<compile_context>
chip_gen: v6e
topology: v6e:2x2x1
jax: 0.10.0
libtpu: 0.0.40
codegen_flags: <defaults>
</compile_context>

<pallas_src>
import functools
import math

import jax
import jax.numpy as jnp
import numpy as np
from jax.experimental import pallas as pl
from jax.experimental.pallas import tpu as pltpu


def _vmem_limit_bytes():
    try:
        cap = int(pltpu.get_tpu_info().vmem_capacity_bytes)
    except Exception:
        cap = 64 * 1024 * 1024
    # leave headroom: ~96 MiB on 128-MiB parts (v5e/v6e), ~48 MiB on v7x.
    return int(min(cap * 3 // 4, 96 * 1024 * 1024))


_VMEM_LIMIT = _vmem_limit_bytes()


def _cparams(n_grid_axes):
    return pltpu.CompilerParams(
        dimension_semantics=("parallel",) * n_grid_axes,
        vmem_limit_bytes=_VMEM_LIMIT,
    )


def _round_up(a, b):
    return ((a + b - 1) // b) * b


def _pick_band(total, target):
    """Largest band size <= target that divides `total` (no ragged bands)."""
    t = max(1, min(target, total))
    while total % t:
        t -= 1
    return t


# ---------------------------------------------------------------------------
# Bilinear (align_corners=True) interpolation tables -- static Python values.
# ---------------------------------------------------------------------------
def _lerp_coeffs(out_size, in_size):
    idx, wgt = [], []
    for o in range(out_size):
        src = 0.0 if out_size == 1 else o * (in_size - 1) / (out_size - 1)
        i0 = min(int(math.floor(src)), in_size - 1)
        i1 = min(i0 + 1, in_size - 1)
        f = src - i0
        idx.append((i0, i1))
        wgt.append((1.0 - f, f))
    return idx, wgt


def _interp_matrix(out_size, in_size):
    idx, wgt = _lerp_coeffs(out_size, in_size)
    m = np.zeros((out_size, in_size), np.float32)
    for o in range(out_size):
        (i0, i1), (w0, w1) = idx[o], wgt[o]
        m[o, i0] += w0
        m[o, i1] += w1
    return jnp.asarray(m)


# ---------------------------------------------------------------------------
# Kernel 1: row-tiled matmul  y = act(x @ w + b)   (1x1 conv + folded BN + act)
# ---------------------------------------------------------------------------
def _mm_bias_act_kernel(x_ref, w_ref, b_ref, o_ref, *, act):
    y = jnp.dot(x_ref[...], w_ref[...], preferred_element_type=jnp.float32)
    y = y + b_ref[...]
    if act == "relu":
        y = jnp.maximum(y, 0.0)
    o_ref[...] = y.astype(o_ref.dtype)


def mm_bias_act(x, w, b, act="none", out_dtype=jnp.bfloat16):
    """act(x @ w + b); bf16 MXU operands, f32 accumulation/epilogue."""
    M, K = x.shape
    N = w.shape[1]
    TM = min(512, _round_up(M, 8))
    grid = (pl.cdiv(M, TM),)
    return pl.pallas_call(
        functools.partial(_mm_bias_act_kernel, act=act),
        out_shape=jax.ShapeDtypeStruct((M, N), out_dtype),
        grid_spec=pltpu.PrefetchScalarGridSpec(
            num_scalar_prefetch=0,
            grid=grid,
            in_specs=[
                pl.BlockSpec((TM, K), lambda i: (i, 0)),
                pl.BlockSpec((K, N), lambda i: (0, 0)),
                pl.BlockSpec((1, N), lambda i: (0, 0)),
            ],
            out_specs=pl.BlockSpec((TM, N), lambda i: (i, 0)),
        ),
        compiler_params=_cparams(1),
    )(x.astype(jnp.bfloat16), w.astype(jnp.bfloat16), b.astype(jnp.float32))


# ---------------------------------------------------------------------------
# Kernel 2: per-image bilinear upsample of NHWC (align_corners=True), row bands.
# H-interp = one bf16 MXU dot per band; W-interp = static 2-tap VPU lerps on
# lane-aligned (channel-multiple-of-128) slices.
# ---------------------------------------------------------------------------
def _resize_nhwc_kernel(x_ref, ah_ref, o_ref, *, out_w, c, idx_w, wgt_w):
    y = jnp.dot(ah_ref[...], x_ref[...], preferred_element_type=jnp.float32)
    for wo in range(out_w):
        (j0, j1), (b0, b1) = idx_w[wo], wgt_w[wo]
        col = b0 * y[:, j0 * c:(j0 + 1) * c] + b1 * y[:, j1 * c:(j1 + 1) * c]
        o_ref[:, wo * c:(wo + 1) * c] = col.astype(o_ref.dtype)


def resize_bilinear_nhwc(x, out_h, out_w, band_target=32):
    n, h, w, c = x.shape
    idx_w, wgt_w = _lerp_coeffs(out_w, w)
    ah = _interp_matrix(out_h, h).astype(jnp.bfloat16)   # (out_h, h)
    tbh = _pick_band(out_h, band_target)
    grid = (n, out_h // tbh)
    out = pl.pallas_call(
        functools.partial(_resize_nhwc_kernel, out_w=out_w, c=c,
                          idx_w=idx_w, wgt_w=wgt_w),
        out_shape=jax.ShapeDtypeStruct((n, out_h, out_w * c), jnp.bfloat16),
        grid_spec=pltpu.PrefetchScalarGridSpec(
            num_scalar_prefetch=0,
            grid=grid,
            in_specs=[
                pl.BlockSpec((None, h, w * c), lambda i, b: (i, 0, 0)),
                pl.BlockSpec((tbh, h), lambda i, b: (b, 0)),
            ],
            out_specs=pl.BlockSpec((None, tbh, out_w * c), lambda i, b: (i, b, 0)),
        ),
        compiler_params=_cparams(2),
    )(x.reshape(n, h, w * c).astype(jnp.bfloat16), ah)
    return out.reshape(n, out_h, out_w, c)


# ---------------------------------------------------------------------------
# Halo-band BlockSpec helpers for the 3x3 convs: body band + 1-row top/bottom
# halo fetched as size-1-row blocks with clamped row index (zero-masked at the
# image border inside the kernel).
# ---------------------------------------------------------------------------
def _band_specs(tb, oh, ow, c):
    body = pl.BlockSpec((None, tb, ow, c), lambda i, b: (i, b, 0, 0))
    top = pl.BlockSpec((None, 1, ow, c),
                       lambda i, b: (i, jnp.maximum(b * tb - 1, 0), 0, 0))
    bot = pl.BlockSpec((None, 1, ow, c),
                       lambda i, b: (i, jnp.minimum((b + 1) * tb, oh - 1), 0, 0))
    return top, body, bot


def _assemble_band(scr, top, body, bot, *, tb, ow, c):
    """Write a (tb+2, ow+2, c) zero-haloed band into VMEM scratch."""
    zcol = jnp.zeros((tb + 2, 1, c), jnp.bfloat16)
    scr[:, 0:1, :] = zcol
    scr[:, ow + 1:ow + 2, :] = zcol
    scr[0:1, 1:ow + 1, :] = top
    scr[1:tb + 1, 1:ow + 1, :] = body
    scr[tb + 1:tb + 2, 1:ow + 1, :] = bot


# ---------------------------------------------------------------------------
# Kernel 3: fused 3x3 conv over the *virtual* concat (x_up | low128) + BN + ReLU,
# row-band tiled.  9 shifted tap dots per input, accumulated in f32.
# ---------------------------------------------------------------------------
def _conv3x3_dual_kernel(xt_ref, xb_ref, xbot_ref, lt_ref, lb_ref, lbot_ref,
                         wx_ref, wl_ref, b_ref, o_ref, scr_x, scr_l, *, tb, ow):
    cx, cl = scr_x.shape[-1], scr_l.shape[-1]
    cout = wx_ref.shape[-1]
    band = pl.program_id(1)
    nb = pl.num_programs(1)

    vxt, vxb = xt_ref[...], xbot_ref[...]
    vlt, vlb = lt_ref[...], lbot_ref[...]
    top_x = jnp.where(band == 0, jnp.zeros_like(vxt), vxt)
    bot_x = jnp.where(band == nb - 1, jnp.zeros_like(vxb), vxb)
    top_l = jnp.where(band == 0, jnp.zeros_like(vlt), vlt)
    bot_l = jnp.where(band == nb - 1, jnp.zeros_like(vlb), vlb)

    _assemble_band(scr_x, top_x, xb_ref[...], bot_x, tb=tb, ow=ow, c=cx)
    _assemble_band(scr_l, top_l, lb_ref[...], bot_l, tb=tb, ow=ow, c=cl)

    acc = None
    for t in range(9):
        dh, dw = divmod(t, 3)
        xs = scr_x[dh:dh + tb, dw:dw + ow, :].reshape(tb * ow, cx)
        ls = scr_l[dh:dh + tb, dw:dw + ow, :].reshape(tb * ow, cl)
        cxp = jnp.dot(xs, wx_ref[t], preferred_element_type=jnp.float32)
        acc = cxp if acc is None else acc + cxp
        acc = acc + jnp.dot(ls, wl_ref[t], preferred_element_type=jnp.float32)
    y = jnp.maximum(acc + b_ref[...], 0.0)
    o_ref[...] = y.reshape(tb, ow, cout).astype(o_ref.dtype)


def conv3x3_dual(x_up, low, wx, wl, b, band_target=32):
    n, oh, ow, cx = x_up.shape
    cl = low.shape[-1]
    cout = wx.shape[-1]
    tb = _pick_band(oh, band_target)
    grid = (n, oh // tb)
    xt, xb, xbt = _band_specs(tb, oh, ow, cx)
    lt, lb, lbt = _band_specs(tb, oh, ow, cl)
    return pl.pallas_call(
        functools.partial(_conv3x3_dual_kernel, tb=tb, ow=ow),
        out_shape=jax.ShapeDtypeStruct((n, oh, ow, cout), jnp.bfloat16),
        grid_spec=pltpu.PrefetchScalarGridSpec(
            num_scalar_prefetch=0,
            grid=grid,
            in_specs=[
                xt, xb, xbt,
                lt, lb, lbt,
                pl.BlockSpec((9, cx, cout), lambda i, b_: (0, 0, 0)),
                pl.BlockSpec((9, cl, cout), lambda i, b_: (0, 0, 0)),
                pl.BlockSpec((1, cout), lambda i, b_: (0, 0)),
            ],
            out_specs=pl.BlockSpec((None, tb, ow, cout), lambda i, b_: (i, b_, 0, 0)),
            scratch_shapes=[
                pltpu.VMEM((tb + 2, ow + 2, cx), jnp.bfloat16),
                pltpu.VMEM((tb + 2, ow + 2, cl), jnp.bfloat16),
            ]),
        compiler_params=_cparams(2),
    )(x_up, x_up, x_up, low, low, low, wx, wl, b)


# ---------------------------------------------------------------------------
# Kernel 4: fused 3x3 conv + BN + ReLU + 1x1 conv (+bias) + sigmoid, row-band
# tiled; lane-dense (rows, W) output so no single-lane masked stores.
# ---------------------------------------------------------------------------
def _conv3x3_head_kernel(ht_ref, hb_ref, hbot_ref, w2_ref, b2_ref, w3_ref,
                         b3_ref, o_ref, scr, *, tb, ow):
    c = scr.shape[-1]
    cout = w2_ref.shape[-1]
    band = pl.program_id(1)
    nb = pl.num_programs(1)

    vt, vb = ht_ref[...], hbot_ref[...]
    top = jnp.where(band == 0, jnp.zeros_like(vt), vt)
    bot = jnp.where(band == nb - 1, jnp.zeros_like(vb), vb)
    _assemble_band(scr, top, hb_ref[...], bot, tb=tb, ow=ow, c=c)

    acc = None
    for t in range(9):
        dh, dw = divmod(t, 3)
        hs = scr[dh:dh + tb, dw:dw + ow, :].reshape(tb * ow, c)
        ct = jnp.dot(hs, w2_ref[t], preferred_element_type=jnp.float32)
        acc = ct if acc is None else acc + ct
    h2 = jnp.maximum(acc + b2_ref[...], 0.0).reshape(tb, ow, cout)

    # 256 -> 1 projection: VPU multiply + cross-lane reduce; result (tb, ow)
    # with W on lanes (lane-dense store).
    logit = jnp.sum(h2 * w3_ref[...], axis=-1) + b3_ref[...]
    z = jnp.exp(-jnp.abs(logit))
    r = 1.0 / (1.0 + z)
    o_ref[...] = jnp.where(logit >= 0.0, r, z * r).astype(o_ref.dtype)


def conv3x3_head(h1, w2, b2, w3, b_out, band_target=32):
    n, oh, ow, c = h1.shape
    cout = w2.shape[-1]
    tb = _pick_band(oh, band_target)
    grid = (n, oh // tb)
    ht, hb, hbt = _band_specs(tb, oh, ow, c)
    return pl.pallas_call(
        functools.partial(_conv3x3_head_kernel, tb=tb, ow=ow),
        out_shape=jax.ShapeDtypeStruct((n, oh, ow), jnp.float32),
        grid_spec=pltpu.PrefetchScalarGridSpec(
            num_scalar_prefetch=0,
            grid=grid,
            in_specs=[
                ht, hb, hbt,
                pl.BlockSpec((9, c, cout), lambda i, b_: (0, 0, 0)),
                pl.BlockSpec((1, cout), lambda i, b_: (0, 0)),
                pl.BlockSpec((1, 1, cout), lambda i, b_: (0, 0, 0)),
                pl.BlockSpec((1, 1), lambda i, b_: (0, 0)),
            ],
            out_specs=pl.BlockSpec((None, tb, ow), lambda i, b_: (i, b_, 0)),
            scratch_shapes=[pltpu.VMEM((tb + 2, ow + 2, c), jnp.bfloat16)]),
        compiler_params=_cparams(2),
    )(h1, h1, h1, w2, b2, w3, b_out)


# ---------------------------------------------------------------------------
# Kernel 5: final bilinear upsample of the 1-channel map, lane-dense output
# (lanes = output width), two small dots per image.
# ---------------------------------------------------------------------------
def _resize2d_kernel(s_ref, ah_ref, awt_ref, o_ref):
    t = jnp.dot(ah_ref[...], s_ref[...], preferred_element_type=jnp.float32)
    o_ref[...] = jnp.dot(t, awt_ref[...],
                         preferred_element_type=jnp.float32).astype(o_ref.dtype)


def resize_bilinear_2d(s, out_h, out_w):
    n, h, w = s.shape
    ah = _interp_matrix(out_h, h)      # (out_h, h)
    awt = _interp_matrix(out_w, w).T   # (w, out_w)
    return pl.pallas_call(
        _resize2d_kernel,
        out_shape=jax.ShapeDtypeStruct((n, out_h, out_w), jnp.float32),
        grid_spec=pltpu.PrefetchScalarGridSpec(
            num_scalar_prefetch=0,
            grid=(n,),
            in_specs=[
                pl.BlockSpec((None, h, w), lambda i: (i, 0, 0)),
                pl.BlockSpec((out_h, h), lambda i: (0, 0)),
                pl.BlockSpec((w, out_w), lambda i: (0, 0)),
            ],
            out_specs=pl.BlockSpec((None, out_h, out_w), lambda i: (i, 0, 0)),
        ),
        compiler_params=_cparams(1),
    )(s, ah, awt)


# ---------------------------------------------------------------------------
# Parameters (deterministic kaiming-normal init, PyTorch conventions) + prep.
# ---------------------------------------------------------------------------
def init_decoder_params(key):
    ks = jax.random.split(key, 5)

    def kaiming(k, cout, cin, kh, kw):
        std = math.sqrt(2.0 / (cin * kh * kw))
        return jax.random.normal(k, (cout, cin, kh, kw), jnp.float32) * std

    p = {}
    p["conv1_w"] = kaiming(ks[0], 48, 256, 1, 1)
    p["lc1_w"] = kaiming(ks[1], 256, 304, 3, 3)
    p["lc2_w"] = kaiming(ks[2], 256, 256, 3, 3)
    p["lc3_w"] = kaiming(ks[3], 1, 256, 1, 1)
    bound = 1.0 / math.sqrt(256.0)
    p["lc3_b"] = jax.random.uniform(ks[4], (1,), jnp.float32, -bound, bound)
    for name, c in [("bn1", 48), ("bn2", 256), ("bn3", 256)]:
        p[name] = dict(
            gamma=jnp.ones((c,), jnp.float32),
            beta=jnp.zeros((c,), jnp.float32),
            mean=jnp.zeros((c,), jnp.float32),
            var=jnp.ones((c,), jnp.float32),
        )
    return p


def prepare_params(p, eps=1e-5):
    """One-time prep: fold BN scales into conv weights, pre-transpose to matmul
    layout, pad the 48-channel low-level projection to 128 lanes, cast MXU
    operands to bf16."""

    def fold(bn):
        s = bn["gamma"] / jnp.sqrt(bn["var"] + eps)
        return s, bn["beta"] - bn["mean"] * s

    s1, b1 = fold(p["bn1"])
    s2, b2 = fold(p["bn2"])
    s3, b3 = fold(p["bn3"])

    prep = {}
    # conv1: (48,256,1,1) -> (256,48) with BN1 folded, zero-padded to 128 cols.
    w1m = p["conv1_w"].reshape(48, 256).T * s1[None, :]           # (256, 48)
    prep["w1"] = jnp.zeros((256, 128), jnp.float32).at[:, :48].set(w1m).astype(jnp.bfloat16)
    prep["b1"] = jnp.zeros((1, 128), jnp.float32).at[:, :48].set(b1[None, :])
    # last_conv[0]: (256,304,3,3) -> per-tap (Cin,Cout), split at the concat
    # seam; low-path K padded 48 -> 128 with zero rows (matches padded conv1).
    lc1 = jnp.transpose(p["lc1_w"], (2, 3, 1, 0)) * s2[None, None, None, :]
    prep["wx"] = lc1[:, :, :256, :].reshape(9, 256, 256).astype(jnp.bfloat16)
    wl48 = lc1[:, :, 256:, :].reshape(9, 48, 256)
    prep["wl"] = jnp.zeros((9, 128, 256), jnp.float32).at[:, :48, :].set(wl48).astype(jnp.bfloat16)
    prep["b2"] = b2.reshape(1, 256).astype(jnp.float32)
    # last_conv[4]: (256,256,3,3) -> per-tap (Cin,Cout), BN3 folded
    lc2 = jnp.transpose(p["lc2_w"], (2, 3, 1, 0)) * s3[None, None, None, :]
    prep["w2"] = lc2.reshape(9, 256, 256).astype(jnp.bfloat16)
    prep["b3"] = b3.reshape(1, 256).astype(jnp.float32)
    # last_conv[8]: 1x1 conv with bias, kept in f32 (VPU reduce + bias)
    prep["w3"] = p["lc3_w"].reshape(1, 1, 256).astype(jnp.float32)
    prep["b_out"] = p["lc3_b"].reshape(1, 1).astype(jnp.float32)
    return prep


# ---------------------------------------------------------------------------
# Decoder forward (NCHW in / NCHW out, matching the PyTorch module).
# ---------------------------------------------------------------------------
@functools.partial(jax.jit, static_argnames=("image_size",))
def decoder_forward(prep, x_nchw, low_nchw, image_size):
    n, cl_in, lh, lw = low_nchw.shape

    # conv1 (1x1, no bias) + folded bn1 + relu on the low-level feature;
    # output lane-dense 128 channels (48 real + 80 exact zeros).
    low = jnp.transpose(low_nchw, (0, 2, 3, 1)).reshape(n * lh * lw, cl_in)
    low128 = mm_bias_act(low, prep["w1"], prep["b1"], act="relu")
    low128 = low128.reshape(n, lh, lw, 128)

    # bilinear upsample (align_corners=True) of the ASPP feature to (lh, lw)
    x = jnp.transpose(x_nchw, (0, 2, 3, 1)).astype(jnp.bfloat16)   # NHWC bf16
    x_up = resize_bilinear_nhwc(x, lh, lw)                         # (n,lh,lw,256)

    # last_conv[0:4]: 3x3 conv over the virtual concat (x_up | low) + bn2 + relu
    # (Dropout(0.5) is identity at inference).  Halo handled in-kernel.
    h1 = conv3x3_dual(x_up, low128, prep["wx"], prep["wl"], prep["b2"])

    # last_conv[4:9] + sigmoid: 3x3 conv + bn3 + relu (+Dropout(0.1) identity)
    # fused with the final 1x1 conv (+bias) and the sigmoid; lane-dense output.
    s = conv3x3_head(h1, prep["w2"], prep["b3"], prep["w3"], prep["b_out"])

    # final bilinear upsample to image_size (sigmoid before resize, as in torch)
    y = resize_bilinear_2d(s, image_size[0], image_size[1])
    return y[:, None, :, :]                                        # (n,1,H,W)


if __name__ == "__main__":
    key = jax.random.PRNGKey(0)
    kp, kx, kl = jax.random.split(key, 3)
    params = init_decoder_params(kp)
    prep = prepare_params(params)

    # Small shapes consistent with the module: x has 256 ch (304 = 256 + 48).
    x = jax.random.normal(kx, (2, 256, 4, 4), jnp.float32)            # ASPP feature
    low_level_feat = jax.random.normal(kl, (2, 256, 8, 8), jnp.float32)
    image_size = (16, 16)

    out = decoder_forward(prep, x, low_level_feat, image_size=image_size)
    out = jax.block_until_ready(out)

    assert out.shape == (2, 1, 16, 16), out.shape
    assert bool(jnp.all(jnp.isfinite(out)))
    assert bool(jnp.all((out >= 0.0) & (out <= 1.0)))
    print("KERNEL_OK")
</pallas_src>

<mosaic_0001>
module attributes {stable_mosaic.version = 11 : i64} {
  func.func @_resize_nhwc_kernel(%arg0: i32, %arg1: i32, %arg2: memref<1x4x1024xbf16, #tpu.memory_space<vmem>>, %arg3: memref<8x4xbf16, #tpu.memory_space<vmem>>, %arg4: memref<1x8x2048xbf16, #tpu.memory_space<vmem>>) attributes {dimension_semantics = [#tpu.dimension_semantics<parallel>, #tpu.dimension_semantics<parallel>], iteration_bounds = array<i64: 2, 1>, scalar_prefetch = 0 : i64, scratch_operands = 0 : i64, tpu.core_type = #tpu.core_type<tc>, window_params = [{transform_indices = @transform_0, window_bounds = array<i64: 1, 4, 1024>}, {transform_indices = @transform_1, window_bounds = array<i64: 8, 4>}, {transform_indices = @transform_2, window_bounds = array<i64: 1, 8, 2048>}]} {
    %c0 = arith.constant 0 : index
    %c0_0 = arith.constant 0 : index
    %0 = vector.load %arg3[%c0, %c0_0] : memref<8x4xbf16, #tpu.memory_space<vmem>>, vector<8x4xbf16>
    %c0_1 = arith.constant 0 : index
    %c0_2 = arith.constant 0 : index
    %c0_3 = arith.constant 0 : index
    %1 = vector.load %arg2[%c0_1, %c0_2, %c0_3] : memref<1x4x1024xbf16, #tpu.memory_space<vmem>>, vector<1x4x1024xbf16>
    %2 = vector.shape_cast %1 : vector<1x4x1024xbf16> to vector<4x1024xbf16>
    %cst = arith.constant dense<0.000000e+00> : vector<8x1024xf32>
    %3 = tpu.matmul %0, %2, %cst {dimension_numbers = #tpu.dot_dimension_numbers<[1], [0], [0], [1], [0, 0, 1, 1], [], []>} : vector<8x4xbf16>, vector<4x1024xbf16>, vector<8x1024xf32> -> vector<8x1024xf32>
    %4 = vector.extract_strided_slice %3 {offsets = [0, 0], sizes = [8, 256], strides = [1, 1]} : vector<8x1024xf32> to vector<8x256xf32>
    %cst_4 = arith.constant 1.000000e+00 : f32
    %5 = vector.broadcast %cst_4 : f32 to vector<8x256xf32>
    %6 = arith.mulf %5, %4 : vector<8x256xf32>
    %7 = vector.extract_strided_slice %3 {offsets = [0, 256], sizes = [8, 256], strides = [1, 1]} : vector<8x1024xf32> to vector<8x256xf32>
    %cst_5 = arith.constant 0.000000e+00 : f32
    %8 = vector.broadcast %cst_5 : f32 to vector<8x256xf32>
    %9 = arith.mulf %8, %7 : vector<8x256xf32>
    %10 = arith.addf %6, %9 : vector<8x256xf32>
    %11 = arith.truncf %10 : vector<8x256xf32> to vector<8x256xbf16>
    %c0_6 = arith.constant 0 : index
    %c0_7 = arith.constant 0 : index
    %c0_8 = arith.constant 0 : index
    %12 = vector.load %arg4[%c0_6, %c0_7, %c0_8] : memref<1x8x2048xbf16, #tpu.memory_space<vmem>>, vector<1x8x256xbf16>
    %13 = vector.shape_cast %12 : vector<1x8x256xbf16> to vector<8x256xbf16>
    %14 = vector.shape_cast %11 : vector<8x256xbf16> to vector<1x8x256xbf16>
    tpu.vector_store %arg4[%c0_6, %c0_7, %c0_8], %14 {strides = array<i32>} : memref<1x8x2048xbf16, #tpu.memory_space<vmem>>, vector<1x8x256xbf16>,
    %15 = vector.extract_strided_slice %3 {offsets = [0, 0], sizes = [8, 256], strides = [1, 1]} : vector<8x1024xf32> to vector<8x256xf32>
    %cst_9 = arith.constant 0.571428597 : f32
    %16 = vector.broadcast %cst_9 : f32 to vector<8x256xf32>
    %17 = arith.mulf %16, %15 : vector<8x256xf32>
    %18 = vector.extract_strided_slice %3 {offsets = [0, 256], sizes = [8, 256], strides = [1, 1]} : vector<8x1024xf32> to vector<8x256xf32>
    %cst_10 = arith.constant 0.428571433 : f32
    %19 = vector.broadcast %cst_10 : f32 to vector<8x256xf32>
    %20 = arith.mulf %19, %18 : vector<8x256xf32>
    %21 = arith.addf %17, %20 : vector<8x256xf32>
    %22 = arith.truncf %21 : vector<8x256xf32> to vector<8x256xbf16>
    %c0_11 = arith.constant 0 : index
    %c0_12 = arith.constant 0 : index
    %c256 = arith.constant 256 : index
    %23 = vector.load %arg4[%c0_11, %c0_12, %c256] : memref<1x8x2048xbf16, #tpu.memory_space<vmem>>, vector<1x8x256xbf16>
    %24 = vector.shape_cast %23 : vector<1x8x256xbf16> to vector<8x256xbf16>
    %25 = vector.shape_cast %22 : vector<8x256xbf16> to vector<1x8x256xbf16>
    tpu.vector_store %arg4[%c0_11, %c0_12, %c256], %25 {strides = array<i32>} : memref<1x8x2048xbf16, #tpu.memory_space<vmem>>, vector<1x8x256xbf16>,
    %26 = vector.extract_strided_slice %3 {offsets = [0, 0], sizes = [8, 256], strides = [1, 1]} : vector<8x1024xf32> to vector<8x256xf32>
    %cst_13 = arith.constant 0.142857149 : f32
    %27 = vector.broadcast %cst_13 : f32 to vector<8x256xf32>
    %28 = arith.mulf %27, %26 : vector<8x256xf32>
    %29 = vector.extract_strided_slice %3 {offsets = [0, 256], sizes = [8, 256], strides = [1, 1]} : vector<8x1024xf32> to vector<8x256xf32>
    %cst_14 = arith.constant 0.857142865 : f32
    %30 = vector.broadcast %cst_14 : f32 to vector<8x256xf32>
    %31 = arith.mulf %30, %29 : vector<8x256xf32>
    %32 = arith.addf %28, %31 : vector<8x256xf32>
    %33 = arith.truncf %32 : vector<8x256xf32> to vector<8x256xbf16>
    %c0_15 = arith.constant 0 : index
    %c0_16 = arith.constant 0 : index
    %c512 = arith.constant 512 : index
    %34 = vector.load %arg4[%c0_15, %c0_16, %c512] : memref<1x8x2048xbf16, #tpu.memory_space<vmem>>, vector<1x8x256xbf16>
    %35 = vector.shape_cast %34 : vector<1x8x256xbf16> to vector<8x256xbf16>
    %36 = vector.shape_cast %33 : vector<8x256xbf16> to vector<1x8x256xbf16>
    tpu.vector_store %arg4[%c0_15, %c0_16, %c512], %36 {strides = array<i32>} : memref<1x8x2048xbf16, #tpu.memory_space<vmem>>, vector<1x8x256xbf16>,
    %37 = vector.extract_strided_slice %3 {offsets = [0, 256], sizes = [8, 256], strides = [1, 1]} : vector<8x1024xf32> to vector<8x256xf32>
    %cst_17 = arith.constant 0.714285731 : f32
    %38 = vector.broadcast %cst_17 : f32 to vector<8x256xf32>
    %39 = arith.mulf %38, %37 : vector<8x256xf32>
    %40 = vector.extract_strided_slice %3 {offsets = [0, 512], sizes = [8, 256], strides = [1, 1]} : vector<8x1024xf32> to vector<8x256xf32>
    %cst_18 = arith.constant 0.285714298 : f32
    %41 = vector.broadcast %cst_18 : f32 to vector<8x256xf32>
    %42 = arith.mulf %41, %40 : vector<8x256xf32>
    %43 = arith.addf %39, %42 : vector<8x256xf32>
    %44 = arith.truncf %43 : vector<8x256xf32> to vector<8x256xbf16>
    %c0_19 = arith.constant 0 : index
    %c0_20 = arith.constant 0 : index
    %c768 = arith.constant 768 : index
    %45 = vector.load %arg4[%c0_19, %c0_20, %c768] : memref<1x8x2048xbf16, #tpu.memory_space<vmem>>, vector<1x8x256xbf16>
    %46 = vector.shape_cast %45 : vector<1x8x256xbf16> to vector<8x256xbf16>
    %47 = vector.shape_cast %44 : vector<8x256xbf16> to vector<1x8x256xbf16>
    tpu.vector_store %arg4[%c0_19, %c0_20, %c768], %47 {strides = array<i32>} : memref<1x8x2048xbf16, #tpu.memory_space<vmem>>, vector<1x8x256xbf16>,
    %48 = vector.extract_strided_slice %3 {offsets = [0, 256], sizes = [8, 256], strides = [1, 1]} : vector<8x1024xf32> to vector<8x256xf32>
    %cst_21 = arith.constant 0.285714298 : f32
    %49 = vector.broadcast %cst_21 : f32 to vector<8x256xf32>
    %50 = arith.mulf %49, %48 : vector<8x256xf32>
    %51 = vector.extract_strided_slice %3 {offsets = [0, 512], sizes = [8, 256], strides = [1, 1]} : vector<8x1024xf32> to vector<8x256xf32>
    %cst_22 = arith.constant 0.714285731 : f32
    %52 = vector.broadcast %cst_22 : f32 to vector<8x256xf32>
    %53 = arith.mulf %52, %51 : vector<8x256xf32>
    %54 = arith.addf %50, %53 : vector<8x256xf32>
    %55 = arith.truncf %54 : vector<8x256xf32> to vector<8x256xbf16>
    %c0_23 = arith.constant 0 : index
    %c0_24 = arith.constant 0 : index
    %c1024 = arith.constant 1024 : index
    %56 = vector.load %arg4[%c0_23, %c0_24, %c1024] : memref<1x8x2048xbf16, #tpu.memory_space<vmem>>, vector<1x8x256xbf16>
    %57 = vector.shape_cast %56 : vector<1x8x256xbf16> to vector<8x256xbf16>
    %58 = vector.shape_cast %55 : vector<8x256xbf16> to vector<1x8x256xbf16>
    tpu.vector_store %arg4[%c0_23, %c0_24, %c1024], %58 {strides = array<i32>} : memref<1x8x2048xbf16, #tpu.memory_space<vmem>>, vector<1x8x256xbf16>,
    %59 = vector.extract_strided_slice %3 {offsets = [0, 512], sizes = [8, 256], strides = [1, 1]} : vector<8x1024xf32> to vector<8x256xf32>
    %cst_25 = arith.constant 0.857142865 : f32
    %60 = vector.broadcast %cst_25 : f32 to vector<8x256xf32>
    %61 = arith.mulf %60, %59 : vector<8x256xf32>
    %62 = vector.extract_strided_slice %3 {offsets = [0, 768], sizes = [8, 256], strides = [1, 1]} : vector<8x1024xf32> to vector<8x256xf32>
    %cst_26 = arith.constant 0.142857149 : f32
    %63 = vector.broadcast %cst_26 : f32 to vector<8x256xf32>
    %64 = arith.mulf %63, %62 : vector<8x256xf32>
    %65 = arith.addf %61, %64 : vector<8x256xf32>
    %66 = arith.truncf %65 : vector<8x256xf32> to vector<8x256xbf16>
    %c0_27 = arith.constant 0 : index
    %c0_28 = arith.constant 0 : index
    %c1280 = arith.constant 1280 : index
    %67 = vector.load %arg4[%c0_27, %c0_28, %c1280] : memref<1x8x2048xbf16, #tpu.memory_space<vmem>>, vector<1x8x256xbf16>
    %68 = vector.shape_cast %67 : vector<1x8x256xbf16> to vector<8x256xbf16>
    %69 = vector.shape_cast %66 : vector<8x256xbf16> to vector<1x8x256xbf16>
    tpu.vector_store %arg4[%c0_27, %c0_28, %c1280], %69 {strides = array<i32>} : memref<1x8x2048xbf16, #tpu.memory_space<vmem>>, vector<1x8x256xbf16>,
    %70 = vector.extract_strided_slice %3 {offsets = [0, 512], sizes = [8, 256], strides = [1, 1]} : vector<8x1024xf32> to vector<8x256xf32>
    %cst_29 = arith.constant 0.428571433 : f32
    %71 = vector.broadcast %cst_29 : f32 to vector<8x256xf32>
    %72 = arith.mulf %71, %70 : vector<8x256xf32>
    %73 = vector.extract_strided_slice %3 {offsets = [0, 768], sizes = [8, 256], strides = [1, 1]} : vector<8x1024xf32> to vector<8x256xf32>
    %cst_30 = arith.constant 0.571428597 : f32
    %74 = vector.broadcast %cst_30 : f32 to vector<8x256xf32>
    %75 = arith.mulf %74, %73 : vector<8x256xf32>
    %76 = arith.addf %72, %75 : vector<8x256xf32>
    %77 = arith.truncf %76 : vector<8x256xf32> to vector<8x256xbf16>
    %c0_31 = arith.constant 0 : index
    %c0_32 = arith.constant 0 : index
    %c1536 = arith.constant 1536 : index
    %78 = vector.load %arg4[%c0_31, %c0_32, %c1536] : memref<1x8x2048xbf16, #tpu.memory_space<vmem>>, vector<1x8x256xbf16>
    %79 = vector.shape_cast %78 : vector<1x8x256xbf16> to vector<8x256xbf16>
    %80 = vector.shape_cast %77 : vector<8x256xbf16> to vector<1x8x256xbf16>
    tpu.vector_store %arg4[%c0_31, %c0_32, %c1536], %80 {strides = array<i32>} : memref<1x8x2048xbf16, #tpu.memory_space<vmem>>, vector<1x8x256xbf16>,
    %81 = vector.extract_strided_slice %3 {offsets = [0, 768], sizes = [8, 256], strides = [1, 1]} : vector<8x1024xf32> to vector<8x256xf32>
    %cst_33 = arith.constant 1.000000e+00 : f32
    %82 = vector.broadcast %cst_33 : f32 to vector<8x256xf32>
    %83 = arith.mulf %82, %81 : vector<8x256xf32>
    %84 = vector.extract_strided_slice %3 {offsets = [0, 768], sizes = [8, 256], strides = [1, 1]} : vector<8x1024xf32> to vector<8x256xf32>
    %cst_34 = arith.constant 0.000000e+00 : f32
    %85 = vector.broadcast %cst_34 : f32 to vector<8x256xf32>
    %86 = arith.mulf %85, %84 : vector<8x256xf32>
    %87 = arith.addf %83, %86 : vector<8x256xf32>
    %88 = arith.truncf %87 : vector<8x256xf32> to vector<8x256xbf16>
    %c0_35 = arith.constant 0 : index
    %c0_36 = arith.constant 0 : index
    %c1792 = arith.constant 1792 : index
    %89 = vector.load %arg4[%c0_35, %c0_36, %c1792] : memref<1x8x2048xbf16, #tpu.memory_space<vmem>>, vector<1x8x256xbf16>
    %90 = vector.shape_cast %89 : vector<1x8x256xbf16> to vector<8x256xbf16>
    %91 = vector.shape_cast %88 : vector<8x256xbf16> to vector<1x8x256xbf16>
    tpu.vector_store %arg4[%c0_35, %c0_36, %c1792], %91 {strides = array<i32>} : memref<1x8x2048xbf16, #tpu.memory_space<vmem>>, vector<1x8x256xbf16>,
    return
  }
  func.func @transform_0(%arg0: i32, %arg1: i32) -> (i32, i32, i32) {
    %c0_i32 = arith.constant 0 : i32
    %c0_i32_0 = arith.constant 0 : i32
    %c0_i32_1 = arith.constant 0 : i32
    return %arg0, %c0_i32, %c0_i32_0 : i32, i32, i32
  }
  func.func @transform_1(%arg0: i32, %arg1: i32) -> (i32, i32) {
    %c0_i32 = arith.constant 0 : i32
    %c0_i32_0 = arith.constant 0 : i32
    return %arg1, %c0_i32 : i32, i32
  }
  func.func @transform_2(%arg0: i32, %arg1: i32) -> (i32, i32, i32) {
    %c0_i32 = arith.constant 0 : i32
    %c0_i32_0 = arith.constant 0 : i32
    return %arg0, %arg1, %c0_i32 : i32, i32, i32
  }
}

module attributes {stable_mosaic.version = 11 : i64} {
  func.func @_mm_bias_act_kernel(%arg0: i32, %arg1: memref<128x256xbf16, #tpu.memory_space<vmem>>, %arg2: memref<256x128xbf16, #tpu.memory_space<vmem>>, %arg3: memref<1x128xf32, #tpu.memory_space<vmem>>, %arg4: memref<128x128xbf16, #tpu.memory_space<vmem>>) attributes {dimension_semantics = [#tpu.dimension_semantics<parallel>], iteration_bounds = array<i64: 1>, scalar_prefetch = 0 : i64, scratch_operands = 0 : i64, tpu.core_type = #tpu.core_type<tc>, window_params = [{transform_indices = @transform_0, window_bounds = array<i64: 128, 256>}, {pipeline_mode = #tpu.pipeline_mode<synchronous>, transform_indices = @transform_1, window_bounds = array<i64: 256, 128>}, {pipeline_mode = #tpu.pipeline_mode<synchronous>, transform_indices = @transform_2, window_bounds = array<i64: 1, 128>}, {transform_indices = @transform_3, window_bounds = array<i64: 128, 128>}]} {
    %c0 = arith.constant 0 : index
    %c0_0 = arith.constant 0 : index
    %0 = vector.load %arg1[%c0, %c0_0] : memref<128x256xbf16, #tpu.memory_space<vmem>>, vector<128x256xbf16>
    %c0_1 = arith.constant 0 : index
    %c0_2 = arith.constant 0 : index
    %1 = vector.load %arg2[%c0_1, %c0_2] : memref<256x128xbf16, #tpu.memory_space<vmem>>, vector<256x128xbf16>
    %cst = arith.constant dense<0.000000e+00> : vector<128x128xf32>
    %2 = tpu.matmul %0, %1, %cst {dimension_numbers = #tpu.dot_dimension_numbers<[1], [0], [0], [1], [0, 0, 1, 1], [], []>} : vector<128x256xbf16>, vector<256x128xbf16>, vector<128x128xf32> -> vector<128x128xf32>
    %c0_3 = arith.constant 0 : index
    %c0_4 = arith.constant 0 : index
    %3 = vector.load %arg3[%c0_3, %c0_4] : memref<1x128xf32, #tpu.memory_space<vmem>>, vector<1x128xf32>
    %4 = vector.broadcast %3 : vector<1x128xf32> to vector<128x128xf32>
    %5 = arith.addf %2, %4 : vector<128x128xf32>
    %cst_5 = arith.constant 0.000000e+00 : f32
    %6 = vector.broadcast %cst_5 : f32 to vector<128x128xf32>
    %7 = arith.maximumf %5, %6 : vector<128x128xf32>
    %8 = arith.truncf %7 : vector<128x128xf32> to vector<128x128xbf16>
    %c0_6 = arith.constant 0 : index
    %c0_7 = arith.constant 0 : index
    %9 = vector.load %arg4[%c0_6, %c0_7] : memref<128x128xbf16, #tpu.memory_space<vmem>>, vector<128x128xbf16>
    tpu.vector_store %arg4[%c0_6, %c0_7], %8 {strides = array<i32>} : memref<128x128xbf16, #tpu.memory_space<vmem>>, vector<128x128xbf16>,
    return
  }
  func.func @transform_0(%arg0: i32) -> (i32, i32) {
    %c0_i32 = arith.constant 0 : i32
    %c0_i32_0 = arith.constant 0 : i32
    return %arg0, %c0_i32 : i32, i32
  }
  func.func @transform_1(%arg0: i32) -> (i32, i32) {
    %c0_i32 = arith.constant 0 : i32
    %c0_i32_0 = arith.constant 0 : i32
    %c0_i32_1 = arith.constant 0 : i32
    return %c0_i32, %c0_i32_0 : i32, i32
  }
  func.func @transform_2(%arg0: i32) -> (i32, i32) {
    %c0_i32 = arith.constant 0 : i32
    %c0_i32_0 = arith.constant 0 : i32
    %c0_i32_1 = arith.constant 0 : i32
    return %c0_i32, %c0_i32_0 : i32, i32
  }
  func.func @transform_3(%arg0: i32) -> (i32, i32) {
    %c0_i32 = arith.constant 0 : i32
    %c0_i32_0 = arith.constant 0 : i32
    return %arg0, %c0_i32 : i32, i32
  }
}

module attributes {stable_mosaic.version = 11 : i64} {
  func.func @_conv3x3_dual_kernel(%arg0: i32, %arg1: i32, %arg2: memref<1x1x8x256xbf16, #tpu.memory_space<vmem>>, %arg3: memref<1x8x8x256xbf16, #tpu.memory_space<vmem>>, %arg4: memref<1x1x8x256xbf16, #tpu.memory_space<vmem>>, %arg5: memref<1x1x8x128xbf16, #tpu.memory_space<vmem>>, %arg6: memref<1x8x8x128xbf16, #tpu.memory_space<vmem>>, %arg7: memref<1x1x8x128xbf16, #tpu.memory_space<vmem>>, %arg8: memref<9x256x256xbf16, #tpu.memory_space<vmem>>, %arg9: memref<9x128x256xbf16, #tpu.memory_space<vmem>>, %arg10: memref<1x256xf32, #tpu.memory_space<vmem>>, %arg11: memref<1x8x8x256xbf16, #tpu.memory_space<vmem>>, %arg12: memref<10x10x256xbf16, #tpu.memory_space<vmem>>, %arg13: memref<10x10x128xbf16, #tpu.memory_space<vmem>>) attributes {dimension_semantics = [#tpu.dimension_semantics<parallel>, #tpu.dimension_semantics<parallel>], iteration_bounds = array<i64: 2, 1>, scalar_prefetch = 0 : i64, scratch_operands = 2 : i64, tpu.core_type = #tpu.core_type<tc>, window_params = [{transform_indices = @transform_0, window_bounds = array<i64: 1, 1, 8, 256>}, {transform_indices = @transform_1, window_bounds = array<i64: 1, 8, 8, 256>}, {transform_indices = @transform_2, window_bounds = array<i64: 1, 1, 8, 256>}, {transform_indices = @transform_3, window_bounds = array<i64: 1, 1, 8, 128>}, {transform_indices = @transform_4, window_bounds = array<i64: 1, 8, 8, 128>}, {transform_indices = @transform_5, window_bounds = array<i64: 1, 1, 8, 128>}, {pipeline_mode = #tpu.pipeline_mode<synchronous>, transform_indices = @transform_6, window_bounds = array<i64: 9, 256, 256>}, {pipeline_mode = #tpu.pipeline_mode<synchronous>, transform_indices = @transform_7, window_bounds = array<i64: 9, 128, 256>}, {pipeline_mode = #tpu.pipeline_mode<synchronous>, transform_indices = @transform_8, window_bounds = array<i64: 1, 256>}, {transform_indices = @transform_9, window_bounds = array<i64: 1, 8, 8, 256>}]} {
    %c0 = arith.constant 0 : index
    %c0_0 = arith.constant 0 : index
    %c0_1 = arith.constant 0 : index
    %c0_2 = arith.constant 0 : index
    %0 = vector.load %arg2[%c0, %c0_0, %c0_1, %c0_2] : memref<1x1x8x256xbf16, #tpu.memory_space<vmem>>, vector<1x1x8x256xbf16>
    %1 = vector.shape_cast %0 : vector<1x1x8x256xbf16> to vector<1x8x256xbf16>
    %c0_3 = arith.constant 0 : index
    %c0_4 = arith.constant 0 : index
    %c0_5 = arith.constant 0 : index
    %c0_6 = arith.constant 0 : index
    %2 = vector.load %arg4[%c0_3, %c0_4, %c0_5, %c0_6] : memref<1x1x8x256xbf16, #tpu.memory_space<vmem>>, vector<1x1x8x256xbf16>
    %3 = vector.shape_cast %2 : vector<1x1x8x256xbf16> to vector<1x8x256xbf16>
    %c0_7 = arith.constant 0 : index
    %c0_8 = arith.constant 0 : index
    %c0_9 = arith.constant 0 : index
    %c0_10 = arith.constant 0 : index
    %4 = vector.load %arg5[%c0_7, %c0_8, %c0_9, %c0_10] : memref<1x1x8x128xbf16, #tpu.memory_space<vmem>>, vector<1x1x8x128xbf16>
    %5 = vector.shape_cast %4 : vector<1x1x8x128xbf16> to vector<1x8x128xbf16>
    %c0_11 = arith.constant 0 : index
    %c0_12 = arith.constant 0 : index
    %c0_13 = arith.constant 0 : index
    %c0_14 = arith.constant 0 : index
    %6 = vector.load %arg7[%c0_11, %c0_12, %c0_13, %c0_14] : memref<1x1x8x128xbf16, #tpu.memory_space<vmem>>, vector<1x1x8x128xbf16>
    %7 = vector.shape_cast %6 : vector<1x1x8x128xbf16> to vector<1x8x128xbf16>
    %c0_i32 = arith.constant 0 : i32
    %8 = arith.cmpi eq, %arg1, %c0_i32 : i32
    %cst = arith.constant 0.000000e+00 : bf16
    %9 = vector.broadcast %cst : bf16 to vector<1x8x256xbf16>
    %10 = arith.select %8, %9, %1 : vector<1x8x256xbf16>
    %c0_i32_15 = arith.constant 0 : i32
    %11 = arith.cmpi eq, %arg1, %c0_i32_15 : i32
    %cst_16 = arith.constant 0.000000e+00 : bf16
    %12 = vector.broadcast %cst_16 : bf16 to vector<1x8x256xbf16>
    %13 = arith.select %11, %12, %3 : vector<1x8x256xbf16>
    %c0_i32_17 = arith.constant 0 : i32
    %14 = arith.cmpi eq, %arg1, %c0_i32_17 : i32
    %cst_18 = arith.constant 0.000000e+00 : bf16
    %15 = vector.broadcast %cst_18 : bf16 to vector<1x8x128xbf16>
    %16 = arith.select %14, %15, %5 : vector<1x8x128xbf16>
    %c0_i32_19 = arith.constant 0 : i32
    %17 = arith.cmpi eq, %arg1, %c0_i32_19 : i32
    %cst_20 = arith.constant 0.000000e+00 : bf16
    %18 = vector.broadcast %cst_20 : bf16 to vector<1x8x128xbf16>
    %19 = arith.select %17, %18, %7 : vector<1x8x128xbf16>
    %c0_21 = arith.constant 0 : index
    %c0_22 = arith.constant 0 : index
    %c0_23 = arith.constant 0 : index
    %c0_24 = arith.constant 0 : index
    %20 = vector.load %arg3[%c0_21, %c0_22, %c0_23, %c0_24] : memref<1x8x8x256xbf16, #tpu.memory_space<vmem>>, vector<1x8x8x256xbf16>
    %21 = vector.shape_cast %20 : vector<1x8x8x256xbf16> to vector<8x8x256xbf16>
    %cst_25 = arith.constant 0.000000e+00 : bf16
    %22 = vector.broadcast %cst_25 : bf16 to vector<10x1x256xbf16>
    %c0_26 = arith.constant 0 : index
    %c0_27 = arith.constant 0 : index
    %c0_28 = arith.constant 0 : index
    %23 = vector.load %arg12[%c0_26, %c0_27, %c0_28] : memref<10x10x256xbf16, #tpu.memory_space<vmem>>, vector<10x1x256xbf16>
    tpu.vector_store %arg12[%c0_26, %c0_27, %c0_28], %22 {strides = array<i32>} : memref<10x10x256xbf16, #tpu.memory_space<vmem>>, vector<10x1x256xbf16>,
    %c0_29 = arith.constant 0 : index
    %c9 = arith.constant 9 : index
    %c0_30 = arith.constant 0 : index
    %24 = vector.load %arg12[%c0_29, %c9, %c0_30] : memref<10x10x256xbf16, #tpu.memory_space<vmem>>, vector<10x1x256xbf16>
    tpu.vector_store %arg12[%c0_29, %c9, %c0_30], %22 {strides = array<i32>} : memref<10x10x256xbf16, #tpu.memory_space<vmem>>, vector<10x1x256xbf16>,
    %c0_31 = arith.constant 0 : index
    %c1 = arith.constant 1 : index
    %c0_32 = arith.constant 0 : index
    %25 = vector.load %arg12[%c0_31, %c1, %c0_32] : memref<10x10x256xbf16, #tpu.memory_space<vmem>>, vector<1x8x256xbf16>
    tpu.vector_store %arg12[%c0_31, %c1, %c0_32], %10 {strides = array<i32>} : memref<10x10x256xbf16, #tpu.memory_space<vmem>>, vector<1x8x256xbf16>,
    %c1_33 = arith.constant 1 : index
    %c1_34 = arith.constant 1 : index
    %c0_35 = arith.constant 0 : index
    %26 = vector.load %arg12[%c1_33, %c1_34, %c0_35] : memref<10x10x256xbf16, #tpu.memory_space<vmem>>, vector<8x8x256xbf16>
    tpu.vector_store %arg12[%c1_33, %c1_34, %c0_35], %21 {strides = array<i32>} : memref<10x10x256xbf16, #tpu.memory_space<vmem>>, vector<8x8x256xbf16>,
    %c9_36 = arith.constant 9 : index
    %c1_37 = arith.constant 1 : index
    %c0_38 = arith.constant 0 : index
    %27 = vector.load %arg12[%c9_36, %c1_37, %c0_38] : memref<10x10x256xbf16, #tpu.memory_space<vmem>>, vector<1x8x256xbf16>
    tpu.vector_store %arg12[%c9_36, %c1_37, %c0_38], %13 {strides = array<i32>} : memref<10x10x256xbf16, #tpu.memory_space<vmem>>, vector<1x8x256xbf16>,
    %c0_39 = arith.constant 0 : index
    %c0_40 = arith.constant 0 : index
    %c0_41 = arith.constant 0 : index
    %c0_42 = arith.constant 0 : index
    %28 = vector.load %arg6[%c0_39, %c0_40, %c0_41, %c0_42] : memref<1x8x8x128xbf16, #tpu.memory_space<vmem>>, vector<1x8x8x128xbf16>
    %29 = vector.shape_cast %28 : vector<1x8x8x128xbf16> to vector<8x8x128xbf16>
    %cst_43 = arith.constant 0.000000e+00 : bf16
    %30 = vector.broadcast %cst_43 : bf16 to vector<10x1x128xbf16>
    %c0_44 = arith.constant 0 : index
    %c0_45 = arith.constant 0 : index
    %c0_46 = arith.constant 0 : index
    %31 = vector.load %arg13[%c0_44, %c0_45, %c0_46] : memref<10x10x128xbf16, #tpu.memory_space<vmem>>, vector<10x1x128xbf16>
    tpu.vector_store %arg13[%c0_44, %c0_45, %c0_46], %30 {strides = array<i32>} : memref<10x10x128xbf16, #tpu.memory_space<vmem>>, vector<10x1x128xbf16>,
    %c0_47 = arith.constant 0 : index
    %c9_48 = arith.constant 9 : index
    %c0_49 = arith.constant 0 : index
    %32 = vector.load %arg13[%c0_47, %c9_48, %c0_49] : memref<10x10x128xbf16, #tpu.memory_space<vmem>>, vector<10x1x128xbf16>
    tpu.vector_store %arg13[%c0_47, %c9_48, %c0_49], %30 {strides = array<i32>} : memref<10x10x128xbf16, #tpu.memory_space<vmem>>, vector<10x1x128xbf16>,
    %c0_50 = arith.constant 0 : index
    %c1_51 = arith.constant 1 : index
    %c0_52 = arith.constant 0 : index
    %33 = vector.load %arg13[%c0_50, %c1_51, %c0_52] : memref<10x10x128xbf16, #tpu.memory_space<vmem>>, vector<1x8x128xbf16>
    tpu.vector_store %arg13[%c0_50, %c1_51, %c0_52], %16 {strides = array<i32>} : memref<10x10x128xbf16, #tpu.memory_space<vmem>>, vector<1x8x128xbf16>,
    %c1_53 = arith.constant 1 : index
    %c1_54 = arith.constant 1 : index
    %c0_55 = arith.constant 0 : index
    %34 = vector.load %arg13[%c1_53, %c1_54, %c0_55] : memref<10x10x128xbf16, #tpu.memory_space<vmem>>, vector<8x8x128xbf16>
    tpu.vector_store %arg13[%c1_53, %c1_54, %c0_55], %29 {strides = array<i32>} : memref<10x10x128xbf16, #tpu.memory_space<vmem>>, vector<8x8x128xbf16>,
    %c9_56 = arith.constant 9 : index
    %c1_57 = arith.constant 1 : index
    %c0_58 = arith.constant 0 : index
    %35 = vector.load %arg13[%c9_56, %c1_57, %c0_58] : memref<10x10x128xbf16, #tpu.memory_space<vmem>>, vector<1x8x128xbf16>
    tpu.vector_store %arg13[%c9_56, %c1_57, %c0_58], %19 {strides = array<i32>} : memref<10x10x128xbf16, #tpu.memory_space<vmem>>, vector<1x8x128xbf16>,
    %c0_59 = arith.constant 0 : index
    %c0_60 = arith.constant 0 : index
    %c0_61 = arith.constant 0 : index
    %36 = vector.load %arg12[%c0_59, %c0_60, %c0_61] : memref<10x10x256xbf16, #tpu.memory_space<vmem>>, vector<8x8x256xbf16>
    %37 = vector.shape_cast %36 : vector<8x8x256xbf16> to vector<64x256xbf16>
    %c0_62 = arith.constant 0 : index
    %c0_63 = arith.constant 0 : index
    %c0_64 = arith.constant 0 : index
    %38 = vector.load %arg13[%c0_62, %c0_63, %c0_64] : memref<10x10x128xbf16, #tpu.memory_space<vmem>>, vector<8x8x128xbf16>
    %39 = vector.shape_cast %38 : vector<8x8x128xbf16> to vector<64x128xbf16>
    %c0_65 = arith.constant 0 : index
    %c0_66 = arith.constant 0 : index
    %c0_67 = arith.constant 0 : index
    %40 = vector.load %arg8[%c0_65, %c0_66, %c0_67] : memref<9x256x256xbf16, #tpu.memory_space<vmem>>, vector<1x256x256xbf16>
    %41 = vector.shape_cast %40 : vector<1x256x256xbf16> to vector<256x256xbf16>
    %cst_68 = arith.constant dense<0.000000e+00> : vector<64x256xf32>
    %42 = tpu.matmul %37, %41, %cst_68 {dimension_numbers = #tpu.dot_dimension_numbers<[1], [0], [0], [1], [0, 0, 1, 1], [], []>} : vector<64x256xbf16>, vector<256x256xbf16>, vector<64x256xf32> -> vector<64x256xf32>
    %c0_69 = arith.constant 0 : index
    %c0_70 = arith.constant 0 : index
    %c0_71 = arith.constant 0 : index
    %43 = vector.load %arg9[%c0_69, %c0_70, %c0_71] : memref<9x128x256xbf16, #tpu.memory_space<vmem>>, vector<1x128x256xbf16>
    %44 = vector.shape_cast %43 : vector<1x128x256xbf16> to vector<128x256xbf16>
    %cst_72 = arith.constant dense<0.000000e+00> : vector<64x256xf32>
    %45 = tpu.matmul %39, %44, %cst_72 {dimension_numbers = #tpu.dot_dimension_numbers<[1], [0], [0], [1], [0, 0, 1, 1], [], []>} : vector<64x128xbf16>, vector<128x256xbf16>, vector<64x256xf32> -> vector<64x256xf32>
    %46 = arith.addf %42, %45 : vector<64x256xf32>
    %c0_73 = arith.constant 0 : index
    %c1_74 = arith.constant 1 : index
    %c0_75 = arith.constant 0 : index
    %47 = vector.load %arg12[%c0_73, %c1_74, %c0_75] : memref<10x10x256xbf16, #tpu.memory_space<vmem>>, vector<8x8x256xbf16>
    %48 = vector.shape_cast %47 : vector<8x8x256xbf16> to vector<64x256xbf16>
    %c0_76 = arith.constant 0 : index
    %c1_77 = arith.constant 1 : index
    %c0_78 = arith.constant 0 : index
    %49 = vector.load %arg13[%c0_76, %c1_77, %c0_78] : memref<10x10x128xbf16, #tpu.memory_space<vmem>>, vector<8x8x128xbf16>
    %50 = vector.shape_cast %49 : vector<8x8x128xbf16> to vector<64x128xbf16>
    %c1_79 = arith.constant 1 : index
    %c0_80 = arith.constant 0 : index
    %c0_81 = arith.constant 0 : index
    %51 = vector.load %arg8[%c1_79, %c0_80, %c0_81] : memref<9x256x256xbf16, #tpu.memory_space<vmem>>, vector<1x256x256xbf16>
    %52 = vector.shape_cast %51 : vector<1x256x256xbf16> to vector<256x256xbf16>
    %cst_82 = arith.constant dense<0.000000e+00> : vector<64x256xf32>
    %53 = tpu.matmul %48, %52, %cst_82 {dimension_numbers = #tpu.dot_dimension_numbers<[1], [0], [0], [1], [0, 0, 1, 1], [], []>} : vector<64x256xbf16>, vector<256x256xbf16>, vector<64x256xf32> -> vector<64x256xf32>
    %54 = arith.addf %46, %53 : vector<64x256xf32>
    %c1_83 = arith.constant 1 : index
    %c0_84 = arith.constant 0 : index
    %c0_85 = arith.constant 0 : index
    %55 = vector.load %arg9[%c1_83, %c0_84, %c0_85] : memref<9x128x256xbf16, #tpu.memory_space<vmem>>, vector<1x128x256xbf16>
    %56 = vector.shape_cast %55 : vector<1x128x256xbf16> to vector<128x256xbf16>
    %cst_86 = arith.constant dense<0.000000e+00> : vector<64x256xf32>
    %57 = tpu.matmul %50, %56, %cst_86 {dimension_numbers = #tpu.dot_dimension_numbers<[1], [0], [0], [1], [0, 0, 1, 1], [], []>} : vector<64x128xbf16>, vector<128x256xbf16>, vector<64x256xf32> -> vector<64x256xf32>
    %58 = arith.addf %54, %57 : vector<64x256xf32>
    %c0_87 = arith.constant 0 : index
    %c2 = arith.constant 2 : index
    %c0_88 = arith.constant 0 : index
    %59 = vector.load %arg12[%c0_87, %c2, %c0_88] : memref<10x10x256xbf16, #tpu.memory_space<vmem>>, vector<8x8x256xbf16>
    %60 = vector.shape_cast %59 : vector<8x8x256xbf16> to vector<64x256xbf16>
    %c0_89 = arith.constant 0 : index
    %c2_90 = arith.constant 2 : index
    %c0_91 = arith.constant 0 : index
    %61 = vector.load %arg13[%c0_89, %c2_90, %c0_91] : memref<10x10x128xbf16, #tpu.memory_space<vmem>>, vector<8x8x128xbf16>
    %62 = vector.shape_cast %61 : vector<8x8x128xbf16> to vector<64x128xbf16>
    %c2_92 = arith.constant 2 : index
    %c0_93 = arith.constant 0 : index
    %c0_94 = arith.constant 0 : index
    %63 = vector.load %arg8[%c2_92, %c0_93, %c0_94] : memref<9x256x256xbf16, #tpu.memory_space<vmem>>, vector<1x256x256xbf16>
    %64 = vector.shape_cast %63 : vector<1x256x256xbf16> to vector<256x256xbf16>
    %cst_95 = arith.constant dense<0.000000e+00> : vector<64x256xf32>
    %65 = tpu.matmul %60, %64, %cst_95 {dimension_numbers = #tpu.dot_dimension_numbers<[1], [0], [0], [1], [0, 0, 1, 1], [], []>} : vector<64x256xbf16>, vector<256x256xbf16>, vector<64x256xf32> -> vector<64x256xf32>
    %66 = arith.addf %58, %65 : vector<64x256xf32>
    %c2_96 = arith.constant 2 : index
    %c0_97 = arith.constant 0 : index
    %c0_98 = arith.constant 0 : index
    %67 = vector.load %arg9[%c2_96, %c0_97, %c0_98] : memref<9x128x256xbf16, #tpu.memory_space<vmem>>, vector<1x128x256xbf16>
    %68 = vector.shape_cast %67 : vector<1x128x256xbf16> to vector<128x256xbf16>
    %cst_99 = arith.constant dense<0.000000e+00> : vector<64x256xf32>
    %69 = tpu.matmul %62, %68, %cst_99 {dimension_numbers = #tpu.dot_dimension_numbers<[1], [0], [0], [1], [0, 0, 1, 1], [], []>} : vector<64x128xbf16>, vector<128x256xbf16>, vector<64x256xf32> -> vector<64x256xf32>
    %70 = arith.addf %66, %69 : vector<64x256xf32>
    %c1_100 = arith.constant 1 : index
    %c0_101 = arith.constant 0 : index
    %c0_102 = arith.constant 0 : index
    %71 = vector.load %arg12[%c1_100, %c0_101, %c0_102] : memref<10x10x256xbf16, #tpu.memory_space<vmem>>, vector<8x8x256xbf16>
    %72 = vector.shape_cast %71 : vector<8x8x256xbf16> to vector<64x256xbf16>
    %c1_103 = arith.constant 1 : index
    %c0_104 = arith.constant 0 : index
    %c0_105 = arith.constant 0 : index
    %73 = vector.load %arg13[%c1_103, %c0_104, %c0_105] : memref<10x10x128xbf16, #tpu.memory_space<vmem>>, vector<8x8x128xbf16>
    %74 = vector.shape_cast %73 : vector<8x8x128xbf16> to vector<64x128xbf16>
    %c3 = arith.constant 3 : index
    %c0_106 = arith.constant 0 : index
    %c0_107 = arith.constant 0 : index
    %75 = vector.load %arg8[%c3, %c0_106, %c0_107] : memref<9x256x256xbf16, #tpu.memory_space<vmem>>, vector<1x256x256xbf16>
    %76 = vector.shape_cast %75 : vector<1x256x256xbf16> to vector<256x256xbf16>
    %cst_108 = arith.constant dense<0.000000e+00> : vector<64x256xf32>
    %77 = tpu.matmul %72, %76, %cst_108 {dimension_numbers = #tpu.dot_dimension_numbers<[1], [0], [0], [1], [0, 0, 1, 1], [], []>} : vector<64x256xbf16>, vector<256x256xbf16>, vector<64x256xf32> -> vector<64x256xf32>
    %78 = arith.addf %70, %77 : vector<64x256xf32>
    %c3_109 = arith.constant 3 : index
    %c0_110 = arith.constant 0 : index
    %c0_111 = arith.constant 0 : index
    %79 = vector.load %arg9[%c3_109, %c0_110, %c0_111] : memref<9x128x256xbf16, #tpu.memory_space<vmem>>, vector<1x128x256xbf16>
    %80 = vector.shape_cast %79 : vector<1x128x256xbf16> to vector<128x256xbf16>
    %cst_112 = arith.constant dense<0.000000e+00> : vector<64x256xf32>
    %81 = tpu.matmul %74, %80, %cst_112 {dimension_numbers = #tpu.dot_dimension_numbers<[1], [0], [0], [1], [0, 0, 1, 1], [], []>} : vector<64x128xbf16>, vector<128x256xbf16>, vector<64x256xf32> -> vector<64x256xf32>
    %82 = arith.addf %78, %81 : vector<64x256xf32>
    %c1_113 = arith.constant 1 : index
    %c1_114 = arith.constant 1 : index
    %c0_115 = arith.constant 0 : index
    %83 = vector.load %arg12[%c1_113, %c1_114, %c0_115] : memref<10x10x256xbf16, #tpu.memory_space<vmem>>, vector<8x8x256xbf16>
    %84 = vector.shape_cast %83 : vector<8x8x256xbf16> to vector<64x256xbf16>
    %c1_116 = arith.constant 1 : index
    %c1_117 = arith.constant 1 : index
    %c0_118 = arith.constant 0 : index
    %85 = vector.load %arg13[%c1_116, %c1_117, %c0_118] : memref<10x10x128xbf16, #tpu.memory_space<vmem>>, vector<8x8x128xbf16>
    %86 = vector.shape_cast %85 : vector<8x8x128xbf16> to vector<64x128xbf16>
    %c4 = arith.constant 4 : index
    %c0_119 = arith.constant 0 : index
    %c0_120 = arith.constant 0 : index
    %87 = vector.load %arg8[%c4, %c0_119, %c0_120] : memref<9x256x256xbf16, #tpu.memory_space<vmem>>, vector<1x256x256xbf16>
    %88 = vector.shape_cast %87 : vector<1x256x256xbf16> to vector<256x256xbf16>
    %cst_121 = arith.constant dense<0.000000e+00> : vector<64x256xf32>
    %89 = tpu.matmul %84, %88, %cst_121 {dimension_numbers = #tpu.dot_dimension_numbers<[1], [0], [0], [1], [0, 0, 1, 1], [], []>} : vector<64x256xbf16>, vector<256x256xbf16>, vector<64x256xf32> -> vector<64x256xf32>
    %90 = arith.addf %82, %89 : vector<64x256xf32>
    %c4_122 = arith.constant 4 : index
    %c0_123 = arith.constant 0 : index
    %c0_124 = arith.constant 0 : index
    %91 = vector.load %arg9[%c4_122, %c0_123, %c0_124] : memref<9x128x256xbf16, #tpu.memory_space<vmem>>, vector<1x128x256xbf16>
    %92 = vector.shape_cast %91 : vector<1x128x256xbf16> to vector<128x256xbf16>
    %cst_125 = arith.constant dense<0.000000e+00> : vector<64x256xf32>
    %93 = tpu.matmul %86, %92, %cst_125 {dimension_numbers = #tpu.dot_dimension_numbers<[1], [0], [0], [1], [0, 0, 1, 1], [], []>} : vector<64x128xbf16>, vector<128x256xbf16>, vector<64x256xf32> -> vector<64x256xf32>
    %94 = arith.addf %90, %93 : vector<64x256xf32>
    %c1_126 = arith.constant 1 : index
    %c2_127 = arith.constant 2 : index
    %c0_128 = arith.constant 0 : index
    %95 = vector.load %arg12[%c1_126, %c2_127, %c0_128] : memref<10x10x256xbf16, #tpu.memory_space<vmem>>, vector<8x8x256xbf16>
    %96 = vector.shape_cast %95 : vector<8x8x256xbf16> to vector<64x256xbf16>
    %c1_129 = arith.constant 1 : index
    %c2_130 = arith.constant 2 : index
    %c0_131 = arith.constant 0 : index
    %97 = vector.load %arg13[%c1_129, %c2_130, %c0_131] : memref<10x10x128xbf16, #tpu.memory_space<vmem>>, vector<8x8x128xbf16>
    %98 = vector.shape_cast %97 : vector<8x8x128xbf16> to vector<64x128xbf16>
    %c5 = arith.constant 5 : index
    %c0_132 = arith.constant 0 : index
    %c0_133 = arith.constant 0 : index
    %99 = vector.load %arg8[%c5, %c0_132, %c0_133] : memref<9x256x256xbf16, #tpu.memory_space<vmem>>, vector<1x256x256xbf16>
    %100 = vector.shape_cast %99 : vector<1x256x256xbf16> to vector<256x256xbf16>
    %cst_134 = arith.constant dense<0.000000e+00> : vector<64x256xf32>
    %101 = tpu.matmul %96, %100, %cst_134 {dimension_numbers = #tpu.dot_dimension_numbers<[1], [0], [0], [1], [0, 0, 1, 1], [], []>} : vector<64x256xbf16>, vector<256x256xbf16>, vector<64x256xf32> -> vector<64x256xf32>
    %102 = arith.addf %94, %101 : vector<64x256xf32>
    %c5_135 = arith.constant 5 : index
    %c0_136 = arith.constant 0 : index
    %c0_137 = arith.constant 0 : index
    %103 = vector.load %arg9[%c5_135, %c0_136, %c0_137] : memref<9x128x256xbf16, #tpu.memory_space<vmem>>, vector<1x128x256xbf16>
    %104 = vector.shape_cast %103 : vector<1x128x256xbf16> to vector<128x256xbf16>
    %cst_138 = arith.constant dense<0.000000e+00> : vector<64x256xf32>
    %105 = tpu.matmul %98, %104, %cst_138 {dimension_numbers = #tpu.dot_dimension_numbers<[1], [0], [0], [1], [0, 0, 1, 1], [], []>} : vector<64x128xbf16>, vector<128x256xbf16>, vector<64x256xf32> -> vector<64x256xf32>
    %106 = arith.addf %102, %105 : vector<64x256xf32>
    %c2_139 = arith.constant 2 : index
    %c0_140 = arith.constant 0 : index
    %c0_141 = arith.constant 0 : index
    %107 = vector.load %arg12[%c2_139, %c0_140, %c0_141] : memref<10x10x256xbf16, #tpu.memory_space<vmem>>, vector<8x8x256xbf16>
    %108 = vector.shape_cast %107 : vector<8x8x256xbf16> to vector<64x256xbf16>
    %c2_142 = arith.constant 2 : index
    %c0_143 = arith.constant 0 : index
    %c0_144 = arith.constant 0 : index
    %109 = vector.load %arg13[%c2_142, %c0_143, %c0_144] : memref<10x10x128xbf16, #tpu.memory_space<vmem>>, vector<8x8x128xbf16>
    %110 = vector.shape_cast %109 : vector<8x8x128xbf16> to vector<64x128xbf16>
    %c6 = arith.constant 6 : index
    %c0_145 = arith.constant 0 : index
    %c0_146 = arith.constant 0 : index
    %111 = vector.load %arg8[%c6, %c0_145, %c0_146] : memref<9x256x256xbf16, #tpu.memory_space<vmem>>, vector<1x256x256xbf16>
    %112 = vector.shape_cast %111 : vector<1x256x256xbf16> to vector<256x256xbf16>
    %cst_147 = arith.constant dense<0.000000e+00> : vector<64x256xf32>
    %113 = tpu.matmul %108, %112, %cst_147 {dimension_numbers = #tpu.dot_dimension_numbers<[1], [0], [0], [1], [0, 0, 1, 1], [], []>} : vector<64x256xbf16>, vector<256x256xbf16>, vector<64x256xf32> -> vector<64x256xf32>
    %114 = arith.addf %106, %113 : vector<64x256xf32>
    %c6_148 = arith.constant 6 : index
    %c0_149 = arith.constant 0 : index
    %c0_150 = arith.constant 0 : index
    %115 = vector.load %arg9[%c6_148, %c0_149, %c0_150] : memref<9x128x256xbf16, #tpu.memory_space<vmem>>, vector<1x128x256xbf16>
    %116 = vector.shape_cast %115 : vector<1x128x256xbf16> to vector<128x256xbf16>
    %cst_151 = arith.constant dense<0.000000e+00> : vector<64x256xf32>
    %117 = tpu.matmul %110, %116, %cst_151 {dimension_numbers = #tpu.dot_dimension_numbers<[1], [0], [0], [1], [0, 0, 1, 1], [], []>} : vector<64x128xbf16>, vector<128x256xbf16>, vector<64x256xf32> -> vector<64x256xf32>
    %118 = arith.addf %114, %117 : vector<64x256xf32>
    %c2_152 = arith.constant 2 : index
    %c1_153 = arith.constant 1 : index
    %c0_154 = arith.constant 0 : index
    %119 = vector.load %arg12[%c2_152, %c1_153, %c0_154] : memref<10x10x256xbf16, #tpu.memory_space<vmem>>, vector<8x8x256xbf16>
    %120 = vector.shape_cast %119 : vector<8x8x256xbf16> to vector<64x256xbf16>
    %c2_155 = arith.constant 2 : index
    %c1_156 = arith.constant 1 : index
    %c0_157 = arith.constant 0 : index
    %121 = vector.load %arg13[%c2_155, %c1_156, %c0_157] : memref<10x10x128xbf16, #tpu.memory_space<vmem>>, vector<8x8x128xbf16>
    %122 = vector.shape_cast %121 : vector<8x8x128xbf16> to vector<64x128xbf16>
    %c7 = arith.constant 7 : index
    %c0_158 = arith.constant 0 : index
    %c0_159 = arith.constant 0 : index
    %123 = vector.load %arg8[%c7, %c0_158, %c0_159] : memref<9x256x256xbf16, #tpu.memory_space<vmem>>, vector<1x256x256xbf16>
    %124 = vector.shape_cast %123 : vector<1x256x256xbf16> to vector<256x256xbf16>
    %cst_160 = arith.constant dense<0.000000e+00> : vector<64x256xf32>
    %125 = tpu.matmul %120, %124, %cst_160 {dimension_numbers = #tpu.dot_dimension_numbers<[1], [0], [0], [1], [0, 0, 1, 1], [], []>} : vector<64x256xbf16>, vector<256x256xbf16>, vector<64x256xf32> -> vector<64x256xf32>
    %126 = arith.addf %118, %125 : vector<64x256xf32>
    %c7_161 = arith.constant 7 : index
    %c0_162 = arith.constant 0 : index
    %c0_163 = arith.constant 0 : index
    %127 = vector.load %arg9[%c7_161, %c0_162, %c0_163] : memref<9x128x256xbf16, #tpu.memory_space<vmem>>, vector<1x128x256xbf16>
    %128 = vector.shape_cast %127 : vector<1x128x256xbf16> to vector<128x256xbf16>
    %cst_164 = arith.constant dense<0.000000e+00> : vector<64x256xf32>
    %129 = tpu.matmul %122, %128, %cst_164 {dimension_numbers = #tpu.dot_dimension_numbers<[1], [0], [0], [1], [0, 0, 1, 1], [], []>} : vector<64x128xbf16>, vector<128x256xbf16>, vector<64x256xf32> -> vector<64x256xf32>
    %130 = arith.addf %126, %129 : vector<64x256xf32>
    %c2_165 = arith.constant 2 : index
    %c2_166 = arith.constant 2 : index
    %c0_167 = arith.constant 0 : index
    %131 = vector.load %arg12[%c2_165, %c2_166, %c0_167] : memref<10x10x256xbf16, #tpu.memory_space<vmem>>, vector<8x8x256xbf16>
    %132 = vector.shape_cast %131 : vector<8x8x256xbf16> to vector<64x256xbf16>
    %c2_168 = arith.constant 2 : index
    %c2_169 = arith.constant 2 : index
    %c0_170 = arith.constant 0 : index
    %133 = vector.load %arg13[%c2_168, %c2_169, %c0_170] : memref<10x10x128xbf16, #tpu.memory_space<vmem>>, vector<8x8x128xbf16>
    %134 = vector.shape_cast %133 : vector<8x8x128xbf16> to vector<64x128xbf16>
    %c8 = arith.constant 8 : index
    %c0_171 = arith.constant 0 : index
    %c0_172 = arith.constant 0 : index
    %135 = vector.load %arg8[%c8, %c0_171, %c0_172] : memref<9x256x256xbf16, #tpu.memory_space<vmem>>, vector<1x256x256xbf16>
    %136 = vector.shape_cast %135 : vector<1x256x256xbf16> to vector<256x256xbf16>
    %cst_173 = arith.constant dense<0.000000e+00> : vector<64x256xf32>
    %137 = tpu.matmul %132, %136, %cst_173 {dimension_numbers = #tpu.dot_dimension_numbers<[1], [0], [0], [1], [0, 0, 1, 1], [], []>} : vector<64x256xbf16>, vector<256x256xbf16>, vector<64x256xf32> -> vector<64x256xf32>
    %138 = arith.addf %130, %137 : vector<64x256xf32>
    %c8_174 = arith.constant 8 : index
    %c0_175 = arith.constant 0 : index
    %c0_176 = arith.constant 0 : index
    %139 = vector.load %arg9[%c8_174, %c0_175, %c0_176] : memref<9x128x256xbf16, #tpu.memory_space<vmem>>, vector<1x128x256xbf16>
    %140 = vector.shape_cast %139 : vector<1x128x256xbf16> to vector<128x256xbf16>
    %cst_177 = arith.constant dense<0.000000e+00> : vector<64x256xf32>
    %141 = tpu.matmul %134, %140, %cst_177 {dimension_numbers = #tpu.dot_dimension_numbers<[1], [0], [0], [1], [0, 0, 1, 1], [], []>} : vector<64x128xbf16>, vector<128x256xbf16>, vector<64x256xf32> -> vector<64x256xf32>
    %142 = arith.addf %138, %141 : vector<64x256xf32>
    %c0_178 = arith.constant 0 : index
    %c0_179 = arith.constant 0 : index
    %143 = vector.load %arg10[%c0_178, %c0_179] : memref<1x256xf32, #tpu.memory_space<vmem>>, vector<1x256xf32>
    %144 = vector.broadcast %143 : vector<1x256xf32> to vector<64x256xf32>
    %145 = arith.addf %142, %144 : vector<64x256xf32>
    %cst_180 = arith.constant 0.000000e+00 : f32
    %146 = vector.broadcast %cst_180 : f32 to vector<64x256xf32>
    %147 = arith.maximumf %145, %146 : vector<64x256xf32>
    %148 = vector.shape_cast %147 : vector<64x256xf32> to vector<8x8x256xf32>
    %149 = arith.truncf %148 : vector<8x8x256xf32> to vector<8x8x256xbf16>
    %c0_181 = arith.constant 0 : index
    %c0_182 = arith.constant 0 : index
    %c0_183 = arith.constant 0 : index
    %c0_184 = arith.constant 0 : index
    %150 = vector.load %arg11[%c0_181, %c0_182, %c0_183, %c0_184] : memref<1x8x8x256xbf16, #tpu.memory_space<vmem>>, vector<1x8x8x256xbf16>
    %151 = vector.shape_cast %150 : vector<1x8x8x256xbf16> to vector<8x8x256xbf16>
    %152 = vector.shape_cast %149 : vector<8x8x256xbf16> to vector<1x8x8x256xbf16>
    tpu.vector_store %arg11[%c0_181, %c0_182, %c0_183, %c0_184], %152 {strides = array<i32>} : memref<1x8x8x256xbf16, #tpu.memory_space<vmem>>, vector<1x8x8x256xbf16>,
    return
  }
  func.func @transform_0(%arg0: i32, %arg1: i32) -> (i32, i32, i32, i32) {
    %c8_i32 = arith.constant 8 : i32
    %0 = arith.muli %arg1, %c8_i32 : i32
    %c1_i32 = arith.constant 1 : i32
    %1 = arith.subi %0, %c1_i32 : i32
    %c0_i32 = arith.constant 0 : i32
    %2 = arith.maxsi %1, %c0_i32 : i32
    %c0_i32_0 = arith.constant 0 : i32
    %c0_i32_1 = arith.constant 0 : i32
    %c0_i32_2 = arith.constant 0 : i32
    return %arg0, %2, %c0_i32_0, %c0_i32_1 : i32, i32, i32, i32
  }
  func.func @transform_1(%arg0: i32, %arg1: i32) -> (i32, i32, i32, i32) {
    %c0_i32 = arith.constant 0 : i32
    %c0_i32_0 = arith.constant 0 : i32
    %c0_i32_1 = arith.constant 0 : i32
    return %arg0, %arg1, %c0_i32, %c0_i32_0 : i32, i32, i32, i32
  }
  func.func @transform_2(%arg0: i32, %arg1: i32) -> (i32, i32, i32, i32) {
    %c1_i32 = arith.constant 1 : i32
    %0 = arith.addi %arg1, %c1_i32 : i32
    %c8_i32 = arith.constant 8 : i32
    %1 = arith.muli %0, %c8_i32 : i32
    %c7_i32 = arith.constant 7 : i32
    %2 = arith.minsi %1, %c7_i32 : i32
    %c0_i32 = arith.constant 0 : i32
    %c0_i32_0 = arith.constant 0 : i32
    %c0_i32_1 = arith.constant 0 : i32
    return %arg0, %2, %c0_i32, %c0_i32_0 : i32, i32, i32, i32
  }
  func.func @transform_3(%arg0: i32, %arg1: i32) -> (i32, i32, i32, i32) {
    %c8_i32 = arith.constant 8 : i32
    %0 = arith.muli %arg1, %c8_i32 : i32
    %c1_i32 = arith.constant 1 : i32
    %1 = arith.subi %0, %c1_i32 : i32
    %c0_i32 = arith.constant 0 : i32
    %2 = arith.maxsi %1, %c0_i32 : i32
    %c0_i32_0 = arith.constant 0 : i32
    %c0_i32_1 = arith.constant 0 : i32
    %c0_i32_2 = arith.constant 0 : i32
    return %arg0, %2, %c0_i32_0, %c0_i32_1 : i32, i32, i32, i32
  }
  func.func @transform_4(%arg0: i32, %arg1: i32) -> (i32, i32, i32, i32) {
    %c0_i32 = arith.constant 0 : i32
    %c0_i32_0 = arith.constant 0 : i32
    %c0_i32_1 = arith.constant 0 : i32
    return %arg0, %arg1, %c0_i32, %c0_i32_0 : i32, i32, i32, i32
  }
  func.func @transform_5(%arg0: i32, %arg1: i32) -> (i32, i32, i32, i32) {
    %c1_i32 = arith.constant 1 : i32
    %0 = arith.addi %arg1, %c1_i32 : i32
    %c8_i32 = arith.constant 8 : i32
    %1 = arith.muli %0, %c8_i32 : i32
    %c7_i32 = arith.constant 7 : i32
    %2 = arith.minsi %1, %c7_i32 : i32
    %c0_i32 = arith.constant 0 : i32
    %c0_i32_0 = arith.constant 0 : i32
    %c0_i32_1 = arith.constant 0 : i32
    return %arg0, %2, %c0_i32, %c0_i32_0 : i32, i32, i32, i32
  }
  func.func @transform_6(%arg0: i32, %arg1: i32) -> (i32, i32, i32) {
    %c0_i32 = arith.constant 0 : i32
    %c0_i32_0 = arith.constant 0 : i32
    %c0_i32_1 = arith.constant 0 : i32
    %c0_i32_2 = arith.constant 0 : i32
    return %c0_i32, %c0_i32_0, %c0_i32_1 : i32, i32, i32
  }
  func.func @transform_7(%arg0: i32, %arg1: i32) -> (i32, i32, i32) {
    %c0_i32 = arith.constant 0 : i32
    %c0_i32_0 = arith.constant 0 : i32
    %c0_i32_1 = arith.constant 0 : i32
    %c0_i32_2 = arith.constant 0 : i32
    return %c0_i32, %c0_i32_0, %c0_i32_1 : i32, i32, i32
  }
  func.func @transform_8(%arg0: i32, %arg1: i32) -> (i32, i32) {
    %c0_i32 = arith.constant 0 : i32
    %c0_i32_0 = arith.constant 0 : i32
    %c0_i32_1 = arith.constant 0 : i32
    return %c0_i32, %c0_i32_0 : i32, i32
  }
  func.func @transform_9(%arg0: i32, %arg1: i32) -> (i32, i32, i32, i32) {
    %c0_i32 = arith.constant 0 : i32
    %c0_i32_0 = arith.constant 0 : i32
    %c0_i32_1 = arith.constant 0 : i32
    return %arg0, %arg1, %c0_i32, %c0_i32_0 : i32, i32, i32, i32
  }
}

module attributes {stable_mosaic.version = 11 : i64} {
  func.func @_conv3x3_head_kernel(%arg0: i32, %arg1: i32, %arg2: memref<1x1x8x256xbf16, #tpu.memory_space<vmem>>, %arg3: memref<1x8x8x256xbf16, #tpu.memory_space<vmem>>, %arg4: memref<1x1x8x256xbf16, #tpu.memory_space<vmem>>, %arg5: memref<9x256x256xbf16, #tpu.memory_space<vmem>>, %arg6: memref<1x256xf32, #tpu.memory_space<vmem>>, %arg7: memref<1x1x256xf32, #tpu.memory_space<vmem>>, %arg8: memref<1x1xf32, #tpu.memory_space<vmem>>, %arg9: memref<1x8x8xf32, #tpu.memory_space<vmem>>, %arg10: memref<10x10x256xbf16, #tpu.memory_space<vmem>>) attributes {dimension_semantics = [#tpu.dimension_semantics<parallel>, #tpu.dimension_semantics<parallel>], iteration_bounds = array<i64: 2, 1>, scalar_prefetch = 0 : i64, scratch_operands = 1 : i64, tpu.core_type = #tpu.core_type<tc>, window_params = [{transform_indices = @transform_0, window_bounds = array<i64: 1, 1, 8, 256>}, {transform_indices = @transform_1, window_bounds = array<i64: 1, 8, 8, 256>}, {transform_indices = @transform_2, window_bounds = array<i64: 1, 1, 8, 256>}, {pipeline_mode = #tpu.pipeline_mode<synchronous>, transform_indices = @transform_3, window_bounds = array<i64: 9, 256, 256>}, {pipeline_mode = #tpu.pipeline_mode<synchronous>, transform_indices = @transform_4, window_bounds = array<i64: 1, 256>}, {pipeline_mode = #tpu.pipeline_mode<synchronous>, transform_indices = @transform_5, window_bounds = array<i64: 1, 1, 256>}, {pipeline_mode = #tpu.pipeline_mode<synchronous>, transform_indices = @transform_6, window_bounds = array<i64: 1, 1>}, {transform_indices = @transform_7, window_bounds = array<i64: 1, 8, 8>}]} {
    %c0 = arith.constant 0 : index
    %c0_0 = arith.constant 0 : index
    %c0_1 = arith.constant 0 : index
    %c0_2 = arith.constant 0 : index
    %0 = vector.load %arg2[%c0, %c0_0, %c0_1, %c0_2] : memref<1x1x8x256xbf16, #tpu.memory_space<vmem>>, vector<1x1x8x256xbf16>
    %1 = vector.shape_cast %0 : vector<1x1x8x256xbf16> to vector<1x8x256xbf16>
    %c0_3 = arith.constant 0 : index
    %c0_4 = arith.constant 0 : index
    %c0_5 = arith.constant 0 : index
    %c0_6 = arith.constant 0 : index
    %2 = vector.load %arg4[%c0_3, %c0_4, %c0_5, %c0_6] : memref<1x1x8x256xbf16, #tpu.memory_space<vmem>>, vector<1x1x8x256xbf16>
    %3 = vector.shape_cast %2 : vector<1x1x8x256xbf16> to vector<1x8x256xbf16>
    %c0_i32 = arith.constant 0 : i32
    %4 = arith.cmpi eq, %arg1, %c0_i32 : i32
    %cst = arith.constant 0.000000e+00 : bf16
    %5 = vector.broadcast %cst : bf16 to vector<1x8x256xbf16>
    %6 = arith.select %4, %5, %1 : vector<1x8x256xbf16>
    %c0_i32_7 = arith.constant 0 : i32
    %7 = arith.cmpi eq, %arg1, %c0_i32_7 : i32
    %cst_8 = arith.constant 0.000000e+00 : bf16
    %8 = vector.broadcast %cst_8 : bf16 to vector<1x8x256xbf16>
    %9 = arith.select %7, %8, %3 : vector<1x8x256xbf16>
    %c0_9 = arith.constant 0 : index
    %c0_10 = arith.constant 0 : index
    %c0_11 = arith.constant 0 : index
    %c0_12 = arith.constant 0 : index
    %10 = vector.load %arg3[%c0_9, %c0_10, %c0_11, %c0_12] : memref<1x8x8x256xbf16, #tpu.memory_space<vmem>>, vector<1x8x8x256xbf16>
    %11 = vector.shape_cast %10 : vector<1x8x8x256xbf16> to vector<8x8x256xbf16>
    %cst_13 = arith.constant 0.000000e+00 : bf16
    %12 = vector.broadcast %cst_13 : bf16 to vector<10x1x256xbf16>
    %c0_14 = arith.constant 0 : index
    %c0_15 = arith.constant 0 : index
    %c0_16 = arith.constant 0 : index
    %13 = vector.load %arg10[%c0_14, %c0_15, %c0_16] : memref<10x10x256xbf16, #tpu.memory_space<vmem>>, vector<10x1x256xbf16>
    tpu.vector_store %arg10[%c0_14, %c0_15, %c0_16], %12 {strides = array<i32>} : memref<10x10x256xbf16, #tpu.memory_space<vmem>>, vector<10x1x256xbf16>,
    %c0_17 = arith.constant 0 : index
    %c9 = arith.constant 9 : index
    %c0_18 = arith.constant 0 : index
    %14 = vector.load %arg10[%c0_17, %c9, %c0_18] : memref<10x10x256xbf16, #tpu.memory_space<vmem>>, vector<10x1x256xbf16>
    tpu.vector_store %arg10[%c0_17, %c9, %c0_18], %12 {strides = array<i32>} : memref<10x10x256xbf16, #tpu.memory_space<vmem>>, vector<10x1x256xbf16>,
    %c0_19 = arith.constant 0 : index
    %c1 = arith.constant 1 : index
    %c0_20 = arith.constant 0 : index
    %15 = vector.load %arg10[%c0_19, %c1, %c0_20] : memref<10x10x256xbf16, #tpu.memory_space<vmem>>, vector<1x8x256xbf16>
    tpu.vector_store %arg10[%c0_19, %c1, %c0_20], %6 {strides = array<i32>} : memref<10x10x256xbf16, #tpu.memory_space<vmem>>, vector<1x8x256xbf16>,
    %c1_21 = arith.constant 1 : index
    %c1_22 = arith.constant 1 : index
    %c0_23 = arith.constant 0 : index
    %16 = vector.load %arg10[%c1_21, %c1_22, %c0_23] : memref<10x10x256xbf16, #tpu.memory_space<vmem>>, vector<8x8x256xbf16>
    tpu.vector_store %arg10[%c1_21, %c1_22, %c0_23], %11 {strides = array<i32>} : memref<10x10x256xbf16, #tpu.memory_space<vmem>>, vector<8x8x256xbf16>,
    %c9_24 = arith.constant 9 : index
    %c1_25 = arith.constant 1 : index
    %c0_26 = arith.constant 0 : index
    %17 = vector.load %arg10[%c9_24, %c1_25, %c0_26] : memref<10x10x256xbf16, #tpu.memory_space<vmem>>, vector<1x8x256xbf16>
    tpu.vector_store %arg10[%c9_24, %c1_25, %c0_26], %9 {strides = array<i32>} : memref<10x10x256xbf16, #tpu.memory_space<vmem>>, vector<1x8x256xbf16>,
    %c0_27 = arith.constant 0 : index
    %c0_28 = arith.constant 0 : index
    %c0_29 = arith.constant 0 : index
    %18 = vector.load %arg10[%c0_27, %c0_28, %c0_29] : memref<10x10x256xbf16, #tpu.memory_space<vmem>>, vector<8x8x256xbf16>
    %19 = vector.shape_cast %18 : vector<8x8x256xbf16> to vector<64x256xbf16>
    %c0_30 = arith.constant 0 : index
    %c0_31 = arith.constant 0 : index
    %c0_32 = arith.constant 0 : index
    %20 = vector.load %arg5[%c0_30, %c0_31, %c0_32] : memref<9x256x256xbf16, #tpu.memory_space<vmem>>, vector<1x256x256xbf16>
    %21 = vector.shape_cast %20 : vector<1x256x256xbf16> to vector<256x256xbf16>
    %cst_33 = arith.constant dense<0.000000e+00> : vector<64x256xf32>
    %22 = tpu.matmul %19, %21, %cst_33 {dimension_numbers = #tpu.dot_dimension_numbers<[1], [0], [0], [1], [0, 0, 1, 1], [], []>} : vector<64x256xbf16>, vector<256x256xbf16>, vector<64x256xf32> -> vector<64x256xf32>
    %c0_34 = arith.constant 0 : index
    %c1_35 = arith.constant 1 : index
    %c0_36 = arith.constant 0 : index
    %23 = vector.load %arg10[%c0_34, %c1_35, %c0_36] : memref<10x10x256xbf16, #tpu.memory_space<vmem>>, vector<8x8x256xbf16>
    %24 = vector.shape_cast %23 : vector<8x8x256xbf16> to vector<64x256xbf16>
    %c1_37 = arith.constant 1 : index
    %c0_38 = arith.constant 0 : index
    %c0_39 = arith.constant 0 : index
    %25 = vector.load %arg5[%c1_37, %c0_38, %c0_39] : memref<9x256x256xbf16, #tpu.memory_space<vmem>>, vector<1x256x256xbf16>
    %26 = vector.shape_cast %25 : vector<1x256x256xbf16> to vector<256x256xbf16>
    %cst_40 = arith.constant dense<0.000000e+00> : vector<64x256xf32>
    %27 = tpu.matmul %24, %26, %cst_40 {dimension_numbers = #tpu.dot_dimension_numbers<[1], [0], [0], [1], [0, 0, 1, 1], [], []>} : vector<64x256xbf16>, vector<256x256xbf16>, vector<64x256xf32> -> vector<64x256xf32>
    %28 = arith.addf %22, %27 : vector<64x256xf32>
    %c0_41 = arith.constant 0 : index
    %c2 = arith.constant 2 : index
    %c0_42 = arith.constant 0 : index
    %29 = vector.load %arg10[%c0_41, %c2, %c0_42] : memref<10x10x256xbf16, #tpu.memory_space<vmem>>, vector<8x8x256xbf16>
    %30 = vector.shape_cast %29 : vector<8x8x256xbf16> to vector<64x256xbf16>
    %c2_43 = arith.constant 2 : index
    %c0_44 = arith.constant 0 : index
    %c0_45 = arith.constant 0 : index
    %31 = vector.load %arg5[%c2_43, %c0_44, %c0_45] : memref<9x256x256xbf16, #tpu.memory_space<vmem>>, vector<1x256x256xbf16>
    %32 = vector.shape_cast %31 : vector<1x256x256xbf16> to vector<256x256xbf16>
    %cst_46 = arith.constant dense<0.000000e+00> : vector<64x256xf32>
    %33 = tpu.matmul %30, %32, %cst_46 {dimension_numbers = #tpu.dot_dimension_numbers<[1], [0], [0], [1], [0, 0, 1, 1], [], []>} : vector<64x256xbf16>, vector<256x256xbf16>, vector<64x256xf32> -> vector<64x256xf32>
    %34 = arith.addf %28, %33 : vector<64x256xf32>
    %c1_47 = arith.constant 1 : index
    %c0_48 = arith.constant 0 : index
    %c0_49 = arith.constant 0 : index
    %35 = vector.load %arg10[%c1_47, %c0_48, %c0_49] : memref<10x10x256xbf16, #tpu.memory_space<vmem>>, vector<8x8x256xbf16>
    %36 = vector.shape_cast %35 : vector<8x8x256xbf16> to vector<64x256xbf16>
    %c3 = arith.constant 3 : index
    %c0_50 = arith.constant 0 : index
    %c0_51 = arith.constant 0 : index
    %37 = vector.load %arg5[%c3, %c0_50, %c0_51] : memref<9x256x256xbf16, #tpu.memory_space<vmem>>, vector<1x256x256xbf16>
    %38 = vector.shape_cast %37 : vector<1x256x256xbf16> to vector<256x256xbf16>
    %cst_52 = arith.constant dense<0.000000e+00> : vector<64x256xf32>
    %39 = tpu.matmul %36, %38, %cst_52 {dimension_numbers = #tpu.dot_dimension_numbers<[1], [0], [0], [1], [0, 0, 1, 1], [], []>} : vector<64x256xbf16>, vector<256x256xbf16>, vector<64x256xf32> -> vector<64x256xf32>
    %40 = arith.addf %34, %39 : vector<64x256xf32>
    %c1_53 = arith.constant 1 : index
    %c1_54 = arith.constant 1 : index
    %c0_55 = arith.constant 0 : index
    %41 = vector.load %arg10[%c1_53, %c1_54, %c0_55] : memref<10x10x256xbf16, #tpu.memory_space<vmem>>, vector<8x8x256xbf16>
    %42 = vector.shape_cast %41 : vector<8x8x256xbf16> to vector<64x256xbf16>
    %c4 = arith.constant 4 : index
    %c0_56 = arith.constant 0 : index
    %c0_57 = arith.constant 0 : index
    %43 = vector.load %arg5[%c4, %c0_56, %c0_57] : memref<9x256x256xbf16, #tpu.memory_space<vmem>>, vector<1x256x256xbf16>
    %44 = vector.shape_cast %43 : vector<1x256x256xbf16> to vector<256x256xbf16>
    %cst_58 = arith.constant dense<0.000000e+00> : vector<64x256xf32>
    %45 = tpu.matmul %42, %44, %cst_58 {dimension_numbers = #tpu.dot_dimension_numbers<[1], [0], [0], [1], [0, 0, 1, 1], [], []>} : vector<64x256xbf16>, vector<256x256xbf16>, vector<64x256xf32> -> vector<64x256xf32>
    %46 = arith.addf %40, %45 : vector<64x256xf32>
    %c1_59 = arith.constant 1 : index
    %c2_60 = arith.constant 2 : index
    %c0_61 = arith.constant 0 : index
    %47 = vector.load %arg10[%c1_59, %c2_60, %c0_61] : memref<10x10x256xbf16, #tpu.memory_space<vmem>>, vector<8x8x256xbf16>
    %48 = vector.shape_cast %47 : vector<8x8x256xbf16> to vector<64x256xbf16>
    %c5 = arith.constant 5 : index
    %c0_62 = arith.constant 0 : index
    %c0_63 = arith.constant 0 : index
    %49 = vector.load %arg5[%c5, %c0_62, %c0_63] : memref<9x256x256xbf16, #tpu.memory_space<vmem>>, vector<1x256x256xbf16>
    %50 = vector.shape_cast %49 : vector<1x256x256xbf16> to vector<256x256xbf16>
    %cst_64 = arith.constant dense<0.000000e+00> : vector<64x256xf32>
    %51 = tpu.matmul %48, %50, %cst_64 {dimension_numbers = #tpu.dot_dimension_numbers<[1], [0], [0], [1], [0, 0, 1, 1], [], []>} : vector<64x256xbf16>, vector<256x256xbf16>, vector<64x256xf32> -> vector<64x256xf32>
    %52 = arith.addf %46, %51 : vector<64x256xf32>
    %c2_65 = arith.constant 2 : index
    %c0_66 = arith.constant 0 : index
    %c0_67 = arith.constant 0 : index
    %53 = vector.load %arg10[%c2_65, %c0_66, %c0_67] : memref<10x10x256xbf16, #tpu.memory_space<vmem>>, vector<8x8x256xbf16>
    %54 = vector.shape_cast %53 : vector<8x8x256xbf16> to vector<64x256xbf16>
    %c6 = arith.constant 6 : index
    %c0_68 = arith.constant 0 : index
    %c0_69 = arith.constant 0 : index
    %55 = vector.load %arg5[%c6, %c0_68, %c0_69] : memref<9x256x256xbf16, #tpu.memory_space<vmem>>, vector<1x256x256xbf16>
    %56 = vector.shape_cast %55 : vector<1x256x256xbf16> to vector<256x256xbf16>
    %cst_70 = arith.constant dense<0.000000e+00> : vector<64x256xf32>
    %57 = tpu.matmul %54, %56, %cst_70 {dimension_numbers = #tpu.dot_dimension_numbers<[1], [0], [0], [1], [0, 0, 1, 1], [], []>} : vector<64x256xbf16>, vector<256x256xbf16>, vector<64x256xf32> -> vector<64x256xf32>
    %58 = arith.addf %52, %57 : vector<64x256xf32>
    %c2_71 = arith.constant 2 : index
    %c1_72 = arith.constant 1 : index
    %c0_73 = arith.constant 0 : index
    %59 = vector.load %arg10[%c2_71, %c1_72, %c0_73] : memref<10x10x256xbf16, #tpu.memory_space<vmem>>, vector<8x8x256xbf16>
    %60 = vector.shape_cast %59 : vector<8x8x256xbf16> to vector<64x256xbf16>
    %c7 = arith.constant 7 : index
    %c0_74 = arith.constant 0 : index
    %c0_75 = arith.constant 0 : index
    %61 = vector.load %arg5[%c7, %c0_74, %c0_75] : memref<9x256x256xbf16, #tpu.memory_space<vmem>>, vector<1x256x256xbf16>
    %62 = vector.shape_cast %61 : vector<1x256x256xbf16> to vector<256x256xbf16>
    %cst_76 = arith.constant dense<0.000000e+00> : vector<64x256xf32>
    %63 = tpu.matmul %60, %62, %cst_76 {dimension_numbers = #tpu.dot_dimension_numbers<[1], [0], [0], [1], [0, 0, 1, 1], [], []>} : vector<64x256xbf16>, vector<256x256xbf16>, vector<64x256xf32> -> vector<64x256xf32>
    %64 = arith.addf %58, %63 : vector<64x256xf32>
    %c2_77 = arith.constant 2 : index
    %c2_78 = arith.constant 2 : index
    %c0_79 = arith.constant 0 : index
    %65 = vector.load %arg10[%c2_77, %c2_78, %c0_79] : memref<10x10x256xbf16, #tpu.memory_space<vmem>>, vector<8x8x256xbf16>
    %66 = vector.shape_cast %65 : vector<8x8x256xbf16> to vector<64x256xbf16>
    %c8 = arith.constant 8 : index
    %c0_80 = arith.constant 0 : index
    %c0_81 = arith.constant 0 : index
    %67 = vector.load %arg5[%c8, %c0_80, %c0_81] : memref<9x256x256xbf16, #tpu.memory_space<vmem>>, vector<1x256x256xbf16>
    %68 = vector.shape_cast %67 : vector<1x256x256xbf16> to vector<256x256xbf16>
    %cst_82 = arith.constant dense<0.000000e+00> : vector<64x256xf32>
    %69 = tpu.matmul %66, %68, %cst_82 {dimension_numbers = #tpu.dot_dimension_numbers<[1], [0], [0], [1], [0, 0, 1, 1], [], []>} : vector<64x256xbf16>, vector<256x256xbf16>, vector<64x256xf32> -> vector<64x256xf32>
    %70 = arith.addf %64, %69 : vector<64x256xf32>
    %c0_83 = arith.constant 0 : index
    %c0_84 = arith.constant 0 : index
    %71 = vector.load %arg6[%c0_83, %c0_84] : memref<1x256xf32, #tpu.memory_space<vmem>>, vector<1x256xf32>
    %72 = vector.broadcast %71 : vector<1x256xf32> to vector<64x256xf32>
    %73 = arith.addf %70, %72 : vector<64x256xf32>
    %cst_85 = arith.constant 0.000000e+00 : f32
    %74 = vector.broadcast %cst_85 : f32 to vector<64x256xf32>
    %75 = arith.maximumf %73, %74 : vector<64x256xf32>
    %76 = vector.shape_cast %75 : vector<64x256xf32> to vector<8x8x256xf32>
    %c0_86 = arith.constant 0 : index
    %c0_87 = arith.constant 0 : index
    %c0_88 = arith.constant 0 : index
    %77 = vector.load %arg7[%c0_86, %c0_87, %c0_88] : memref<1x1x256xf32, #tpu.memory_space<vmem>>, vector<1x1x256xf32>
    %78 = vector.broadcast %77 : vector<1x1x256xf32> to vector<8x8x256xf32>
    %79 = arith.mulf %76, %78 : vector<8x8x256xf32>
    %cst_89 = arith.constant dense<0.000000e+00> : vector<8x8xf32>
    %80 = vector.multi_reduction <add>, %79, %cst_89 [2] : vector<8x8x256xf32> to vector<8x8xf32>
    %c0_90 = arith.constant 0 : index
    %c0_91 = arith.constant 0 : index
    %81 = vector.load %arg8[%c0_90, %c0_91] : memref<1x1xf32, #tpu.memory_space<vmem>>, vector<1x1xf32>
    %82 = vector.broadcast %81 : vector<1x1xf32> to vector<8x8xf32>
    %83 = arith.addf %80, %82 : vector<8x8xf32>
    %84 = math.absf %83 : vector<8x8xf32>
    %cst_92 = arith.constant 0.000000e+00 : f32
    %85 = vector.broadcast %cst_92 : f32 to vector<8x8xf32>
    %86 = arith.subf %85, %84 : vector<8x8xf32>
    %87 = math.exp %86 : vector<8x8xf32>
    %cst_93 = arith.constant 1.000000e+00 : f32
    %88 = vector.broadcast %cst_93 : f32 to vector<8x8xf32>
    %89 = arith.addf %88, %87 : vector<8x8xf32>
    %cst_94 = arith.constant 1.000000e+00 : f32
    %90 = vector.broadcast %cst_94 : f32 to vector<8x8xf32>
    %91 = arith.divf %90, %89 : vector<8x8xf32>
    %cst_95 = arith.constant 0.000000e+00 : f32
    %92 = vector.broadcast %cst_95 : f32 to vector<8x8xf32>
    %93 = arith.cmpf oge, %83, %92 : vector<8x8xf32>
    %94 = arith.mulf %87, %91 : vector<8x8xf32>
    %95 = arith.select %93, %91, %94 : vector<8x8xi1>, vector<8x8xf32>
    %c0_96 = arith.constant 0 : index
    %c0_97 = arith.constant 0 : index
    %c0_98 = arith.constant 0 : index
    %96 = vector.load %arg9[%c0_96, %c0_97, %c0_98] : memref<1x8x8xf32, #tpu.memory_space<vmem>>, vector<1x8x8xf32>
    %97 = vector.shape_cast %96 : vector<1x8x8xf32> to vector<8x8xf32>
    %98 = vector.shape_cast %95 : vector<8x8xf32> to vector<1x8x8xf32>
    tpu.vector_store %arg9[%c0_96, %c0_97, %c0_98], %98 {strides = array<i32>} : memref<1x8x8xf32, #tpu.memory_space<vmem>>, vector<1x8x8xf32>,
    return
  }
  func.func @transform_0(%arg0: i32, %arg1: i32) -> (i32, i32, i32, i32) {
    %c8_i32 = arith.constant 8 : i32
    %0 = arith.muli %arg1, %c8_i32 : i32
    %c1_i32 = arith.constant 1 : i32
    %1 = arith.subi %0, %c1_i32 : i32
    %c0_i32 = arith.constant 0 : i32
    %2 = arith.maxsi %1, %c0_i32 : i32
    %c0_i32_0 = arith.constant 0 : i32
    %c0_i32_1 = arith.constant 0 : i32
    %c0_i32_2 = arith.constant 0 : i32
    return %arg0, %2, %c0_i32_0, %c0_i32_1 : i32, i32, i32, i32
  }
  func.func @transform_1(%arg0: i32, %arg1: i32) -> (i32, i32, i32, i32) {
    %c0_i32 = arith.constant 0 : i32
    %c0_i32_0 = arith.constant 0 : i32
    %c0_i32_1 = arith.constant 0 : i32
    return %arg0, %arg1, %c0_i32, %c0_i32_0 : i32, i32, i32, i32
  }
  func.func @transform_2(%arg0: i32, %arg1: i32) -> (i32, i32, i32, i32) {
    %c1_i32 = arith.constant 1 : i32
    %0 = arith.addi %arg1, %c1_i32 : i32
    %c8_i32 = arith.constant 8 : i32
    %1 = arith.muli %0, %c8_i32 : i32
    %c7_i32 = arith.constant 7 : i32
    %2 = arith.minsi %1, %c7_i32 : i32
    %c0_i32 = arith.constant 0 : i32
    %c0_i32_0 = arith.constant 0 : i32
    %c0_i32_1 = arith.constant 0 : i32
    return %arg0, %2, %c0_i32, %c0_i32_0 : i32, i32, i32, i32
  }
  func.func @transform_3(%arg0: i32, %arg1: i32) -> (i32, i32, i32) {
    %c0_i32 = arith.constant 0 : i32
    %c0_i32_0 = arith.constant 0 : i32
    %c0_i32_1 = arith.constant 0 : i32
    %c0_i32_2 = arith.constant 0 : i32
    return %c0_i32, %c0_i32_0, %c0_i32_1 : i32, i32, i32
  }
  func.func @transform_4(%arg0: i32, %arg1: i32) -> (i32, i32) {
    %c0_i32 = arith.constant 0 : i32
    %c0_i32_0 = arith.constant 0 : i32
    %c0_i32_1 = arith.constant 0 : i32
    return %c0_i32, %c0_i32_0 : i32, i32
  }
  func.func @transform_5(%arg0: i32, %arg1: i32) -> (i32, i32, i32) {
    %c0_i32 = arith.constant 0 : i32
    %c0_i32_0 = arith.constant 0 : i32
    %c0_i32_1 = arith.constant 0 : i32
    %c0_i32_2 = arith.constant 0 : i32
    return %c0_i32, %c0_i32_0, %c0_i32_1 : i32, i32, i32
  }
  func.func @transform_6(%arg0: i32, %arg1: i32) -> (i32, i32) {
    %c0_i32 = arith.constant 0 : i32
    %c0_i32_0 = arith.constant 0 : i32
    %c0_i32_1 = arith.constant 0 : i32
    return %c0_i32, %c0_i32_0 : i32, i32
  }
  func.func @transform_7(%arg0: i32, %arg1: i32) -> (i32, i32, i32) {
    %c0_i32 = arith.constant 0 : i32
    %c0_i32_0 = arith.constant 0 : i32
    return %arg0, %arg1, %c0_i32 : i32, i32, i32
  }
}

module attributes {stable_mosaic.version = 11 : i64} {
  func.func @_resize2d_kernel(%arg0: i32, %arg1: memref<1x8x8xf32, #tpu.memory_space<vmem>>, %arg2: memref<16x8xf32, #tpu.memory_space<vmem>>, %arg3: memref<8x16xf32, #tpu.memory_space<vmem>>, %arg4: memref<1x16x16xf32, #tpu.memory_space<vmem>>) attributes {dimension_semantics = [#tpu.dimension_semantics<parallel>], iteration_bounds = array<i64: 2>, scalar_prefetch = 0 : i64, scratch_operands = 0 : i64, tpu.core_type = #tpu.core_type<tc>, window_params = [{transform_indices = @transform_0, window_bounds = array<i64: 1, 8, 8>}, {pipeline_mode = #tpu.pipeline_mode<synchronous>, transform_indices = @transform_1, window_bounds = array<i64: 16, 8>}, {pipeline_mode = #tpu.pipeline_mode<synchronous>, transform_indices = @transform_2, window_bounds = array<i64: 8, 16>}, {transform_indices = @transform_3, window_bounds = array<i64: 1, 16, 16>}]} {
    %c0 = arith.constant 0 : index
    %c0_0 = arith.constant 0 : index
    %0 = vector.load %arg2[%c0, %c0_0] : memref<16x8xf32, #tpu.memory_space<vmem>>, vector<16x8xf32>
    %c0_1 = arith.constant 0 : index
    %c0_2 = arith.constant 0 : index
    %c0_3 = arith.constant 0 : index
    %1 = vector.load %arg1[%c0_1, %c0_2, %c0_3] : memref<1x8x8xf32, #tpu.memory_space<vmem>>, vector<1x8x8xf32>
    %2 = vector.shape_cast %1 : vector<1x8x8xf32> to vector<8x8xf32>
    %cst = arith.constant dense<0.000000e+00> : vector<16x8xf32>
    %3 = tpu.matmul %0, %2, %cst {dimension_numbers = #tpu.dot_dimension_numbers<[1], [0], [0], [1], [0, 0, 1, 1], [], []>} : vector<16x8xf32>, vector<8x8xf32>, vector<16x8xf32> -> vector<16x8xf32>
    %c0_4 = arith.constant 0 : index
    %c0_5 = arith.constant 0 : index
    %4 = vector.load %arg3[%c0_4, %c0_5] : memref<8x16xf32, #tpu.memory_space<vmem>>, vector<8x16xf32>
    %cst_6 = arith.constant dense<0.000000e+00> : vector<16x16xf32>
    %5 = tpu.matmul %3, %4, %cst_6 {dimension_numbers = #tpu.dot_dimension_numbers<[1], [0], [0], [1], [0, 0, 1, 1], [], []>} : vector<16x8xf32>, vector<8x16xf32>, vector<16x16xf32> -> vector<16x16xf32>
    %c0_7 = arith.constant 0 : index
    %c0_8 = arith.constant 0 : index
    %c0_9 = arith.constant 0 : index
    %6 = vector.load %arg4[%c0_7, %c0_8, %c0_9] : memref<1x16x16xf32, #tpu.memory_space<vmem>>, vector<1x16x16xf32>
    %7 = vector.shape_cast %6 : vector<1x16x16xf32> to vector<16x16xf32>
    %8 = vector.shape_cast %5 : vector<16x16xf32> to vector<1x16x16xf32>
    tpu.vector_store %arg4[%c0_7, %c0_8, %c0_9], %8 {strides = array<i32>} : memref<1x16x16xf32, #tpu.memory_space<vmem>>, vector<1x16x16xf32>,
    return
  }
  func.func @transform_0(%arg0: i32) -> (i32, i32, i32) {
    %c0_i32 = arith.constant 0 : i32
    %c0_i32_0 = arith.constant 0 : i32
    %c0_i32_1 = arith.constant 0 : i32
    return %arg0, %c0_i32, %c0_i32_0 : i32, i32, i32
  }
  func.func @transform_1(%arg0: i32) -> (i32, i32) {
    %c0_i32 = arith.constant 0 : i32
    %c0_i32_0 = arith.constant 0 : i32
    %c0_i32_1 = arith.constant 0 : i32
    return %c0_i32, %c0_i32_0 : i32, i32
  }
  func.func @transform_2(%arg0: i32) -> (i32, i32) {
    %c0_i32 = arith.constant 0 : i32
    %c0_i32_0 = arith.constant 0 : i32
    %c0_i32_1 = arith.constant 0 : i32
    return %c0_i32, %c0_i32_0 : i32, i32
  }
  func.func @transform_3(%arg0: i32) -> (i32, i32, i32) {
    %c0_i32 = arith.constant 0 : i32
    %c0_i32_0 = arith.constant 0 : i32
    %c0_i32_1 = arith.constant 0 : i32
    return %arg0, %c0_i32, %c0_i32_0 : i32, i32, i32
  }
}

</mosaic_0001>

<bundles_post_ra>
// kernel: decoder_forward.6
= control target key start
LH: loop header
LB: loop body
LE: loop exit
PB: predicated region body
PF: predicated region fallthrough
CT: control target
= control target key end

     0   :  { %7 = vsyncpa [#allocation3], 0  ;;  %s783_s9 = smov 0   ;;  %s785_s10 = smov 0   ;;  %s864_s0 = inlined_call_operand.vmem [shape: bf16[2,4,1024], index: 0, kind: input, shape index: {}]   ;;  %s865_s1 = inlined_call_operand.hbm [shape: bf16[8,4], index: 1, kind: input, shape index: {}]   ;;  %s866_s2 = inlined_call_operand.vmem [shape: bf16[2,8,2048], index: 2, kind: output, shape index: {}]  }
   0x1   :  { %s787_s11 = smov 0  }
   0x2 LB: > { %s633_s12 = sadd.s32 4294967295, %s763_s11   ;;  %s25_s13 = sadd.s32 1, %s759_s10  ;;  %s763_s11 = sphi %s787_s11, %s13_s11   ;;  %s759_s10 = sphi %s785_s10, %s870_s10   ;;  %s755_s9 = sphi %s783_s9, %s869_s9  }
   0x3   : > { %p27_p0 = scmp.ge.s32.totalorder %s25_s13, 2  ;;  %p635_p1 = scmp.ge.s32.totalorder %s763_s11, 1 }
   0x4   : > { %p110_p2 = scmp.lt.s32.totalorder %s763_s11, 3  ;;  %p808_p4 = scmp.eq.s32.totalorder %s633_s12, 0 }
   0x5   : > { %s872_s13 = smov (%p27_p0, %s25_s13), 0  ;;  %s765_s16 = smov [#allocation2]  }
   0x6   : > { %p804_p3 = pnand %p635_p1, %p110_p2  ;;  %s125_s17 = sshll.u32 %s765_s16, 4  ;;  %s126_s17 = int_to_ptr.vmem [resolvable:$true] %s125_s17 }
   0x7   : > { %s722_s18 = scalar_lea.vmem %s126_s17, 64  ;;  %p730_p11 = scmp.lt.s32.totalorder %s126_s17, %s126_s17 }
   0x8   : > { %p676_p5 = pneg %p804_p3  ;;  %p723_p8 = scmp.ne.s32.totalorder %s126_s17, %s722_s18 }
   0x9   : > { %p731_p12 = scmp.lt.s32.totalorder %s722_s18, %s722_s18 }
   0xa   : > { %p677_p6 = pnand %p808_p4, %p676_p5 }
   0xb   : > { %p732_p13 = por %p731_p12, %p730_p11 }
   0xc   : > { %p713_p7 = pneg %p677_p6 }
   0xe   : > { %p725_p9 = pnand %p723_p8, %p713_p7 }
  0x10   : > { %p726_p10 = pneg %p725_p9 }
  0x12   : > { %p733_p0 = pnand %p732_p13, %p726_p10 }
  0x14   : > { %736 = shalt.err (!%p733_p0)
}
  0x15   : > { %679 = dma.hbm_to_vmem [thread:$0]  (!%p677_p6), %s865_s1, 64, %s126_s17, [#allocation3]  }
  0x16   : > { %146 = sbr.rel (%p804_p3) target bundleno = 257 (0x101), region = 28 }
  0x1b   : > { %750 = dma.done.wait (%p808_p4), [#allocation3], 64  }
  0x1c   : > { %752 = vsyncadd (%p808_p4), [#allocation3], 4294967232  ;;  %p172_p1 = scmp.lt.s32.totalorder %s755_s9, 1  ;;  %v196_v0 = vlaneseq  ;;  %v766_v1 = vmov 1983009808   ;;  %v767_v4 = vmov 0  }
  0x1d   : > { %v194_v2 = vunpack.c.l.s4 %v766_v1  ;;  %287 = vmatprep.mubr.bf16.mxu0 %v767_v4  ;;  %328 = vmatprep.mubr.bf16.mxu1 %v767_v4  ;;  %vm230_vm0 = vcmask 1041408   ;;  %v187_v20 = vld [vmem:[#allocation2] sm:$0xf]  ;;  %vm226_vm1 = vcmask 31744  }
  0x1e   : > { %s874_s9 = smov (!%p172_p1, %s755_s9), 1  ;;  %v197_v3 = vshrl.u32 %v196_v0, 7 }
  0x1f   : > { %v195_v5 = vunpack.c.0.s8 %v194_v2  ;;  %s662_s21 = sshll.u32 %s874_s9, 4  ;;  %s663_s25 = sshll.u32 %s874_s9, 6 }
  0x20   : > { %s176_s24 = scalar_lea.vmem %s864_s0, %s662_s21  ;;  %s845_s28 = scalar_lea.vmem %s866_s2, %s663_s25 }
  0x21   : > { %v198_v6 = vsub.s32 %v195_v5, %v197_v3  ;;  %v188_v7 = vld [vmem:[%s176_s24] sm:$0xff]  ;;  %v189_v8 = vld [vmem:[%s176_s24 + $0x8] sm:$0xff] }
  0x22   : > { %v209_v10 = vcombine.high %v189_v8, %v189_v8  ;;  %v192_v12 = vcombine.high %v188_v7, %v188_v7 }
  0x23   : > { %v199_v9 = vrot.slane %v188_v7, %v198_v6  ;;  %v216_v11 = vrot.slane %v189_v8, %v198_v6 }
  0x24   : > { %v206_v15 = vrot.slane %v192_v12, %v198_v6  ;;  %v223_v17 = vrot.slane %v209_v10, %v198_v6 }
  0x25   : > { %v207_v13 = vcombine.high %v199_v9, %v199_v9  ;;  %v232_v14 = vsel %vm230_vm0, %v199_v9, 0  ;;  %v224_v16 = vcombine.high %v216_v11, %v216_v11  ;;  %v244_v22 = vsel %vm230_vm0, %v216_v11, 0 }
  0x26   : > { %v208_v18 = vcombine.high %v206_v15, %v206_v15  ;;  %v238_v19 = vsel %vm230_vm0, %v206_v15, 0  ;;  %v225_v21 = vcombine.high %v223_v17, %v223_v17  ;;  %v250_v23 = vsel %vm230_vm0, %v223_v17, 0 }
  0x27   : > { %644 = vmatprep.subr.msk.bf16.mxu0 %vm230_vm0, %v207_v13 }
  0x28   : > { %270 = vmatpush1.bf16.msra.mxu0 %v232_v14  ;;  %646 = vmatprep.subr.msk.bf16.mxu1 %vm230_vm0, %v208_v18 }
  0x29   : > { %648 = vmatprep.subr.msk.bf16.mxu0 %vm230_vm0, %v224_v16  ;;  %311 = vmatpush1.bf16.msra.mxu1 %v238_v19 }
  0x2a   : > { %650 = vmatprep.subr.msk.bf16.mxu1 %vm230_vm0, %v225_v21 }
  0x2b   : > { %645 = vmatmul.mubr.msk.bf16.vlgmr.msra.gmra.mxu0 %vm226_vm1, %v187_v20 }
  0x2c   : > { %352 = vmatpush1.bf16.msra.mxu0 %v244_v22  ;;  %369 = vmatprep.mubr.bf16.mxu0 %v767_v4 }
  0x2d   : > { %647 = vmatmul.mubr.msk.bf16.vlgmr.msra.gmra.mxu1 %vm226_vm1, %v187_v20 }
  0x2e   : > { %393 = vmatpush1.bf16.msra.mxu1 %v250_v23  ;;  %410 = vmatprep.mubr.bf16.mxu1 %v767_v4 }
  0x33   : > { %649 = vmatmul.mubr.msk.bf16.vlgmr.msra.gmra.mxu0 %vm226_vm1, %v187_v20 }
  0x35   : > { %651 = vmatmul.mubr.msk.bf16.vlgmr.msra.gmra.mxu1 %vm226_vm1, %v187_v20 }
  0xeb   : > { %v289_v24 = vpop.f32.mrf.mxu0 }
  0xec   : > { %v432_v27 = vmul.f32 0.5714286, %v289_v24  ;;  %v447_v29 = vmul.f32 0.14285715, %v289_v24 }
  0xed   : > { %v291_v25 = vpop.f32.mrf.mxu0  ;;  %v330_v26 = vpop.f32.mrf.mxu1 }
  0xee   : > { %v419_v28 = vmul.f32 0.0, %v330_v26  ;;  %v434_v30 = vmul.f32 0.42857143, %v330_v26  ;;  %v449_v31 = vmul.f32 0.85714287, %v330_v26 }
  0xef   : > { %v293_v32 = vpop.f32.mrf.mxu0  ;;  %v332_v33 = vpop.f32.mrf.mxu1  ;;  %v433_v34 = vmul.f32 0.5714286, %v291_v25  ;;  %v448_v37 = vmul.f32 0.14285715, %v291_v25  ;;  %v462_v46 = vmul.f32 0.71428573, %v330_v26 }
  0xf0   : > { %v420_v35 = vmul.f32 0.0, %v332_v33  ;;  %v435_v36 = vmul.f32 0.42857143, %v332_v33  ;;  %v450_v38 = vmul.f32 0.85714287, %v332_v33  ;;  %v421_v41 = vadd.f32 %v419_v28, %v289_v24 }
  0xf1   : > { %v294_v39 = vpop.f32.mrf.mxu0  ;;  %v334_v40 = vpop.f32.mrf.mxu1  ;;  %v436_v42 = vadd.f32 %v434_v30, %v432_v27  ;;  %v451_v45 = vadd.f32 %v449_v31, %v447_v29  ;;  %v477_v47 = vmul.f32 0.2857143, %v330_v26  ;;  %v463_v56 = vmul.f32 0.71428573, %v332_v33 }
  0xf2   : > { %v422_v43 = vadd.f32 %v420_v35, %v291_v25  ;;  %v437_v44 = vadd.f32 %v435_v36, %v433_v34  ;;  %v452_v48 = vadd.f32 %v450_v38, %v448_v37  ;;  %v478_v57 = vmul.f32 0.2857143, %v332_v33 }
  0xf3   : > { %v335_v49 = vpop.f32.mrf.mxu1  ;;  %v371_v50 = vpop.f32.mrf.mxu0 }
  0xf4   : > { %v664_v51 = vpack.c.bf16 %v422_v43, %v421_v41  ;;  %v665_v52 = vpack.c.bf16 %v437_v44, %v436_v42  ;;  %v464_v53 = vmul.f32 0.2857143, %v371_v50  ;;  %v479_v54 = vmul.f32 0.71428573, %v371_v50 }
  0xf5   : > { %v666_v55 = vpack.c.bf16 %v452_v48, %v451_v45  ;;  %v492_v58 = vmul.f32 0.85714287, %v371_v50  ;;  %v373_v59 = vpop.f32.mrf.mxu0  ;;  %v412_v60 = vpop.f32.mrf.mxu1  ;;  %v507_v62 = vmul.f32 0.42857143, %v371_v50 }
  0xf6   : > { %431 = vst [vmem:[%s845_s28] sm:$0xff] %v664_v51  ;;  %446 = vst [vmem:[%s845_s28 + $0x8] sm:$0xff] %v665_v52  ;;  %v466_v61 = vadd.f32 %v464_v53, %v462_v46  ;;  %v465_v63 = vmul.f32 0.2857143, %v373_v59  ;;  %v480_v0 = vmul.f32 0.71428573, %v373_v59  ;;  %v481_v1 = vadd.f32 %v479_v54, %v477_v47 }
  0xf7   : > { %461 = vst [vmem:[%s845_s28 + $0x10] sm:$0xff] %v666_v55  ;;  %v493_v2 = vmul.f32 0.85714287, %v373_v59  ;;  %v508_v3 = vmul.f32 0.42857143, %v373_v59  ;;  %v375_v5 = vpop.f32.mrf.mxu0  ;;  %v414_v6 = vpop.f32.mrf.mxu1  ;;  %v522_v10 = vmul.f32 0.0, %v412_v60 }
  0xf8   : > { %v494_v4 = vmul.f32 0.14285715, %v412_v60  ;;  %v467_v7 = vadd.f32 %v465_v63, %v463_v56  ;;  %v482_v8 = vadd.f32 %v480_v0, %v478_v57  ;;  %v509_v9 = vmul.f32 0.5714286, %v412_v60 }
  0xf9   : > { %v495_v11 = vmul.f32 0.14285715, %v414_v6  ;;  %v510_v12 = vmul.f32 0.5714286, %v414_v6  ;;  %v523_v13 = vmul.f32 0.0, %v414_v6  ;;  %v376_v14 = vpop.f32.mrf.mxu0  ;;  %v416_v15 = vpop.f32.mrf.mxu1  ;;  %v524_v20 = vadd.f32 %v522_v10, %v412_v60 }
  0xfa   : > { %v667_v16 = vpack.c.bf16 %v467_v7, %v466_v61  ;;  %v668_v17 = vpack.c.bf16 %v482_v8, %v481_v1  ;;  %v496_v18 = vadd.f32 %v494_v4, %v492_v58  ;;  %v511_v19 = vadd.f32 %v509_v9, %v507_v62 }
  0xfb   : > { %v497_v21 = vadd.f32 %v495_v11, %v493_v2  ;;  %v512_v22 = vadd.f32 %v510_v12, %v508_v3  ;;  %v525_v23 = vadd.f32 %v523_v13, %v414_v6  ;;  %v417_v24 = vpop.f32.mrf.mxu1 }
  0xfc   : > { %476 = vst [vmem:[%s845_s28 + $0x18] sm:$0xff] %v667_v16  ;;  %491 = vst [vmem:[%s845_s28 + $0x20] sm:$0xff] %v668_v17 }
  0xfd   : > { %v669_v25 = vpack.c.bf16 %v497_v21, %v496_v18  ;;  %v670_v26 = vpack.c.bf16 %v512_v22, %v511_v19  ;;  %v671_v27 = vpack.c.bf16 %v525_v23, %v524_v20 }
  0xff   : > { %506 = vst [vmem:[%s845_s28 + $0x28] sm:$0xff] %v669_v25  ;;  %521 = vst [vmem:[%s845_s28 + $0x30] sm:$0xff] %v670_v26 }
 0x100   : > { %534 = vst [vmem:[%s845_s28 + $0x38] sm:$0xff] %v671_v27 }
 0x101 PF: > { %s13_s11 = sadd.s32 1, %s763_s11   ;;  %s869_s9 = smov %s759_s10 }
 0x102   : > { %p10_p2 = scmp.ge.s32.totalorder %s13_s11, 4   ;;  %s870_s10 = smov %s872_s13 }
 0x104   :  { %12 = sbr.rel (!%p10_p2) target bundleno = 2 (0x2), region = 64 }
 0x109   :  { %564 = vsyncpa [#allocation3], 1 }
 0x10a   :  { %566 = vsyncpa [#allocation3 + $0x1], 1 }

// kernel: decoder_forward.5
= control target key start
LH: loop header
LB: loop body
LE: loop exit
PB: predicated region body
PF: predicated region fallthrough
CT: control target
= control target key end

     0   :  { %8 = vsyncpa [#allocation3], 0  ;;  %s871_s0 = inlined_call_operand.vmem [shape: bf16[128,256], index: 0, kind: input, shape index: {}]   ;;  %s872_s1 = inlined_call_operand.hbm [shape: bf16[256,128], index: 1, kind: input, shape index: {}]   ;;  %s873_s2 = inlined_call_operand.hbm [shape: f32[1,128], index: 2, kind: input, shape index: {}]   ;;  %s874_s3 = inlined_call_operand.vmem [shape: bf16[128,128], index: 3, kind: output, shape index: {}]  }
   0x1   :  { %9 = vsyncpa [#allocation5], 0  ;;  %s751_s12 = smov [#allocation2]  }
   0x2   :  { %s17_s13 = sshll.u32 %s751_s12, 4  ;;  %s18_s13 = int_to_ptr.vmem [resolvable:$true] %s17_s13 }
   0x3   :  { %s715_s14 = scalar_lea.vmem %s18_s13, 2048  ;;  %p720_p1 = scmp.lt.s32.totalorder %s18_s13, %s18_s13 }
   0x4   :  { %p716_p0 = scmp.ne.s32.totalorder %s18_s13, %s715_s14  ;;  %p721_p2 = scmp.lt.s32.totalorder %s715_s14, %s715_s14 }
   0x6   :  { %p722_p3 = por %p721_p2, %p720_p1 }
   0x8   :  { %p723_p4 = pnand %p722_p3, %p716_p0 }
   0xa   :  { %726 = shalt.err (!%p723_p4)
}
   0xb   :  { %s752_s15 = smov 64   ;;  %s753_s16 = smov 4  }
   0xc   :  { %23 = dma.hbm_to_vmem [thread:$0]  %s872_s1, 2048, %s18_s13, [#allocation3], %s752_s15, %s752_s15, %s753_s16  }
   0xd   :  { %s754_s19 = smov [#allocation4]  }
   0xe   :  { %s30_s20 = sshll.u32 %s754_s19, 4  ;;  %s31_s20 = int_to_ptr.vmem [resolvable:$true] %s30_s20 }
   0xf   :  { %s735_s21 = scalar_lea.vmem %s31_s20, 16  ;;  %s739_s22 = scalar_lea.vmem %s31_s20, 32 }
  0x10   :  { %p736_p5 = scmp.ne.s32.totalorder %s31_s20, %s735_s21  ;;  %p740_p6 = scmp.lt.s32.totalorder %s31_s20, %s31_s20 }
  0x11   :  { %p741_p7 = scmp.lt.s32.totalorder %s739_s22, %s735_s21 }
  0x13   :  { %p742_p8 = por %p741_p7, %p740_p6 }
  0x15   :  { %p743_p9 = pnand %p742_p8, %p736_p5 }
  0x17   :  { %746 = shalt.err (!%p743_p9)
}
  0x18   :  { %33 = dma.hbm_to_vmem [thread:$0]  %s873_s2, 16, %s31_s20, [#allocation5]  }
  0x19   :  { %747 = dma.done.wait [#allocation3], 2048  }
  0x1a   :  { %748 = vsyncadd [#allocation3], 4294965248 }
  0x1b   :  { %749 = dma.done.wait [#allocation5], 16  }
  0x1c   :  { %750 = vsyncadd [#allocation5], 4294967280  ;;  %v667_v0 = vld [vmem:[#allocation2 + $0x78] sm:$0xff]   ;;  %v669_v2 = vld [vmem:[#allocation2 + $0x70] sm:$0xff]  }
  0x1d   :  { %v668_v1 = vld [vmem:[#allocation2 + $0x38] sm:$0xff]   ;;  %583 = vmatprep.subr.bf16.mxu0 %v667_v0  ;;  %647 = vmatprep.subr.bf16.mxu1 %v667_v0  ;;  %v670_v3 = vld [vmem:[#allocation2 + $0x30] sm:$0xff]   ;;  %v671_v4 = vld [vmem:[#allocation2 + $0x68] sm:$0xff]  }
  0x1e   :  { %584 = vmatpush3.bf16.msra.mxu0 %v668_v1  ;;  %655 = vmatpush3.bf16.msra.mxu1 %v668_v1  ;;  %v672_v5 = vld [vmem:[#allocation2 + $0x28] sm:$0xff]   ;;  %v673_v6 = vld [vmem:[#allocation2 + $0x60] sm:$0xff]   ;;  %v675_v8 = vld [vmem:[#allocation2 + $0x58] sm:$0xff]  }
  0x1f   :  { %585 = vmatprep.subr.bf16.mxu0 %v669_v2  ;;  %648 = vmatprep.subr.bf16.mxu1 %v669_v2  ;;  %v674_v7 = vld [vmem:[#allocation2 + $0x20] sm:$0xff]   ;;  %v676_v9 = vld [vmem:[#allocation2 + $0x18] sm:$0xff]   ;;  %v677_v10 = vld [vmem:[#allocation2 + $0x50] sm:$0xff]  }
  0x20   :  { %v685_v11 = vld [vmem:[%s871_s0 + $0x4] ss:$8 sps:$4 sm:$0xff]   ;;  %v678_v13 = vld [vmem:[#allocation2 + $0x10] sm:$0xff]   ;;  %v683_v18 = vld [vmem:[%s871_s0] ss:$8 sps:$4 sm:$0xff]  }
  0x21   :  { %v688_v12 = vld [vmem:[%s871_s0 + $0x44] ss:$8 sps:$4 sm:$0xff]   ;;  %304 = vmatprep.mubr.bf16.mxu0 %v685_v11  ;;  %v686_v19 = vld [vmem:[%s871_s0 + $0x40] ss:$8 sps:$4 sm:$0xff]   ;;  %v689_v20 = vld [vmem:[%s871_s0 + $0x14] ss:$8 sps:$4 sm:$0xff]  }
  0x22   :  { %586 = vmatpush3.bf16.msra.mxu0 %v670_v3  ;;  %656 = vmatpush3.bf16.msra.mxu1 %v670_v3  ;;  %v679_v14 = vld [vmem:[#allocation2 + $0x48] sm:$0xff]   ;;  %v681_v16 = vld [vmem:[#allocation2 + $0x40] sm:$0xff]   ;;  %v691_v21 = vld [vmem:[%s871_s0 + $0x54] ss:$8 sps:$4 sm:$0xff]  }
  0x23   :  { %587 = vmatprep.subr.bf16.mxu0 %v671_v4  ;;  %649 = vmatprep.subr.bf16.mxu1 %v671_v4  ;;  %v680_v15 = vld [vmem:[#allocation2 + $0x8] sm:$0xff]   ;;  %v682_v17 = vld [vmem:[#allocation2] sm:$0xff]   ;;  %v693_v22 = vld [vmem:[%s871_s0 + $0x10] ss:$8 sps:$4 sm:$0xff]  }
  0x24   :  { %336 = vmatprep.mubr.bf16.mxu1 %v688_v12  ;;  %v694_v23 = vld [vmem:[%s871_s0 + $0x50] ss:$8 sps:$4 sm:$0xff]   ;;  %v695_v24 = vld [vmem:[%s871_s0 + $0x24] ss:$8 sps:$4 sm:$0xff]   ;;  %v699_v26 = vld [vmem:[%s871_s0 + $0x20] ss:$8 sps:$4 sm:$0xff]  }
  0x25   :  { %v697_v25 = vld [vmem:[%s871_s0 + $0x64] ss:$8 sps:$4 sm:$0xff]   ;;  %v700_v27 = vld [vmem:[%s871_s0 + $0x60] ss:$8 sps:$4 sm:$0xff]   ;;  %v701_v28 = vld [vmem:[%s871_s0 + $0x34] ss:$8 sps:$4 sm:$0xff]  }
  0x26   :  { %588 = vmatpush3.bf16.msra.mxu0 %v672_v5  ;;  %657 = vmatpush3.bf16.msra.mxu1 %v672_v5  ;;  %v703_v29 = vld [vmem:[%s871_s0 + $0x74] ss:$8 sps:$4 sm:$0xff]   ;;  %v705_v30 = vld [vmem:[%s871_s0 + $0x30] ss:$8 sps:$4 sm:$0xff]   ;;  %v829_v36 = vld [vmem:[#allocation4] ss:$0 sm:$0xff] }
  0x27   :  { %589 = vmatprep.subr.bf16.mxu0 %v673_v6  ;;  %650 = vmatprep.subr.bf16.mxu1 %v673_v6  ;;  %v706_v31 = vld [vmem:[%s871_s0 + $0x70] ss:$8 sps:$4 sm:$0xff]  }
  0x2a   :  { %590 = vmatpush3.bf16.msra.mxu0 %v674_v7  ;;  %658 = vmatpush3.bf16.msra.mxu1 %v674_v7 }
  0x2b   :  { %591 = vmatprep.subr.bf16.mxu0 %v675_v8  ;;  %651 = vmatprep.subr.bf16.mxu1 %v675_v8 }
  0x2e   :  { %592 = vmatpush3.bf16.msra.mxu0 %v676_v9  ;;  %659 = vmatpush3.bf16.msra.mxu1 %v676_v9 }
  0x2f   :  { %593 = vmatprep.subr.bf16.mxu0 %v677_v10  ;;  %652 = vmatprep.subr.bf16.mxu1 %v677_v10 }
  0x32   :  { %594 = vmatpush3.bf16.msra.mxu0 %v678_v13  ;;  %660 = vmatpush3.bf16.msra.mxu1 %v678_v13 }
  0x33   :  { %595 = vmatprep.subr.bf16.mxu0 %v679_v14  ;;  %653 = vmatprep.subr.bf16.mxu1 %v679_v14 }
  0x36   :  { %596 = vmatpush3.bf16.msra.mxu0 %v680_v15  ;;  %661 = vmatpush3.bf16.msra.mxu1 %v680_v15 }
  0x37   :  { %597 = vmatprep.subr.bf16.mxu0 %v681_v16  ;;  %654 = vmatprep.subr.bf16.mxu1 %v681_v16 }
  0x3a   :  { %598 = vmatpush3.bf16.msra.mxu0 %v682_v17  ;;  %662 = vmatpush3.bf16.msra.mxu1 %v682_v17 }
  0x3d   :  { %305 = vmatmul.mubr.bf16.vlgmr.msra.gmra.mxu0 %v683_v18  ;;  %337 = vmatmul.mubr.bf16.vlgmr.msra.gmra.mxu1 %v686_v19 }
  0x3e   :  { %312 = vmatprep.mubr.bf16.mxu0 %v689_v20  ;;  %344 = vmatprep.mubr.bf16.mxu1 %v691_v21 }
  0x45   :  { %313 = vmatmul.mubr.bf16.gmra.mxu0 %v693_v22  ;;  %345 = vmatmul.mubr.bf16.gmra.mxu1 %v694_v23 }
  0x46   :  { %320 = vmatprep.mubr.bf16.mxu0 %v695_v24  ;;  %352 = vmatprep.mubr.bf16.mxu1 %v697_v25 }
  0x4d   :  { %321 = vmatmul.mubr.bf16.gmra.mxu0 %v699_v26  ;;  %353 = vmatmul.mubr.bf16.gmra.mxu1 %v700_v27 }
  0x4e   :  { %328 = vmatprep.mubr.bf16.mxu0 %v701_v28  ;;  %360 = vmatprep.mubr.bf16.mxu1 %v703_v29 }
  0x55   :  { %329 = vmatmul.mubr.bf16.gmra.mxu0 %v705_v30  ;;  %361 = vmatmul.mubr.bf16.gmra.mxu1 %v706_v31 }
  0xfd   :  { %v599_v32 = vpop.f32.mrf.mxu0  ;;  %v623_v33 = vpop.f32.mrf.mxu1 }
  0xff   :  { %v600_v34 = vpop.f32.mrf.mxu0  ;;  %v624_v35 = vpop.f32.mrf.mxu1 }
 0x100   :  { %v601_v37 = vadd.f32 %v600_v34, %v599_v32  ;;  %v625_v38 = vadd.f32 %v624_v35, %v623_v33 }
 0x101   :  { %v602_v39 = vpop.f32.mrf.mxu0  ;;  %v626_v40 = vpop.f32.mrf.mxu1 }
 0x102   :  { %v307_v41 = vadd.f32 %v601_v37, %v829_v36  ;;  %v339_v42 = vadd.f32 %v625_v38, %v829_v36 }
 0x103   :  { %v603_v43 = vpop.f32.mrf.mxu0  ;;  %v627_v44 = vpop.f32.mrf.mxu1 }
 0x104   :  { %v604_v45 = vadd.f32 %v603_v43, %v602_v39  ;;  %v628_v46 = vadd.f32 %v627_v44, %v626_v40  ;;  %v369_v51 = vmax.f32 %v307_v41, 0.0  ;;  %v377_v52 = vmax.f32 %v339_v42, 0.0 }
 0x105   :  { %v605_v47 = vpop.f32.mrf.mxu0  ;;  %v629_v48 = vpop.f32.mrf.mxu1 }
 0x106   :  { %v310_v49 = vadd.f32 %v604_v45, %v829_v36  ;;  %v342_v50 = vadd.f32 %v628_v46, %v829_v36 }
 0x107   :  { %v606_v53 = vpop.f32.mrf.mxu0  ;;  %v630_v54 = vpop.f32.mrf.mxu1 }
 0x108   :  { %v370_v55 = vmax.f32 %v310_v49, 0.0  ;;  %v378_v56 = vmax.f32 %v342_v50, 0.0  ;;  %v607_v57 = vadd.f32 %v606_v53, %v605_v47  ;;  %v631_v58 = vadd.f32 %v630_v54, %v629_v48 }
 0x109   :  { %v608_v59 = vpop.f32.mrf.mxu0  ;;  %v632_v60 = vpop.f32.mrf.mxu1 }
 0x10a   :  { %v539_v61 = vpack.c.bf16 %v370_v55, %v369_v51  ;;  %v559_v62 = vpack.c.bf16 %v378_v56, %v377_v52  ;;  %v315_v63 = vadd.f32 %v607_v57, %v829_v36  ;;  %v347_v0 = vadd.f32 %v631_v58, %v829_v36 }
 0x10b   :  { %v609_v1 = vpop.f32.mrf.mxu0  ;;  %v633_v2 = vpop.f32.mrf.mxu1 }
 0x10c   :  { %540 = vst [vmem:[%s874_s3] sm:$0xff] %v539_v61   ;;  %579 = vst [vmem:[%s874_s3 + $0x20] sm:$0xff] %v559_v62   ;;  %v610_v3 = vadd.f32 %v609_v1, %v608_v59  ;;  %v634_v4 = vadd.f32 %v633_v2, %v632_v60  ;;  %v371_v9 = vmax.f32 %v315_v63, 0.0  ;;  %v379_v10 = vmax.f32 %v347_v0, 0.0 }
 0x10d   :  { %v611_v5 = vpop.f32.mrf.mxu0  ;;  %v635_v6 = vpop.f32.mrf.mxu1 }
 0x10e   :  { %v318_v7 = vadd.f32 %v610_v3, %v829_v36  ;;  %v350_v8 = vadd.f32 %v634_v4, %v829_v36 }
 0x10f   :  { %v612_v11 = vpop.f32.mrf.mxu0  ;;  %v636_v12 = vpop.f32.mrf.mxu1 }
 0x110   :  { %v372_v13 = vmax.f32 %v318_v7, 0.0  ;;  %v380_v14 = vmax.f32 %v350_v8, 0.0  ;;  %v613_v15 = vadd.f32 %v612_v11, %v611_v5  ;;  %v637_v16 = vadd.f32 %v636_v12, %v635_v6 }
 0x111   :  { %v614_v17 = vpop.f32.mrf.mxu0  ;;  %v638_v18 = vpop.f32.mrf.mxu1 }
 0x112   :  { %v544_v19 = vpack.c.bf16 %v372_v13, %v371_v9  ;;  %v564_v20 = vpack.c.bf16 %v380_v14, %v379_v10  ;;  %v323_v21 = vadd.f32 %v613_v15, %v829_v36  ;;  %v355_v22 = vadd.f32 %v637_v16, %v829_v36 }
 0x113   :  { %v615_v23 = vpop.f32.mrf.mxu0  ;;  %v639_v24 = vpop.f32.mrf.mxu1 }
 0x114   :  { %576 = vst [vmem:[%s874_s3 + $0x8] sm:$0xff] %v544_v19   ;;  %580 = vst [vmem:[%s874_s3 + $0x28] sm:$0xff] %v564_v20   ;;  %v616_v25 = vadd.f32 %v615_v23, %v614_v17  ;;  %v640_v26 = vadd.f32 %v639_v24, %v638_v18  ;;  %v373_v31 = vmax.f32 %v323_v21, 0.0  ;;  %v381_v32 = vmax.f32 %v355_v22, 0.0 }
 0x115   :  { %v617_v27 = vpop.f32.mrf.mxu0  ;;  %v641_v28 = vpop.f32.mrf.mxu1 }
 0x116   :  { %v326_v29 = vadd.f32 %v616_v25, %v829_v36  ;;  %v358_v30 = vadd.f32 %v640_v26, %v829_v36 }
 0x117   :  { %v618_v33 = vpop.f32.mrf.mxu0  ;;  %v642_v34 = vpop.f32.mrf.mxu1 }
 0x118   :  { %v374_v35 = vmax.f32 %v326_v29, 0.0  ;;  %v382_v37 = vmax.f32 %v358_v30, 0.0  ;;  %v619_v38 = vadd.f32 %v618_v33, %v617_v27  ;;  %v643_v39 = vadd.f32 %v642_v34, %v641_v28 }
 0x119   :  { %v620_v40 = vpop.f32.mrf.mxu0  ;;  %v644_v41 = vpop.f32.mrf.mxu1 }
 0x11a   :  { %v549_v42 = vpack.c.bf16 %v374_v35, %v373_v31  ;;  %v569_v43 = vpack.c.bf16 %v382_v37, %v381_v32  ;;  %v331_v46 = vadd.f32 %v619_v38, %v829_v36  ;;  %v363_v47 = vadd.f32 %v643_v39, %v829_v36 }
 0x11b   :  { %v621_v44 = vpop.f32.mrf.mxu0  ;;  %v645_v45 = vpop.f32.mrf.mxu1 }
 0x11c   :  { %577 = vst [vmem:[%s874_s3 + $0x10] sm:$0xff] %v549_v42   ;;  %581 = vst [vmem:[%s874_s3 + $0x30] sm:$0xff] %v569_v43   ;;  %v622_v48 = vadd.f32 %v621_v44, %v620_v40  ;;  %v646_v49 = vadd.f32 %v645_v45, %v644_v41  ;;  %v375_v52 = vmax.f32 %v331_v46, 0.0  ;;  %v383_v53 = vmax.f32 %v363_v47, 0.0 }
 0x11e   :  { %v334_v50 = vadd.f32 %v622_v48, %v829_v36  ;;  %v366_v51 = vadd.f32 %v646_v49, %v829_v36 }
 0x120   :  { %v376_v54 = vmax.f32 %v334_v50, 0.0  ;;  %v384_v55 = vmax.f32 %v366_v51, 0.0 }
 0x122   :  { %v554_v56 = vpack.c.bf16 %v376_v54, %v375_v52  ;;  %v574_v57 = vpack.c.bf16 %v384_v55, %v383_v53 }
 0x124   :  { %578 = vst [vmem:[%s874_s3 + $0x18] sm:$0xff] %v554_v56   ;;  %582 = vst [vmem:[%s874_s3 + $0x38] sm:$0xff] %v574_v57  }
 0x125   :  { %469 = vsyncpa [#allocation3], 1 }
 0x126   :  { %470 = vsyncpa [#allocation5], 1 }

// kernel: decoder_forward.9
= control target key start
LH: loop header
LB: loop body
LE: loop exit
PB: predicated region body
PF: predicated region fallthrough
CT: control target
= control target key end

     0   :  { %8 = vsyncpa [#allocation3], 0  ;;  %s685_s0 = inlined_call_operand.vmem [shape: f32[2,8,8], index: 0, kind: input, shape index: {}]   ;;  %s686_s1 = inlined_call_operand.vmem [shape: f32[16,8], index: 1, kind: input, shape index: {}]   ;;  %s687_s2 = inlined_call_operand.vmem [shape: f32[8,16], index: 2, kind: input, shape index: {}]   ;;  %s688_s3 = inlined_call_operand.hbm [shape: f32[2,16,16], index: 3, kind: output, shape index: {}]  }
   0x1   :  { %10 = vsyncpa [#allocation3 + $0x1], 0  ;;  %s570_s12 = smov 0   ;;  %s572_s13 = smov 0  }
   0x2   :  { %s574_s14 = smov 0   ;;  %s576_s15 = smov 0  }
   0x3 LB: > { %s591_s16 = sadd.s32 4294967295, %s545_s15   ;;  %s412_s17 = sadd.s32 4294967294, %s545_s15   ;;  %s545_s15 = sphi %s576_s15, %s694_s15   ;;  %s541_s14 = sphi %s574_s14, %s693_s14   ;;  %s537_s13 = sphi %s572_s13, %s692_s13   ;;  %s533_s12 = sphi %s570_s12, %s691_s12  }
   0x4   : > { %s595_s18 = sadd.s32 1, %s545_s15   ;;  %s91_s19 = sadd.s32 1, %s541_s14 }
   0x5   : > { %s88_s20 = ssub.s32 %s545_s15, %s595_s18  ;;  %p101_p0 = scmp.ne.s32.totalorder %s541_s14, %s537_s13 }
   0x6   : > { %p89_p1 = scmp.eq.s32.totalorder %s88_s20, 0  ;;  %p102_p2 = scmp.eq.s32.totalorder %s591_s16, 1 }
   0x7   : > { %p107_p3 = scmp.ne.s32.totalorder %s537_s13, %s533_s12  ;;  %p108_p4 = scmp.eq.s32.totalorder %s412_s17, 1 }
   0x8   : > { %s606_s21 = scalar_select %p89_p1, %s541_s14, %s91_s19  }
   0x9   : > { %p608_p5 = por %p102_p2, %p101_p0  ;;  %p612_p6 = por %p108_p4, %p107_p3 }
   0xa   : > { %p415_p7 = scmp.ge.s32.totalorder %s545_s15, 1  ;;  %p139_p8 = scmp.lt.s32.totalorder %s545_s15, 3 }
   0xc   : > { %p140_p9 = pnand %p415_p7, %p139_p8 }
   0xd   : > { %p162_p10 = scmp.lt.s32.totalorder (!%p140_p9), %s591_s16, 1  ;;  %s159_s8 = sand.u32 (!%p140_p9), 1, %s537_s13  }
   0xe   : > { %143 = sbr.rel (%p140_p9) target bundleno = 431 (0x1af), region = 32  ;;  %s416_s9 = sshll.u32 (!%p140_p9), %s159_s8, 4 }
   0xf   : > { %s161_s10 = scalar_lea.vmem (!%p140_p9), [#allocation2], %s416_s9  ;;  %s427_s17 = sshll.u32 (!%p140_p9), %s591_s16, 8 }
  0x10   : > { %s350_s11 = sshll.u32 (!%p140_p9), %s161_s10, 4  ;;  %s643_s24 = scalar_lea.hbm (!%p140_p9), %s688_s3, %s427_s17  ;;  %s638_s11 = int_to_ptr.vmem [resolvable:$true] %s350_s11 }
  0x11   : > { %s645_s25 = scalar_lea.sflag (!%p140_p9), [#allocation3], %s159_s8 }
  0x13   : > { %v166_v0 = vld [vmem:[%s686_s1] sm:$0xff]  ;;  %vm169_vm0 = vcmask 64512   ;;  %s163_s26 = scalar_select %p162_p10, %s591_s16, 1  ;;  %v167_v2 = vld [vmem:[%s686_s1 + $0x8] sm:$0xff]  ;;  %vm333_vm1 = vcmask 130048  }
  0x14   : > { %436 = vmatprep.mubr.msk.f32.mxu0 %vm169_vm0, %v166_v0  ;;  %v251_v3 = vld [vmem:[%s687_s2] sm:$0xff]  ;;  %s547_s16 = smov [#allocation2]  }
  0x15   : > { %s417_s27 = sshll.u32 %s163_s26, 3  ;;  %439 = vmatprep.subr.mxu1 %v251_v3  ;;  %s485_s26 = scalar_lea.vmem %s638_s11, 256 }
  0x16   : > { %s165_s30 = scalar_lea.vmem %s685_s0, %s417_s27  ;;  %440 = vmatpush3.msra.mxu1 %v251_v3  ;;  %p486_p11 = scmp.ne.s32.totalorder %s638_s11, %s485_s26 }
  0x17   : > { %v168_v1 = vld [vmem:[%s165_s30] sm:$0xff]  ;;  %s489_s27 = sshll.u32 %s547_s16, 4  ;;  %s490_s27 = int_to_ptr.vmem [resolvable:$false] %s489_s27 }
  0x18   : > { %434 = vmatprep.subr.mxu0 %v168_v1  ;;  %p487_p12 = pnand %p486_p11, %p608_p5  ;;  %s491_s28 = scalar_lea.vmem %s490_s27, 512 }
  0x19   : > { %435 = vmatpush3.msra.mxu0 %v168_v1  ;;  %p492_p0 = scmp.lt.s32.totalorder %s638_s11, %s490_s27  ;;  %p493_p1 = scmp.lt.s32.totalorder %s491_s28, %s485_s26 }
  0x1a   : > { %437 = vmatmul.mubr.msk.f32.vlgmr.msra.gmra.mxu0 %vm169_vm0, %v167_v2  ;;  %p488_p13 = pneg %p487_p12 }
  0x1b   : > { %p494_p2 = por %p493_p1, %p492_p0 }
  0x1d   : > { %p495_p3 = pnand %p494_p2, %p488_p13 }
  0xda   : > { %v438_v4 = vpop.f32.mrf.mxu0 }
  0xdc   : > { %v242_v5 = vpop.f32.mrf.mxu0 }
  0xdd   : > { %441 = vmatprep.mubr.msk.f32.mxu1 %vm169_vm0, %v242_v5 }
  0xde   : > { %442 = vmatmul.mubr.msk.f32.vlgmr.msra.gmra.mxu1 %vm169_vm0, %v438_v4 }
 0x19e   : > { %v443_v6 = vpop.f32.mrf.mxu1 }
 0x19f   : > { %335 = vst.msk [vmem:[%s161_s10 + $0x8] sm:$0xff] %vm333_vm1, %v443_v6 }
 0x1a0   : > { %v324_v7 = vpop.f32.mrf.mxu1 }
 0x1a1   : > { %334 = vst.msk [vmem:[%s161_s10] sm:$0xff] %vm333_vm1, %v324_v7 }
 0x1a2   : > { %498 = shalt.err (!%p495_p3)
}
 0x1a3   : > { %s499_s29 = scalar_lea.hbm %s643_s24, 256  ;;  %s503_s5 = scalar_lea.hbm %s688_s3, 512 }
 0x1a4   : > { %p500_p4 = scmp.ne.s32.totalorder %s643_s24, %s499_s29  ;;  %p504_p9 = scmp.lt.s32.totalorder %s643_s24, %s688_s3 }
 0x1a5   : > { %p505_p10 = scmp.lt.s32.totalorder %s503_s5, %s499_s29 }
 0x1a6   : > { %p501_p7 = pnand %p500_p4, %p608_p5 }
 0x1a7   : > { %p506_p11 = por %p505_p10, %p504_p9 }
 0x1a8   : > { %p502_p8 = pneg %p501_p7 }
 0x1aa   : > { %p507_p12 = pnand %p506_p11, %p502_p8 }
 0x1ac   : > { %510 = shalt.err (!%p507_p12)
}
 0x1ad   : > { %s548_s8 = smov 128   ;;  %s549_s9 = smov 8  }
 0x1ae   : > { %444 = dma.vmem_to_hbm [thread:$0]  (%p608_p5), %s638_s11, 256, %s643_s24, %s645_s25, %s548_s8, %s548_s8, %s549_s9  }
 0x1af PF: > { %p450_p13 = scmp.ge.s32.totalorder %s545_s15, 2  ;;  %s365_s10 = sand.u32 1, %s533_s12  }
 0x1b0   : > { %s366_s17 = scalar_lea.sflag [#allocation3], %s365_s10 }
 0x1b1   : > { %p447_p0 = pnand %p450_p13, %p612_p6 }
 0x1b3   : > { %p448_p1 = pneg %p447_p0 }
 0x1b5   : > { %528 = dma.done.wait (%p448_p1), %s366_s17, 256  }
 0x1b6   : > { %530 = vsyncadd (%p448_p1), %s366_s17, 4294967040  ;;  %p13_p2 = scmp.ge.s32.totalorder %s595_s18, 4   ;;  %s691_s12 = smov %s537_s13 }
 0x1b7   : > { %s692_s13 = smov %s541_s14  ;;  %s693_s14 = smov %s606_s21 }
 0x1b8   : > { %s694_s15 = smov %s595_s18  ;;  %15 = sbr.rel (!%p13_p2) target bundleno = 3 (0x3), region = 67 }
 0x1bd   :  { %371 = vsyncpa [#allocation3], 1 }
 0x1be   :  { %373 = vsyncpa [#allocation3 + $0x1], 1 }

// kernel: decoder_forward.8
= control target key start
LH: loop header
LB: loop body
LE: loop exit
PB: predicated region body
PF: predicated region fallthrough
CT: control target
= control target key end

     0   :  { %s5720_s2 = smov 0   ;;  %s5722_s25 = smov 0   ;;  %s7419_s0 = inlined_call_operand.vmem [shape: bf16[2,8,8,256], index: 0, kind: input, shape index: {}, may-alias: {0,1,2}]   ;;  %s7420_s1 = inlined_call_operand.vmem [shape: bf16[2,8,8,256], index: 1, kind: input, shape index: {}, may-alias: {0,1,2}]   ;;  %s7421_s2 = inlined_call_operand.vmem [shape: bf16[2,8,8,256], index: 2, kind: input, shape index: {}, may-alias: {0,1,2}]   ;;  %s7422_s3 = inlined_call_operand.vmem [shape: bf16[9,256,256], index: 3, kind: input, shape index: {}]   ;;  %s7423_s4 = inlined_call_operand.vmem [shape: f32[1,256], index: 4, kind: input, shape index: {}]   ;;  %s7424_s5 = inlined_call_operand.vmem [shape: f32[1,1,256], index: 5, kind: input, shape index: {}]   ;;  %s7425_s6 = inlined_call_operand.<no memory space> [shape: f32[1,1], index: 6, kind: input, shape index: {}]   ;;  %s7426_s7 = inlined_call_operand.vmem [shape: f32[2,8,8], index: 7, kind: output, shape index: {}]  }
   0x1   :  { %v12_v0 = vstv %s7425_s6  ;;  %s5724_s26 = smov 0  }
   0x2   :  { %13 = vst [vmem:[#allocation3] sm:$0x1] %v12_v0 }
   0x3 LB: > { %s31_s6 = sadd.s32 1, %s5670_s25  ;;  %p4469_p0 = scmp.ge.s32.totalorder %s5674_s26, 1  ;;  %s5674_s26 = sphi %s5724_s26, %s19_s26   ;;  %s5670_s25 = sphi %s5722_s25, %s7455_s25   ;;  %s5666_s2 = sphi %s5720_s2, %s7454_s2  }
   0x4   : > { %p33_p1 = scmp.ge.s32.totalorder %s31_s6, 2  ;;  %p325_p2 = scmp.lt.s32.totalorder %s5674_s26, 3 }
   0x6   : > { %s7457_s6 = smov (%p33_p1, %s31_s6), 0  ;;  %p326_p3 = pnand %p4469_p0, %p325_p2 }
   0x8   : > { %329 = sbr.rel (%p326_p3) target bundleno = 755 (0x2f3), region = 48 }
   0xd   : > { %v5182_v1 = vld [vmem:[%s7422_s3 + $0x174] ss:$8 sps:$4 sm:$0xff]   ;;  %v5186_v3 = vld [vmem:[%s7422_s3 + $0x170] ss:$8 sps:$4 sm:$0xff]   ;;  %v5188_v5 = vld [vmem:[%s7422_s3 + $0x164] ss:$8 sps:$4 sm:$0xff]  }
   0xe   : > { %v5184_v2 = vld [vmem:[%s7422_s3 + $0x74] ss:$8 sps:$4 sm:$0xff]   ;;  %1086 = vmatprep.subr.bf16.mxu0 %v5182_v1  ;;  %v5187_v4 = vld [vmem:[%s7422_s3 + $0x70] ss:$8 sps:$4 sm:$0xff]   ;;  %v5190_v6 = vld [vmem:[%s7422_s3 + $0x64] ss:$8 sps:$4 sm:$0xff]  }
   0xf   : > { %1359 = vmatprep.subr.bf16.mxu1 %v5184_v2  ;;  %1087 = vmatpush1.bf16.msra.mxu0 %v5186_v3  ;;  %v5192_v7 = vld [vmem:[%s7422_s3 + $0x160] ss:$8 sps:$4 sm:$0xff]   ;;  %v5676_v9 = vmov 0   ;;  %v5194_v10 = vld [vmem:[%s7422_s3 + $0x154] ss:$8 sps:$4 sm:$0xff]   ;;  %p408_p4 = scmp.lt.s32.totalorder %s5666_s2, 1 }
  0x10   : > { %1360 = vmatpush1.bf16.msra.mxu1 %v5187_v4  ;;  %1088 = vmatprep.subr.bf16.mxu0 %v5188_v5  ;;  %v5193_v8 = vld [vmem:[%s7422_s3 + $0x60] ss:$8 sps:$4 sm:$0xff]   ;;  %v5196_v11 = vld [vmem:[%s7422_s3 + $0x54] ss:$8 sps:$4 sm:$0xff]   ;;  %v5198_v12 = vld [vmem:[%s7422_s3 + $0x150] ss:$8 sps:$4 sm:$0xff]  }
  0x11   : > { %5181 = vset.pattern.permute.xlu0 %v5676_v9  ;;  %1361 = vmatprep.subr.bf16.mxu1 %v5190_v6  ;;  %v5199_v13 = vld [vmem:[%s7422_s3 + $0x50] ss:$8 sps:$4 sm:$0xff]   ;;  %v5200_v14 = vld [vmem:[%s7422_s3 + $0x144] ss:$8 sps:$4 sm:$0xff]   ;;  %v5204_v16 = vld [vmem:[%s7422_s3 + $0x140] ss:$8 sps:$4 sm:$0xff]  }
  0x12   : > { %v5202_v15 = vld [vmem:[%s7422_s3 + $0x44] ss:$8 sps:$4 sm:$0xff]   ;;  %v5205_v17 = vld [vmem:[%s7422_s3 + $0x40] ss:$8 sps:$4 sm:$0xff]   ;;  %v5206_v18 = vld [vmem:[%s7422_s3 + $0x134] ss:$8 sps:$4 sm:$0xff]  }
  0x13   : > { %1089 = vmatpush1.bf16.msra.mxu0 %v5192_v7  ;;  %v5208_v19 = vld [vmem:[%s7422_s3 + $0x34] ss:$8 sps:$4 sm:$0xff]   ;;  %v5210_v20 = vld [vmem:[%s7422_s3 + $0x130] ss:$8 sps:$4 sm:$0xff]   ;;  %v5212_v22 = vld [vmem:[%s7422_s3 + $0x124] ss:$8 sps:$4 sm:$0xff]  }
  0x14   : > { %1362 = vmatpush1.bf16.msra.mxu1 %v5193_v8  ;;  %1090 = vmatprep.subr.bf16.mxu0 %v5194_v10  ;;  %v5211_v21 = vld [vmem:[%s7422_s3 + $0x30] ss:$8 sps:$4 sm:$0xff]   ;;  %v5214_v23 = vld [vmem:[%s7422_s3 + $0x24] ss:$8 sps:$4 sm:$0xff]   ;;  %v5216_v24 = vld [vmem:[%s7422_s3 + $0x120] ss:$8 sps:$4 sm:$0xff]  }
  0x15   : > { %1363 = vmatprep.subr.bf16.mxu1 %v5196_v11  ;;  %v5217_v25 = vld [vmem:[%s7422_s3 + $0x20] ss:$8 sps:$4 sm:$0xff]   ;;  %v5218_v26 = vld [vmem:[%s7422_s3 + $0x114] ss:$8 sps:$4 sm:$0xff]   ;;  %v5222_v28 = vld [vmem:[%s7422_s3 + $0x110] ss:$8 sps:$4 sm:$0xff]  }
  0x16   : > { %v5220_v27 = vld [vmem:[%s7422_s3 + $0x14] ss:$8 sps:$4 sm:$0xff]   ;;  %v5223_v29 = vld [vmem:[%s7422_s3 + $0x10] ss:$8 sps:$4 sm:$0xff]   ;;  %v5224_v30 = vld [vmem:[%s7422_s3 + $0x104] ss:$8 sps:$4 sm:$0xff]  }
  0x17   : > { %1091 = vmatpush1.bf16.msra.mxu0 %v5198_v12  ;;  %v5226_v31 = vld [vmem:[%s7422_s3 + $0x4] ss:$8 sps:$4 sm:$0xff]   ;;  %v5228_v32 = vld [vmem:[%s7422_s3 + $0x100] ss:$8 sps:$4 sm:$0xff]   ;;  %v5230_v34 = vld [vmem:[%s7422_s3 + $0x1f4] ss:$8 sps:$4 sm:$0xff]  }
  0x18   : > { %1364 = vmatpush1.bf16.msra.mxu1 %v5199_v13  ;;  %1092 = vmatprep.subr.bf16.mxu0 %v5200_v14  ;;  %v5229_v33 = vld [vmem:[%s7422_s3] ss:$8 sps:$4 sm:$0xff]   ;;  %v5232_v35 = vld [vmem:[%s7422_s3 + $0xf4] ss:$8 sps:$4 sm:$0xff]   ;;  %v5234_v36 = vld [vmem:[%s7422_s3 + $0x1f0] ss:$8 sps:$4 sm:$0xff]  }
  0x19   : > { %1365 = vmatprep.subr.bf16.mxu1 %v5202_v15  ;;  %v5235_v37 = vld [vmem:[%s7422_s3 + $0xf0] ss:$8 sps:$4 sm:$0xff]   ;;  %v5236_v38 = vld [vmem:[%s7422_s3 + $0x1e4] ss:$8 sps:$4 sm:$0xff]   ;;  %s7459_s2 = smov (!%p408_p4, %s5666_s2), 1  ;;  %vm459_vm0 = vcmask 1040384  }
  0x1a   : > { %v5238_v39 = vld [vmem:[%s7422_s3 + $0xe4] ss:$8 sps:$4 sm:$0xff]   ;;  %v5240_v40 = vld [vmem:[%s7422_s3 + $0x1e0] ss:$8 sps:$4 sm:$0xff]   ;;  %v5242_v42 = vld [vmem:[%s7422_s3 + $0x1d4] ss:$8 sps:$4 sm:$0xff]  }
  0x1b   : > { %1093 = vmatpush1.bf16.msra.mxu0 %v5204_v16  ;;  %v5241_v41 = vld [vmem:[%s7422_s3 + $0xe0] ss:$8 sps:$4 sm:$0xff]   ;;  %s5121_s20 = sshll.u32 %s7459_s2, 6  ;;  %v5244_v43 = vld [vmem:[%s7422_s3 + $0xd4] ss:$8 sps:$4 sm:$0xff]   ;;  %vm462_vm3 = vcmask 1044484  }
  0x1c   : > { %1366 = vmatpush1.bf16.msra.mxu1 %v5205_v17  ;;  %1094 = vmatprep.subr.bf16.mxu0 %v5206_v18  ;;  %v5246_v44 = vld [vmem:[%s7422_s3 + $0x1d0] ss:$8 sps:$4 sm:$0xff]   ;;  %s5881_s30 = scalar_lea.vmem %s7420_s1, %s5121_s20  ;;  %v5248_v46 = vld [vmem:[%s7422_s3 + $0x1c4] ss:$8 sps:$4 sm:$0xff]   ;;  %vm460_vm1 = vsmask.f32 256 }
  0x1d   : > { %1367 = vmatprep.subr.bf16.mxu1 %v5208_v19  ;;  %v5247_v45 = vld [vmem:[%s7422_s3 + $0xd0] ss:$8 sps:$4 sm:$0xff]   ;;  %v5250_v47 = vld [vmem:[%s7422_s3 + $0xc4] ss:$8 sps:$4 sm:$0xff]   ;;  %vm463_vm2 = vsmask.f32 4352  ;;  %vm461_vm4 = vmand %vm459_vm0, %vm460_vm1 }
  0x1e   : > { %v5252_v48 = vld [vmem:[%s7422_s3 + $0x1c0] ss:$8 sps:$4 sm:$0xff]   ;;  %v469_v52 = vld [vmem:[#allocation2 + $0x70] sm:$0x11]  ;;  %vm496_vm5 = vsmask.f32 7938  ;;  %vm464_vm6 = vmand %vm462_vm3, %vm463_vm2 }
  0x1f   : > { %1095 = vmatpush1.bf16.msra.mxu0 %v5210_v20  ;;  %v5253_v49 = vld [vmem:[%s7422_s3 + $0xc0] ss:$8 sps:$4 sm:$0xff]   ;;  %v5254_v53 = vld [vmem:[%s7422_s3 + $0x1b4] ss:$8 sps:$4 sm:$0xff]   ;;  %vm498_vm7 = vsmask.f32 7954  ;;  %vm5904_vm8 = vmor %vm464_vm6, %vm461_vm4 }
  0x20   : > { %1368 = vmatpush1.bf16.msra.mxu1 %v5211_v21  ;;  %1096 = vmatprep.subr.bf16.mxu0 %v5212_v22  ;;  %v451_v50 = vld [vmem:[%s5881_s30] sm:$0xff]  ;;  %v5256_v54 = vld [vmem:[%s7422_s3 + $0xb4] ss:$8 sps:$4 sm:$0xff]   ;;  %vm541_vm9 = vcmask 1043456   ;;  %v5258_v57 = vld [vmem:[%s7422_s3 + $0x1b0] ss:$8 sps:$4 sm:$0xff]  }
  0x21   : > { %1369 = vmatprep.subr.bf16.mxu1 %v5214_v23  ;;  %v466_v51 = vld [vmem:[#allocation2] sm:$0x11]  ;;  %v553_v56 = vshrl.u32 %v451_v50, 16  ;;  %v5259_v58 = vld [vmem:[%s7422_s3 + $0xb0] ss:$8 sps:$4 sm:$0xff]   ;;  %v470_v60 = vsel %vm5904_vm8, 0, %v469_v52  ;;  %vm497_vm10 = vmand %vm459_vm0, %vm496_vm5 }
  0x22   : > { %v467_v59 = vsel %vm5904_vm8, 0, %v466_v51  ;;  %v501_v61 = vld [vmem:[#allocation2 + $0x50] sm:$0x11]  ;;  %v504_v62 = vld [vmem:[#allocation2 + $0x80] sm:$0x11]  ;;  %vm499_vm11 = vmand %vm462_vm3, %vm498_vm7  ;;  %vm543_vm12 = vcmask 1047556  }
  0x23   : > { %1097 = vmatpush1.bf16.msra.mxu0 %v5216_v24  ;;  %468 = vst [vmem:[#allocation2] sm:$0x11] %v467_v59  ;;  %471 = vst [vmem:[#allocation2 + $0x70] sm:$0x11] %v470_v60  ;;  %v556_v63 = vshll.u32 %v451_v50, 16  ;;  %v555_v5 = vrot.slane %v553_v56, 7 }
  0x24   : > { %1370 = vmatpush1.bf16.msra.mxu1 %v5217_v25  ;;  %1098 = vmatprep.subr.bf16.mxu0 %v5218_v26  ;;  %v5260_v0 = vld [vmem:[%s7422_s3 + $0x1a4] ss:$8 sps:$4 sm:$0xff]   ;;  %vm5928_vm13 = vmor %vm499_vm11, %vm497_vm10  ;;  %v5939_v6 = vrot.slane %v5676_v9, 7  ;;  %v5264_v7 = vld [vmem:[%s7422_s3 + $0x1a0] ss:$8 sps:$4 sm:$0xff]   ;;  %vm1457_vm6 = vcmask 1046532  }
  0x25   : > { %1371 = vmatprep.subr.bf16.mxu1 %v5220_v27  ;;  %v5262_v1 = vld [vmem:[%s7422_s3 + $0xa4] ss:$8 sps:$4 sm:$0xff]   ;;  %v502_v3 = vsel %vm5928_vm13, 0, %v501_v61  ;;  %v505_v4 = vsel %vm5928_vm13, 0, %v504_v62  ;;  %vm542_vm14 = vmand %vm541_vm9, %vm496_vm5  ;;  %v558_v8 = vor.u32 %v556_v63, %v555_v5  ;;  %v5265_v10 = vld [vmem:[%s7422_s3 + $0xa0] ss:$8 sps:$4 sm:$0xff]  }
  0x26   : > { %503 = vst [vmem:[#allocation2 + $0x50] sm:$0x11] %v502_v3  ;;  %506 = vst [vmem:[#allocation2 + $0x80] sm:$0x11] %v505_v4  ;;  %v5266_v11 = vld [vmem:[%s7422_s3 + $0x194] ss:$8 sps:$4 sm:$0xff]  }
  0x27   : > { %1099 = vmatpush1.bf16.msra.mxu0 %v5222_v28  ;;  %vm544_vm15 = vmand %vm543_vm12, %vm498_vm7  ;;  %v5268_v12 = vld [vmem:[%s7422_s3 + $0x94] ss:$8 sps:$4 sm:$0xff]   ;;  %v5270_v13 = vld [vmem:[%s7422_s3 + $0x190] ss:$8 sps:$4 sm:$0xff]   ;;  %v538_v15 = vrot.slane %v5939_v6, 4  ;;  %v559_v17 = vrot.slane %v555_v5, 4 }
  0x28   : > { %1372 = vmatpush1.bf16.msra.mxu1 %v5223_v29  ;;  %1100 = vmatprep.subr.bf16.mxu0 %v5224_v30  ;;  %vm5952_vm0 = vmor %vm544_vm15, %vm542_vm14  ;;  %v5271_v14 = vld [vmem:[%s7422_s3 + $0x90] ss:$8 sps:$4 sm:$0xff]   ;;  %v5272_v19 = vld [vmem:[%s7422_s3 + $0x184] ss:$8 sps:$4 sm:$0xff]   ;;  %vm746_vm1 = vsmask.f32 3328 }
  0x29   : > { %1373 = vmatprep.subr.bf16.mxu1 %v5226_v31  ;;  %v5274_v22 = vld [vmem:[%s7422_s3 + $0x84] ss:$8 sps:$4 sm:$0xff]   ;;  %vm747_vm2 = vsmask.f32 7440  ;;  %v5287_v52 = vld [vmem:[%s7422_s3 + $0x360] ss:$8 sps:$4 sm:$0xff]  }
  0x2a   : > { %v546_v16 = vld [vmem:[#allocation2] sm:$0xff]  ;;  %v633_v18 = vld [vmem:[#allocation2 + $0x70] sm:$0xff]  ;;  %vm6012_vm4 = vmor %vm746_vm1, %vm747_vm2  ;;  %vm1456_vm5 = vcmask 1042432   ;;  %vm4328_vm9 = vcmask 1042434   ;;  %vm4330_vm10 = vcmask 1043459   ;;  %vm4334_vm11 = vcmask 1045509  }
  0x2b   : > { %1101 = vmatpush1.bf16.msra.mxu0 %v5228_v32  ;;  %v547_v20 = vsel %vm5952_vm0, %v5939_v6, %v546_v16  ;;  %v5974_v21 = vsel %vm5952_vm0, %v558_v8, %v633_v18  ;;  %v5295_v56 = vld [vmem:[%s7422_s3 + $0x354] ss:$8 sps:$4 sm:$0xff]   ;;  %v5278_v61 = vld [vmem:[%s7422_s3 + $0x270] ss:$8 sps:$4 sm:$0xff]   ;;  %v5286_v63 = vld [vmem:[%s7422_s3 + $0x264] ss:$8 sps:$4 sm:$0xff]  }
  0x2c   : > { %1374 = vmatpush1.bf16.msra.mxu1 %v5229_v33  ;;  %1102 = vmatprep.subr.bf16.mxu0 %v5230_v34  ;;  %548 = vst [vmem:[#allocation2] sm:$0xff] %v547_v20  ;;  %635 = vst [vmem:[#allocation2 + $0x70] sm:$0xff] %v5974_v21  ;;  %v750_v23 = vshrl.u32 %v547_v20, 16  ;;  %v753_v24 = vshll.u32 %v547_v20, 16  ;;  %v764_v25 = vshrl.u32 %v5974_v21, 16  ;;  %v767_v26 = vshll.u32 %v5974_v21, 16 }
  0x2d   : > { %1375 = vmatprep.subr.bf16.mxu1 %v5232_v35  ;;  %v549_v27 = vld [vmem:[#allocation2 + $0x50] sm:$0x11]  ;;  %v636_v28 = vld [vmem:[#allocation2 + $0x80] sm:$0x11]  ;;  %v4550_v29 = vcombine.high %v547_v20, %v5974_v21  ;;  %vm6305_vm7 = vmor %vm1456_vm5, %vm1457_vm6  ;;  %vm4336_vm12 = vcmask 1046534   ;;  %s4476_s0 = sshll.u32 %s7459_s2, 3 }
  0x2e   : > { %v550_v30 = vsel %vm5904_vm8, %v538_v15, %v549_v27  ;;  %v637_v31 = vsel %vm5904_vm8, %v559_v17, %v636_v28  ;;  %v752_v32 = vrot.slane %v750_v23, 4  ;;  %v755_v33 = vrot.slane %v753_v24, 5  ;;  %v5293_v62 = vld [vmem:[%s7422_s3 + $0x350] ss:$8 sps:$4 sm:$0xff]   ;;  %v5299_v3 = vld [vmem:[%s7422_s3 + $0x340] ss:$8 sps:$4 sm:$0xff]   ;;  %s441_s24 = scalar_lea.vmem %s7426_s7, %s4476_s0 }
  0x2f   : > { %1103 = vmatpush2.bf16.msra.mxu0 %v5234_v36  ;;  %551 = vst [vmem:[#allocation2 + $0x50] sm:$0x11] %v550_v30  ;;  %638 = vst [vmem:[#allocation2 + $0x80] sm:$0x11] %v637_v31  ;;  %v766_v34 = vrot.slane %v764_v25, 4  ;;  %v769_v35 = vrot.slane %v767_v26, 5  ;;  %1391 = vmatprep.mubr.bf16.mxu1 %v4550_v29 }
  0x30   : > { %1376 = vmatpush2.bf16.msra.mxu1 %v5235_v37  ;;  %1104 = vmatprep.subr.bf16.mxu0 %v5236_v38  ;;  %v5276_v36 = vld [vmem:[%s7422_s3 + $0x180] ss:$8 sps:$4 sm:$0xff]   ;;  %v5280_v38 = vld [vmem:[%s7422_s3 + $0x274] ss:$8 sps:$4 sm:$0xff]   ;;  %v5290_v24 = vld [vmem:[%s7422_s3 + $0x250] ss:$8 sps:$4 sm:$0xff]  }
  0x31   : > { %1377 = vmatprep.subr.bf16.mxu1 %v5238_v39  ;;  %v5277_v37 = vld [vmem:[%s7422_s3 + $0x80] ss:$8 sps:$4 sm:$0xff]   ;;  %v5283_v39 = vld [vmem:[%s7422_s3 + $0x374] ss:$8 sps:$4 sm:$0xff]   ;;  %v5298_v26 = vld [vmem:[%s7422_s3 + $0x244] ss:$8 sps:$4 sm:$0xff]  }
  0x32   : > { %v5292_v4 = vld [vmem:[%s7422_s3 + $0x254] ss:$8 sps:$4 sm:$0xff]   ;;  %v510_v17 = vld [vmem:[#allocation2 + $0x20] sm:$0x11]  ;;  %v5305_v27 = vld [vmem:[%s7422_s3 + $0x330] ss:$8 sps:$4 sm:$0xff]  }
  0x33   : > { %1105 = vmatpush2.bf16.msra.mxu0 %v5240_v40  ;;  %v756_v40 = vor.u32 %v755_v33, %v752_v32  ;;  %v5307_v5 = vld [vmem:[%s7422_s3 + $0x334] ss:$8 sps:$4 sm:$0xff]   ;;  %v5313_v29 = vld [vmem:[%s7422_s3 + $0x324] ss:$8 sps:$4 sm:$0xff]   ;;  %v5296_v30 = vld [vmem:[%s7422_s3 + $0x240] ss:$8 sps:$4 sm:$0xff]  }
  0x34   : > { %1378 = vmatpush2.bf16.msra.mxu1 %v5241_v41  ;;  %1106 = vmatprep.subr.bf16.mxu0 %v5242_v42  ;;  %v770_v41 = vor.u32 %v769_v35, %v766_v34  ;;  %v4549_v42 = vcombine.low %v547_v20, %v5974_v21  ;;  %v453_v8 = vld [vmem:[%s5881_s30 + $0x10] sm:$0xff]  ;;  %v5311_v35 = vld [vmem:[%s7422_s3 + $0x320] ss:$8 sps:$4 sm:$0xff]   ;;  %v5541_v2 = vld [vmem:[%s7422_s3 + $0x7c4] ss:$8 sps:$4 sm:$0xff]   ;;  %vm4338_vm6 = vcmask 1047559  }
  0x35   : > { %1379 = vmatprep.subr.bf16.mxu1 %v5244_v43  ;;  %v5281_v43 = vld [vmem:[%s7422_s3 + $0x370] ss:$8 sps:$4 sm:$0xff]   ;;  %v572_v23 = vshll.u32 %v453_v8, 16  ;;  %v5304_v34 = vld [vmem:[%s7422_s3 + $0x234] ss:$8 sps:$4 sm:$0xff]  }
  0x36   : > { %v771_v50 = vrot.slane %v770_v41, 4  ;;  %v5551_v55 = vld [vmem:[%s7422_s3 + $0x7a0] ss:$8 sps:$4 sm:$0xff]  }
  0x37   : > { %1107 = vmatpush2.bf16.msra.mxu0 %v5246_v44  ;;  %v5289_v44 = vld [vmem:[%s7422_s3 + $0x364] ss:$8 sps:$4 sm:$0xff]  }
  0x38   : > { %1380 = vmatpush2.bf16.msra.mxu1 %v5247_v45  ;;  %1108 = vmatprep.subr.bf16.mxu0 %v5248_v46  ;;  %v6008_v45 = vld [vmem:[#allocation2 + $0x50] sm:$0x11]  ;;  %v6010_v46 = vld [vmem:[#allocation2 + $0x80] sm:$0x11] }
  0x39   : > { %1381 = vmatprep.subr.bf16.mxu1 %v5250_v47  ;;  %v773_v51 = vshll.u32 %v6010_v46, 16  ;;  %v5587_v47 = vld [vmem:[%s7422_s3 + $0x820] ss:$8 sps:$4 sm:$0xff]  }
  0x3b   : > { %1109 = vmatpush2.bf16.msra.mxu0 %v5252_v48  ;;  %v757_v48 = vrot.slane %v756_v40, 4  ;;  %v481_v40 = vld [vmem:[#allocation2 + $0x38] sm:$0x11] }
  0x3c   : > { %1382 = vmatpush2.bf16.msra.mxu1 %v5253_v49  ;;  %1110 = vmatprep.subr.bf16.mxu0 %v5254_v53  ;;  %v759_v49 = vshll.u32 %v6008_v45, 16 }
  0x3d   : > { %1383 = vmatprep.subr.bf16.mxu1 %v5256_v54  ;;  %v775_v54 = vrot.slane %v773_v51, 5  ;;  %v5302_v51 = vld [vmem:[%s7422_s3 + $0x230] ss:$8 sps:$4 sm:$0xff]  }
  0x3e   : > { %v761_v53 = vrot.slane %v759_v49, 5 }
  0x3f   : > { %1111 = vmatpush2.bf16.msra.mxu0 %v5258_v57 }
  0x40   : > { %1384 = vmatpush2.bf16.msra.mxu1 %v5259_v58  ;;  %1112 = vmatprep.subr.bf16.mxu0 %v5260_v0  ;;  %v762_v57 = vsel %vm6012_vm4, %v757_v48, %v761_v53  ;;  %v776_v58 = vsel %vm6012_vm4, %v771_v50, %v775_v54  ;;  %v5301_v0 = vld [vmem:[%s7422_s3 + $0x344] ss:$8 sps:$4 sm:$0xff]   ;;  %v482_v50 = vsel %vm5904_vm8, 0, %v481_v40 }
  0x41   : > { %1385 = vmatprep.subr.bf16.mxu1 %v5262_v1  ;;  %v4509_v59 = vcombine.low %v762_v57, %v776_v58  ;;  %v4510_v60 = vcombine.high %v762_v57, %v776_v58  ;;  %v5284_v1 = vld [vmem:[%s7422_s3 + $0x260] ss:$8 sps:$4 sm:$0xff]   ;;  %483 = vst [vmem:[#allocation2 + $0x38] sm:$0x11] %v482_v50  ;;  %v513_v57 = vld [vmem:[#allocation2 + $0x98] sm:$0x11] }
  0x42   : > { %v6091_v48 = vld [vmem:[%s5881_s30 + $0x20] sm:$0xff]  ;;  %v516_v58 = vld [vmem:[#allocation2 + $0x28] sm:$0x11] }
  0x43   : > { %1113 = vmatpush2.bf16.msra.mxu0 %v5264_v7  ;;  %1118 = vmatprep.mubr.bf16.mxu0 %v4510_v60  ;;  %v452_v7 = vld [vmem:[%s5881_s30 + $0x8] sm:$0xff] }
  0x44   : > { %1386 = vmatpush2.bf16.msra.mxu1 %v5265_v10  ;;  %1114 = vmatprep.subr.bf16.mxu0 %v5266_v11  ;;  %v472_v10 = vld [vmem:[#allocation2 + $0x8] sm:$0x11]  ;;  %v475_v11 = vld [vmem:[#allocation2 + $0x30] sm:$0x11]  ;;  %v561_v18 = vshrl.u32 %v452_v7, 16  ;;  %v564_v20 = vshll.u32 %v452_v7, 16 }
  0x45   : > { %1387 = vmatprep.subr.bf16.mxu1 %v5268_v12  ;;  %v507_v12 = vld [vmem:[#allocation2 + $0x18] sm:$0x11]  ;;  %v514_v7 = vsel %vm5928_vm13, 0, %v513_v57 }
  0x46   : > { %v508_v16 = vsel %vm5928_vm13, 0, %v507_v12  ;;  %v563_v25 = vrot.slane %v561_v18, 7  ;;  %515 = vst [vmem:[#allocation2 + $0x98] sm:$0x11] %v514_v7  ;;  %v517_v12 = vsel %vm5928_vm13, 0, %v516_v58 }
  0x47   : > { %1115 = vmatpush2.bf16.msra.mxu0 %v5270_v13  ;;  %v473_v13 = vsel %vm5904_vm8, 0, %v472_v10  ;;  %509 = vst [vmem:[#allocation2 + $0x18] sm:$0x11] %v508_v16  ;;  %518 = vst [vmem:[#allocation2 + $0x28] sm:$0x11] %v517_v12 }
  0x48   : > { %1388 = vmatpush2.bf16.msra.mxu1 %v5271_v14  ;;  %1116 = vmatprep.subr.bf16.mxu0 %v5272_v19  ;;  %v476_v14 = vsel %vm5904_vm8, 0, %v475_v11  ;;  %474 = vst [vmem:[#allocation2 + $0x8] sm:$0x11] %v473_v13  ;;  %v511_v19 = vsel %vm5928_vm13, 0, %v510_v17  ;;  %v566_v31 = vor.u32 %v564_v20, %v563_v25  ;;  %v567_v32 = vrot.slane %v563_v25, 4 }
  0x49   : > { %1389 = vmatprep.subr.bf16.mxu1 %v5274_v22  ;;  %477 = vst [vmem:[#allocation2 + $0x30] sm:$0x11] %v476_v14  ;;  %v569_v22 = vshrl.u32 %v453_v8, 16  ;;  %512 = vst [vmem:[#allocation2 + $0x20] sm:$0x11] %v511_v19  ;;  %v585_v17 = vshrl.u32 %v6091_v48, 16 }
  0x4a   : > { %v5308_v18 = vld [vmem:[%s7422_s3 + $0x220] ss:$8 sps:$4 sm:$0xff]   ;;  %v5316_v19 = vld [vmem:[%s7422_s3 + $0x214] ss:$8 sps:$4 sm:$0xff]  }
  0x4b   : > { %1117 = vmatpush2.bf16.msra.mxu0 %v5276_v36  ;;  %v571_v28 = vrot.slane %v569_v22, 7  ;;  %v5319_v36 = vld [vmem:[%s7422_s3 + $0x314] ss:$8 sps:$4 sm:$0xff]   ;;  %v588_v22 = vshll.u32 %v6091_v48, 16 }
  0x4c   : > { %1390 = vmatpush2.bf16.msra.mxu1 %v5277_v37  ;;  %1716 = vmatprep.subr.bf16.mxu0 %v5280_v38  ;;  %v6087_v38 = vld [vmem:[%s5881_s30 + $0x18] sm:$0xff] }
  0x4d   : > { %2046 = vmatprep.subr.bf16.mxu1 %v5283_v39  ;;  %v574_v33 = vor.u32 %v572_v23, %v571_v28  ;;  %v575_v37 = vrot.slane %v571_v28, 4  ;;  %v478_v39 = vld [vmem:[#allocation2 + $0x60] sm:$0x11]  ;;  %v577_v41 = vshrl.u32 %v6087_v38, 16  ;;  %v580_v16 = vshll.u32 %v6087_v38, 16 }
  0x4e   : > { %1119 = vmatmul.mubr.bf16.vlgmr.msra.gmra.mxu0 %v4509_v59  ;;  %v479_v49 = vsel %vm5904_vm8, 0, %v478_v39  ;;  %v5310_v59 = vld [vmem:[%s7422_s3 + $0x224] ss:$8 sps:$4 sm:$0xff]   ;;  %v5323_v23 = vld [vmem:[%s7422_s3 + $0x300] ss:$8 sps:$4 sm:$0xff]  }
  0x4f   : > { %1392 = vmatmul.mubr.bf16.vlgmr.msra.gmra.mxu1 %v4549_v42  ;;  %1717 = vmatpush1.bf16.msra.mxu0 %v5278_v61  ;;  %v639_v42 = vld [vmem:[#allocation2 + $0x8] sm:$0xff]  ;;  %480 = vst [vmem:[#allocation2 + $0x60] sm:$0x11] %v479_v49  ;;  %v579_v14 = vrot.slane %v577_v41, 7  ;;  %v654_v49 = vld [vmem:[#allocation2 + $0x98] sm:$0x11] }
  0x50   : > { %2047 = vmatpush1.bf16.msra.mxu1 %v5281_v43  ;;  %1718 = vmatprep.subr.bf16.mxu0 %v5286_v63  ;;  %v642_v43 = vld [vmem:[#allocation2 + $0x18] sm:$0x11]  ;;  %v5337_v41 = vld [vmem:[%s7422_s3 + $0x3e4] ss:$8 sps:$4 sm:$0xff]  }
  0x51   : > { %2048 = vmatprep.subr.bf16.mxu1 %v5289_v44  ;;  %v645_v44 = vld [vmem:[#allocation2 + $0x30] sm:$0xff]  ;;  %v643_v53 = vsel %vm5904_vm8, %v567_v32, %v642_v43  ;;  %v582_v25 = vor.u32 %v580_v16, %v579_v14  ;;  %v583_v28 = vrot.slane %v579_v14, 4  ;;  %v660_v57 = vld [vmem:[#allocation2 + $0x28] sm:$0x11] }
  0x52   : > { %v6108_v54 = vsel %vm5952_vm0, %v574_v33, %v645_v44  ;;  %644 = vst [vmem:[#allocation2 + $0x18] sm:$0x11] %v643_v53  ;;  %v5329_v32 = vld [vmem:[%s7422_s3 + $0x3f0] ss:$8 sps:$4 sm:$0xff]  }
  0x53   : > { %1719 = vmatpush1.bf16.msra.mxu0 %v5284_v1  ;;  %647 = vst [vmem:[#allocation2 + $0x30] sm:$0xff] %v6108_v54  ;;  %v792_v63 = vshrl.u32 %v6108_v54, 16  ;;  %v5325_v1 = vld [vmem:[%s7422_s3 + $0x304] ss:$8 sps:$4 sm:$0xff]   ;;  %v457_v16 = vld [vmem:[%s5881_s30 + $0x30] sm:$0xff] }
  0x54   : > { %2049 = vmatpush1.bf16.msra.mxu1 %v5287_v52  ;;  %1720 = vmatprep.subr.bf16.mxu0 %v5292_v4  ;;  %v6102_v52 = vsel %vm5952_vm0, %v566_v31, %v639_v42  ;;  %v5314_v31 = vld [vmem:[%s7422_s3 + $0x210] ss:$8 sps:$4 sm:$0xff]  }
  0x55   : > { %2050 = vmatprep.subr.bf16.mxu1 %v5295_v56  ;;  %v648_v56 = vld [vmem:[#allocation2 + $0x20] sm:$0x11]  ;;  %641 = vst [vmem:[#allocation2 + $0x8] sm:$0xff] %v6102_v52  ;;  %v778_v61 = vshrl.u32 %v6102_v52, 16  ;;  %v4552_v4 = vcombine.high %v6102_v52, %v6108_v54  ;;  %v794_v11 = vrot.slane %v792_v63, 4 }
  0x56   : > { %v649_v60 = vsel %vm5904_vm8, %v575_v37, %v648_v56  ;;  %v5322_v37 = vld [vmem:[%s7422_s3 + $0x204] ss:$8 sps:$4 sm:$0xff]   ;;  %v655_v56 = vsel %vm5904_vm8, %v583_v28, %v654_v49 }
  0x57   : > { %1721 = vmatpush1.bf16.msra.mxu0 %v5290_v24  ;;  %650 = vst [vmem:[#allocation2 + $0x20] sm:$0x11] %v649_v60  ;;  %v780_v8 = vrot.slane %v778_v61, 4  ;;  %1401 = vmatprep.mubr.bf16.mxu1 %v4552_v4  ;;  %v5320_v60 = vld [vmem:[%s7422_s3 + $0x200] ss:$8 sps:$4 sm:$0xff]  }
  0x58   : > { %2051 = vmatpush1.bf16.msra.mxu1 %v5293_v62  ;;  %1722 = vmatprep.subr.bf16.mxu0 %v5298_v26  ;;  %v781_v62 = vshll.u32 %v6102_v52, 16  ;;  %v587_v26 = vrot.slane %v585_v17, 7  ;;  %656 = vst [vmem:[#allocation2 + $0x98] sm:$0x11] %v655_v56  ;;  %v5347_v56 = vld [vmem:[%s7422_s3 + $0x3c0] ss:$8 sps:$4 sm:$0xff]  }
  0x59   : > { %2052 = vmatprep.subr.bf16.mxu1 %v5301_v0  ;;  %v5317_v0 = vld [vmem:[%s7422_s3 + $0x310] ss:$8 sps:$4 sm:$0xff]  }
  0x5a   : > { %v783_v10 = vrot.slane %v781_v62, 5  ;;  %v6156_v33 = vld [vmem:[#allocation2 + $0x18] sm:$0x11]  ;;  %v5335_v62 = vld [vmem:[%s7422_s3 + $0x3e0] ss:$8 sps:$4 sm:$0xff]  }
  0x5b   : > { %1723 = vmatpush1.bf16.msra.mxu0 %v5296_v30  ;;  %v657_v30 = vld [vmem:[#allocation2 + $0x38] sm:$0xff]  ;;  %v787_v40 = vshll.u32 %v6156_v33, 16 }
  0x5c   : > { %2053 = vmatpush1.bf16.msra.mxu1 %v5299_v3  ;;  %v795_v3 = vshll.u32 %v6108_v54, 16  ;;  %1724 = vmatprep.subr.bf16.mxu0 %v5304_v34  ;;  %v784_v20 = vor.u32 %v783_v10, %v780_v8  ;;  %v590_v34 = vor.u32 %v588_v22, %v587_v26  ;;  %v456_v8 = vld [vmem:[%s5881_s30 + $0x28] sm:$0xff]  ;;  %v519_v10 = vld [vmem:[#allocation2 + $0x40] sm:$0x11] }
  0x5d   : > { %2054 = vmatprep.subr.bf16.mxu1 %v5307_v5  ;;  %v4551_v5 = vcombine.low %v6102_v52, %v6108_v54  ;;  %v789_v53 = vrot.slane %v787_v40, 5  ;;  %v5349_v40 = vld [vmem:[%s7422_s3 + $0x3c4] ss:$8 sps:$4 sm:$0xff]  }
  0x5e   : > { %v797_v13 = vrot.slane %v795_v3, 5  ;;  %v6165_v38 = vld [vmem:[#allocation2 + $0x20] sm:$0x11]  ;;  %v785_v39 = vrot.slane %v784_v20, 4  ;;  %v6177_v50 = vsel %vm5952_vm0, %v590_v34, %v657_v30  ;;  %v487_v3 = vld [vmem:[#allocation2 + $0x68] sm:$0x11] }
  0x5f   : > { %1402 = vmatmul.mubr.bf16.gmra.mxu1 %v4551_v5  ;;  %1725 = vmatpush1.bf16.msra.mxu0 %v5302_v51  ;;  %v801_v48 = vshll.u32 %v6165_v38, 16  ;;  %v484_v51 = vld [vmem:[#allocation2 + $0x58] sm:$0x11]  ;;  %659 = vst [vmem:[#allocation2 + $0x38] sm:$0xff] %v6177_v50  ;;  %v5334_v30 = vld [vmem:[%s7422_s3 + $0x2e4] ss:$8 sps:$4 sm:$0xff]  }
  0x60   : > { %2055 = vmatpush1.bf16.msra.mxu1 %v5305_v27  ;;  %v798_v24 = vor.u32 %v797_v13, %v794_v11  ;;  %1726 = vmatprep.subr.bf16.mxu0 %v5310_v59  ;;  %v5331_v27 = vld [vmem:[%s7422_s3 + $0x3f4] ss:$8 sps:$4 sm:$0xff]   ;;  %v790_v4 = vsel %vm6012_vm4, %v785_v39, %v789_v53  ;;  %v485_v17 = vsel %vm5904_vm8, 0, %v484_v51  ;;  %v604_v34 = vshll.u32 %v457_v16, 16 }
  0x61   : > { %2056 = vmatprep.subr.bf16.mxu1 %v5313_v29  ;;  %v651_v29 = vld [vmem:[#allocation2 + $0x60] sm:$0xff]  ;;  %v803_v61 = vrot.slane %v801_v48, 5  ;;  %v522_v11 = vld [vmem:[#allocation2 + $0x90] sm:$0x11]  ;;  %486 = vst [vmem:[#allocation2 + $0x58] sm:$0x11] %v485_v17 }
  0x62   : > { %v799_v44 = vrot.slane %v798_v24, 4  ;;  %v5326_v24 = vld [vmem:[%s7422_s3 + $0x2f0] ss:$8 sps:$4 sm:$0xff]   ;;  %v523_v28 = vsel %vm5928_vm13, 0, %v522_v11 }
  0x63   : > { %1727 = vmatpush1.bf16.msra.mxu0 %v5308_v18  ;;  %v5328_v18 = vld [vmem:[%s7422_s3 + $0x2f4] ss:$8 sps:$4 sm:$0xff]   ;;  %524 = vst [vmem:[#allocation2 + $0x90] sm:$0x11] %v523_v28 }
  0x64   : > { %2057 = vmatpush1.bf16.msra.mxu1 %v5311_v35  ;;  %v591_v35 = vrot.slane %v587_v26, 4  ;;  %1728 = vmatprep.subr.bf16.mxu0 %v5316_v19  ;;  %v804_v12 = vsel %vm6012_vm4, %v799_v44, %v803_v61  ;;  %v6225_v39 = vld [vmem:[#allocation2 + $0x98] sm:$0x11] }
  0x65   : > { %2058 = vmatprep.subr.bf16.mxu1 %v5319_v36  ;;  %v6160_v36 = vsel %vm5952_vm0, %v582_v25, %v651_v29  ;;  %v4512_v19 = vcombine.high %v790_v4, %v804_v12  ;;  %v4511_v20 = vcombine.low %v790_v4, %v804_v12  ;;  %v5343_v25 = vld [vmem:[%s7422_s3 + $0x3d4] ss:$8 sps:$4 sm:$0xff]   ;;  %v593_v29 = vshrl.u32 %v456_v8, 16  ;;  %v5338_v12 = vld [vmem:[%s7422_s3 + $0x2d0] ss:$8 sps:$4 sm:$0xff]  }
  0x66   : > { %653 = vst [vmem:[#allocation2 + $0x60] sm:$0xff] %v6160_v36  ;;  %v806_v42 = vshrl.u32 %v6160_v36, 16  ;;  %v809_v43 = vshll.u32 %v6160_v36, 16  ;;  %v661_v63 = vsel %vm5904_vm8, %v591_v35, %v660_v57  ;;  %v4554_v5 = vcombine.high %v6160_v36, %v6177_v50  ;;  %v5341_v35 = vld [vmem:[%s7422_s3 + $0x3d0] ss:$8 sps:$4 sm:$0xff]  }
  0x67   : > { %662 = vst [vmem:[#allocation2 + $0x28] sm:$0x11] %v661_v63  ;;  %v4553_v7 = vcombine.low %v6160_v36, %v6177_v50  ;;  %1729 = vmatpush1.bf16.msra.mxu0 %v5314_v31  ;;  %1128 = vmatprep.mubr.bf16.mxu0 %v4512_v19  ;;  %v596_v31 = vshll.u32 %v456_v8, 16  ;;  %v815_v48 = vshll.u32 %v6225_v39, 16 }
  0x68   : > { %2059 = vmatpush1.bf16.msra.mxu1 %v5317_v0  ;;  %v808_v58 = vrot.slane %v806_v42, 4  ;;  %v811_v59 = vrot.slane %v809_v43, 5  ;;  %v820_v0 = vshrl.u32 %v6177_v50, 16  ;;  %1730 = vmatprep.subr.bf16.mxu0 %v5322_v37  ;;  %v595_v37 = vrot.slane %v593_v29, 7  ;;  %v5332_v42 = vld [vmem:[%s7422_s3 + $0x2e0] ss:$8 sps:$4 sm:$0xff]  }
  0x69   : > { %2060 = vmatprep.subr.bf16.mxu1 %v5325_v1  ;;  %v823_v1 = vshll.u32 %v6177_v50, 16  ;;  %1411 = vmatprep.mubr.bf16.mxu1 %v4554_v5  ;;  %v663_v61 = vld [vmem:[#allocation2 + $0x58] sm:$0xff]  ;;  %v5344_v29 = vld [vmem:[%s7422_s3 + $0x2c0] ss:$8 sps:$4 sm:$0xff]  }
  0x6a   : > { %v822_v13 = vrot.slane %v820_v0, 4  ;;  %v812_v22 = vor.u32 %v811_v59, %v808_v58  ;;  %1412 = vmatmul.mubr.bf16.gmra.mxu1 %v4553_v7  ;;  %1129 = vmatmul.mubr.bf16.gmra.mxu0 %v4511_v20  ;;  %v598_v51 = vor.u32 %v596_v31, %v595_v37  ;;  %v599_v57 = vrot.slane %v595_v37, 4  ;;  %v5355_v0 = vld [vmem:[%s7422_s3 + $0x3b4] ss:$8 sps:$4 sm:$0xff]   ;;  %v5353_v20 = vld [vmem:[%s7422_s3 + $0x3b0] ss:$8 sps:$4 sm:$0xff]  }
  0x6b   : > { %v825_v14 = vrot.slane %v823_v1, 5  ;;  %1731 = vmatpush1.bf16.msra.mxu0 %v5320_v60  ;;  %v817_v60 = vrot.slane %v815_v48, 5  ;;  %v672_v8 = vld [vmem:[#allocation2 + $0x90] sm:$0x11]  ;;  %v4702_v31 = vcombine.high %v5974_v21, %v6102_v52 }
  0x6c   : > { %2061 = vmatpush1.bf16.msra.mxu1 %v5323_v23  ;;  %v488_v23 = vsel %vm5904_vm8, 0, %v487_v3  ;;  %1732 = vmatprep.subr.bf16.mxu0 %v5328_v18  ;;  %v6235_v44 = vrot.slane %v812_v22, 4  ;;  %v6250_v1 = vsel %vm5952_vm0, %v598_v51, %v663_v61  ;;  %v5352_v48 = vld [vmem:[%s7422_s3 + $0x2b4] ss:$8 sps:$4 sm:$0xff]  }
  0x6d   : > { %2062 = vmatprep.subr.bf16.mxu1 %v5331_v27  ;;  %v826_v26 = vor.u32 %v825_v14, %v822_v13  ;;  %489 = vst [vmem:[#allocation2 + $0x68] sm:$0x11] %v488_v23  ;;  %v520_v27 = vsel %vm5928_vm13, 0, %v519_v10  ;;  %665 = vst [vmem:[#allocation2 + $0x58] sm:$0xff] %v6250_v1  ;;  %v834_v10 = vshrl.u32 %v6250_v1, 16  ;;  %v837_v11 = vshll.u32 %v6250_v1, 16 }
  0x6e   : > { %521 = vst [vmem:[#allocation2 + $0x40] sm:$0x11] %v520_v27  ;;  %v6233_v43 = vld [vmem:[#allocation2 + $0x28] sm:$0x11]  ;;  %v818_v4 = vsel %vm6012_vm4, %v6235_v44, %v817_v60  ;;  %v5367_v51 = vld [vmem:[%s7422_s3 + $0x394] ss:$8 sps:$4 sm:$0xff]  }
  0x6f   : > { %v827_v49 = vrot.slane %v826_v26, 4  ;;  %v829_v53 = vshll.u32 %v6233_v43, 16  ;;  %1733 = vmatpush2.bf16.msra.mxu0 %v5326_v24  ;;  %v836_v22 = vrot.slane %v834_v10, 4  ;;  %v839_v23 = vrot.slane %v837_v11, 5  ;;  %v5346_v24 = vld [vmem:[%s7422_s3 + $0x2c4] ss:$8 sps:$4 sm:$0xff]  }
  0x70   : > { %2063 = vmatpush2.bf16.msra.mxu1 %v5329_v32  ;;  %v601_v32 = vshrl.u32 %v457_v16, 16  ;;  %1734 = vmatprep.subr.bf16.mxu0 %v5334_v30  ;;  %v5361_v30 = vld [vmem:[%s7422_s3 + $0x3a4] ss:$8 sps:$4 sm:$0xff]  }
  0x71   : > { %2064 = vmatprep.subr.bf16.mxu1 %v5337_v41  ;;  %v831_v63 = vrot.slane %v829_v53, 5  ;;  %v840_v37 = vor.u32 %v839_v23, %v836_v22  ;;  %v4701_v22 = vcombine.low %v5974_v21, %v6102_v52  ;;  %v1434_v23 = vld [vmem:[#allocation2 + $0x8] sm:$0xee] }
  0x72   : > { %v603_v41 = vrot.slane %v601_v32, 7  ;;  %v5385_v21 = vld [vmem:[%s7422_s3 + $0x564] ss:$8 sps:$4 sm:$0xff]  }
  0x73   : > { %v832_v13 = vsel %vm6012_vm4, %v827_v49, %v831_v63  ;;  %1735 = vmatpush2.bf16.msra.mxu0 %v5332_v42  ;;  %v1465_v42 = vrot.slane %v6010_v46, 5  ;;  %v5365_v46 = vld [vmem:[%s7422_s3 + $0x390] ss:$8 sps:$4 sm:$0xff]   ;;  %v6319_v60 = vrot.slane %v840_v37, 4  ;;  %v5370_v52 = vld [vmem:[%s7422_s3 + $0x284] ss:$8 sps:$4 sm:$0xff]  }
  0x74   : > { %2065 = vmatpush2.bf16.msra.mxu1 %v5335_v62  ;;  %v606_v58 = vor.u32 %v604_v34, %v603_v41  ;;  %v607_v59 = vrot.slane %v603_v41, 4  ;;  %v5340_v62 = vld [vmem:[%s7422_s3 + $0x2d4] ss:$8 sps:$4 sm:$0xff]   ;;  %v669_v3 = vld [vmem:[#allocation2 + $0x68] sm:$0xff]  ;;  %v4514_v18 = vcombine.high %v818_v4, %v832_v13  ;;  %v4513_v19 = vcombine.low %v818_v4, %v832_v13  ;;  %v1432_v34 = vld [vmem:[#allocation2] sm:$0xee] }
  0x75   : > { %2066 = vmatprep.subr.bf16.mxu1 %v5343_v25  ;;  %v666_v5 = vld [vmem:[#allocation2 + $0x40] sm:$0x11]  ;;  %1736 = vmatprep.subr.bf16.mxu0 %v5340_v62  ;;  %v1461_v41 = vrot.slane %v6008_v45, 5  ;;  %v5350_v45 = vld [vmem:[%s7422_s3 + $0x2b0] ss:$8 sps:$4 sm:$0xff]  }
  0x76   : > { %v6258_v7 = vsel %vm5952_vm0, %v606_v58, %v669_v3  ;;  %v667_v14 = vsel %vm5904_vm8, %v599_v57, %v666_v5  ;;  %v673_v16 = vsel %vm5904_vm8, %v607_v59, %v672_v8  ;;  %1138 = vmatprep.mubr.bf16.mxu0 %v4514_v18  ;;  %v5373_v3 = vld [vmem:[%s7422_s3 + $0x384] ss:$8 sps:$4 sm:$0xff]   ;;  %v5356_v13 = vld [vmem:[%s7422_s3 + $0x2a0] ss:$8 sps:$4 sm:$0xff]   ;;  %v5364_v18 = vld [vmem:[%s7422_s3 + $0x294] ss:$8 sps:$4 sm:$0xff]  }
  0x77   : > { %671 = vst [vmem:[#allocation2 + $0x68] sm:$0xff] %v6258_v7  ;;  %v848_v17 = vshrl.u32 %v6258_v7, 16  ;;  %668 = vst [vmem:[#allocation2 + $0x40] sm:$0x11] %v667_v14  ;;  %v851_v26 = vshll.u32 %v6258_v7, 16  ;;  %v4556_v27 = vcombine.high %v6250_v1, %v6258_v7  ;;  %v4555_v28 = vcombine.low %v6250_v1, %v6258_v7  ;;  %1139 = vmatmul.mubr.bf16.gmra.mxu0 %v4513_v19 }
  0x78   : > { %2067 = vmatpush2.bf16.msra.mxu1 %v5341_v35  ;;  %674 = vst [vmem:[#allocation2 + $0x90] sm:$0x11] %v673_v16  ;;  %v1433_v35 = vld [vmem:[#allocation2 + $0x70] sm:$0xee]  ;;  %1737 = vmatpush2.bf16.msra.mxu0 %v5338_v12  ;;  %v5371_v14 = vld [vmem:[%s7422_s3 + $0x380] ss:$8 sps:$4 sm:$0xff]  }
  0x79   : > { %2068 = vmatprep.subr.bf16.mxu1 %v5349_v40  ;;  %v850_v25 = vrot.slane %v848_v17, 4  ;;  %v853_v32 = vrot.slane %v851_v26, 5  ;;  %1421 = vmatprep.mubr.bf16.mxu1 %v4556_v27  ;;  %v5359_v40 = vld [vmem:[%s7422_s3 + $0x3a0] ss:$8 sps:$4 sm:$0xff]   ;;  %v4590_v57 = vrot.slane %v1433_v35, 9  ;;  %v4704_v27 = vcombine.high %v6108_v54, %v6160_v36 }
  0x7a   : > { %1738 = vmatprep.subr.bf16.mxu0 %v5346_v24  ;;  %1422 = vmatmul.mubr.bf16.gmra.mxu1 %v4555_v28  ;;  %v1435_v24 = vld [vmem:[#allocation2 + $0x30] sm:$0xee]  ;;  %v4591_v28 = vrot.slane %v1434_v23, 9 }
  0x7b   : > { %v854_v49 = vor.u32 %v853_v32, %v850_v25  ;;  %2078 = vmatprep.mubr.bf16.mxu1 %v4702_v31  ;;  %v6335_v10 = vsel %vm6305_vm7, %v4590_v57, %v1465_v42  ;;  %v5362_v25 = vld [vmem:[%s7422_s3 + $0x290] ss:$8 sps:$4 sm:$0xff]   ;;  %v1473_v31 = vrot.slane %v6165_v38, 5  ;;  %v5368_v32 = vld [vmem:[%s7422_s3 + $0x280] ss:$8 sps:$4 sm:$0xff]  }
  0x7c   : > { %2069 = vmatpush2.bf16.msra.mxu1 %v5347_v56  ;;  %v4589_v56 = vrot.slane %v1432_v34, 9  ;;  %1739 = vmatpush2.bf16.msra.mxu0 %v5344_v29  ;;  %v5377_v26 = vld [vmem:[%s7422_s3 + $0x570] ss:$8 sps:$4 sm:$0xff]   ;;  %v1469_v29 = vrot.slane %v6156_v33, 5  ;;  %v5383_v34 = vld [vmem:[%s7422_s3 + $0x560] ss:$8 sps:$4 sm:$0xff]  }
  0x7d   : > { %2070 = vmatprep.subr.bf16.mxu1 %v5355_v0  ;;  %v855_v62 = vrot.slane %v854_v49, 4  ;;  %1740 = vmatprep.subr.bf16.mxu0 %v5352_v48  ;;  %v5358_v0 = vld [vmem:[%s7422_s3 + $0x2a4] ss:$8 sps:$4 sm:$0xff]   ;;  %v5376_v35 = vld [vmem:[%s7422_s3 + $0x474] ss:$8 sps:$4 sm:$0xff]   ;;  %v4703_v49 = vcombine.low %v6108_v54, %v6160_v36 }
  0x7e   : > { %v6315_v58 = vld [vmem:[#allocation2 + $0x40] sm:$0x11]  ;;  %v6331_v8 = vsel %vm6305_vm7, %v4589_v56, %v1461_v41  ;;  %v5391_v33 = vld [vmem:[%s7422_s3 + $0x554] ss:$8 sps:$4 sm:$0xff]   ;;  %v6389_v37 = vsel %vm6305_vm7, %v4591_v28, %v1469_v29  ;;  %v5374_v48 = vld [vmem:[%s7422_s3 + $0x470] ss:$8 sps:$4 sm:$0xff]  }
  0x7f   : > { %v6317_v59 = vld [vmem:[#allocation2 + $0x90] sm:$0x11]  ;;  %v843_v61 = vshll.u32 %v6315_v58, 16  ;;  %v4630_v19 = vcombine.high %v6331_v8, %v6335_v10  ;;  %v458_v38 = vld [vmem:[%s5881_s30 + $0x38] sm:$0xff]  ;;  %v4629_v56 = vcombine.low %v6331_v8, %v6335_v10  ;;  %v5382_v54 = vld [vmem:[%s7422_s3 + $0x464] ss:$8 sps:$4 sm:$0xff]   ;;  %v4706_v8 = vcombine.high %v6177_v50, %v6250_v1 }
  0x80   : > { %2071 = vmatpush2.bf16.msra.mxu1 %v5353_v20  ;;  %v857_v63 = vshll.u32 %v6317_v59, 16  ;;  %1741 = vmatpush2.bf16.msra.mxu0 %v5350_v45  ;;  %v5379_v20 = vld [vmem:[%s7422_s3 + $0x574] ss:$8 sps:$4 sm:$0xff]   ;;  %v609_v42 = vshrl.u32 %v458_v38, 16  ;;  %v5389_v57 = vld [vmem:[%s7422_s3 + $0x550] ss:$8 sps:$4 sm:$0xff]  }
  0x81   : > { %2072 = vmatprep.subr.bf16.mxu1 %v5361_v30  ;;  %v845_v4 = vrot.slane %v843_v61, 5  ;;  %1742 = vmatprep.subr.bf16.mxu0 %v5358_v0  ;;  %v4592_v30 = vrot.slane %v1435_v24, 9  ;;  %v490_v41 = vld [vmem:[#allocation2 + $0x10] sm:$0x11]  ;;  %v1437_v45 = vld [vmem:[#allocation2 + $0x38] sm:$0xee] }
  0x82   : > { %v859_v5 = vrot.slane %v857_v63, 5  ;;  %v6407_v61 = vrot.slane %v609_v42, 7  ;;  %v1477_v63 = vrot.slane %v6225_v39, 5  ;;  %v1481_v0 = vrot.slane %v6233_v43, 5  ;;  %v5380_v10 = vld [vmem:[%s7422_s3 + $0x460] ss:$8 sps:$4 sm:$0xff]  }
  0x83   : > { %v846_v11 = vsel %vm6012_vm4, %v6319_v60, %v845_v4  ;;  %v5395_v39 = vld [vmem:[%s7422_s3 + $0x540] ss:$8 sps:$4 sm:$0xff]   ;;  %v5401_v23 = vld [vmem:[%s7422_s3 + $0x530] ss:$8 sps:$4 sm:$0xff]  }
  0x84   : > { %2073 = vmatpush2.bf16.msra.mxu1 %v5359_v40  ;;  %v860_v12 = vsel %vm6012_vm4, %v855_v62, %v859_v5  ;;  %1743 = vmatpush2.bf16.msra.mxu0 %v5356_v13  ;;  %v6393_v40 = vsel %vm6305_vm7, %v4592_v30, %v1473_v31  ;;  %v612_v62 = vshll.u32 %v458_v38, 16  ;;  %v4594_v5 = vrot.slane %v1437_v45, 9  ;;  %v5392_v28 = vld [vmem:[%s7422_s3 + $0x440] ss:$8 sps:$4 sm:$0xff]   ;;  %v5400_v30 = vld [vmem:[%s7422_s3 + $0x434] ss:$8 sps:$4 sm:$0xff]  }
  0x85   : > { %2074 = vmatprep.subr.bf16.mxu1 %v5367_v51  ;;  %v4516_v16 = vcombine.high %v846_v11, %v860_v12  ;;  %v4515_v17 = vcombine.low %v846_v11, %v860_v12  ;;  %1744 = vmatprep.subr.bf16.mxu0 %v5364_v18  ;;  %v1436_v51 = vld [vmem:[#allocation2 + $0x60] sm:$0xee]  ;;  %v4632_v36 = vcombine.high %v6389_v37, %v6393_v40  ;;  %v5403_v11 = vld [vmem:[%s7422_s3 + $0x534] ss:$8 sps:$4 sm:$0xff]   ;;  %v5398_v38 = vld [vmem:[%s7422_s3 + $0x430] ss:$8 sps:$4 sm:$0xff]  }
  0x86   : > { %v4593_v4 = vrot.slane %v1436_v51, 9  ;;  %v614_v43 = vor.u32 %v612_v62, %v6407_v61  ;;  %v5388_v12 = vld [vmem:[%s7422_s3 + $0x454] ss:$8 sps:$4 sm:$0xff]   ;;  %v5419_v42 = vld [vmem:[%s7422_s3 + $0x500] ss:$8 sps:$4 sm:$0xff]  }
  0x87   : > { %1148 = vmatprep.mubr.bf16.mxu0 %v4516_v16  ;;  %v5386_v16 = vld [vmem:[%s7422_s3 + $0x450] ss:$8 sps:$4 sm:$0xff]   ;;  %v2136_v62 = vld [vmem:[#allocation2 + $0x80] sm:$0x11] }
  0x88   : > { %2075 = vmatpush2.bf16.msra.mxu1 %v5365_v46  ;;  %1149 = vmatmul.mubr.bf16.gmra.mxu0 %v4515_v17  ;;  %v491_v46 = vsel %vm5904_vm8, 0, %v490_v41  ;;  %v1478_v13 = vsel %vm6305_vm7, %v4593_v4, %v1477_v63  ;;  %v4705_v17 = vcombine.low %v6177_v50, %v6250_v1  ;;  %v1438_v18 = vld [vmem:[#allocation2 + $0x58] sm:$0xee]  ;;  %v5394_v50 = vld [vmem:[%s7422_s3 + $0x444] ss:$8 sps:$4 sm:$0xff]   ;;  %v2135_v45 = vld [vmem:[#allocation2 + $0x70] sm:$0xff] }
  0x89   : > { %2076 = vmatprep.subr.bf16.mxu1 %v5373_v3  ;;  %1748 = vmatprep.mubr.bf16.mxu0 %v4630_v19  ;;  %492 = vst [vmem:[#allocation2 + $0x10] sm:$0x11] %v491_v46  ;;  %v5397_v3 = vld [vmem:[%s7422_s3 + $0x544] ss:$8 sps:$4 sm:$0xff]   ;;  %v5404_v41 = vld [vmem:[%s7422_s3 + $0x420] ss:$8 sps:$4 sm:$0xff]  }
  0x8a   : > { %1745 = vmatpush2.bf16.msra.mxu0 %v5362_v25  ;;  %v1439_v19 = vld [vmem:[#allocation2 + $0x68] sm:$0xee]  ;;  %v1485_v25 = vrot.slane %v6315_v58, 5  ;;  %v5425_v51 = vld [vmem:[%s7422_s3 + $0x5f0] ss:$8 sps:$4 sm:$0xff]   ;;  %v2152_v63 = vshrl.u32 %v2135_v45, 16 }
  0x8b   : > { %1746 = vmatprep.subr.bf16.mxu0 %v5370_v52  ;;  %v1489_v52 = vrot.slane %v6317_v59, 5  ;;  %v5407_v58 = vld [vmem:[%s7422_s3 + $0x520] ss:$8 sps:$4 sm:$0xff]   ;;  %v5415_v59 = vld [vmem:[%s7422_s3 + $0x514] ss:$8 sps:$4 sm:$0xff]   ;;  %v2161_v4 = vshll.u32 %v2136_v62, 16 }
  0x8c   : > { %2077 = vmatpush2.bf16.msra.mxu1 %v5371_v14  ;;  %v1482_v14 = vsel %vm6305_vm7, %v4594_v5, %v1481_v0  ;;  %v5418_v0 = vld [vmem:[%s7422_s3 + $0x404] ss:$8 sps:$4 sm:$0xff]  }
  0x8d   : > { %2858 = vmatprep.subr.bf16.mxu1 %v5379_v20  ;;  %v4634_v1 = vcombine.high %v1478_v13, %v1482_v14 }
  0x8e   : > { %1747 = vmatpush2.bf16.msra.mxu0 %v5368_v32 }
  0x8f   : > { %2079 = vmatmul.mubr.bf16.vlgmr.msra.gmra.mxu1 %v4701_v22  ;;  %2488 = vmatprep.subr.bf16.mxu0 %v5376_v35  ;;  %v4631_v22 = vcombine.low %v6389_v37, %v6393_v40  ;;  %v4633_v35 = vcombine.low %v1478_v13, %v1482_v14  ;;  %v5406_v40 = vld [vmem:[%s7422_s3 + $0x424] ss:$8 sps:$4 sm:$0xff]   ;;  %v2603_v13 = vrot.slane %v2136_v62, 5 }
  0x90   : > { %2859 = vmatpush1.bf16.msra.mxu1 %v5377_v26  ;;  %2088 = vmatprep.mubr.bf16.mxu1 %v4704_v27  ;;  %v675_v20 = vld [vmem:[#allocation2 + $0x10] sm:$0xff]  ;;  %v5409_v26 = vld [vmem:[%s7422_s3 + $0x524] ss:$8 sps:$4 sm:$0xff]   ;;  %v4595_v27 = vrot.slane %v1438_v18, 9  ;;  %v5416_v18 = vld [vmem:[%s7422_s3 + $0x400] ss:$8 sps:$4 sm:$0xff]  }
  0x91   : > { %2860 = vmatprep.subr.bf16.mxu1 %v5385_v21  ;;  %1749 = vmatmul.mubr.bf16.vlgmr.msra.gmra.mxu0 %v4629_v56  ;;  %v6450_v24 = vsel %vm5952_vm0, %v614_v43, %v675_v20  ;;  %v4596_v21 = vrot.slane %v1439_v19, 9  ;;  %v5410_v56 = vld [vmem:[%s7422_s3 + $0x410] ss:$8 sps:$4 sm:$0xff]  }
  0x92   : > { %2489 = vmatpush1.bf16.msra.mxu0 %v5374_v48  ;;  %1758 = vmatprep.mubr.bf16.mxu0 %v4632_v36  ;;  %677 = vst [vmem:[#allocation2 + $0x10] sm:$0xff] %v6450_v24  ;;  %v4708_v29 = vcombine.high %v6258_v7, %v6450_v24  ;;  %v1486_v31 = vsel %vm6305_vm7, %v4595_v27, %v1485_v25  ;;  %v5427_v48 = vld [vmem:[%s7422_s3 + $0x5f4] ss:$8 sps:$4 sm:$0xff]  }
  0x93   : > { %2490 = vmatprep.subr.bf16.mxu0 %v5382_v54  ;;  %v1490_v32 = vsel %vm6305_vm7, %v4596_v21, %v1489_v52  ;;  %v6514_v54 = vld [vmem:[#allocation2 + $0x8] sm:$0xff]  ;;  %v2138_v36 = vld [vmem:[#allocation2 + $0x18] sm:$0x11] }
  0x94   : > { %2861 = vmatpush1.bf16.msra.mxu1 %v5383_v34  ;;  %v4707_v34 = vcombine.low %v6258_v7, %v6450_v24  ;;  %v4636_v37 = vcombine.high %v1486_v31, %v1490_v32  ;;  %v5421_v7 = vld [vmem:[%s7422_s3 + $0x504] ss:$8 sps:$4 sm:$0xff]   ;;  %v4635_v46 = vcombine.low %v1486_v31, %v1490_v32  ;;  %v2166_v5 = vshrl.u32 %v6514_v54, 16  ;;  %v5439_v27 = vld [vmem:[%s7422_s3 + $0x5d4] ss:$8 sps:$4 sm:$0xff]  }
  0x95   : > { %2862 = vmatprep.subr.bf16.mxu1 %v5391_v33  ;;  %v5413_v33 = vld [vmem:[%s7422_s3 + $0x510] ss:$8 sps:$4 sm:$0xff]   ;;  %v2175_v43 = vshll.u32 %v2138_v36, 16  ;;  %v5424_v52 = vld [vmem:[%s7422_s3 + $0x4f4] ss:$8 sps:$4 sm:$0xff]  }
  0x96   : > { %2491 = vmatpush1.bf16.msra.mxu0 %v5380_v10  ;;  %v2577_v10 = vld [vmem:[#allocation2 + $0x70] sm:$0xee]  ;;  %v5445_v31 = vld [vmem:[%s7422_s3 + $0x5c4] ss:$8 sps:$4 sm:$0xff]  }
  0x97   : > { %2089 = vmatmul.mubr.bf16.gmra.mxu1 %v4703_v49  ;;  %2492 = vmatprep.subr.bf16.mxu0 %v5388_v12  ;;  %v5412_v49 = vld [vmem:[%s7422_s3 + $0x414] ss:$8 sps:$4 sm:$0xff]   ;;  %v4813_v12 = vrot.slane %v2577_v10, 9  ;;  %v2140_v10 = vld [vmem:[#allocation2 + $0x20] sm:$0x11] }
  0x98   : > { %2863 = vmatpush1.bf16.msra.mxu1 %v5389_v57  ;;  %2098 = vmatprep.mubr.bf16.mxu1 %v4706_v8  ;;  %v5433_v57 = vld [vmem:[%s7422_s3 + $0x5e4] ss:$8 sps:$4 sm:$0xff]   ;;  %v2169_v8 = vshll.u32 %v6514_v54, 16 }
  0x99   : > { %2864 = vmatprep.subr.bf16.mxu1 %v5397_v3  ;;  %1759 = vmatmul.mubr.bf16.gmra.mxu0 %v4631_v22  ;;  %v2155_v3 = vshll.u32 %v2135_v45, 16  ;;  %v6526_v19 = vsel %vm6305_vm7, %v4813_v12, %v2603_v13  ;;  %v2607_v22 = vrot.slane %v2138_v36, 5  ;;  %v5442_v45 = vld [vmem:[%s7422_s3 + $0x4c4] ss:$8 sps:$4 sm:$0xff]   ;;  %v5448_v36 = vld [vmem:[%s7422_s3 + $0x4b4] ss:$8 sps:$4 sm:$0xff]  }
  0x9a   : > { %2493 = vmatpush1.bf16.msra.mxu0 %v5386_v16  ;;  %1768 = vmatprep.mubr.bf16.mxu0 %v4634_v1  ;;  %v2168_v16 = vrot.slane %v2166_v5, 4  ;;  %v2163_v1 = vrot.slane %v2161_v4, 5  ;;  %v2580_v4 = vld [vmem:[#allocation2 + $0x60] sm:$0xee]  ;;  %v5446_v5 = vld [vmem:[%s7422_s3 + $0x4b0] ss:$8 sps:$4 sm:$0xff]  }
  0x9b   : > { %2494 = vmatprep.subr.bf16.mxu0 %v5394_v50  ;;  %v2157_v14 = vrot.slane %v2155_v3, 5  ;;  %v5461_v3 = vld [vmem:[%s7422_s3 + $0x590] ss:$8 sps:$4 sm:$0xff]   ;;  %v2611_v13 = vrot.slane %v2140_v10, 5 }
  0x9c   : > { %2865 = vmatpush1.bf16.msra.mxu1 %v5395_v39  ;;  %v2154_v39 = vrot.slane %v2152_v63, 4  ;;  %v5463_v63 = vld [vmem:[%s7422_s3 + $0x594] ss:$8 sps:$4 sm:$0xff]  }
  0x9d   : > { %2866 = vmatprep.subr.bf16.mxu1 %v5403_v11  ;;  %v2578_v11 = vld [vmem:[#allocation2 + $0x8] sm:$0xee] }
  0x9e   : > { %2495 = vmatpush1.bf16.msra.mxu0 %v5392_v28  ;;  %v4814_v20 = vrot.slane %v2578_v11, 9  ;;  %v2158_v50 = vor.u32 %v2157_v14, %v2154_v39  ;;  %v2142_v39 = vld [vmem:[#allocation2 + $0x98] sm:$0x11]  ;;  %v4816_v14 = vrot.slane %v2580_v4, 9  ;;  %v2253_v4 = vshll.u32 %v6450_v24, 16 }
  0x9f   : > { %2099 = vmatmul.mubr.bf16.gmra.mxu1 %v4705_v17  ;;  %2496 = vmatprep.subr.bf16.mxu0 %v5400_v30  ;;  %v2171_v17 = vrot.slane %v2169_v8, 5  ;;  %v5437_v30 = vld [vmem:[%s7422_s3 + $0x5d0] ss:$8 sps:$4 sm:$0xff]   ;;  %v5469_v8 = vld [vmem:[%s7422_s3 + $0x584] ss:$8 sps:$4 sm:$0xff]  }
  0xa0   : > { %2867 = vmatpush1.bf16.msra.mxu1 %v5401_v23  ;;  %2108 = vmatprep.mubr.bf16.mxu1 %v4708_v29  ;;  %v5431_v23 = vld [vmem:[%s7422_s3 + $0x5e0] ss:$8 sps:$4 sm:$0xff]   ;;  %v6536_v21 = vsel %vm6305_vm7, %v4814_v20, %v2607_v22  ;;  %v2159_v28 = vrot.slane %v2158_v50, 4  ;;  %v6624_v22 = vld [vmem:[#allocation2 + $0x38] sm:$0xff]  ;;  %v2189_v50 = vshll.u32 %v2140_v10, 16 }
  0xa1   : > { %2868 = vmatprep.subr.bf16.mxu1 %v5409_v26  ;;  %1769 = vmatmul.mubr.bf16.gmra.mxu0 %v4633_v35  ;;  %v2172_v25 = vor.u32 %v2171_v17, %v2168_v16  ;;  %v2177_v26 = vrot.slane %v2175_v43, 5  ;;  %v2615_v16 = vrot.slane %v2142_v39, 5  ;;  %v525_v17 = vld [vmem:[#allocation2 + $0x48] sm:$0x11] }
  0xa2   : > { %2497 = vmatpush1.bf16.msra.mxu0 %v5398_v38  ;;  %1778 = vmatprep.mubr.bf16.mxu0 %v4636_v37  ;;  %v6556_v32 = vsel %vm6012_vm4, %v2159_v28, %v2163_v1  ;;  %v5430_v38 = vld [vmem:[%s7422_s3 + $0x4e4] ss:$8 sps:$4 sm:$0xff]   ;;  %v526_v20 = vsel %vm5928_vm13, 0, %v525_v17  ;;  %v2203_v1 = vshll.u32 %v2142_v39, 16 }
  0xa3   : > { %2498 = vmatprep.subr.bf16.mxu0 %v5406_v40  ;;  %v6541_v29 = vrot.slane %v2172_v25, 4  ;;  %v5443_v40 = vld [vmem:[%s7422_s3 + $0x5c0] ss:$8 sps:$4 sm:$0xff]   ;;  %527 = vst [vmem:[#allocation2 + $0x48] sm:$0x11] %v526_v20  ;;  %v6641_v28 = vsel %vm6305_vm7, %v4816_v14, %v2615_v16 }
  0xa4   : > { %2869 = vmatpush1.bf16.msra.mxu1 %v5407_v58  ;;  %v4854_v58 = vcombine.high %v6526_v19, %v6536_v21  ;;  %v5452_v25 = vld [vmem:[%s7422_s3 + $0x4a0] ss:$8 sps:$4 sm:$0xff]   ;;  %v5470_v20 = vld [vmem:[%s7422_s3 + $0x670] ss:$8 sps:$4 sm:$0xff]  }
  0xa5   : > { %2870 = vmatprep.subr.bf16.mxu1 %v5415_v59  ;;  %v5422_v59 = vld [vmem:[%s7422_s3 + $0x4f0] ss:$8 sps:$4 sm:$0xff]  }
  0xa6   : > { %2499 = vmatpush1.bf16.msra.mxu0 %v5404_v41  ;;  %v5451_v41 = vld [vmem:[%s7422_s3 + $0x5b4] ss:$8 sps:$4 sm:$0xff]  }
  0xa7   : > { %2109 = vmatmul.mubr.bf16.gmra.mxu1 %v4707_v34  ;;  %2500 = vmatprep.subr.bf16.mxu0 %v5412_v49  ;;  %v6561_v34 = vsel %vm6012_vm4, %v6541_v29, %v2177_v26  ;;  %v5449_v49 = vld [vmem:[%s7422_s3 + $0x5b0] ss:$8 sps:$4 sm:$0xff]   ;;  %v5475_v26 = vld [vmem:[%s7422_s3 + $0x774] ss:$8 sps:$4 sm:$0xff]  }
  0xa8   : > { %2871 = vmatpush1.bf16.msra.mxu1 %v5413_v33  ;;  %2890 = vmatprep.mubr.bf16.mxu1 %v4854_v58  ;;  %v4774_v35 = vcombine.high %v6556_v32, %v6561_v34  ;;  %v6565_v33 = vld [vmem:[#allocation2 + $0x30] sm:$0xff] }
  0xa9   : > { %2872 = vmatprep.subr.bf16.mxu1 %v5421_v7  ;;  %1779 = vmatmul.mubr.bf16.gmra.mxu0 %v4635_v46  ;;  %v4925_v37 = vcombine.low %v6514_v54, %v6565_v33  ;;  %v5428_v7 = vld [vmem:[%s7422_s3 + $0x4e0] ss:$8 sps:$4 sm:$0xff]   ;;  %v2183_v62 = vshll.u32 %v6565_v33, 16  ;;  %v5460_v58 = vld [vmem:[%s7422_s3 + $0x494] ss:$8 sps:$4 sm:$0xff]  }
  0xaa   : > { %2501 = vmatpush1.bf16.msra.mxu0 %v5410_v56  ;;  %2520 = vmatprep.mubr.bf16.mxu0 %v4774_v35  ;;  %v5440_v46 = vld [vmem:[%s7422_s3 + $0x4c0] ss:$8 sps:$4 sm:$0xff]   ;;  %v5458_v35 = vld [vmem:[%s7422_s3 + $0x490] ss:$8 sps:$4 sm:$0xff]  }
  0xab   : > { %2502 = vmatprep.subr.bf16.mxu0 %v5418_v0  ;;  %v5455_v56 = vld [vmem:[%s7422_s3 + $0x5a0] ss:$8 sps:$4 sm:$0xff]   ;;  %v2579_v0 = vld [vmem:[#allocation2 + $0x30] sm:$0xee]  ;;  %v2185_v11 = vrot.slane %v2183_v62, 5 }
  0xac   : > { %2873 = vmatpush1.bf16.msra.mxu1 %v5419_v42  ;;  %v5436_v42 = vld [vmem:[%s7422_s3 + $0x4d4] ss:$8 sps:$4 sm:$0xff]   ;;  %v4815_v12 = vrot.slane %v2579_v0, 9  ;;  %v678_v62 = vld [vmem:[#allocation2 + $0x48] sm:$0x11] }
  0xad   : > { %2874 = vmatprep.subr.bf16.mxu1 %v5427_v48  ;;  %v5434_v48 = vld [vmem:[%s7422_s3 + $0x4d0] ss:$8 sps:$4 sm:$0xff]   ;;  %v6675_v0 = vld [vmem:[#allocation2 + $0x68] sm:$0xff] }
  0xae   : > { %2503 = vmatpush1.bf16.msra.mxu0 %v5416_v18  ;;  %v5454_v18 = vld [vmem:[%s7422_s3 + $0x4a4] ss:$8 sps:$4 sm:$0xff]   ;;  %v2236_v17 = vshrl.u32 %v6675_v0, 16 }
  0xaf   : > { %2504 = vmatprep.subr.bf16.mxu0 %v5424_v52  ;;  %v6637_v52 = vsel %vm6305_vm7, %v4815_v12, %v2611_v13  ;;  %v5487_v12 = vld [vmem:[%s7422_s3 + $0x754] ss:$8 sps:$4 sm:$0xff]  }
  0xb0   : > { %2875 = vmatpush2.bf16.msra.mxu1 %v5425_v51  ;;  %v5457_v51 = vld [vmem:[%s7422_s3 + $0x5a4] ss:$8 sps:$4 sm:$0xff]  }
  0xb1   : > { %2876 = vmatprep.subr.bf16.mxu1 %v5433_v57  ;;  %v2180_v57 = vshrl.u32 %v6565_v33, 16 }
  0xb2   : > { %2505 = vmatpush2.bf16.msra.mxu0 %v5422_v59  ;;  %v2208_v59 = vshrl.u32 %v6624_v22, 16 }
  0xb3   : > { %2506 = vmatprep.subr.bf16.mxu0 %v5430_v38  ;;  %v2182_v43 = vrot.slane %v2180_v57, 4  ;;  %v4853_v38 = vcombine.low %v6526_v19, %v6536_v21  ;;  %v2144_v21 = vld [vmem:[#allocation2 + $0x28] sm:$0x11] }
  0xb4   : > { %2877 = vmatpush2.bf16.msra.mxu1 %v5431_v23  ;;  %v5467_v23 = vld [vmem:[%s7422_s3 + $0x580] ss:$8 sps:$4 sm:$0xff]   ;;  %v2217_v16 = vshll.u32 %v2144_v21, 16 }
  0xb5   : > { %2878 = vmatprep.subr.bf16.mxu1 %v5439_v27  ;;  %v2186_v27 = vor.u32 %v2185_v11, %v2182_v43  ;;  %v5472_v43 = vld [vmem:[%s7422_s3 + $0x674] ss:$8 sps:$4 sm:$0xff]  }
  0xb6   : > { %2507 = vmatpush2.bf16.msra.mxu0 %v5428_v7  ;;  %v5481_v7 = vld [vmem:[%s7422_s3 + $0x764] ss:$8 sps:$4 sm:$0xff]  }
  0xb7   : > { %2508 = vmatprep.subr.bf16.mxu0 %v5436_v42  ;;  %v2205_v42 = vrot.slane %v2203_v1, 5  ;;  %v6665_v19 = vrot.slane %v2186_v27, 4  ;;  %v5478_v1 = vld [vmem:[%s7422_s3 + $0x664] ss:$8 sps:$4 sm:$0xff]  }
  0xb8   : > { %2879 = vmatpush2.bf16.msra.mxu1 %v5437_v30  ;;  %v2211_v30 = vshll.u32 %v6624_v22, 16 }
  0xb9   : > { %2880 = vmatprep.subr.bf16.mxu1 %v5445_v31  ;;  %v615_v31 = vrot.slane %v6407_v61, 4  ;;  %v2191_v61 = vrot.slane %v2189_v50, 5  ;;  %v4773_v50 = vcombine.low %v6556_v32, %v6561_v34  ;;  %v2255_v32 = vrot.slane %v2253_v4, 5 }
  0xba   : > { %2509 = vmatpush2.bf16.msra.mxu0 %v5434_v48  ;;  %v4856_v48 = vcombine.high %v6637_v52, %v6641_v28  ;;  %v2213_v57 = vrot.slane %v2211_v30, 5  ;;  %v5491_v30 = vld [vmem:[%s7422_s3 + $0x740] ss:$8 sps:$4 sm:$0xff]  }
  0xbb   : > { %2510 = vmatprep.subr.bf16.mxu0 %v5442_v45  ;;  %v2582_v45 = vld [vmem:[#allocation2 + $0x58] sm:$0xee]  ;;  %v6685_v11 = vsel %vm6012_vm4, %v6665_v19, %v2191_v61 }
  0xbc   : > { %2881 = vmatpush2.bf16.msra.mxu1 %v5443_v40  ;;  %v5473_v40 = vld [vmem:[%s7422_s3 + $0x770] ss:$8 sps:$4 sm:$0xff]   ;;  %v4818_v10 = vrot.slane %v2582_v45, 9 }
  0xbd   : > { %2882 = vmatprep.subr.bf16.mxu1 %v5451_v41  ;;  %v5466_v41 = vld [vmem:[%s7422_s3 + $0x484] ss:$8 sps:$4 sm:$0xff]  }
  0xbe   : > { %2511 = vmatpush2.bf16.msra.mxu0 %v5440_v46  ;;  %v5479_v46 = vld [vmem:[%s7422_s3 + $0x760] ss:$8 sps:$4 sm:$0xff]  }
  0xbf   : > { %2512 = vmatprep.subr.bf16.mxu0 %v5448_v36  ;;  %v5464_v36 = vld [vmem:[%s7422_s3 + $0x480] ss:$8 sps:$4 sm:$0xff]  }
  0xc0   : > { %2883 = vmatpush2.bf16.msra.mxu1 %v5449_v49  ;;  %v2146_v49 = vld [vmem:[#allocation2 + $0x40] sm:$0x11] }
  0xc1   : > { %2884 = vmatprep.subr.bf16.mxu1 %v5457_v51  ;;  %v2581_v51 = vld [vmem:[#allocation2 + $0x38] sm:$0xee]  ;;  %v2623_v39 = vrot.slane %v2146_v49, 5  ;;  %v2231_v13 = vshll.u32 %v2146_v49, 16 }
  0xc2   : > { %2513 = vmatpush2.bf16.msra.mxu0 %v5446_v5  ;;  %v4817_v5 = vrot.slane %v2581_v51, 9  ;;  %v5476_v51 = vld [vmem:[%s7422_s3 + $0x660] ss:$8 sps:$4 sm:$0xff]  }
  0xc3   : > { %2514 = vmatprep.subr.bf16.mxu0 %v5454_v18  ;;  %v2239_v18 = vshll.u32 %v6675_v0, 16 }
  0xc4   : > { %2885 = vmatpush2.bf16.msra.mxu1 %v5455_v56  ;;  %v2210_v56 = vrot.slane %v2208_v59, 4  ;;  %v2584_v59 = vld [vmem:[#allocation2 + $0x10] sm:$0xee] }
  0xc5   : > { %2886 = vmatprep.subr.bf16.mxu1 %v5463_v63  ;;  %v679_v63 = vsel %vm5904_vm8, %v615_v31, %v678_v62  ;;  %v4820_v49 = vrot.slane %v2584_v59, 9  ;;  %v5502_v59 = vld [vmem:[%s7422_s3 + $0x624] ss:$8 sps:$4 sm:$0xff]  }
  0xc6   : > { %2515 = vmatpush2.bf16.msra.mxu0 %v5452_v25  ;;  %680 = vst [vmem:[#allocation2 + $0x48] sm:$0x11] %v679_v63  ;;  %v2214_v14 = vor.u32 %v2213_v57, %v2210_v56  ;;  %v5485_v25 = vld [vmem:[%s7422_s3 + $0x750] ss:$8 sps:$4 sm:$0xff]   ;;  %v5484_v57 = vld [vmem:[%s7422_s3 + $0x654] ss:$8 sps:$4 sm:$0xff]  }
  0xc7   : > { %2516 = vmatprep.subr.bf16.mxu0 %v5460_v58  ;;  %v2583_v58 = vld [vmem:[#allocation2 + $0x68] sm:$0xee] }
  0xc8   : > { %2887 = vmatpush2.bf16.msra.mxu1 %v5461_v3  ;;  %v2250_v3 = vshrl.u32 %v6450_v24, 16  ;;  %v6690_v24 = vsel %vm6012_vm4, %v6235_v44, %v2205_v42  ;;  %v4855_v44 = vcombine.low %v6637_v52, %v6641_v28  ;;  %v2624_v52 = vsel %vm6305_vm7, %v4818_v10, %v2623_v39  ;;  %v5497_v10 = vld [vmem:[%s7422_s3 + $0x730] ss:$8 sps:$4 sm:$0xff]  }
  0xc9   : > { %2888 = vmatprep.subr.bf16.mxu1 %v5469_v8  ;;  %v2619_v8 = vrot.slane %v2144_v21, 5  ;;  %v4776_v34 = vcombine.high %v6685_v11, %v6690_v24  ;;  %v2233_v28 = vrot.slane %v2231_v13, 5  ;;  %v6722_v31 = vrot.slane %v2214_v14, 4 }
  0xca   : > { %2517 = vmatpush2.bf16.msra.mxu0 %v5458_v35  ;;  %v2219_v35 = vrot.slane %v2217_v16, 5  ;;  %v4819_v42 = vrot.slane %v2583_v58, 9  ;;  %v5494_v58 = vld [vmem:[%s7422_s3 + $0x630] ss:$8 sps:$4 sm:$0xff]  }
  0xcb   : > { %2518 = vmatprep.subr.bf16.mxu0 %v5466_v41  ;;  %v2620_v27 = vsel %vm6305_vm7, %v4817_v5, %v2619_v8  ;;  %v2148_v41 = vld [vmem:[#allocation2 + $0x90] sm:$0x11]  ;;  %v6730_v45 = vsel %vm6012_vm4, %v6319_v60, %v2233_v28  ;;  %v4775_v5 = vcombine.low %v6685_v11, %v6690_v24  ;;  %v5490_v8 = vld [vmem:[%s7422_s3 + $0x644] ss:$8 sps:$4 sm:$0xff]  }
  0xcc   : > { %2889 = vmatpush2.bf16.msra.mxu1 %v5467_v23  ;;  %v2252_v23 = vrot.slane %v2250_v3, 4  ;;  %v2220_v62 = vsel %vm6012_vm4, %v6722_v31, %v2219_v35  ;;  %v2245_v63 = vshll.u32 %v2148_v41, 16  ;;  %v5482_v60 = vld [vmem:[%s7422_s3 + $0x650] ss:$8 sps:$4 sm:$0xff]   ;;  %v4857_v4 = vcombine.low %v2620_v27, %v2624_v52  ;;  %v5505_v11 = vld [vmem:[%s7422_s3 + $0x724] ss:$8 sps:$4 sm:$0xff]  }
  0xcd   : > { %3631 = vmatprep.subr.bf16.mxu1 %v5475_v26  ;;  %v5493_v26 = vld [vmem:[%s7422_s3 + $0x744] ss:$8 sps:$4 sm:$0xff]   ;;  %v5509_v28 = vld [vmem:[%s7422_s3 + $0x710] ss:$8 sps:$4 sm:$0xff]  }
  0xce   : > { %2519 = vmatpush2.bf16.msra.mxu0 %v5464_v36  ;;  %v2150_v61 = vld [vmem:[#allocation2 + $0x48] sm:$0x11]  ;;  %v2256_v56 = vor.u32 %v2255_v32, %v2252_v23  ;;  %v2247_v13 = vrot.slane %v2245_v63, 5  ;;  %v5496_v23 = vld [vmem:[%s7422_s3 + $0x634] ss:$8 sps:$4 sm:$0xff]  }
  0xcf   : > { %2891 = vmatmul.mubr.bf16.vlgmr.msra.gmra.mxu1 %v4853_v38  ;;  %3189 = vmatprep.subr.bf16.mxu0 %v5472_v43  ;;  %v2238_v38 = vrot.slane %v2236_v17, 4  ;;  %v2631_v21 = vrot.slane %v2150_v61, 5  ;;  %v2259_v3 = vshll.u32 %v2150_v61, 16  ;;  %v5515_v61 = vld [vmem:[%s7422_s3 + $0x700] ss:$8 sps:$4 sm:$0xff]  }
  0xd0   : > { %3632 = vmatpush1.bf16.msra.mxu1 %v5473_v40  ;;  %2900 = vmatprep.mubr.bf16.mxu1 %v4856_v48  ;;  %v2241_v40 = vrot.slane %v2239_v18, 5  ;;  %v2627_v48 = vrot.slane %v2148_v41, 5  ;;  %v2257_v14 = vrot.slane %v2256_v56, 4  ;;  %v5488_v18 = vld [vmem:[%s7422_s3 + $0x640] ss:$8 sps:$4 sm:$0xff]   ;;  %v4926_v56 = vcombine.high %v6514_v54, %v6565_v33 }
  0xd1   : > { %3633 = vmatprep.subr.bf16.mxu1 %v5481_v7  ;;  %v4858_v7 = vcombine.high %v2620_v27, %v2624_v52  ;;  %2521 = vmatmul.mubr.bf16.vlgmr.msra.gmra.mxu0 %v4773_v50  ;;  %v2632_v43 = vsel %vm6305_vm7, %v4820_v49, %v2631_v21  ;;  %v2261_v16 = vrot.slane %v2259_v3, 5  ;;  %v5506_v21 = vld [vmem:[%s7422_s3 + $0x610] ss:$8 sps:$4 sm:$0xff]   ;;  %v5535_v3 = vld [vmem:[%s7422_s3 + $0x7d4] ss:$8 sps:$4 sm:$0xff]  }
  0xd2   : > { %3190 = vmatpush1.bf16.msra.mxu0 %v5470_v20  ;;  %2530 = vmatprep.mubr.bf16.mxu0 %v4776_v34  ;;  %v2242_v36 = vor.u32 %v2241_v40, %v2238_v38  ;;  %v2628_v39 = vsel %vm6305_vm7, %v4819_v42, %v2627_v48  ;;  %v5503_v20 = vld [vmem:[%s7422_s3 + $0x720] ss:$8 sps:$4 sm:$0xff]   ;;  %v4777_v34 = vcombine.low %v2220_v62, %v6730_v45  ;;  %v5517_v40 = vld [vmem:[%s7422_s3 + $0x704] ss:$8 sps:$4 sm:$0xff]   ;;  %v5508_v48 = vld [vmem:[%s7422_s3 + $0x614] ss:$8 sps:$4 sm:$0xff]  }
  0xd3   : > { %3191 = vmatprep.subr.bf16.mxu0 %v5478_v1  ;;  %v4860_v17 = vcombine.high %v2628_v39, %v2632_v43  ;;  %v2262_v1 = vsel %vm6012_vm4, %v2257_v14, %v2261_v16  ;;  %v4859_v27 = vcombine.low %v2628_v39, %v2632_v43  ;;  %v5526_v39 = vld [vmem:[%s7422_s3 + $0x6e4] ss:$8 sps:$4 sm:$0xff]   ;;  %v5547_v14 = vld [vmem:[%s7422_s3 + $0x7b4] ss:$8 sps:$4 sm:$0xff]  }
  0xd4   : > { %3634 = vmatpush1.bf16.msra.mxu1 %v5479_v46  ;;  %v5499_v46 = vld [vmem:[%s7422_s3 + $0x734] ss:$8 sps:$4 sm:$0xff]   ;;  %v6760_v24 = vrot.slane %v2242_v36, 4  ;;  %v5527_v36 = vld [vmem:[%s7422_s3 + $0x7e0] ss:$8 sps:$4 sm:$0xff]  }
  0xd5   : > { %3635 = vmatprep.subr.bf16.mxu1 %v5487_v12  ;;  %v4778_v12 = vcombine.high %v2220_v62, %v6730_v45  ;;  %v5529_v45 = vld [vmem:[%s7422_s3 + $0x7e4] ss:$8 sps:$4 sm:$0xff]   ;;  %v5512_v62 = vld [vmem:[%s7422_s3 + $0x600] ss:$8 sps:$4 sm:$0xff]  }
  0xd6   : > { %3192 = vmatpush1.bf16.msra.mxu0 %v5476_v51  ;;  %v2248_v50 = vsel %vm6012_vm4, %v6760_v24, %v2247_v13  ;;  %v5521_v51 = vld [vmem:[%s7422_s3 + $0x7f0] ss:$8 sps:$4 sm:$0xff]   ;;  %v6864_v43 = vld [vmem:[#allocation2 + $0x60] sm:$0xff] }
  0xd7   : > { %2901 = vmatmul.mubr.bf16.gmra.mxu1 %v4855_v44  ;;  %3193 = vmatprep.subr.bf16.mxu0 %v5484_v57  ;;  %v5511_v44 = vld [vmem:[%s7422_s3 + $0x714] ss:$8 sps:$4 sm:$0xff]   ;;  %v4779_v49 = vcombine.low %v2248_v50, %v2262_v1  ;;  %v3323_v16 = vshrl.u32 %v6864_v43, 16 }
  0xd8   : > { %3636 = vmatpush1.bf16.msra.mxu1 %v5485_v25  ;;  %2910 = vmatprep.mubr.bf16.mxu1 %v4858_v7  ;;  %v6779_v25 = vld [vmem:[#allocation2 + $0x18] sm:$0x11] }
  0xd9   : > { %3637 = vmatprep.subr.bf16.mxu1 %v5493_v26  ;;  %2531 = vmatmul.mubr.bf16.gmra.mxu0 %v4775_v5  ;;  %v6781_v26 = vld [vmem:[#allocation2 + $0x20] sm:$0x11]  ;;  %v3304_v52 = vshll.u32 %v6779_v25, 16  ;;  %v493_v57 = vld [vmem:[#allocation2 + $0x78] sm:$0x11] }
  0xda   : > { %3194 = vmatpush1.bf16.msra.mxu0 %v5482_v60  ;;  %2540 = vmatprep.mubr.bf16.mxu0 %v4778_v12  ;;  %v3318_v32 = vshll.u32 %v6781_v26, 16  ;;  %v494_v63 = vsel %vm5904_vm8, 0, %v493_v57  ;;  %v528_v60 = vld [vmem:[#allocation2 + $0x88] sm:$0x11] }
  0xdb   : > { %3195 = vmatprep.subr.bf16.mxu0 %v5490_v8  ;;  %v3306_v35 = vrot.slane %v3304_v52, 5  ;;  %495 = vst [vmem:[#allocation2 + $0x78] sm:$0x11] %v494_v63  ;;  %v529_v5 = vsel %vm5928_vm13, 0, %v528_v60  ;;  %v5518_v8 = vld [vmem:[%s7422_s3 + $0x6f0] ss:$8 sps:$4 sm:$0xff]  }
  0xdc   : > { %3638 = vmatpush1.bf16.msra.mxu1 %v5491_v30  ;;  %v4780_v30 = vcombine.high %v2248_v50, %v2262_v1  ;;  %v3320_v38 = vrot.slane %v3318_v32, 5  ;;  %530 = vst [vmem:[#allocation2 + $0x88] sm:$0x11] %v529_v5  ;;  %v5524_v12 = vld [vmem:[%s7422_s3 + $0x6e0] ss:$8 sps:$4 sm:$0xff]   ;;  %v3325_v32 = vrot.slane %v3323_v16, 4 }
  0xdd   : > { %3639 = vmatprep.subr.bf16.mxu1 %v5499_v46  ;;  %v6801_v7 = vsel %vm6012_vm4, %v6541_v29, %v3306_v35  ;;  %v5500_v29 = vld [vmem:[%s7422_s3 + $0x620] ss:$8 sps:$4 sm:$0xff]   ;;  %v5514_v46 = vld [vmem:[%s7422_s3 + $0x604] ss:$8 sps:$4 sm:$0xff]   ;;  %v5545_v50 = vld [vmem:[%s7422_s3 + $0x7b0] ss:$8 sps:$4 sm:$0xff]  }
  0xde   : > { %3196 = vmatpush1.bf16.msra.mxu0 %v5488_v18  ;;  %v6806_v41 = vsel %vm6012_vm4, %v6665_v19, %v3320_v38  ;;  %v5523_v19 = vld [vmem:[%s7422_s3 + $0x7f4] ss:$8 sps:$4 sm:$0xff]   ;;  %v5538_v1 = vld [vmem:[%s7422_s3 + $0x6c4] ss:$8 sps:$4 sm:$0xff]   ;;  %v5557_v60 = vld [vmem:[%s7422_s3 + $0x790] ss:$8 sps:$4 sm:$0xff]  }
  0xdf   : > { %2911 = vmatmul.mubr.bf16.gmra.mxu1 %v4857_v4  ;;  %3197 = vmatprep.subr.bf16.mxu0 %v5496_v23  ;;  %v4998_v42 = vcombine.high %v6801_v7, %v6806_v41  ;;  %v5520_v4 = vld [vmem:[%s7422_s3 + $0x6f4] ss:$8 sps:$4 sm:$0xff]   ;;  %v5530_v23 = vld [vmem:[%s7422_s3 + $0x6d0] ss:$8 sps:$4 sm:$0xff]   ;;  %v5565_v5 = vld [vmem:[%s7422_s3 + $0x784] ss:$8 sps:$4 sm:$0xff]  }
  0xe0   : > { %3640 = vmatpush1.bf16.msra.mxu1 %v5497_v10  ;;  %2920 = vmatprep.mubr.bf16.mxu1 %v4860_v17  ;;  %v5533_v10 = vld [vmem:[%s7422_s3 + $0x7d0] ss:$8 sps:$4 sm:$0xff]   ;;  %v3326_v17 = vshll.u32 %v6864_v43, 16  ;;  %v5559_v38 = vld [vmem:[%s7422_s3 + $0x794] ss:$8 sps:$4 sm:$0xff]  }
  0xe1   : > { %3641 = vmatprep.subr.bf16.mxu1 %v5505_v11  ;;  %2541 = vmatmul.mubr.bf16.gmra.mxu0 %v4777_v34  ;;  %v5539_v11 = vld [vmem:[%s7422_s3 + $0x7c0] ss:$8 sps:$4 sm:$0xff]   ;;  %v3283_v52 = vld [vmem:[#allocation2 + $0x98] sm:$0x11]  ;;  %v3721_v35 = vld [vmem:[#allocation2 + $0x30] sm:$0xee] }
  0xe2   : > { %3198 = vmatpush1.bf16.msra.mxu0 %v5494_v58  ;;  %2550 = vmatprep.mubr.bf16.mxu0 %v4780_v30  ;;  %v692_v13 = vld [vmem:[#allocation2 + $0x78] sm:$0xff]  ;;  %v3328_v34 = vrot.slane %v3326_v17, 5  ;;  %v5536_v58 = vld [vmem:[%s7422_s3 + $0x6c0] ss:$8 sps:$4 sm:$0xff]  }
  0xe3   : > { %3199 = vmatprep.subr.bf16.mxu0 %v5502_v59  ;;  %v6880_v18 = vsel %vm5952_vm0, %v5939_v6, %v692_v13  ;;  %v3285_v6 = vld [vmem:[#allocation2 + $0x28] sm:$0x11]  ;;  %v6910_v59 = vld [vmem:[#allocation2 + $0x58] sm:$0xff]  ;;  %v3720_v30 = vld [vmem:[#allocation2 + $0x8] sm:$0xee] }
  0xe4   : > { %3642 = vmatpush1.bf16.msra.mxu1 %v5503_v20  ;;  %v5532_v20 = vld [vmem:[%s7422_s3 + $0x6d4] ss:$8 sps:$4 sm:$0xff]   ;;  %694 = vst [vmem:[#allocation2 + $0x78] sm:$0xff] %v6880_v18  ;;  %v3354_v57 = vshll.u32 %v6910_v59, 16 }
  0xe5   : > { %3643 = vmatprep.subr.bf16.mxu1 %v5511_v44  ;;  %v695_v44 = vld [vmem:[#allocation2 + $0x88] sm:$0x11] }
  0xe6   : > { %3200 = vmatpush1.bf16.msra.mxu0 %v5500_v29  ;;  %v696_v9 = vsel %vm5904_vm8, %v538_v15, %v695_v44  ;;  %v3746_v15 = vrot.slane %v6779_v25, 5  ;;  %v3754_v29 = vrot.slane %v3283_v52, 5  ;;  %v3329_v25 = vor.u32 %v3328_v34, %v3325_v32  ;;  %v6961_v44 = vld [vmem:[#allocation2 + $0x90] sm:$0x11] }
  0xe7   : > { %2921 = vmatmul.mubr.bf16.gmra.mxu1 %v4859_v27  ;;  %3201 = vmatprep.subr.bf16.mxu0 %v5508_v48  ;;  %v5553_v27 = vld [vmem:[%s7422_s3 + $0x7a4] ss:$8 sps:$4 sm:$0xff]   ;;  %697 = vst [vmem:[#allocation2 + $0x88] sm:$0x11] %v696_v9  ;;  %v3723_v48 = vld [vmem:[#allocation2 + $0x38] sm:$0xee]  ;;  %v4997_v32 = vcombine.low %v6801_v7, %v6806_v41 }
  0xe8   : > { %3644 = vmatpush1.bf16.msra.mxu1 %v5509_v28  ;;  %3663 = vmatprep.mubr.bf16.mxu1 %v4998_v42  ;;  %v3750_v28 = vrot.slane %v6781_v26, 5  ;;  %v5038_v42 = vrot.slane %v3721_v35, 9  ;;  %v3346_v26 = vshll.u32 %v3285_v6, 16  ;;  %v5040_v63 = vrot.slane %v3723_v48, 9  ;;  %v5570_v9 = vld [vmem:[%s7422_s3 + $0x874] ss:$8 sps:$4 sm:$0xff]  }
  0xe9   : > { %3645 = vmatprep.subr.bf16.mxu1 %v5517_v40  ;;  %2551 = vmatmul.mubr.bf16.gmra.mxu0 %v4779_v49  ;;  %v3332_v40 = vshll.u32 %v3283_v52, 16  ;;  %v3758_v49 = vrot.slane %v3285_v6, 5  ;;  %v3356_v17 = vrot.slane %v3354_v57, 5  ;;  %v5556_v52 = vld [vmem:[%s7422_s3 + $0x694] ss:$8 sps:$4 sm:$0xff]   ;;  %v3374_v6 = vshll.u32 %v6961_v44, 16 }
  0xea   : > { %3202 = vmatpush1.bf16.msra.mxu0 %v5506_v21  ;;  %3221 = vmatprep.mubr.bf16.mxu0 %v4926_v56  ;;  %v5544_v21 = vld [vmem:[%s7422_s3 + $0x6b4] ss:$8 sps:$4 sm:$0xff]   ;;  %v3396_v35 = vshll.u32 %v6880_v18, 16  ;;  %v5554_v7 = vld [vmem:[%s7422_s3 + $0x690] ss:$8 sps:$4 sm:$0xff]   ;;  %vm4326_vm8 = vcmask 1041409  }
  0xeb   : > { %3203 = vmatprep.subr.bf16.mxu0 %v5514_v46  ;;  %v6925_v46 = vsel %vm6305_vm7, %v5038_v42, %v3750_v28  ;;  %v5573_v41 = vld [vmem:[%s7422_s3 + $0x864] ss:$8 sps:$4 sm:$0xff]  }
  0xec   : > { %3646 = vmatpush1.bf16.msra.mxu1 %v5515_v61  ;;  %v5037_v61 = vrot.slane %v3720_v30, 9  ;;  %v3393_v30 = vshrl.u32 %v6880_v18, 16 }
  0xed   : > { %3647 = vmatprep.subr.bf16.mxu1 %v5523_v19  ;;  %v3722_v19 = vld [vmem:[#allocation2 + $0x60] sm:$0xee] }
  0xee   : > { %3204 = vmatpush1.bf16.msra.mxu0 %v5512_v62  ;;  %v5039_v56 = vrot.slane %v3722_v19, 9  ;;  %v7010_v57 = vld [vmem:[#allocation2 + $0x88] sm:$0x11] }
  0xef   : > { %3205 = vmatprep.subr.bf16.mxu0 %v5520_v4 }
  0xf0   : > { %3648 = vmatpush2.bf16.msra.mxu1 %v5521_v51  ;;  %v3351_v51 = vshrl.u32 %v6910_v59, 16  ;;  %v6940_v4 = vsel %vm6305_vm7, %v5039_v56, %v3754_v29  ;;  %v5578_v56 = vld [vmem:[%s7422_s3 + $0x854] ss:$8 sps:$4 sm:$0xff]  }
  0xf1   : > { %3649 = vmatprep.subr.bf16.mxu1 %v5529_v45  ;;  %v6921_v45 = vsel %vm6305_vm7, %v5037_v61, %v3746_v15  ;;  %v5571_v61 = vld [vmem:[%s7422_s3 + $0x860] ss:$8 sps:$4 sm:$0xff]  }
  0xf2   : > { %3206 = vmatpush2.bf16.msra.mxu0 %v5518_v8  ;;  %v5077_v62 = vcombine.low %v6921_v45, %v6925_v46  ;;  %v3330_v8 = vrot.slane %v3329_v25, 4  ;;  %v3353_v16 = vrot.slane %v3351_v51, 4  ;;  %v3376_v25 = vrot.slane %v3374_v6, 5  ;;  %v5560_v51 = vld [vmem:[%s7422_s3 + $0x680] ss:$8 sps:$4 sm:$0xff]  }
  0xf3   : > { %3207 = vmatprep.subr.bf16.mxu0 %v5526_v39  ;;  %v3348_v39 = vrot.slane %v3346_v26, 5  ;;  %v7002_v26 = vld [vmem:[#allocation2 + $0x48] sm:$0x11] }
  0xf4   : > { %3650 = vmatpush2.bf16.msra.mxu1 %v5527_v36  ;;  %v5078_v36 = vcombine.high %v6921_v45, %v6925_v46  ;;  %v3357_v34 = vor.u32 %v3356_v17, %v3353_v16  ;;  %v4928_v16 = vcombine.high %v6864_v43, %v6624_v22 }
  0xf5   : > { %3651 = vmatprep.subr.bf16.mxu1 %v5535_v3  ;;  %v5542_v3 = vld [vmem:[%s7422_s3 + $0x6b0] ss:$8 sps:$4 sm:$0xff]  }
  0xf6   : > { %3208 = vmatpush2.bf16.msra.mxu0 %v5524_v12  ;;  %v5550_v12 = vld [vmem:[%s7422_s3 + $0x6a4] ss:$8 sps:$4 sm:$0xff]   ;;  %v3358_v42 = vrot.slane %v3357_v34, 4 }
  0xf7   : > { %3209 = vmatprep.subr.bf16.mxu0 %v5532_v20  ;;  %v6959_v20 = vld [vmem:[#allocation2 + $0x40] sm:$0x11] }
  0xf8   : > { %3652 = vmatpush2.bf16.msra.mxu1 %v5533_v10  ;;  %v3334_v10 = vrot.slane %v3332_v40, 5 }
  0xf9   : > { %3653 = vmatprep.subr.bf16.mxu1 %v5541_v2  ;;  %v6947_v2 = vsel %vm6305_vm7, %v5040_v63, %v3758_v49  ;;  %v3395_v49 = vrot.slane %v3393_v30, 4  ;;  %v4927_v30 = vcombine.low %v6864_v43, %v6624_v22  ;;  %v5589_v43 = vld [vmem:[%s7422_s3 + $0x824] ss:$8 sps:$4 sm:$0xff]  }
  0xfa   : > { %3210 = vmatpush2.bf16.msra.mxu0 %v5530_v23  ;;  %v5079_v13 = vcombine.low %v6940_v4, %v6947_v2  ;;  %v6963_v23 = vld [vmem:[#allocation2 + $0x10] sm:$0xff] }
  0xfb   : > { %3211 = vmatprep.subr.bf16.mxu0 %v5538_v1  ;;  %v3335_v1 = vsel %vm6012_vm4, %v3330_v8, %v3334_v10  ;;  %v3379_v15 = vshrl.u32 %v6963_v23, 16  ;;  %v5576_v8 = vld [vmem:[%s7422_s3 + $0x850] ss:$8 sps:$4 sm:$0xff]  }
  0xfc   : > { %3654 = vmatpush2.bf16.msra.mxu1 %v5539_v11  ;;  %v5080_v11 = vcombine.high %v6940_v4, %v6947_v2 }
  0xfd   : > { %3655 = vmatprep.subr.bf16.mxu1 %v5547_v14  ;;  %v5563_v14 = vld [vmem:[%s7422_s3 + $0x780] ss:$8 sps:$4 sm:$0xff]   ;;  %v3381_v19 = vrot.slane %v3379_v15, 4  ;;  %v5586_v15 = vld [vmem:[%s7422_s3 + $0x834] ss:$8 sps:$4 sm:$0xff]  }
  0xfe   : > { %3212 = vmatpush2.bf16.msra.mxu0 %v5536_v58  ;;  %v3382_v58 = vshll.u32 %v6963_v23, 16 }
  0xff   : > { %3213 = vmatprep.subr.bf16.mxu0 %v5544_v21  ;;  %v3398_v21 = vrot.slane %v3396_v35, 5 }
 0x100   : > { %3656 = vmatpush2.bf16.msra.mxu1 %v5545_v50  ;;  %v5548_v50 = vld [vmem:[%s7422_s3 + $0x6a0] ss:$8 sps:$4 sm:$0xff]   ;;  %v3384_v48 = vrot.slane %v3382_v58, 5 }
 0x101   : > { %3657 = vmatprep.subr.bf16.mxu1 %v5553_v27  ;;  %v3349_v27 = vsel %vm6012_vm4, %v6722_v31, %v3348_v39  ;;  %v5568_v31 = vld [vmem:[%s7422_s3 + $0x870] ss:$8 sps:$4 sm:$0xff]  }
 0x102   : > { %3214 = vmatpush2.bf16.msra.mxu0 %v5542_v3  ;;  %v5000_v28 = vcombine.high %v3335_v1, %v3349_v27  ;;  %v4999_v3 = vcombine.low %v3335_v1, %v3349_v27  ;;  %v3385_v39 = vor.u32 %v3384_v48, %v3381_v19  ;;  %v3766_v48 = vrot.slane %v6961_v44, 5 }
 0x103   : > { %3215 = vmatprep.subr.bf16.mxu0 %v5550_v12  ;;  %v3399_v12 = vor.u32 %v3398_v21, %v3395_v49  ;;  %v5592_v49 = vld [vmem:[%s7422_s3 + $0x814] ss:$8 sps:$4 sm:$0xff]  }
 0x104   : > { %3658 = vmatpush2.bf16.msra.mxu1 %v5551_v55  ;;  %v3360_v55 = vshll.u32 %v6959_v20, 16 }
 0x105   : > { %3659 = vmatprep.subr.bf16.mxu1 %v5559_v38  ;;  %v5562_v38 = vld [vmem:[%s7422_s3 + $0x684] ss:$8 sps:$4 sm:$0xff]   ;;  %v3400_v34 = vrot.slane %v3399_v12, 4  ;;  %v5596_v12 = vld [vmem:[%s7422_s3 + $0x8f0] ss:$8 sps:$4 sm:$0xff]  }
 0x106   : > { %3216 = vmatpush2.bf16.msra.mxu0 %v5548_v50  ;;  %v3362_v29 = vrot.slane %v3360_v55, 5 }
 0x107   : > { %3217 = vmatprep.subr.bf16.mxu0 %v5556_v52 }
 0x108   : > { %3660 = vmatpush2.bf16.msra.mxu1 %v5557_v60  ;;  %v3377_v60 = vsel %vm6012_vm4, %v6760_v24, %v3376_v25  ;;  %v3363_v10 = vsel %vm6012_vm4, %v3358_v42, %v3362_v29  ;;  %v5581_v24 = vld [vmem:[%s7422_s3 + $0x844] ss:$8 sps:$4 sm:$0xff]   ;;  %v3762_v25 = vrot.slane %v6959_v20, 5  ;;  %v5590_v20 = vld [vmem:[%s7422_s3 + $0x810] ss:$8 sps:$4 sm:$0xff]  }
 0x109   : > { %3661 = vmatprep.subr.bf16.mxu1 %v5565_v5  ;;  %v3388_v5 = vshll.u32 %v7002_v26, 16  ;;  %v5002_v1 = vcombine.high %v3363_v10, %v3377_v60  ;;  %v3725_v42 = vld [vmem:[#allocation2 + $0x68] sm:$0xee] }
 0x10a   : > { %3218 = vmatpush2.bf16.msra.mxu0 %v5554_v7  ;;  %v5042_v19 = vrot.slane %v3725_v42, 9 }
 0x10b   : > { %3219 = vmatprep.subr.bf16.mxu0 %v5562_v38  ;;  %v3390_v27 = vrot.slane %v3388_v5, 5  ;;  %v4930_v38 = vcombine.high %v6910_v59, %v6675_v0  ;;  %v5598_v5 = vld [vmem:[%s7422_s3 + $0x8f4] ss:$8 sps:$4 sm:$0xff]  }
 0x10c   : > { %3662 = vmatpush2.bf16.msra.mxu1 %v5563_v14  ;;  %v3402_v14 = vshll.u32 %v7010_v57, 16 }
 0x10d   : > { %5124 = vmatprep.subr.bf16.mxu1 %v5570_v9 }
 0x10e   : > { %3220 = vmatpush2.bf16.msra.mxu0 %v5560_v51  ;;  %v1120_v17 = vpop.f32.mrf.mxu0  ;;  %v3404_v55 = vrot.slane %v3402_v14, 5  ;;  %v4929_v51 = vcombine.low %v6910_v59, %v6675_v0  ;;  %v5595_v0 = vld [vmem:[%s7422_s3 + $0x804] ss:$8 sps:$4 sm:$0xff]  }
 0x10f   : > { %v1393_v40 = vpop.f32.mrf.mxu1  ;;  %3664 = vmatmul.mubr.bf16.vlgmr.msra.gmra.mxu1 %v4997_v32  ;;  %4001 = vmatprep.subr.bf16.mxu0 %v5570_v9  ;;  %v5579_v9 = vld [vmem:[%s7422_s3 + $0x840] ss:$8 sps:$4 sm:$0xff]   ;;  %v3386_v32 = vrot.slane %v3385_v39, 4  ;;  %v4931_v39 = vcombine.low %v6963_v23, %v6880_v18  ;;  %v5601_v14 = vld [vmem:[%s7422_s3 + $0x8e4] ss:$8 sps:$4 sm:$0xff]  }
 0x110   : > { %5140 = vmatpush1.bf16.msra.mxu1 %v5568_v31  ;;  %3673 = vmatprep.mubr.bf16.mxu1 %v5000_v28  ;;  %v7027_v52 = vadd.f32 %v1393_v40, %v1120_v17  ;;  %v1122_v6 = vpop.f32.mrf.mxu0  ;;  %v3405_v7 = vsel %vm6012_vm4, %v3400_v34, %v3404_v55  ;;  %v3724_v40 = vld [vmem:[#allocation2 + $0x58] sm:$0xee] }
 0x111   : > { %5125 = vmatprep.subr.bf16.mxu1 %v5573_v41  ;;  %v1395_v63 = vpop.f32.mrf.mxu1  ;;  %3222 = vmatmul.mubr.bf16.vlgmr.msra.gmra.mxu0 %v4925_v37  ;;  %v5001_v37 = vcombine.low %v3363_v10, %v3377_v60  ;;  %v3391_v35 = vsel %vm6012_vm4, %v3386_v32, %v3390_v27  ;;  %v5593_v60 = vld [vmem:[%s7422_s3 + $0x800] ss:$8 sps:$4 sm:$0xff]   ;;  %v5602_v17 = vld [vmem:[%s7422_s3 + $0x8d0] ss:$8 sps:$4 sm:$0xff]  }
 0x112   : > { %4002 = vmatpush1.bf16.msra.mxu0 %v5568_v31  ;;  %3231 = vmatprep.mubr.bf16.mxu0 %v4928_v16  ;;  %v7038_v28 = vadd.f32 %v1395_v63, %v1122_v6  ;;  %v1124_v54 = vpop.f32.mrf.mxu0  ;;  %v5584_v31 = vld [vmem:[%s7422_s3 + $0x830] ss:$8 sps:$4 sm:$0xff]   ;;  %v5004_v29 = vcombine.high %v3391_v35, %v3405_v7  ;;  %v5003_v21 = vcombine.low %v3391_v35, %v3405_v7  ;;  %v5613_v35 = vld [vmem:[%s7422_s3 + $0x8a4] ss:$8 sps:$4 sm:$0xff]  }
 0x113   : > { %v1397_v50 = vpop.f32.mrf.mxu1  ;;  %4003 = vmatprep.subr.bf16.mxu0 %v5573_v41  ;;  %v4932_v63 = vcombine.high %v6963_v23, %v6880_v18  ;;  %v5604_v18 = vld [vmem:[%s7422_s3 + $0x8d4] ss:$8 sps:$4 sm:$0xff]  }
 0x114   : > { %5141 = vmatpush1.bf16.msra.mxu1 %v5571_v61  ;;  %v7040_v58 = vadd.f32 %v1397_v50, %v1124_v54  ;;  %v1126_v41 = vpop.f32.mrf.mxu0 }
 0x115   : > { %5126 = vmatprep.subr.bf16.mxu1 %v5578_v56  ;;  %v1399_v33 = vpop.f32.mrf.mxu1 }
 0x116   : > { %4004 = vmatpush1.bf16.msra.mxu0 %v5571_v61  ;;  %v7053_v22 = vadd.f32 %v1399_v33, %v1126_v41  ;;  %v5041_v61 = vrot.slane %v3724_v40, 9 }
 0x117   : > { %3674 = vmatmul.mubr.bf16.gmra.mxu1 %v4999_v3  ;;  %4005 = vmatprep.subr.bf16.mxu0 %v5578_v56  ;;  %v7077_v56 = vsel %vm6305_vm7, %v5042_v19, %v3766_v48  ;;  %v5614_v48 = vld [vmem:[%s7422_s3 + $0x890] ss:$8 sps:$4 sm:$0xff]  }
 0x118   : > { %5142 = vmatpush1.bf16.msra.mxu1 %v5576_v8  ;;  %3683 = vmatprep.mubr.bf16.mxu1 %v5002_v1  ;;  %v7073_v44 = vsel %vm6305_vm7, %v5041_v61, %v3762_v25  ;;  %v5607_v1 = vld [vmem:[%s7422_s3 + $0x8c4] ss:$8 sps:$4 sm:$0xff]   ;;  %v3727_v61 = vld [vmem:[#allocation2 + $0x78] sm:$0xee] }
 0x119   : > { %5127 = vmatprep.subr.bf16.mxu1 %v5581_v24  ;;  %3232 = vmatmul.mubr.bf16.gmra.mxu0 %v4927_v30  ;;  %v5082_v3 = vcombine.high %v7073_v44, %v7077_v56  ;;  %v5608_v30 = vld [vmem:[%s7422_s3 + $0x8b0] ss:$8 sps:$4 sm:$0xff]  }
 0x11a   : > { %4006 = vmatpush1.bf16.msra.mxu0 %v5576_v8  ;;  %3241 = vmatprep.mubr.bf16.mxu0 %v4930_v38  ;;  %v5611_v38 = vld [vmem:[%s7422_s3 + $0x8a0] ss:$8 sps:$4 sm:$0xff]  }
 0x11b   : > { %4007 = vmatprep.subr.bf16.mxu0 %v5581_v24  ;;  %v5599_v24 = vld [vmem:[%s7422_s3 + $0x8e0] ss:$8 sps:$4 sm:$0xff]  }
 0x11c   : > { %5143 = vmatpush1.bf16.msra.mxu1 %v5579_v9 }
 0x11d   : > { %5128 = vmatprep.subr.bf16.mxu1 %v5586_v15 }
 0x11e   : > { %4008 = vmatpush1.bf16.msra.mxu0 %v5579_v9 }
 0x11f   : > { %3684 = vmatmul.mubr.bf16.gmra.mxu1 %v5001_v37  ;;  %4009 = vmatprep.subr.bf16.mxu0 %v5586_v15  ;;  %v1403_v59 = vpop.f32.mrf.mxu1  ;;  %v5610_v15 = vld [vmem:[%s7422_s3 + $0x8b4] ss:$8 sps:$4 sm:$0xff]  }
 0x120   : > { %5144 = vmatpush1.bf16.msra.mxu1 %v5584_v31  ;;  %3693 = vmatprep.mubr.bf16.mxu1 %v5004_v29 }
 0x121   : > { %5129 = vmatprep.subr.bf16.mxu1 %v5589_v43  ;;  %3242 = vmatmul.mubr.bf16.gmra.mxu0 %v4929_v51  ;;  %v1405_v8 = vpop.f32.mrf.mxu1  ;;  %v5619_v51 = vld [vmem:[%s7422_s3 + $0x884] ss:$8 sps:$4 sm:$0xff]  }
 0x122   : > { %4010 = vmatpush1.bf16.msra.mxu0 %v5584_v31  ;;  %3251 = vmatprep.mubr.bf16.mxu0 %v4932_v63  ;;  %v3770_v63 = vrot.slane %v7002_v26, 5 }
 0x123   : > { %4011 = vmatprep.subr.bf16.mxu0 %v5589_v43  ;;  %v1407_v10 = vpop.f32.mrf.mxu1  ;;  %v5616_v43 = vld [vmem:[%s7422_s3 + $0x894] ss:$8 sps:$4 sm:$0xff]  }
 0x124   : > { %5145 = vmatpush1.bf16.msra.mxu1 %v5587_v47 }
 0x125   : > { %5130 = vmatprep.subr.bf16.mxu1 %v5592_v49  ;;  %v1409_v16 = vpop.f32.mrf.mxu1 }
 0x126   : > { %4012 = vmatpush1.bf16.msra.mxu0 %v5587_v47  ;;  %v3726_v47 = vld [vmem:[#allocation2 + $0x10] sm:$0xee] }
 0x127   : > { %3694 = vmatmul.mubr.bf16.gmra.mxu1 %v5003_v21  ;;  %4013 = vmatprep.subr.bf16.mxu0 %v5592_v49 }
 0x128   : > { %5146 = vmatpush1.bf16.msra.mxu1 %v5590_v20  ;;  %4053 = vmatprep.mubr.bf16.mxu1 %v5082_v3 }
 0x129   : > { %5131 = vmatprep.subr.bf16.mxu1 %v5595_v0  ;;  %3252 = vmatmul.mubr.bf16.gmra.mxu0 %v4931_v39 }
 0x12a   : > { %4014 = vmatpush1.bf16.msra.mxu0 %v5590_v20  ;;  %4033 = vmatprep.mubr.bf16.mxu0 %v5078_v36  ;;  %v1413_v23 = vpop.f32.mrf.mxu1  ;;  %v1130_v50 = vpop.f32.mrf.mxu0  ;;  %v5605_v36 = vld [vmem:[%s7422_s3 + $0x8c0] ss:$8 sps:$4 sm:$0xff]   ;;  %v5043_v20 = vrot.slane %v3726_v47, 9 }
 0x12b   : > { %4015 = vmatprep.subr.bf16.mxu0 %v5595_v0  ;;  %v7115_v9 = vadd.f32 %v1403_v59, %v1130_v50  ;;  %v5044_v0 = vrot.slane %v3727_v61, 9  ;;  %v3774_v59 = vrot.slane %v7010_v57, 5  ;;  %v5081_v57 = vcombine.low %v7073_v44, %v7077_v56 }
 0x12c   : > { %5147 = vmatpush1.bf16.msra.mxu1 %v5593_v60  ;;  %v1415_v27 = vpop.f32.mrf.mxu1  ;;  %v1132_v32 = vpop.f32.mrf.mxu0 }
 0x12d   : > { %5132 = vmatprep.subr.bf16.mxu1 %v5598_v5  ;;  %v7117_v34 = vadd.f32 %v1405_v8, %v1132_v32  ;;  %v3771_v8 = vsel %vm6305_vm7, %v5043_v20, %v3770_v63  ;;  %v3775_v26 = vsel %vm6305_vm7, %v5044_v0, %v3774_v59  ;;  %vm4341_vm7 = vcmask 64512  }
 0x12e   : > { %4016 = vmatpush1.bf16.msra.mxu0 %v5593_v60  ;;  %v1134_v55 = vpop.f32.mrf.mxu0  ;;  %v1417_v6 = vpop.f32.mrf.mxu1  ;;  %v5617_v60 = vld [vmem:[%s7422_s3 + $0x880] ss:$8 sps:$4 sm:$0xff]   ;;  %v5084_v39 = vcombine.high %v3771_v8, %v3775_v26 }
 0x12f   : > { %4017 = vmatprep.subr.bf16.mxu0 %v5598_v5  ;;  %v7125_v54 = vadd.f32 %v1407_v10, %v1134_v55 }
 0x130   : > { %5148 = vmatpush2.bf16.msra.mxu1 %v5596_v12  ;;  %v1136_v33 = vpop.f32.mrf.mxu0  ;;  %v1419_v31 = vpop.f32.mrf.mxu1 }
 0x131   : > { %5133 = vmatprep.subr.bf16.mxu1 %v5601_v14  ;;  %v7127_v37 = vadd.f32 %v1409_v16, %v1136_v33 }
 0x132   : > { %4018 = vmatpush2.bf16.msra.mxu0 %v5596_v12 }
 0x133   : > { %4019 = vmatprep.subr.bf16.mxu0 %v5601_v14 }
 0x134   : > { %5149 = vmatpush2.bf16.msra.mxu1 %v5599_v24 }
 0x135   : > { %5134 = vmatprep.subr.bf16.mxu1 %v5604_v18 }
 0x136   : > { %4020 = vmatpush2.bf16.msra.mxu0 %v5599_v24 }
 0x137   : > { %4021 = vmatprep.subr.bf16.mxu0 %v5604_v18  ;;  %v1140_v7 = vpop.f32.mrf.mxu0 }
 0x138   : > { %5150 = vmatpush2.bf16.msra.mxu1 %v5602_v17  ;;  %v7135_v41 = vadd.f32 %v1413_v23, %v1140_v7 }
 0x139   : > { %5135 = vmatprep.subr.bf16.mxu1 %v5607_v1  ;;  %v1142_v40 = vpop.f32.mrf.mxu0 }
 0x13a   : > { %4022 = vmatpush2.bf16.msra.mxu0 %v5602_v17  ;;  %v1423_v42 = vpop.f32.mrf.mxu1  ;;  %v7143_v29 = vadd.f32 %v1415_v27, %v1142_v40 }
 0x13b   : > { %4023 = vmatprep.subr.bf16.mxu0 %v5607_v1  ;;  %v1144_v25 = vpop.f32.mrf.mxu0  ;;  %v5083_v1 = vcombine.low %v3771_v8, %v3775_v26 }
 0x13c   : > { %5151 = vmatpush2.bf16.msra.mxu1 %v5605_v36  ;;  %v7145_v19 = vadd.f32 %v1417_v6, %v1144_v25  ;;  %v1425_v21 = vpop.f32.mrf.mxu1 }
 0x13d   : > { %5136 = vmatprep.subr.bf16.mxu1 %v5610_v15  ;;  %v1146_v49 = vpop.f32.mrf.mxu0 }
 0x13e   : > { %4024 = vmatpush2.bf16.msra.mxu0 %v5605_v36  ;;  %v7155_v3 = vadd.f32 %v1419_v31, %v1146_v49  ;;  %v1427_v5 = vpop.f32.mrf.mxu1 }
 0x13f   : > { %4025 = vmatprep.subr.bf16.mxu0 %v5610_v15 }
 0x140   : > { %5152 = vmatpush2.bf16.msra.mxu1 %v5608_v30  ;;  %v1429_v14 = vpop.f32.mrf.mxu1 }
 0x141   : > { %5137 = vmatprep.subr.bf16.mxu1 %v5613_v35 }
 0x142   : > { %4026 = vmatpush2.bf16.msra.mxu0 %v5608_v30 }
 0x143   : > { %4027 = vmatprep.subr.bf16.mxu0 %v5613_v35 }
 0x144   : > { %5153 = vmatpush2.bf16.msra.mxu1 %v5611_v38 }
 0x145   : > { %5138 = vmatprep.subr.bf16.mxu1 %v5616_v43 }
 0x146   : > { %4028 = vmatpush2.bf16.msra.mxu0 %v5611_v38 }
 0x147   : > { %4029 = vmatprep.subr.bf16.mxu0 %v5616_v43 }
 0x148   : > { %5154 = vmatpush2.bf16.msra.mxu1 %v5614_v48  ;;  %v1150_v10 = vpop.f32.mrf.mxu0 }
 0x149   : > { %5139 = vmatprep.subr.bf16.mxu1 %v5619_v51  ;;  %v7166_v12 = vadd.f32 %v1423_v42, %v1150_v10 }
 0x14a   : > { %v1152_v16 = vpop.f32.mrf.mxu0  ;;  %4030 = vmatpush2.bf16.msra.mxu0 %v5614_v48 }
 0x14b   : > { %v7168_v24 = vadd.f32 %v1425_v21, %v1152_v16  ;;  %4031 = vmatprep.subr.bf16.mxu0 %v5619_v51 }
 0x14c   : > { %5155 = vmatpush2.bf16.msra.mxu1 %v5617_v60  ;;  %v1154_v23 = vpop.f32.mrf.mxu0 }
 0x14d   : > { %v7170_v53 = vadd.f32 %v1427_v5, %v1154_v23 }
 0x14e   : > { %v1156_v44 = vpop.f32.mrf.mxu0  ;;  %4032 = vmatpush2.bf16.msra.mxu0 %v5617_v60 }
 0x14f   : > { %v2080_v18 = vpop.f32.mrf.mxu1  ;;  %4054 = vmatmul.mubr.bf16.vlgmr.msra.gmra.mxu1 %v5081_v57  ;;  %v7172_v56 = vadd.f32 %v1429_v14, %v1156_v44 }
 0x150   : > { %4063 = vmatprep.mubr.bf16.mxu1 %v5084_v39 }
 0x151   : > { %v2082_v17 = vpop.f32.mrf.mxu1  ;;  %v1750_v36 = vpop.f32.mrf.mxu0  ;;  %4034 = vmatmul.mubr.bf16.vlgmr.msra.gmra.mxu0 %v5077_v62 }
 0x152   : > { %v1789_v55 = vadd.f32 %v1750_v36, %v7027_v52  ;;  %4043 = vmatprep.mubr.bf16.mxu0 %v5080_v11 }
 0x153   : > { %v2084_v50 = vpop.f32.mrf.mxu1  ;;  %v1752_v15 = vpop.f32.mrf.mxu0 }
 0x154   : > { %v2119_v33 = vadd.f32 %v2080_v18, %v1789_v55  ;;  %v1790_v30 = vadd.f32 %v1752_v15, %v7038_v28  ;;  %v4092_v15 = vlaneseq }
 0x155   : > { %v2086_v27 = vpop.f32.mrf.mxu1  ;;  %v1754_v35 = vpop.f32.mrf.mxu0 }
 0x156   : > { %v2120_v7 = vadd.f32 %v2082_v17, %v1790_v30  ;;  %v1791_v38 = vadd.f32 %v1754_v35, %v7040_v58 }
 0x157   : > { %4064 = vmatmul.mubr.bf16.gmra.mxu1 %v5083_v1  ;;  %v2090_v32 = vpop.f32.mrf.mxu1  ;;  %v1756_v42 = vpop.f32.mrf.mxu0 }
 0x158   : > { %v2121_v45 = vadd.f32 %v2084_v50, %v1791_v38  ;;  %v1792_v46 = vadd.f32 %v1756_v42, %v7053_v22  ;;  %v7219_v42 = vshrl.u32 %v4092_v15, 7 }
 0x159   : > { %v2092_v6 = vpop.f32.mrf.mxu1  ;;  %v1760_v52 = vpop.f32.mrf.mxu0  ;;  %4044 = vmatmul.mubr.bf16.gmra.mxu0 %v5079_v13 }
 0x15a   : > { %v2122_v11 = vadd.f32 %v2086_v27, %v1792_v46  ;;  %v1793_v43 = vadd.f32 %v1760_v52, %v7115_v9  ;;  %v4293_v46 = vand.u32 127, %v4092_v15 }
 0x15b   : > { %v2094_v31 = vpop.f32.mrf.mxu1  ;;  %v1762_v47 = vpop.f32.mrf.mxu0 }
 0x15c   : > { %v1794_v61 = vadd.f32 %v1762_v47, %v7117_v34  ;;  %v2123_v25 = vadd.f32 %v2090_v32, %v1793_v43 }
 0x15d   : > { %v2096_v40 = vpop.f32.mrf.mxu1  ;;  %v1764_v48 = vpop.f32.mrf.mxu0 }
 0x15e   : > { %v1795_v49 = vadd.f32 %v1764_v48, %v7125_v54  ;;  %v2124_v21 = vadd.f32 %v2092_v6, %v1794_v61 }
 0x15f   : > { %v2100_v62 = vpop.f32.mrf.mxu1  ;;  %v1766_v22 = vpop.f32.mrf.mxu0 }
 0x160   : > { %v1796_v20 = vadd.f32 %v1766_v22, %v7127_v37  ;;  %v2125_v63 = vadd.f32 %v2094_v31, %v1795_v49 }
 0x161   : > { %v2102_v28 = vpop.f32.mrf.mxu1  ;;  %v1770_v4 = vpop.f32.mrf.mxu0 }
 0x162   : > { %v1797_v2 = vadd.f32 %v1770_v4, %v7135_v41  ;;  %v2126_v13 = vadd.f32 %v2096_v40, %v1796_v20 }
 0x163   : > { %v2104_v58 = vpop.f32.mrf.mxu1  ;;  %v1772_v9 = vpop.f32.mrf.mxu0 }
 0x164   : > { %v1798_v59 = vadd.f32 %v1772_v9, %v7143_v29  ;;  %v7193_v34 = vadd.f32 %v2100_v62, %v1797_v2 }
 0x165   : > { %v2106_v51 = vpop.f32.mrf.mxu1  ;;  %v1774_v60 = vpop.f32.mrf.mxu0 }
 0x166   : > { %v1799_v5 = vadd.f32 %v1774_v60, %v7145_v19  ;;  %v7196_v54 = vadd.f32 %v2102_v28, %v1798_v59 }
 0x167   : > { %v2110_v0 = vpop.f32.mrf.mxu1  ;;  %v1776_v8 = vpop.f32.mrf.mxu0 }
 0x168   : > { %v1800_v37 = vadd.f32 %v1776_v8, %v7155_v3  ;;  %v7199_v57 = vadd.f32 %v2104_v58, %v1799_v5 }
 0x169   : > { %v2112_v26 = vpop.f32.mrf.mxu1  ;;  %v1780_v10 = vpop.f32.mrf.mxu0 }
 0x16a   : > { %v1801_v41 = vadd.f32 %v1780_v10, %v7166_v12  ;;  %v7202_v39 = vadd.f32 %v2106_v51, %v1800_v37 }
 0x16b   : > { %v1782_v14 = vpop.f32.mrf.mxu0  ;;  %v2114_v29 = vpop.f32.mrf.mxu1 }
 0x16c   : > { %v1802_v16 = vadd.f32 %v1782_v14, %v7168_v24  ;;  %v7205_v18 = vadd.f32 %v2110_v0, %v1801_v41 }
 0x16d   : > { %v1784_v19 = vpop.f32.mrf.mxu0  ;;  %v2116_v3 = vpop.f32.mrf.mxu1 }
 0x16e   : > { %v1803_v23 = vadd.f32 %v1784_v19, %v7170_v53  ;;  %v7208_v17 = vadd.f32 %v2112_v26, %v1802_v16 }
 0x16f   : > { %v1786_v44 = vpop.f32.mrf.mxu0 }
 0x170   : > { %v1804_v50 = vadd.f32 %v1786_v44, %v7172_v56  ;;  %v7211_v1 = vadd.f32 %v2114_v29, %v1803_v23 }
 0x172   : > { %v7213_v12 = vadd.f32 %v2116_v3, %v1804_v50 }
 0x18f   : > { %v2892_v27 = vpop.f32.mrf.mxu1 }
 0x191   : > { %v2894_v32 = vpop.f32.mrf.mxu1  ;;  %v2522_v55 = vpop.f32.mrf.mxu0 }
 0x192   : > { %v2561_v6 = vadd.f32 %v2522_v55, %v2119_v33  ;;  %v7224_v33 = vsub.s32 %v4293_v46, %v7219_v42 }
 0x193   : > { %v2896_v36 = vpop.f32.mrf.mxu1  ;;  %v2524_v30 = vpop.f32.mrf.mxu0 }
 0x194   : > { %v7215_v53 = vadd.f32 %v2892_v27, %v2561_v6  ;;  %v2562_v35 = vadd.f32 %v2524_v30, %v2120_v7  ;;  %7438 = vst [vmem:[#allocation4_spill] sm:$0xff] %v7224_v33 }
 0x195   : > { %v2898_v24 = vpop.f32.mrf.mxu1  ;;  %v2526_v38 = vpop.f32.mrf.mxu0 }
 0x196   : > { %v7217_v40 = vadd.f32 %v2894_v32, %v2562_v35  ;;  %v2563_v56 = vadd.f32 %v2526_v38, %v2121_v45 }
 0x197   : > { %v2902_v31 = vpop.f32.mrf.mxu1  ;;  %v2528_v62 = vpop.f32.mrf.mxu0 }
 0x198   : > { %v7221_v43 = vadd.f32 %v2896_v36, %v2563_v56  ;;  %v2564_v28 = vadd.f32 %v2528_v62, %v2122_v11 }
 0x199   : > { %v2904_v52 = vpop.f32.mrf.mxu1  ;;  %v2532_v47 = vpop.f32.mrf.mxu0 }
 0x19a   : > { %v7226_v61 = vadd.f32 %v2898_v24, %v2564_v28  ;;  %v2565_v58 = vadd.f32 %v2532_v47, %v2123_v25 }
 0x19b   : > { %v2534_v7 = vpop.f32.mrf.mxu0  ;;  %v2906_v48 = vpop.f32.mrf.mxu1 }
 0x19c   : > { %v2566_v49 = vadd.f32 %v2534_v7, %v2124_v21  ;;  %v7228_v22 = vadd.f32 %v2902_v31, %v2565_v58 }
 0x19d   : > { %v2536_v45 = vpop.f32.mrf.mxu0  ;;  %v2908_v2 = vpop.f32.mrf.mxu1 }
 0x19e   : > { %v2567_v51 = vadd.f32 %v2536_v45, %v2125_v63  ;;  %v7230_v20 = vadd.f32 %v2904_v52, %v2566_v49 }
 0x19f   : > { %v2538_v4 = vpop.f32.mrf.mxu0  ;;  %v2912_v59 = vpop.f32.mrf.mxu1 }
 0x1a0   : > { %v2568_v9 = vadd.f32 %v2538_v4, %v2126_v13  ;;  %v7232_v11 = vadd.f32 %v2906_v48, %v2567_v51 }
 0x1a1   : > { %v2914_v60 = vpop.f32.mrf.mxu1  ;;  %v2542_v5 = vpop.f32.mrf.mxu0 }
 0x1a2   : > { %v7234_v0 = vadd.f32 %v2908_v2, %v2568_v9  ;;  %v2569_v45 = vadd.f32 %v2542_v5, %v7193_v34 }
 0x1a3   : > { %v2916_v25 = vpop.f32.mrf.mxu1  ;;  %v2544_v8 = vpop.f32.mrf.mxu0 }
 0x1a4   : > { %7439 = vst [vmem:[#allocation5_spill] sm:$0xff] %v7234_v0  ;;  %v2570_v4 = vadd.f32 %v2544_v8, %v7196_v54  ;;  %v2939_v9 = vadd.f32 %v2912_v59, %v2569_v45  ;;  %v4098_v0 = vsub.s32 1, %v7219_v42 }
 0x1a5   : > { %v2918_v26 = vpop.f32.mrf.mxu1  ;;  %v2546_v21 = vpop.f32.mrf.mxu0 }
 0x1a6   : > { %v2571_v33 = vadd.f32 %v2546_v21, %v7199_v57  ;;  %v4134_v21 = vld [vmem:[%s7424_s5] sm:$0x3] }
 0x1a7   : > { %v2922_v37 = vpop.f32.mrf.mxu1  ;;  %v2548_v10 = vpop.f32.mrf.mxu0 }
 0x1a8   : > { %v2572_v34 = vadd.f32 %v2548_v10, %v7202_v39  ;;  %v2941_v59 = vadd.f32 %v2916_v25, %v2571_v33 }
 0x1a9   : > { %v7236_v41 = vpop.f32.mrf.mxu1  ;;  %v2552_v63 = vpop.f32.mrf.mxu0 }
 0x1aa   : > { %v2573_v54 = vadd.f32 %v2552_v63, %v7205_v18  ;;  %v2942_v10 = vadd.f32 %v2918_v26, %v2572_v34 }
 0x1ab   : > { %v7238_v14 = vpop.f32.mrf.mxu1  ;;  %v2554_v29 = vpop.f32.mrf.mxu0 }
 0x1ac   : > { %v2943_v63 = vadd.f32 %v2922_v37, %v2573_v54 }
 0x1ad   : > { %v7240_v13 = vpop.f32.mrf.mxu1  ;;  %v2556_v16 = vpop.f32.mrf.mxu0 }
 0x1af   : > { %v2558_v23 = vpop.f32.mrf.mxu0 }
 0x1cf   : > { %v7242_v19 = vpop.f32.mrf.mxu1 }
 0x1d1   : > { %v7244_v44 = vpop.f32.mrf.mxu1  ;;  %v3223_v3 = vpop.f32.mrf.mxu0 }
 0x1d2   : > { %v3262_v18 = vadd.f32 %v3223_v3, %v7215_v53 }
 0x1d3   : > { %v3225_v50 = vpop.f32.mrf.mxu0  ;;  %v7246_v27 = vpop.f32.mrf.mxu1 }
 0x1d5   : > { %v3227_v32 = vpop.f32.mrf.mxu0  ;;  %v7248_v36 = vpop.f32.mrf.mxu1 }
 0x1d7   : > { %v7250_v55 = vpop.f32.mrf.mxu1  ;;  %v7252_v24 = vpop.f32.mrf.mxu0 }
 0x1d9   : > { %v7254_v6 = vpop.f32.mrf.mxu1  ;;  %v7256_v15 = vpop.f32.mrf.mxu0 }
 0x1da   : > { %7440 = vst [vmem:[#allocation6_spill] sm:$0xff] %v7254_v6  ;;  %v2940_v6 = vadd.f32 %v2914_v60, %v2570_v4 }
 0x1db   : > { %v7258_v30 = vpop.f32.mrf.mxu1  ;;  %v7260_v31 = vpop.f32.mrf.mxu0 }
 0x1dc   : > { %7441 = vst [vmem:[#allocation7_spill] sm:$0xff] %v7258_v30 }
 0x1dd   : > { %v7262_v35 = vpop.f32.mrf.mxu1  ;;  %v7264_v38 = vpop.f32.mrf.mxu0 }
 0x1de   : > { %7442 = vst [vmem:[#allocation8_spill] sm:$0xff] %v7262_v35  ;;  %v4094_v35 = vsub.s32 0, %v7219_v42  ;;  %v2576_v42 = vadd.f32 %v2558_v23, %v7213_v12 }
 0x1df   : > { %v3685_v56 = vpop.f32.mrf.mxu1  ;;  %v7266_v46 = vpop.f32.mrf.mxu0 }
 0x1e0   : > { %7443 = vst [vmem:[#allocation9_spill] sm:$0xff] %v7266_v46  ;;  %v4090_v46 = vld [vmem:[%s7423_s4] sm:$0x3]  ;;  %v7294_v4 = vrot.slane %v4134_v21, %v4094_v35  ;;  %v2946_v23 = vadd.f32 %v7240_v13, %v2576_v42 }
 0x1e1   : > { %v3687_v62 = vpop.f32.mrf.mxu1  ;;  %v3243_v52 = vpop.f32.mrf.mxu0  ;;  %v7282_v57 = vrot.slane %v4090_v46, %v4094_v35  ;;  %v7290_v39 = vrot.slane %v4090_v46, %v4098_v0 }
 0x1e2   : > { %v3270_v5 = vadd.f32 %v3243_v52, %v2939_v9 }
 0x1e3   : > { %v3689_v28 = vpop.f32.mrf.mxu1  ;;  %v3245_v47 = vpop.f32.mrf.mxu0 }
 0x1e4   : > { %v3271_v45 = vadd.f32 %v3245_v47, %v2940_v6  ;;  %v3712_v33 = vadd.f32 %v3685_v56, %v3270_v5  ;;  %v3263_v6 = vadd.f32 %v3225_v50, %v7217_v40  ;;  %v3704_v40 = vadd.f32 %v7242_v19, %v3262_v18 }
 0x1e5   : > { %v3691_v58 = vpop.f32.mrf.mxu1  ;;  %v3247_v7 = vpop.f32.mrf.mxu0 }
 0x1e6   : > { %v3272_v25 = vadd.f32 %v3247_v7, %v2941_v59  ;;  %v3713_v12 = vadd.f32 %v3687_v62, %v3271_v45  ;;  %v3705_v56 = vadd.f32 %v7244_v44, %v3263_v6  ;;  %v7447_v59 = vld [vmem:[#allocation6_spill] sm:$0xff] }
 0x1e7   : > { %v3695_v48 = vpop.f32.mrf.mxu1  ;;  %v3249_v49 = vpop.f32.mrf.mxu0 }
 0x1e8   : > { %v3714_v50 = vadd.f32 %v3689_v28, %v3272_v25  ;;  %v3267_v28 = vadd.f32 %v7260_v31, %v7230_v20 }
 0x1e9   : > { %v7269_v51 = vpop.f32.mrf.mxu1  ;;  %v3253_v2 = vpop.f32.mrf.mxu0 }
 0x1ea   : > { %7444 = vst [vmem:[#allocation10_spill] sm:$0xff] %v7269_v51  ;;  %v2575_v51 = vadd.f32 %v2556_v16, %v7211_v1  ;;  %v3264_v1 = vadd.f32 %v3227_v32, %v7221_v43  ;;  %v3274_v37 = vadd.f32 %v3253_v2, %v2943_v63  ;;  %v3265_v43 = vadd.f32 %v7252_v24, %v7226_v61 }
 0x1eb   : > { %v7274_v30 = vpop.f32.mrf.mxu1  ;;  %v3255_v8 = vpop.f32.mrf.mxu0  ;;  %v3709_v45 = vadd.f32 %v7447_v59, %v3267_v28 }
 0x1ec   : > { %7445 = vst [vmem:[#allocation11_spill] sm:$0xff] %v7274_v30  ;;  %v2574_v30 = vadd.f32 %v2554_v29, %v7208_v17  ;;  %v7296_v17 = vrot.slane %v4134_v21, %v4098_v0  ;;  %v3273_v29 = vadd.f32 %v3249_v49, %v2942_v10  ;;  %v2945_v53 = vadd.f32 %v7238_v14, %v2575_v51 }
 0x1ed   : > { %v3701_v60 = vpop.f32.mrf.mxu1  ;;  %v3257_v52 = vpop.f32.mrf.mxu0  ;;  %v3706_v13 = vadd.f32 %v7246_v27, %v3264_v1  ;;  %v3716_v7 = vadd.f32 %v3695_v48, %v3274_v37  ;;  %v3707_v2 = vadd.f32 %v7248_v36, %v3265_v43 }
 0x1ee   : > { %v2944_v26 = vadd.f32 %v7236_v41, %v2574_v30  ;;  %v3266_v41 = vadd.f32 %v7256_v15, %v7228_v22  ;;  %v3715_v46 = vadd.f32 %v3691_v58, %v3273_v29  ;;  %v3276_v44 = vadd.f32 %v3257_v52, %v2945_v53 }
 0x1ef   : > { %v3259_v14 = vpop.f32.mrf.mxu0  ;;  %v3268_v58 = vadd.f32 %v7264_v38, %v7232_v11 }
 0x1f0   : > { %v3275_v32 = vadd.f32 %v3255_v8, %v2944_v26  ;;  %v3277_v61 = vadd.f32 %v3259_v14, %v2946_v23  ;;  %v3708_v27 = vadd.f32 %v7250_v55, %v3266_v41  ;;  %v7450_v23 = vld [vmem:[#allocation9_spill] sm:$0xff] }
 0x1f1   : > { %v7446_v9 = vld [vmem:[#allocation10_spill] sm:$0xff] }
 0x1f2   : > { %v3717_v34 = vadd.f32 %v7446_v9, %v3275_v32  ;;  %v3719_v18 = vadd.f32 %v3701_v60, %v3277_v61  ;;  %v7449_v60 = vld [vmem:[#allocation5_spill] sm:$0xff] }
 0x1f3   : > { %v7448_v21 = vld [vmem:[#allocation11_spill] sm:$0xff]  ;;  %v3269_v37 = vadd.f32 %v7450_v23, %v7449_v60 }
 0x1f4   : > { %v3718_v42 = vadd.f32 %v7448_v21, %v3276_v44 }
 0x20f   : > { %v4055_v47 = vpop.f32.mrf.mxu1 }
 0x210   : > { %v4082_v16 = vadd.f32 %v4055_v47, %v3712_v33 }
 0x211   : > { %v4057_v3 = vpop.f32.mrf.mxu1  ;;  %v4035_v20 = vpop.f32.mrf.mxu0 }
 0x212   : > { %v4110_v35 = vadd.f32 %v7282_v57, %v4082_v16  ;;  %v4083_v0 = vadd.f32 %v4057_v3, %v3713_v12  ;;  %v4074_v36 = vadd.f32 %v4035_v20, %v3704_v40 }
 0x213   : > { %v4059_v30 = vpop.f32.mrf.mxu1  ;;  %v4037_v11 = vpop.f32.mrf.mxu0 }
 0x214   : > { %v4111_v19 = vadd.f32 %v7290_v39, %v4083_v0  ;;  %v4084_v62 = vadd.f32 %v4059_v30, %v3714_v50  ;;  %v4126_v49 = vmax.f32 %v4110_v35, 0.0  ;;  %v4102_v63 = vadd.f32 %v7282_v57, %v4074_v36 }
 0x215   : > { %v4061_v51 = vpop.f32.mrf.mxu1  ;;  %v4075_v6 = vadd.f32 %v4037_v11, %v3705_v56  ;;  %v4039_v12 = vpop.f32.mrf.mxu0 }
 0x216   : > { %v4127_v24 = vmax.f32 %v4111_v19, 0.0  ;;  %v4112_v22 = vadd.f32 %v7282_v57, %v4084_v62  ;;  %v4085_v15 = vadd.f32 %v4061_v51, %v3715_v46  ;;  %v4154_v55 = vmul.f32 %v7294_v4, %v4126_v49 }
 0x217   : > { %v4065_v5 = vpop.f32.mrf.mxu1  ;;  %v4118_v3 = vmax.f32 %v4102_v63, 0.0  ;;  %v4103_v40 = vadd.f32 %v7290_v39, %v4075_v6  ;;  %v4076_v50 = vadd.f32 %v4039_v12, %v3706_v13  ;;  %v4041_v0 = vpop.f32.mrf.mxu0 }
 0x218   : > { %v4128_v31 = vmax.f32 %v4112_v22, 0.0  ;;  %v4113_v48 = vadd.f32 %v7290_v39, %v4085_v15  ;;  %v4086_v54 = vadd.f32 %v4065_v5, %v3716_v7  ;;  %v4155_v8 = vmul.f32 %v7296_v17, %v4127_v24  ;;  %v7451_v22 = vld [vmem:[#allocation7_spill] sm:$0xff] }
 0x219   : > { %v4067_v10 = vpop.f32.mrf.mxu1  ;;  %v4119_v14 = vmax.f32 %v4103_v40, 0.0  ;;  %v4104_v30 = vadd.f32 %v7282_v57, %v4076_v50  ;;  %v4077_v46 = vadd.f32 %v4041_v0, %v3707_v2  ;;  %v4146_v19 = vmul.f32 %v7294_v4, %v4118_v3  ;;  %v4045_v62 = vpop.f32.mrf.mxu0 }
 0x21a   : > { %v4129_v38 = vmax.f32 %v4113_v48, 0.0  ;;  %v4114_v33 = vadd.f32 %v7282_v57, %v4086_v54  ;;  %v4087_v25 = vadd.f32 %v4067_v10, %v3717_v34  ;;  %v4156_v47 = vmul.f32 %v7294_v4, %v4128_v31  ;;  %v7452_v54 = vld [vmem:[#allocation8_spill] sm:$0xff] }
 0x21b   : > { %v4069_v52 = vpop.f32.mrf.mxu1  ;;  %v4174_v1 = vadd.f32 %v4155_v8, %v4154_v55  ;;  %v4120_v49 = vmax.f32 %v4104_v30, 0.0  ;;  %v4105_v51 = vadd.f32 %v7290_v39, %v4077_v46  ;;  %v4078_v61 = vadd.f32 %v4045_v62, %v3708_v27  ;;  %v4047_v2 = vpop.f32.mrf.mxu0 }
 0x21c   : > { %v4130_v29 = vmax.f32 %v4114_v33, 0.0  ;;  %v4115_v16 = vadd.f32 %v7290_v39, %v4087_v25  ;;  %v4088_v26 = vadd.f32 %v4069_v52, %v3718_v42  ;;  %v4157_v53 = vmul.f32 %v7296_v17, %v4129_v38 }
 0x21d   : > { %v4071_v35 = vpop.f32.mrf.mxu1  ;;  %v4147_v24 = vmul.f32 %v7296_v17, %v4119_v14  ;;  %v3710_v15 = vadd.f32 %v7451_v22, %v3268_v58  ;;  %v4121_v5 = vmax.f32 %v4105_v51, 0.0  ;;  %v4106_v20 = vadd.f32 %v7282_v57, %v4078_v61  ;;  %v4049_v59 = vpop.f32.mrf.mxu0 }
 0x21e   : > { %v4131_v56 = vmax.f32 %v4115_v16, 0.0  ;;  %v4116_v43 = vadd.f32 %v7282_v57, %v4088_v26  ;;  %v4089_v41 = vadd.f32 %v4071_v35, %v3719_v18  ;;  %v4177_v32 = vadd.f32 %v4157_v53, %v4156_v47 }
 0x21f   : > { %v4158_v13 = vmul.f32 %v7294_v4, %v4130_v29  ;;  %v4079_v31 = vadd.f32 %v4047_v2, %v3709_v45  ;;  %v4162_v48 = vadd.f32 %v4147_v24, %v4146_v19  ;;  %v3711_v8 = vadd.f32 %v7452_v54, %v3269_v37  ;;  %v4051_v18 = vpop.f32.mrf.mxu0 }
 0x220   : > { %v4132_v28 = vmax.f32 %v4116_v43, 0.0  ;;  %v4117_v7 = vadd.f32 %v7290_v39, %v4089_v41  ;;  %4178 = vadd.xlane.f32.xlu1 %v4177_v32  ;;  %v4159_v44 = vmul.f32 %v7296_v17, %v4131_v56  ;;  %v4148_v21 = vmul.f32 %v7294_v4, %v4120_v49 }
 0x221   : > { %v4122_v36 = vmax.f32 %v4106_v20, 0.0  ;;  %v4107_v58 = vadd.f32 %v7290_v39, %v4079_v31  ;;  %v4080_v10 = vadd.f32 %v4049_v59, %v3710_v15  ;;  %4163 = vadd.xlane.f32.xlu0 %v4162_v48  ;;  %v4149_v55 = vmul.f32 %v7296_v17, %v4121_v5 }
 0x222   : > { %v4133_v9 = vmax.f32 %v4117_v7, 0.0  ;;  %v4180_v34 = vadd.f32 %v4159_v44, %v4158_v13  ;;  %v4160_v42 = vmul.f32 %v7294_v4, %v4132_v28  ;;  %v4081_v33 = vadd.f32 %v4051_v18, %v3711_v8 }
 0x223   : > { %v4123_v45 = vmax.f32 %v4107_v58, 0.0  ;;  %v4108_v38 = vadd.f32 %v7282_v57, %v4080_v10  ;;  %v4165_v25 = vadd.f32 %v4149_v55, %v4148_v21  ;;  %v4150_v52 = vmul.f32 %v7294_v4, %v4122_v36  ;;  %v5117_v57 = vld [vmem:[#allocation3] ss:$0 sm:$0xff] }
 0x224   : > { %v4161_v27 = vmul.f32 %v7296_v17, %v4133_v9  ;;  %v4109_v6 = vadd.f32 %v7290_v39, %v4081_v33 }
 0x225   : > { %v4124_v63 = vmax.f32 %v4108_v38, 0.0  ;;  %4175 = vadd.xlane.f32.xlu0 %v4174_v1  ;;  %v4151_v47 = vmul.f32 %v7296_v17, %v4123_v45 }
 0x226   : > { %v4183_v11 = vadd.f32 %v4161_v27, %v4160_v42  ;;  %v4125_v12 = vmax.f32 %v4109_v6, 0.0 }
 0x227   : > { %v4168_v29 = vadd.f32 %v4151_v47, %v4150_v52  ;;  %v4152_v16 = vmul.f32 %v7294_v4, %v4124_v63 }
 0x228   : > { %v4153_v26 = vmul.f32 %v7296_v17, %v4125_v12 }
 0x229   : > { %4166 = vadd.xlane.f32.xlu0 %v4165_v25  ;;  %4169 = vadd.xlane.f32.xlu1 %v4168_v29 }
 0x22a   : > { %v4171_v53 = vadd.f32 %v4153_v26, %v4152_v16 }
 0x22d   : > { %4181 = vadd.xlane.f32.xlu0 %v4180_v34  ;;  %4172 = vadd.xlane.f32.xlu1 %v4171_v53 }
 0x231   : > { %4184 = vadd.xlane.f32.xlu1 %v4183_v11 }
 0x243   : > { %4193 = vperm.xlu0 %5181, %v5117_v57  }
 0x2a9   : > { %v4179_v1 = vpop.xlane.xlu1 %4178 }
 0x2aa   : > { %v4164_v39 = vpop.xlane.xlu0 %4163 }
 0x2ae   : > { %v4176_v60 = vpop.xlane.xlu0 %4175 }
 0x2b2   : > { %v4170_v23 = vpop.xlane.xlu1 %4169  ;;  %v4167_v37 = vpop.xlane.xlu0 %4166 }
 0x2b6   : > { %v4173_v3 = vpop.xlane.xlu1 %4172  ;;  %v4182_v40 = vpop.xlane.xlu0 %4181 }
 0x2ba   : > { %v4185_v35 = vpop.xlane.xlu1 %4184 }
 0x2be   : > { %v4194_v50 = vpop.permute.xlu0 %4193 }
 0x2bf   : > { %v7354_v0 = vadd.f32 %v4194_v50, %v4164_v39  ;;  %v7356_v4 = vadd.f32 %v4194_v50, %v4167_v37  ;;  %v7358_v17 = vadd.f32 %v4194_v50, %v4170_v23  ;;  %v7360_v56 = vadd.f32 %v4194_v50, %v4173_v3  ;;  %v7453_v37 = vld [vmem:[#allocation4_spill] sm:$0xff] }
 0x2c0   : > { %v7362_v43 = vadd.f32 %v4194_v50, %v4176_v60  ;;  %v7364_v41 = vadd.f32 %v4194_v50, %v4179_v1  ;;  %v7366_v32 = vadd.f32 %v4194_v50, %v4182_v40  ;;  %v7368_v14 = vadd.f32 %v4194_v50, %v4185_v35 }
 0x2c1   : > { %v4204_v30 = vand.u32 2147483647, %v7354_v0  ;;  %v4205_v46 = vand.u32 2147483647, %v7356_v4  ;;  %v4206_v19 = vand.u32 2147483647, %v7358_v17 }
 0x2c2   : > { %v4207_v62 = vand.u32 2147483647, %v7360_v56  ;;  %v4208_v28 = vand.u32 2147483647, %v7362_v43  ;;  %v4209_v7 = vand.u32 2147483647, %v7364_v41 }
 0x2c3   : > { %v4210_v13 = vand.u32 2147483647, %v7366_v32  ;;  %v4211_v44 = vand.u32 2147483647, %v7368_v14  ;;  %v4212_v49 = vsub.f32 0.0, %v4204_v30  ;;  %v4213_v51 = vsub.f32 0.0, %v4205_v46 }
 0x2c4   : > { %v4214_v61 = vsub.f32 0.0, %v4206_v19  ;;  %v4215_v24 = vsub.f32 0.0, %v4207_v62  ;;  %v4216_v22 = vsub.f32 0.0, %v4208_v28  ;;  %v4217_v15 = vsub.f32 0.0, %v4209_v7 }
 0x2c5   : > { %v4218_v2 = vsub.f32 0.0, %v4210_v13  ;;  %v4220_v9 = vmul.f32 1.442695, %v4212_v49  ;;  %v4222_v34 = vmul.f32 1.442695, %v4213_v51  ;;  %v4219_v5 = vsub.f32 0.0, %v4211_v44 }
 0x2c6   : > { %v4224_v20 = vmul.f32 1.442695, %v4214_v61  ;;  %v4226_v31 = vmul.f32 1.442695, %v4215_v24  ;;  %v4228_v48 = vmul.f32 1.442695, %v4216_v22 }
 0x2c7   : > { %5620 = vpow2.f32 %v4220_v9  ;;  %v4230_v54 = vmul.f32 1.442695, %v4217_v15  ;;  %v4232_v8 = vmul.f32 1.442695, %v4218_v2  ;;  %v4234_v59 = vmul.f32 1.442695, %v4219_v5 }
 0x2c8   : > { %5622 = vpow2.f32 %v4222_v34  ;;  %vm4260_vm13 = vcmp.ge.f32.partialorder %v7354_v0, 0.0  ;;  %vm4261_vm14 = vcmp.ge.f32.partialorder %v7356_v4, 0.0  ;;  %vm4262_vm15 = vcmp.ge.f32.partialorder %v7358_v17, 0.0 }
 0x2c9   : > { %5624 = vpow2.f32 %v4224_v20  ;;  %vm4263_vm0 = vcmp.ge.f32.partialorder %v7360_v56, 0.0  ;;  %vm4264_vm1 = vcmp.ge.f32.partialorder %v7362_v43, 0.0  ;;  %vm4265_vm2 = vcmp.ge.f32.partialorder %v7364_v41, 0.0 }
 0x2ca   : > { %5626 = vpow2.f32 %v4226_v31  ;;  %vm4266_vm4 = vcmp.ge.f32.partialorder %v7366_v32, 0.0  ;;  %vm4267_vm5 = vcmp.ge.f32.partialorder %v7368_v14, 0.0 }
 0x2cb   : > { %5628 = vpow2.f32 %v4228_v48 }
 0x2cc   : > { %5630 = vpow2.f32 %v4230_v54 }
 0x2cd   : > { %5632 = vpow2.f32 %v4232_v8 }
 0x2ce   : > { %5634 = vpow2.f32 %v4234_v59 }
 0x2d4   : > { %v5621_v21 = vpop.eup %5620 }
 0x2d5   : > { %v5623_v42 = vpop.eup %5622  ;;  %v4236_v27 = vadd.f32 1.0, %v5621_v21 }
 0x2d6   : > { %v5625_v36 = vpop.eup %5624  ;;  %v4237_v58 = vadd.f32 1.0, %v5623_v42 }
 0x2d7   : > { %v5627_v10 = vpop.eup %5626  ;;  %v4238_v55 = vadd.f32 1.0, %v5625_v36  ;;  %5636 = vrcp.f32 %v4236_v27 }
 0x2d8   : > { %v5629_v18 = vpop.eup %5628  ;;  %v4239_v11 = vadd.f32 1.0, %v5627_v10  ;;  %5638 = vrcp.f32 %v4237_v58 }
 0x2d9   : > { %v5631_v45 = vpop.eup %5630  ;;  %v4240_v38 = vadd.f32 1.0, %v5629_v18  ;;  %5640 = vrcp.f32 %v4238_v55 }
 0x2da   : > { %v5633_v33 = vpop.eup %5632  ;;  %v4241_v25 = vadd.f32 1.0, %v5631_v45  ;;  %5642 = vrcp.f32 %v4239_v11 }
 0x2db   : > { %v5635_v63 = vpop.eup %5634  ;;  %v4242_v6 = vadd.f32 1.0, %v5633_v33  ;;  %5644 = vrcp.f32 %v4240_v38 }
 0x2dc   : > { %v4243_v52 = vadd.f32 1.0, %v5635_v63  ;;  %5646 = vrcp.f32 %v4241_v25 }
 0x2dd   : > { %5648 = vrcp.f32 %v4242_v6 }
 0x2de   : > { %5650 = vrcp.f32 %v4243_v52 }
 0x2e4   : > { %v5637_v47 = vpop.eup %5636 }
 0x2e5   : > { %v5639_v12 = vpop.eup %5638  ;;  %v4268_v29 = vmul.f32 %v5637_v47, %v5621_v21 }
 0x2e6   : > { %v5641_v16 = vpop.eup %5640  ;;  %v4269_v26 = vmul.f32 %v5639_v12, %v5623_v42 }
 0x2e7   : > { %v5643_v53 = vpop.eup %5642  ;;  %v4270_v57 = vmul.f32 %v5641_v16, %v5625_v36  ;;  %v4276_v39 = vsel %vm4260_vm13, %v5637_v47, %v4268_v29 }
 0x2e8   : > { %v5645_v1 = vpop.eup %5644  ;;  %v4271_v60 = vmul.f32 %v5643_v53, %v5627_v10  ;;  %v4277_v23 = vsel %vm4261_vm14, %v5639_v12, %v4269_v26  ;;  %v4297_v3 = vrot.slane %v4276_v39, %v7453_v37 }
 0x2e9   : > { %v5647_v40 = vpop.eup %5646  ;;  %v4272_v50 = vmul.f32 %v5645_v1, %v5629_v18  ;;  %v4278_v35 = vsel %vm4262_vm15, %v5641_v16, %v4270_v57  ;;  %v4301_v0 = vrot.slane %v4277_v23, %v7453_v37 }
 0x2ea   : > { %v5649_v4 = vpop.eup %5648  ;;  %v4273_v17 = vmul.f32 %v5647_v40, %v5631_v45  ;;  %v4279_v30 = vsel %vm4263_vm0, %v5643_v53, %v4271_v60  ;;  %v4305_v46 = vrot.slane %v4278_v35, %v7453_v37 }
 0x2eb   : > { %v5651_v19 = vpop.eup %5650  ;;  %v4274_v62 = vmul.f32 %v5649_v4, %v5633_v33  ;;  %v4280_v28 = vsel %vm4264_vm1, %v5645_v1, %v4272_v50  ;;  %v4309_v7 = vrot.slane %v4279_v30, %v7453_v37  ;;  %v4327_v13 = vsel %vm4326_vm8, %v4301_v0, %v4297_v3 }
 0x2ec   : > { %v4275_v44 = vmul.f32 %v5651_v19, %v5635_v63  ;;  %v4281_v32 = vsel %vm4265_vm2, %v5647_v40, %v4273_v17  ;;  %v4313_v49 = vrot.slane %v4280_v28, %v7453_v37  ;;  %v4329_v56 = vsel %vm4328_vm9, %v4305_v46, %v4327_v13 }
 0x2ed   : > { %v4282_v51 = vsel %vm4266_vm4, %v5649_v4, %v4274_v62  ;;  %v4317_v61 = vrot.slane %v4281_v32, %v7453_v37  ;;  %v4331_v43 = vsel %vm4330_vm10, %v4309_v7, %v4329_v56 }
 0x2ee   : > { %v4283_v24 = vsel %vm4267_vm5, %v5651_v19, %v4275_v44  ;;  %v4321_v22 = vrot.slane %v4282_v51, %v7453_v37  ;;  %v4333_v15 = vsel %vm462_vm3, %v4313_v49, %v4331_v43 }
 0x2ef   : > { %v4325_v41 = vrot.slane %v4283_v24, %v7453_v37  ;;  %v4335_v14 = vsel %vm4334_vm11, %v4317_v61, %v4333_v15 }
 0x2f0   : > { %v4337_v2 = vsel %vm4336_vm12, %v4321_v22, %v4335_v14 }
 0x2f1   : > { %v4339_v9 = vsel %vm4338_vm6, %v4325_v41, %v4337_v2 }
 0x2f2   : > { %4342 = vst.msk [vmem:[%s441_s24] sm:$0xff] %vm4341_vm7, %v4339_v9 }
 0x2f3 PF: > { %s19_s26 = sadd.s32 1, %s5674_s26   ;;  %s7454_s2 = smov %s5670_s25 }
 0x2f4   : > { %p16_p5 = scmp.ge.s32.totalorder %s19_s26, 4   ;;  %s7455_s25 = smov %s7457_s6 }
 0x2f6   :  { %18 = sbr.rel (!%p16_p5) target bundleno = 3 (0x3), region = 95 }

// kernel: decoder_forward.7
= control target key start
LH: loop header
LB: loop body
LE: loop exit
PB: predicated region body
PF: predicated region fallthrough
CT: control target
= control target key end

     0   :  { %14 = vsyncpa [#allocation5], 0  ;;  %s11210_s0 = inlined_call_operand.vmem [shape: bf16[2,8,8,256], index: 0, kind: input, shape index: {}, may-alias: {0,1,2}]   ;;  %s11211_s1 = inlined_call_operand.vmem [shape: bf16[2,8,8,256], index: 1, kind: input, shape index: {}, may-alias: {0,1,2}]   ;;  %s11212_s2 = inlined_call_operand.vmem [shape: bf16[2,8,8,256], index: 2, kind: input, shape index: {}, may-alias: {0,1,2}]   ;;  %s11213_s3 = inlined_call_operand.vmem [shape: bf16[2,8,8,128], index: 3, kind: input, shape index: {}, may-alias: {3,4,5}]   ;;  %s11214_s4 = inlined_call_operand.vmem [shape: bf16[2,8,8,128], index: 4, kind: input, shape index: {}, may-alias: {3,4,5}]   ;;  %s11215_s5 = inlined_call_operand.vmem [shape: bf16[2,8,8,128], index: 5, kind: input, shape index: {}, may-alias: {3,4,5}]   ;;  %s11216_s6 = inlined_call_operand.hbm [shape: bf16[9,256,256], index: 6, kind: input, shape index: {}]   ;;  %s11217_s7 = inlined_call_operand.vmem [shape: bf16[9,128,256], index: 7, kind: input, shape index: {}]   ;;  %s11218_s8 = inlined_call_operand.hbm [shape: f32[1,256], index: 8, kind: input, shape index: {}]   ;;  %s11219_s9 = inlined_call_operand.vmem [shape: bf16[2,8,8,256], index: 9, kind: output, shape index: {}]  }
   0x1   :  { %15 = vsyncpa [#allocation7], 0  ;;  %s8944_s3 = smov 0   ;;  %s8946_s28 = smov 0  }
   0x2   :  { %s8948_s29 = smov 0  }
   0x3 LB: > { %s7321_s5 = sadd.s32 4294967295, %s8887_s29   ;;  %s33_s30 = sadd.s32 1, %s8883_s28  ;;  %s8887_s29 = sphi %s8948_s29, %s21_s29   ;;  %s8883_s28 = sphi %s8946_s28, %s11365_s28   ;;  %s8879_s3 = sphi %s8944_s3, %s11364_s3  }
   0x4   : > { %p35_p0 = scmp.ge.s32.totalorder %s33_s30, 2  ;;  %p7323_p1 = scmp.ge.s32.totalorder %s8887_s29, 1 }
   0x5   : > { %p329_p2 = scmp.lt.s32.totalorder %s8887_s29, 3  ;;  %p8969_p4 = scmp.eq.s32.totalorder %s7321_s5, 0 }
   0x6   : > { %s11367_s30 = smov (%p35_p0, %s33_s30), 0  ;;  %s8889_s12 = smov [#allocation4]  }
   0x7   : > { %p8965_p3 = pnand %p7323_p1, %p329_p2  ;;  %s341_s13 = sshll.u32 %s8889_s12, 4  ;;  %s342_s13 = int_to_ptr.vmem [resolvable:$true] %s341_s13 }
   0x8   : > { %s8890_s15 = smov [#allocation6]   ;;  %s8816_s17 = scalar_lea.vmem %s342_s13, 36864 }
   0x9   : > { %p8095_p5 = pneg %p8965_p3  ;;  %s358_s16 = sshll.u32 %s8890_s15, 4  ;;  %s359_s16 = int_to_ptr.vmem [resolvable:$true] %s358_s16 }
   0xa   : > { %p8817_p8 = scmp.ne.s32.totalorder %s342_s13, %s8816_s17  ;;  %p8824_p11 = scmp.lt.s32.totalorder %s342_s13, %s342_s13 }
   0xb   : > { %p8977_p6 = pnand %p8969_p4, %p8095_p5  ;;  %p8825_p12 = scmp.lt.s32.totalorder %s8816_s17, %s8816_s17 }
   0xd   : > { %p8807_p7 = pneg %p8977_p6  ;;  %p8826_p13 = por %p8825_p12, %p8824_p11 }
   0xf   : > { %p8819_p9 = pnand %p8817_p8, %p8807_p7 }
  0x11   : > { %p8820_p10 = pneg %p8819_p9 }
  0x13   : > { %p8827_p0 = pnand %p8826_p13, %p8820_p10 }
  0x15   : > { %8830 = shalt.err (!%p8827_p0)
}
  0x16   : > { %s8891_s18 = smov 128   ;;  %s8892_s19 = smov 8  }
  0x17   : > { %8098 = dma.hbm_to_vmem [thread:$0]  (!%p8977_p6), %s11216_s6, 36864, %s342_s13, [#allocation5], %s8891_s18, %s8891_s18, %s8892_s19  }
  0x18   : > { %s8842_s22 = scalar_lea.vmem %s359_s16, 32  ;;  %p8850_p8 = scmp.lt.s32.totalorder %s359_s16, %s359_s16 }
  0x19   : > { %p8843_p1 = scmp.ne.s32.totalorder %s359_s16, %s8842_s22  ;;  %p8851_p9 = scmp.lt.s32.totalorder %s8842_s22, %s8842_s22 }
  0x1b   : > { %p8845_p2 = pnand %p8843_p1, %p8807_p7  ;;  %p8852_p11 = por %p8851_p9, %p8850_p8 }
  0x1d   : > { %p8846_p5 = pneg %p8845_p2 }
  0x1f   : > { %p8853_p10 = pnand %p8852_p11, %p8846_p5 }
  0x21   : > { %8856 = shalt.err (!%p8853_p10)
}
  0x22   : > { %8101 = dma.hbm_to_vmem [thread:$0]  (!%p8977_p6), %s11218_s8, 32, %s359_s16, [#allocation7]  }
  0x23   : > { %476 = sbr.rel (%p8965_p3) target bundleno = 742 (0x2e6), region = 56 }
  0x28   : > { %8870 = dma.done.wait (%p8969_p4), [#allocation5], 36864  }
  0x29   : > { %8872 = vsyncadd (%p8969_p4), [#allocation5], 4294930432 }
  0x2a   : > { %8874 = dma.done.wait (%p8969_p4), [#allocation7], 32  }
  0x2b   : > { %8876 = vsyncadd (%p8969_p4), [#allocation7], 4294967264  ;;  %v11222_v0 = vmov 0   ;;  %v8135_v1 = vld [vmem:[%s11217_s7 + $0x74] ss:$8 sps:$4 sm:$0xff]   ;;  %p603_p3 = scmp.lt.s32.totalorder %s8879_s3, 1 }
  0x2c   : > { %1373 = vmatprep.mubr.bf16.mxu0 %v11222_v0  ;;  %v8137_v2 = vld [vmem:[#allocation4 + $0x74] ss:$8 sps:$4 sm:$0xff]   ;;  %1341 = vmatprep.subr.bf16.mxu0 %v8135_v1  ;;  %v8139_v3 = vld [vmem:[%s11217_s7 + $0x70] ss:$8 sps:$4 sm:$0xff]   ;;  %v8140_v4 = vld [vmem:[#allocation4 + $0x70] ss:$8 sps:$4 sm:$0xff]  }
  0x2d   : > { %1614 = vmatprep.subr.bf16.mxu1 %v8137_v2  ;;  %v8141_v5 = vld [vmem:[%s11217_s7 + $0x64] ss:$8 sps:$4 sm:$0xff]   ;;  %1342 = vmatpush1.bf16.msra.mxu0 %v8139_v3  ;;  %v8143_v6 = vld [vmem:[#allocation4 + $0x64] ss:$8 sps:$4 sm:$0xff]   ;;  %v8145_v7 = vld [vmem:[%s11217_s7 + $0x60] ss:$8 sps:$4 sm:$0xff]  }
  0x2e   : > { %1615 = vmatpush1.bf16.msra.mxu1 %v8140_v4  ;;  %1343 = vmatprep.subr.bf16.mxu0 %v8141_v5  ;;  %v8146_v8 = vld [vmem:[#allocation4 + $0x60] ss:$8 sps:$4 sm:$0xff]   ;;  %v8147_v9 = vld [vmem:[%s11217_s7 + $0x54] ss:$8 sps:$4 sm:$0xff]   ;;  %v8149_v10 = vld [vmem:[#allocation4 + $0x54] ss:$8 sps:$4 sm:$0xff]  }
  0x2f   : > { %1616 = vmatprep.subr.bf16.mxu1 %v8143_v6  ;;  %v8151_v11 = vld [vmem:[%s11217_s7 + $0x50] ss:$8 sps:$4 sm:$0xff]   ;;  %v8152_v12 = vld [vmem:[#allocation4 + $0x50] ss:$8 sps:$4 sm:$0xff]   ;;  %v8153_v13 = vld [vmem:[%s11217_s7 + $0x44] ss:$8 sps:$4 sm:$0xff]  }
  0x30   : > { %v8155_v14 = vld [vmem:[#allocation4 + $0x44] ss:$8 sps:$4 sm:$0xff]   ;;  %v8157_v15 = vld [vmem:[%s11217_s7 + $0x40] ss:$8 sps:$4 sm:$0xff]   ;;  %s11369_s3 = smov (!%p603_p3, %s8879_s3), 1  ;;  %vm704_vm1 = vcmask 1040384  }
  0x31   : > { %1344 = vmatpush1.bf16.msra.mxu0 %v8145_v7  ;;  %v8158_v16 = vld [vmem:[#allocation4 + $0x40] ss:$8 sps:$4 sm:$0xff]   ;;  %v8159_v17 = vld [vmem:[%s11217_s7 + $0x34] ss:$8 sps:$4 sm:$0xff]   ;;  %v8161_v18 = vld [vmem:[#allocation4 + $0x34] ss:$8 sps:$4 sm:$0xff]  }
  0x32   : > { %1617 = vmatpush1.bf16.msra.mxu1 %v8146_v8  ;;  %1345 = vmatprep.subr.bf16.mxu0 %v8147_v9  ;;  %vm705_vm0 = vsmask.f32 256  ;;  %v8163_v19 = vld [vmem:[%s11217_s7 + $0x30] ss:$8 sps:$4 sm:$0xff]   ;;  %v8164_v20 = vld [vmem:[#allocation4 + $0x30] ss:$8 sps:$4 sm:$0xff]  }
  0x33   : > { %1618 = vmatprep.subr.bf16.mxu1 %v8149_v10  ;;  %s8075_s24 = sshll.u32 %s11369_s3, 5  ;;  %v8165_v21 = vld [vmem:[%s11217_s7 + $0x24] ss:$8 sps:$4 sm:$0xff]   ;;  %v8167_v22 = vld [vmem:[#allocation4 + $0x24] ss:$8 sps:$4 sm:$0xff]   ;;  %vm9054_vm2 = vmand %vm704_vm1, %vm705_vm0  ;;  %v11242_v31 = vmov 0 }
  0x34   : > { %s9051_s2 = scalar_lea.vmem %s11214_s4, %s8075_s24  ;;  %v8169_v24 = vld [vmem:[%s11217_s7 + $0x20] ss:$8 sps:$4 sm:$0xff]   ;;  %vm741_vm3 = vsmask.f32 7938  ;;  %v8170_v25 = vld [vmem:[#allocation4 + $0x20] ss:$8 sps:$4 sm:$0xff]  }
  0x35   : > { %1346 = vmatpush1.bf16.msra.mxu0 %v8151_v11  ;;  %v8171_v26 = vld [vmem:[%s11217_s7 + $0x14] ss:$8 sps:$4 sm:$0xff]   ;;  %v8173_v27 = vld [vmem:[#allocation4 + $0x14] ss:$8 sps:$4 sm:$0xff]   ;;  %v943_v28 = vld [vmem:[%s9051_s2] sm:$0xf] }
  0x36   : > { %1619 = vmatpush1.bf16.msra.mxu1 %v8152_v12  ;;  %1347 = vmatprep.subr.bf16.mxu0 %v8153_v13  ;;  %v951_v29 = vld [vmem:[#allocation3] sm:$0x1]  ;;  %v8175_v30 = vld [vmem:[%s11217_s7 + $0x10] ss:$8 sps:$4 sm:$0xff]   ;;  %vm9070_vm4 = vmand %vm704_vm1, %vm741_vm3  ;;  %v1028_v35 = vshrl.u32 %v943_v28, 16  ;;  %vm786_vm5 = vcmask 1043456  }
  0x37   : > { %1620 = vmatprep.subr.bf16.mxu1 %v8155_v14  ;;  %v11243_v31 = vsel %vm9070_vm4, 4294967295, %v11242_v31  ;;  %v952_v32 = vsel %vm9054_vm2, 0, %v951_v29  ;;  %v954_v33 = vld [vmem:[#allocation3 + $0x8] sm:$0x1]  ;;  %v984_v34 = vld [vmem:[#allocation3 + $0xc] sm:$0x1]  ;;  %vm9085_vm6 = vmand %vm786_vm5, %vm741_vm3 }
  0x38   : > { %11244 = vst [vmem:[#allocation10_spill] sm:$0xff] %v11243_v31  ;;  %953 = vst [vmem:[#allocation3] sm:$0x1] %v952_v32  ;;  %v955_v36 = vsel %vm9054_vm2, 0, %v954_v33  ;;  %v985_v37 = vsel %vm9070_vm4, 0, %v984_v34  ;;  %v1030_v39 = vrot.slane %v1028_v35, 7 }
  0x39   : > { %1348 = vmatpush1.bf16.msra.mxu0 %v8157_v15  ;;  %v8176_v38 = vld [vmem:[#allocation4 + $0x10] ss:$8 sps:$4 sm:$0xff]   ;;  %956 = vst [vmem:[#allocation3 + $0x8] sm:$0x1] %v955_v36  ;;  %986 = vst [vmem:[#allocation3 + $0xc] sm:$0x1] %v985_v37 }
  0x3a   : > { %1621 = vmatpush1.bf16.msra.mxu1 %v8158_v16  ;;  %1349 = vmatprep.subr.bf16.mxu0 %v8159_v17  ;;  %v1031_v40 = vshll.u32 %v943_v28, 16  ;;  %v8177_v41 = vld [vmem:[%s11217_s7 + $0x4] ss:$8 sps:$4 sm:$0xff]   ;;  %v8179_v42 = vld [vmem:[#allocation4 + $0x4] ss:$8 sps:$4 sm:$0xff]   ;;  %v11245_v43 = vmov 0 }
  0x3b   : > { %1622 = vmatprep.subr.bf16.mxu1 %v8161_v18  ;;  %v11246_v43 = vsel %vm9085_vm6, 4294967295, %v11245_v43  ;;  %v8181_v44 = vld [vmem:[%s11217_s7] ss:$8 sps:$4 sm:$0xff]   ;;  %v8182_v45 = vld [vmem:[#allocation4] ss:$8 sps:$4 sm:$0xff]   ;;  %v9093_v46 = vrot.slane %v11222_v0, 7 }
  0x3c   : > { %11247 = vst [vmem:[#allocation11_spill] sm:$0xff] %v11246_v43  ;;  %v1033_v47 = vor.u32 %v1031_v40, %v1030_v39  ;;  %v1034_v48 = vrot.slane %v1030_v39, 4  ;;  %v8184_v49 = vld [vmem:[#allocation4 + $0xf4] ss:$8 sps:$4 sm:$0xff]   ;;  %v8189_v57 = vld [vmem:[#allocation4 + $0xf0] ss:$8 sps:$4 sm:$0xff]  }
  0x3d   : > { %1350 = vmatpush1.bf16.msra.mxu0 %v8163_v19  ;;  %v8188_v50 = vld [vmem:[#allocation4 + $0x174] ss:$8 sps:$4 sm:$0xff]   ;;  %v8190_v58 = vld [vmem:[#allocation4 + $0xe4] ss:$8 sps:$4 sm:$0xff]   ;;  %vm707_vm7 = vcmask 1044484   ;;  %s8071_s19 = sshll.u32 %s11369_s3, 6 }
  0x3e   : > { %1623 = vmatpush1.bf16.msra.mxu1 %v8164_v20  ;;  %1351 = vmatprep.subr.bf16.mxu0 %v8165_v21  ;;  %vm708_vm8 = vsmask.f32 4352  ;;  %v8195_v59 = vld [vmem:[#allocation4 + $0xe0] ss:$8 sps:$4 sm:$0xff]   ;;  %v8196_v60 = vld [vmem:[#allocation4 + $0xd4] ss:$8 sps:$4 sm:$0xff]   ;;  %s9115_s22 = scalar_lea.vmem %s11211_s1, %s8071_s19  ;;  %s11144_s5 = scalar_lea.vmem %s11219_s9, %s8071_s19 }
  0x3f   : > { %1624 = vmatprep.subr.bf16.mxu1 %v8167_v22  ;;  %v1021_v51 = vld [vmem:[#allocation3] sm:$0xf]  ;;  %vm709_vm9 = vmand %vm707_vm7, %vm708_vm8  ;;  %v8194_v62 = vld [vmem:[#allocation4 + $0x164] ss:$8 sps:$4 sm:$0xff]   ;;  %vm743_vm11 = vsmask.f32 7954 }
  0x40   : > { %v1022_v52 = vsel %vm9085_vm6, %v9093_v46, %v1021_v51  ;;  %v1108_v53 = vld [vmem:[#allocation3 + $0x8] sm:$0xf]  ;;  %v1111_v54 = vld [vmem:[#allocation3 + $0xc] sm:$0x1]  ;;  %v8202_v2 = vld [vmem:[#allocation4 + $0xc4] ss:$8 sps:$4 sm:$0xff]  }
  0x41   : > { %1352 = vmatpush1.bf16.msra.mxu0 %v8169_v24  ;;  %1023 = vst [vmem:[#allocation3] sm:$0xf] %v1022_v52  ;;  %v1109_v55 = vsel %vm9085_vm6, %v1033_v47, %v1108_v53  ;;  %v1112_v56 = vsel %vm9054_vm2, %v1034_v48, %v1111_v54  ;;  %v8186_v61 = vld [vmem:[#allocation4 + $0x170] ss:$8 sps:$4 sm:$0xff]   ;;  %vm9106_vm10 = vmor %vm709_vm9, %vm9054_vm2  ;;  %v8192_v4 = vld [vmem:[#allocation4 + $0x160] ss:$8 sps:$4 sm:$0xff]  }
  0x42   : > { %1625 = vmatpush1.bf16.msra.mxu1 %v8170_v25  ;;  %1353 = vmatprep.subr.bf16.mxu0 %v8171_v26  ;;  %1110 = vst [vmem:[#allocation3 + $0x8] sm:$0xf] %v1109_v55  ;;  %1113 = vst [vmem:[#allocation3 + $0xc] sm:$0x1] %v1112_v56  ;;  %v8201_v1 = vld [vmem:[#allocation4 + $0xd0] ss:$8 sps:$4 sm:$0xff]  }
  0x43   : > { %1626 = vmatprep.subr.bf16.mxu1 %v8173_v27  ;;  %v8200_v5 = vld [vmem:[#allocation4 + $0x154] ss:$8 sps:$4 sm:$0xff]   ;;  %v8207_v6 = vld [vmem:[#allocation4 + $0xc0] ss:$8 sps:$4 sm:$0xff]   ;;  %v8198_v7 = vld [vmem:[#allocation4 + $0x150] ss:$8 sps:$4 sm:$0xff]  }
  0x44   : > { %v8208_v8 = vld [vmem:[#allocation4 + $0xb4] ss:$8 sps:$4 sm:$0xff]   ;;  %v8206_v9 = vld [vmem:[#allocation4 + $0x144] ss:$8 sps:$4 sm:$0xff]   ;;  %vm788_vm12 = vcmask 1047556   ;;  %vm9279_vm15 = vmand %vm707_vm7, %vm743_vm11  ;;  %vm2486_vm7 = vcmask 1042432  }
  0x45   : > { %1354 = vmatpush1.bf16.msra.mxu0 %v8175_v30  ;;  %v696_v10 = vld [vmem:[%s9115_s22] sm:$0xff]  ;;  %v714_v13 = vld [vmem:[#allocation2 + $0x70] sm:$0x11]  ;;  %vm789_vm13 = vmand %vm788_vm12, %vm743_vm11  ;;  %vm1703_vm1 = vsmask.f32 3328  ;;  %vm2487_vm8 = vcmask 1046532  }
  0x46   : > { %1627 = vmatpush1.bf16.msra.mxu1 %v8176_v38  ;;  %1355 = vmatprep.subr.bf16.mxu0 %v8177_v41  ;;  %v711_v11 = vld [vmem:[#allocation2] sm:$0x11]  ;;  %v798_v14 = vshrl.u32 %v696_v10, 16  ;;  %v715_v16 = vsel %vm9106_vm10, 0, %v714_v13  ;;  %v801_v17 = vshll.u32 %v696_v10, 16  ;;  %vm9132_vm14 = vmor %vm789_vm13, %vm9085_vm6 }
  0x47   : > { %1628 = vmatprep.subr.bf16.mxu1 %v8179_v42  ;;  %v712_v12 = vsel %vm9106_vm10, 0, %v711_v11  ;;  %v8213_v15 = vld [vmem:[#allocation4 + $0xb0] ss:$8 sps:$4 sm:$0xff]   ;;  %v8204_v18 = vld [vmem:[#allocation4 + $0x140] ss:$8 sps:$4 sm:$0xff]   ;;  %vm9306_vm0 = vmor %vm9279_vm15, %vm9070_vm4 }
  0x48   : > { %713 = vst [vmem:[#allocation2] sm:$0x11] %v712_v12  ;;  %v8214_v19 = vld [vmem:[#allocation4 + $0xa4] ss:$8 sps:$4 sm:$0xff]   ;;  %716 = vst [vmem:[#allocation2 + $0x70] sm:$0x11] %v715_v16 }
  0x49   : > { %1356 = vmatpush1.bf16.msra.mxu0 %v8181_v44  ;;  %v8183_v63 = vld [vmem:[#allocation3] ss:$8 sps:$4 sm:$0xff]   ;;  %v9123_v20 = vrot.slane %v798_v14, 7  ;;  %v8212_v21 = vld [vmem:[#allocation4 + $0x134] ss:$8 sps:$4 sm:$0xff]   ;;  %vm9653_vm9 = vmor %vm2486_vm7, %vm2487_vm8 }
  0x4a   : > { %1629 = vmatpush1.bf16.msra.mxu1 %v8182_v45  ;;  %2171 = vmatprep.subr.bf16.mxu0 %v8188_v50  ;;  %v8219_v22 = vld [vmem:[#allocation4 + $0xa0] ss:$8 sps:$4 sm:$0xff]   ;;  %v8220_v24 = vld [vmem:[#allocation4 + $0x94] ss:$8 sps:$4 sm:$0xff]   ;;  %v945_v26 = vld [vmem:[%s9051_s2 + $0x8] sm:$0xf] }
  0x4b   : > { %1630 = vmatprep.subr.bf16.mxu1 %v8184_v49  ;;  %v944_v25 = vld [vmem:[%s9051_s2 + $0x4] sm:$0xf]  ;;  %v803_v27 = vor.u32 %v801_v17, %v9123_v20  ;;  %v957_v28 = vld [vmem:[#allocation3 + $0x10] sm:$0x1]  ;;  %v960_v29 = vld [vmem:[#allocation3 + $0x18] sm:$0x1] }
  0x4c   : > { %1374 = vmatmul.mubr.bf16.vlgmr.msra.gmra.mxu0 %v8183_v63  ;;  %v1036_v30 = vshrl.u32 %v944_v25, 16  ;;  %v8210_v32 = vld [vmem:[#allocation4 + $0x130] ss:$8 sps:$4 sm:$0xff]   ;;  %v958_v34 = vsel %vm9054_vm2, 0, %v957_v28  ;;  %v961_v35 = vsel %vm9054_vm2, 0, %v960_v29  ;;  %v1039_v36 = vshll.u32 %v944_v25, 16 }
  0x4d   : > { %2172 = vmatpush1.bf16.msra.mxu0 %v8186_v61  ;;  %1383 = vmatprep.mubr.bf16.mxu0 %v11222_v0  ;;  %v1044_v37 = vshrl.u32 %v945_v26, 16  ;;  %v8218_v38 = vld [vmem:[#allocation4 + $0x124] ss:$8 sps:$4 sm:$0xff]   ;;  %959 = vst [vmem:[#allocation3 + $0x10] sm:$0x1] %v958_v34  ;;  %v1047_v40 = vshll.u32 %v945_v26, 16 }
  0x4e   : > { %1631 = vmatpush2.bf16.msra.mxu1 %v8189_v57  ;;  %2173 = vmatprep.subr.bf16.mxu0 %v8194_v62  ;;  %962 = vst [vmem:[#allocation3 + $0x18] sm:$0x1] %v961_v35  ;;  %v9140_v39 = vrot.slane %v1036_v30, 7  ;;  %v8225_v41 = vld [vmem:[#allocation4 + $0x90] ss:$8 sps:$4 sm:$0xff]   ;;  %v698_v50 = vld [vmem:[%s9115_s22 + $0x10] sm:$0xff] }
  0x4f   : > { %1632 = vmatprep.subr.bf16.mxu1 %v8190_v58  ;;  %v8226_v42 = vld [vmem:[#allocation4 + $0x84] ss:$8 sps:$4 sm:$0xff]   ;;  %v791_v44 = vld [vmem:[#allocation2] sm:$0xff]  ;;  %v9142_v45 = vrot.slane %v1044_v37, 7  ;;  %v697_v49 = vld [vmem:[%s9115_s22 + $0x8] sm:$0xff] }
  0x50   : > { %v9147_v47 = vsel %vm9132_vm14, %v9093_v46, %v791_v44  ;;  %v878_v48 = vld [vmem:[#allocation2 + $0x70] sm:$0xff]  ;;  %v1041_v53 = vor.u32 %v1039_v36, %v9140_v39  ;;  %v717_v54 = vld [vmem:[#allocation2 + $0x8] sm:$0x11]  ;;  %v806_v56 = vshrl.u32 %v697_v49, 16  ;;  %vm1704_vm3 = vsmask.f32 7440 }
  0x51   : > { %2174 = vmatpush1.bf16.msra.mxu0 %v8192_v4  ;;  %v8216_v51 = vld [vmem:[#allocation4 + $0x120] ss:$8 sps:$4 sm:$0xff]   ;;  %793 = vst [vmem:[#allocation2] sm:$0xff] %v9147_v47  ;;  %v9154_v52 = vsel %vm9132_vm14, %v803_v27, %v878_v48  ;;  %v8224_v57 = vld [vmem:[#allocation4 + $0x114] ss:$8 sps:$4 sm:$0xff]   ;;  %v817_v4 = vshll.u32 %v698_v50, 16  ;;  %vm9421_vm5 = vmor %vm1703_vm1, %vm1704_vm3 }
  0x52   : > { %1633 = vmatpush2.bf16.msra.mxu1 %v8195_v59  ;;  %2175 = vmatprep.subr.bf16.mxu0 %v8200_v5  ;;  %v720_v55 = vld [vmem:[#allocation2 + $0x30] sm:$0x11]  ;;  %880 = vst [vmem:[#allocation2 + $0x70] sm:$0xff] %v9154_v52  ;;  %v7365_v58 = vcombine.high %v9147_v47, %v9154_v52  ;;  %v1049_v59 = vor.u32 %v1047_v40, %v9142_v45  ;;  %v9165_v63 = vrot.slane %v806_v56, 7  ;;  %v946_v14 = vld [vmem:[%s9051_s2 + $0xc] sm:$0xf] }
  0x53   : > { %1634 = vmatprep.subr.bf16.mxu1 %v8196_v60  ;;  %v718_v60 = vsel %vm9106_vm10, 0, %v717_v54  ;;  %v721_v61 = vsel %vm9106_vm10, 0, %v720_v55  ;;  %v8231_v62 = vld [vmem:[#allocation4 + $0x80] ss:$8 sps:$4 sm:$0xff]   ;;  %v8237_v5 = vld [vmem:[%s11217_s7 + $0xf4] ss:$8 sps:$4 sm:$0xff]   ;;  %v7364_v16 = vcombine.low %v9147_v47, %v9154_v52 }
  0x54   : > { %719 = vst [vmem:[#allocation2 + $0x8] sm:$0x11] %v718_v60  ;;  %722 = vst [vmem:[#allocation2 + $0x30] sm:$0x11] %v721_v61  ;;  %1646 = vmatprep.mubr.bf16.mxu1 %v7365_v58  ;;  %v8230_v10 = vld [vmem:[#allocation4 + $0x104] ss:$8 sps:$4 sm:$0xff]  }
  0x55   : > { %2176 = vmatpush1.bf16.msra.mxu0 %v8198_v7  ;;  %v1114_v7 = vld [vmem:[#allocation3 + $0x10] sm:$0xf]  ;;  %v1055_v26 = vshll.u32 %v946_v14, 16  ;;  %v8244_v29 = vld [vmem:[%s11217_s7 + $0xe4] ss:$8 sps:$4 sm:$0xff]  }
  0x56   : > { %1635 = vmatpush2.bf16.msra.mxu1 %v8201_v1  ;;  %2177 = vmatprep.subr.bf16.mxu0 %v8206_v9  ;;  %v809_v1 = vshll.u32 %v697_v49, 16  ;;  %v8235_v11 = vld [vmem:[%s11217_s7 + $0xf0] ss:$8 sps:$4 sm:$0xff]   ;;  %v1115_v12 = vsel %vm9085_vm6, %v1041_v53, %v1114_v7  ;;  %v8234_v37 = vld [vmem:[#allocation4 + $0x1f4] ss:$8 sps:$4 sm:$0xff]  }
  0x57   : > { %1636 = vmatprep.subr.bf16.mxu1 %v8202_v2  ;;  %v814_v2 = vshrl.u32 %v698_v50, 16  ;;  %1116 = vst [vmem:[#allocation3 + $0x10] sm:$0xf] %v1115_v12  ;;  %v8228_v28 = vld [vmem:[#allocation4 + $0x100] ss:$8 sps:$4 sm:$0xff]  }
  0x58   : > { %v811_v17 = vor.u32 %v809_v1, %v9165_v63  ;;  %v8250_v44 = vld [vmem:[%s11217_s7 + $0xd4] ss:$8 sps:$4 sm:$0xff]   ;;  %v723_v53 = vld [vmem:[#allocation2 + $0x60] sm:$0x11]  ;;  %v8525_v43 = vld [vmem:[#allocation4 + $0x480] ss:$8 sps:$4 sm:$0xff]  }
  0x59   : > { %2178 = vmatpush1.bf16.msra.mxu0 %v8204_v18  ;;  %v9170_v9 = vrot.slane %v814_v2, 7  ;;  %v699_v50 = vld [vmem:[%s9115_s22 + $0x18] sm:$0xff]  ;;  %v8232_v54 = vld [vmem:[#allocation4 + $0x1f0] ss:$8 sps:$4 sm:$0xff]   ;;  %v724_v55 = vsel %vm9106_vm10, 0, %v723_v53  ;;  %v702_v53 = vld [vmem:[%s9115_s22 + $0x30] sm:$0xff] }
  0x5a   : > { %1637 = vmatpush2.bf16.msra.mxu1 %v8207_v6  ;;  %2179 = vmatprep.subr.bf16.mxu0 %v8212_v21  ;;  %v8222_v6 = vld [vmem:[#allocation4 + $0x110] ss:$8 sps:$4 sm:$0xff]   ;;  %v726_v56 = vld [vmem:[#allocation2 + $0x38] sm:$0x11]  ;;  %v825_v58 = vshll.u32 %v699_v50, 16 }
  0x5b   : > { %1638 = vmatprep.subr.bf16.mxu1 %v8208_v8  ;;  %v1120_v8 = vld [vmem:[#allocation3 + $0x18] sm:$0xf]  ;;  %v819_v18 = vor.u32 %v817_v4, %v9170_v9  ;;  %v966_v21 = vld [vmem:[#allocation3 + $0x28] sm:$0x1]  ;;  %v890_v35 = vld [vmem:[#allocation2 + $0x30] sm:$0xff]  ;;  %v727_v1 = vsel %vm9106_vm10, 0, %v726_v56 }
  0x5c   : > { %v1121_v13 = vsel %vm9085_vm6, %v1049_v59, %v1120_v8  ;;  %v967_v25 = vsel %vm9054_vm2, 0, %v966_v21  ;;  %v884_v34 = vld [vmem:[#allocation2 + $0x8] sm:$0xff]  ;;  %725 = vst [vmem:[#allocation2 + $0x60] sm:$0x11] %v724_v55  ;;  %v8241_v61 = vld [vmem:[#allocation4 + $0x1e4] ss:$8 sps:$4 sm:$0xff]  }
  0x5d   : > { %2180 = vmatpush1.bf16.msra.mxu0 %v8210_v32  ;;  %1122 = vst [vmem:[#allocation3 + $0x18] sm:$0xf] %v1121_v13  ;;  %968 = vst [vmem:[#allocation3 + $0x28] sm:$0x1] %v967_v25  ;;  %v9201_v40 = vsel %vm9132_vm14, %v811_v17, %v884_v34  ;;  %v8239_v8 = vld [vmem:[#allocation4 + $0x1e0] ss:$8 sps:$4 sm:$0xff]  }
  0x5e   : > { %1639 = vmatpush2.bf16.msra.mxu1 %v8213_v15  ;;  %2181 = vmatprep.subr.bf16.mxu0 %v8218_v38  ;;  %v947_v15 = vld [vmem:[%s9051_s2 + $0x10] sm:$0xf]  ;;  %v8242_v38 = vld [vmem:[%s11217_s7 + $0xe0] ss:$8 sps:$4 sm:$0xff]   ;;  %886 = vst [vmem:[#allocation2 + $0x8] sm:$0xff] %v9201_v40 }
  0x5f   : > { %1640 = vmatprep.subr.bf16.mxu1 %v8214_v19  ;;  %v963_v19 = vld [vmem:[#allocation3 + $0x20] sm:$0x1]  ;;  %v1060_v27 = vshrl.u32 %v947_v15, 16  ;;  %v1063_v32 = vshll.u32 %v947_v15, 16  ;;  %728 = vst [vmem:[#allocation2 + $0x38] sm:$0x11] %v727_v1 }
  0x60   : > { %v8247_v13 = vld [vmem:[#allocation4 + $0x1d4] ss:$8 sps:$4 sm:$0xff]   ;;  %v948_v17 = vld [vmem:[%s9051_s2 + $0x14] sm:$0xf]  ;;  %v8252_v56 = vld [vmem:[#allocation4 + $0x1c0] ss:$8 sps:$4 sm:$0xff]  }
  0x61   : > { %2182 = vmatpush1.bf16.msra.mxu0 %v8216_v51  ;;  %v9194_v36 = vrot.slane %v1060_v27, 7  ;;  %v700_v51 = vld [vmem:[%s9115_s22 + $0x20] sm:$0xff]  ;;  %v1068_v25 = vshrl.u32 %v948_v17, 16 }
  0x62   : > { %1641 = vmatpush2.bf16.msra.mxu1 %v8219_v22  ;;  %v1052_v22 = vshrl.u32 %v946_v14, 16  ;;  %2183 = vmatprep.subr.bf16.mxu0 %v8224_v57  ;;  %v822_v57 = vshrl.u32 %v699_v50, 16  ;;  %v830_v59 = vshrl.u32 %v700_v51, 16  ;;  %v833_v7 = vshll.u32 %v700_v51, 16  ;;  %v8257_v14 = vld [vmem:[%s11217_s7 + $0xc4] ss:$8 sps:$4 sm:$0xff]  }
  0x63   : > { %1642 = vmatprep.subr.bf16.mxu1 %v8220_v24  ;;  %v964_v24 = vsel %vm9054_vm2, 0, %v963_v19  ;;  %v1065_v49 = vor.u32 %v1063_v32, %v9194_v36  ;;  %v969_v19 = vld [vmem:[#allocation3 + $0x30] sm:$0x1]  ;;  %v896_v27 = vld [vmem:[#allocation2 + $0x60] sm:$0xff]  ;;  %v1071_v32 = vshll.u32 %v948_v17, 16  ;;  %v701_v51 = vld [vmem:[%s9115_s22 + $0x28] sm:$0xff] }
  0x64   : > { %965 = vst [vmem:[#allocation3 + $0x20] sm:$0x1] %v964_v24  ;;  %v9192_v30 = vrot.slane %v1052_v22, 7  ;;  %v8238_v60 = vld [vmem:[#allocation3 + $0x10] ss:$8 sps:$4 sm:$0xff]   ;;  %v9224_v2 = vrot.slane %v822_v57, 7 }
  0x65   : > { %2184 = vmatpush1.bf16.msra.mxu0 %v8222_v6  ;;  %v9226_v6 = vrot.slane %v830_v59, 7  ;;  %v970_v22 = vsel %vm9054_vm2, 0, %v969_v19  ;;  %v972_v24 = vld [vmem:[#allocation3 + $0x38] sm:$0x1]  ;;  %v8270_v1 = vld [vmem:[%s11217_s7 + $0xa4] ss:$8 sps:$4 sm:$0xff]  }
  0x66   : > { %1643 = vmatpush2.bf16.msra.mxu1 %v8225_v41  ;;  %v9205_v41 = vsel %vm9132_vm14, %v819_v18, %v890_v35  ;;  %2185 = vmatprep.subr.bf16.mxu0 %v8230_v10  ;;  %v1057_v48 = vor.u32 %v1055_v26, %v9192_v30  ;;  %v8248_v10 = vld [vmem:[%s11217_s7 + $0xd0] ss:$8 sps:$4 sm:$0xff]   ;;  %v827_v15 = vor.u32 %v825_v58, %v9224_v2  ;;  %v9257_v35 = vrot.slane %v1068_v25, 7  ;;  %v8693_v23 = vld [vmem:[#allocation4 + $0x7d0] ss:$8 sps:$4 sm:$0xff]  }
  0x67   : > { %1644 = vmatprep.subr.bf16.mxu1 %v8226_v42  ;;  %892 = vst [vmem:[#allocation2 + $0x30] sm:$0xff] %v9205_v41  ;;  %v7367_v42 = vcombine.high %v9201_v40, %v9205_v41  ;;  %1384 = vmatmul.mubr.bf16.gmra.mxu0 %v8238_v60  ;;  %v949_v18 = vld [vmem:[%s9051_s2 + $0x18] sm:$0xf]  ;;  %v835_v21 = vor.u32 %v833_v7, %v9226_v6  ;;  %971 = vst [vmem:[#allocation3 + $0x30] sm:$0x1] %v970_v22  ;;  %v838_v7 = vshrl.u32 %v701_v51, 16 }
  0x68   : > { %1393 = vmatprep.mubr.bf16.mxu0 %v11222_v0  ;;  %v1076_v26 = vshrl.u32 %v949_v18, 16  ;;  %v9255_v34 = vsel %vm9132_vm14, %v827_v15, %v896_v27  ;;  %v8261_v50 = vld [vmem:[%s11217_s7 + $0xb0] ss:$8 sps:$4 sm:$0xff]   ;;  %v1073_v59 = vor.u32 %v1071_v32, %v9257_v35  ;;  %v804_v15 = vrot.slane %v9123_v20, 4  ;;  %v8276_v32 = vld [vmem:[%s11217_s7 + $0x94] ss:$8 sps:$4 sm:$0xff]  }
  0x69   : > { %2186 = vmatpush1.bf16.msra.mxu0 %v8228_v28  ;;  %v8263_v28 = vld [vmem:[%s11217_s7 + $0xb4] ss:$8 sps:$4 sm:$0xff]   ;;  %898 = vst [vmem:[#allocation2 + $0x60] sm:$0xff] %v9255_v34  ;;  %v9300_v19 = vrot.slane %v9093_v46, 4  ;;  %v1042_v22 = vrot.slane %v9140_v39, 4  ;;  %v1707_v27 = vshrl.u32 %v9147_v47, 16 }
  0x6a   : > { %1645 = vmatpush2.bf16.msra.mxu1 %v8231_v62  ;;  %v7366_v62 = vcombine.low %v9201_v40, %v9205_v41  ;;  %2187 = vmatprep.subr.bf16.mxu0 %v8234_v37  ;;  %v9259_v37 = vrot.slane %v1076_v26, 7  ;;  %v8268_v26 = vld [vmem:[%s11217_s7 + $0xa0] ss:$8 sps:$4 sm:$0xff]   ;;  %v1766_v39 = vshll.u32 %v9255_v34, 16 }
  0x6b   : > { %2373 = vmatprep.subr.bf16.mxu1 %v8237_v5  ;;  %v1126_v4 = vld [vmem:[#allocation3 + $0x20] sm:$0xf]  ;;  %v1132_v5 = vld [vmem:[#allocation3 + $0x28] sm:$0xf]  ;;  %11254 = vst [vmem:[#allocation12_spill] sm:$0xff] %v9300_v19 }
  0x6c   : > { %v1133_v12 = vsel %vm9085_vm6, %v1065_v49, %v1132_v5  ;;  %v732_v5 = vld [vmem:[#allocation2 + $0x68] sm:$0x11] }
  0x6d   : > { %1647 = vmatmul.mubr.bf16.vlgmr.msra.gmra.mxu1 %v7364_v16  ;;  %1134 = vst [vmem:[#allocation3 + $0x28] sm:$0xf] %v1133_v12  ;;  %2188 = vmatpush2.bf16.msra.mxu0 %v8232_v54  ;;  %v8255_v16 = vld [vmem:[%s11217_s7 + $0xc0] ss:$8 sps:$4 sm:$0xff]   ;;  %v729_v54 = vld [vmem:[#allocation2 + $0x58] sm:$0x11] }
  0x6e   : > { %2374 = vmatpush1.bf16.msra.mxu1 %v8235_v11  ;;  %1656 = vmatprep.mubr.bf16.mxu1 %v7367_v42  ;;  %v1127_v11 = vsel %vm9085_vm6, %v1057_v48, %v1126_v4  ;;  %v8245_v42 = vld [vmem:[#allocation4 + $0x1d0] ss:$8 sps:$4 sm:$0xff]   ;;  %v902_v48 = vld [vmem:[#allocation2 + $0x38] sm:$0xff]  ;;  %v730_v4 = vsel %vm9106_vm10, 0, %v729_v54  ;;  %v1138_v12 = vld [vmem:[#allocation3 + $0x30] sm:$0xf] }
  0x6f   : > { %2375 = vmatprep.subr.bf16.mxu1 %v8244_v29  ;;  %1128 = vst [vmem:[#allocation3 + $0x20] sm:$0xf] %v1127_v11  ;;  %2189 = vmatprep.subr.bf16.mxu0 %v8241_v61  ;;  %v973_v29 = vsel %vm9054_vm2, 0, %v972_v24  ;;  %v9264_v49 = vsel %vm9132_vm14, %v835_v21, %v902_v48  ;;  %v8260_v61 = vld [vmem:[#allocation4 + $0x1b4] ss:$8 sps:$4 sm:$0xff]   ;;  %v846_v11 = vshrl.u32 %v702_v53, 16 }
  0x70   : > { %974 = vst [vmem:[#allocation3 + $0x38] sm:$0x1] %v973_v29  ;;  %904 = vst [vmem:[#allocation2 + $0x38] sm:$0xff] %v9264_v49  ;;  %v7369_v57 = vcombine.high %v9255_v34, %v9264_v49  ;;  %v7368_v58 = vcombine.low %v9255_v34, %v9264_v49  ;;  %v1050_v24 = vrot.slane %v9142_v45, 4  ;;  %v8274_v48 = vld [vmem:[%s11217_s7 + $0x90] ss:$8 sps:$4 sm:$0xff]  }
  0x71   : > { %2190 = vmatpush2.bf16.msra.mxu0 %v8239_v8  ;;  %731 = vst [vmem:[#allocation2 + $0x58] sm:$0x11] %v730_v4  ;;  %v733_v8 = vsel %vm9106_vm10, 0, %v732_v5  ;;  %v1724_v54 = vshll.u32 %v9154_v52, 16  ;;  %v8282_v4 = vld [vmem:[%s11217_s7 + $0x84] ss:$8 sps:$4 sm:$0xff]  }
  0x72   : > { %2376 = vmatpush1.bf16.msra.mxu1 %v8242_v38  ;;  %v1079_v38 = vshll.u32 %v949_v18, 16  ;;  %2191 = vmatprep.subr.bf16.mxu0 %v8247_v13  ;;  %734 = vst [vmem:[#allocation2 + $0x68] sm:$0x11] %v733_v8  ;;  %v9291_v13 = vrot.slane %v838_v7, 7  ;;  %v9297_v18 = vrot.slane %v846_v11, 7  ;;  %v1777_v45 = vshrl.u32 %v9264_v49, 16 }
  0x73   : > { %2377 = vmatprep.subr.bf16.mxu1 %v8250_v44  ;;  %v8254_v44 = vld [vmem:[#allocation4 + $0x1c4] ss:$8 sps:$4 sm:$0xff]   ;;  %v9353_v8 = vrot.slane %v1724_v54, 5  ;;  %v828_v54 = vrot.slane %v9224_v2, 4  ;;  %v8306_v2 = vld [vmem:[%s11217_s7 + $0x144] ss:$8 sps:$4 sm:$0xff]  }
  0x75   : > { %1657 = vmatmul.mubr.bf16.gmra.mxu1 %v7366_v62  ;;  %v1081_v62 = vor.u32 %v1079_v38, %v9259_v37  ;;  %2192 = vmatpush2.bf16.msra.mxu0 %v8245_v42  ;;  %v1710_v38 = vshll.u32 %v9147_v47, 16  ;;  %v8267_v42 = vld [vmem:[#allocation4 + $0x1a4] ss:$8 sps:$4 sm:$0xff]  }
  0x76   : > { %2378 = vmatpush1.bf16.msra.mxu1 %v8248_v10  ;;  %v8251_v55 = vld [vmem:[#allocation3 + $0x20] ss:$8 sps:$4 sm:$0xff]   ;;  %1666 = vmatprep.mubr.bf16.mxu1 %v7369_v57  ;;  %v841_v10 = vshll.u32 %v701_v51, 16  ;;  %v746_v51 = vld [vmem:[#allocation2 + $0x50] sm:$0x11] }
  0x77   : > { %2379 = vmatprep.subr.bf16.mxu1 %v8257_v14  ;;  %1394 = vmatmul.mubr.bf16.gmra.mxu0 %v8251_v55  ;;  %v849_v14 = vshll.u32 %v702_v53, 16  ;;  %v1144_v17 = vld [vmem:[#allocation3 + $0x38] sm:$0xf]  ;;  %v749_v53 = vld [vmem:[#allocation2 + $0x80] sm:$0x11]  ;;  %v812_v55 = vrot.slane %v9165_v63, 4 }
  0x78   : > { %2193 = vmatprep.subr.bf16.mxu0 %v8254_v44  ;;  %1403 = vmatprep.mubr.bf16.mxu0 %v11222_v0  ;;  %v1145_v25 = vsel %vm9085_vm6, %v1081_v62, %v1144_v17  ;;  %v843_v29 = vor.u32 %v841_v10, %v9291_v13  ;;  %v747_v47 = vsel %vm9306_vm0, 0, %v746_v51  ;;  %v750_v57 = vsel %vm9306_vm0, 0, %v749_v53  ;;  %v1818_v17 = vld [vmem:[#allocation3] sm:$0xf] }
  0x79   : > { %2194 = vmatpush2.bf16.msra.mxu0 %v8252_v56  ;;  %1146 = vst [vmem:[#allocation3 + $0x38] sm:$0xf] %v1145_v25  ;;  %v851_v44 = vor.u32 %v849_v14, %v9297_v18  ;;  %v908_v56 = vld [vmem:[#allocation2 + $0x58] sm:$0xff]  ;;  %v914_v60 = vld [vmem:[#allocation2 + $0x68] sm:$0xff]  ;;  %748 = vst [vmem:[#allocation2 + $0x50] sm:$0x11] %v747_v47 }
  0x7a   : > { %2380 = vmatpush1.bf16.msra.mxu1 %v8255_v16  ;;  %v1139_v16 = vsel %vm9085_vm6, %v1073_v59, %v1138_v12  ;;  %2195 = vmatprep.subr.bf16.mxu0 %v8260_v61  ;;  %v9336_v59 = vsel %vm9132_vm14, %v843_v29, %v908_v56  ;;  %v8273_v61 = vld [vmem:[#allocation4 + $0x194] ss:$8 sps:$4 sm:$0xff]   ;;  %751 = vst [vmem:[#allocation2 + $0x80] sm:$0x11] %v750_v57  ;;  %v1712_v5 = vrot.slane %v1710_v38, 5  ;;  %v820_v29 = vrot.slane %v9170_v9, 4 }
  0x7b   : > { %2381 = vmatprep.subr.bf16.mxu1 %v8263_v28  ;;  %1140 = vst [vmem:[#allocation3 + $0x30] sm:$0xf] %v1139_v16  ;;  %v8258_v28 = vld [vmem:[#allocation4 + $0x1b0] ss:$8 sps:$4 sm:$0xff]   ;;  %910 = vst [vmem:[#allocation2 + $0x58] sm:$0xff] %v9336_v59  ;;  %v9343_v62 = vsel %vm9132_vm14, %v851_v44, %v914_v60  ;;  %v1058_v44 = vrot.slane %v9192_v30, 4 }
  0x7c   : > { %916 = vst [vmem:[#allocation2 + $0x68] sm:$0xff] %v9343_v62  ;;  %v7371_v10 = vcombine.high %v9336_v59, %v9343_v62  ;;  %v7370_v11 = vcombine.low %v9336_v59, %v9343_v62  ;;  %v8271_v12 = vld [vmem:[#allocation4 + $0x190] ss:$8 sps:$4 sm:$0xff]   ;;  %v8288_v14 = vld [vmem:[%s11217_s7 + $0x174] ss:$8 sps:$4 sm:$0xff]   ;;  %v1066_v53 = vrot.slane %v9194_v36, 4 }
  0x7d   : > { %1667 = vmatmul.mubr.bf16.gmra.mxu1 %v7368_v58  ;;  %2196 = vmatpush2.bf16.msra.mxu0 %v8258_v28  ;;  %v8265_v58 = vld [vmem:[#allocation4 + $0x1a0] ss:$8 sps:$4 sm:$0xff]   ;;  %v981_v16 = vld [vmem:[#allocation3 + $0x4] sm:$0x1]  ;;  %v1835_v28 = vshrl.u32 %v1818_v17, 16 }
  0x7e   : > { %2382 = vmatpush1.bf16.msra.mxu1 %v8261_v50  ;;  %v1721_v50 = vshrl.u32 %v9154_v52, 16  ;;  %v9338_v52 = vrot.slane %v1707_v27, 4  ;;  %2197 = vmatprep.subr.bf16.mxu0 %v8267_v42  ;;  %v982_v27 = vsel %vm9070_vm4, 0, %v981_v16  ;;  %v9366_v38 = vld [vmem:[#allocation3 + $0xc] sm:$0x1]  ;;  %v1838_v42 = vshll.u32 %v1818_v17, 16 }
  0x7f   : > { %2383 = vmatprep.subr.bf16.mxu1 %v8270_v1  ;;  %v8280_v1 = vld [vmem:[%s11217_s7 + $0x80] ss:$8 sps:$4 sm:$0xff]   ;;  %1676 = vmatprep.mubr.bf16.mxu1 %v7371_v10  ;;  %983 = vst [vmem:[#allocation3 + $0x4] sm:$0x1] %v982_v27  ;;  %v8277_v56 = vld [vmem:[#allocation4 + $0x180] ss:$8 sps:$4 sm:$0xff]  }
  0x80   : > { %v9351_v7 = vrot.slane %v1721_v50, 4  ;;  %v1837_v50 = vrot.slane %v1835_v28, 4  ;;  %v1713_v47 = vor.u32 %v1712_v5, %v9338_v52  ;;  %v1840_v57 = vrot.slane %v1838_v42, 5  ;;  %v794_v60 = vld [vmem:[#allocation2 + $0x50] sm:$0x11] }
  0x81   : > { %2198 = vmatpush2.bf16.msra.mxu0 %v8265_v58  ;;  %v836_v58 = vrot.slane %v9226_v6, 4  ;;  %v881_v10 = vld [vmem:[#allocation2 + $0x80] sm:$0x11]  ;;  %v1858_v16 = vshll.u32 %v9366_v38, 16  ;;  %v1082_v28 = vrot.slane %v9259_v37, 4  ;;  %v1752_v42 = vshll.u32 %v9205_v41, 16 }
  0x82   : > { %2384 = vmatpush1.bf16.msra.mxu1 %v8268_v26  ;;  %v8264_v25 = vld [vmem:[#allocation3 + $0x30] ss:$8 sps:$4 sm:$0xff]   ;;  %v8279_v26 = vld [vmem:[#allocation4 + $0x184] ss:$8 sps:$4 sm:$0xff]   ;;  %2199 = vmatprep.subr.bf16.mxu0 %v8273_v61  ;;  %v795_v61 = vsel %vm9106_vm10, %v9300_v19, %v794_v60  ;;  %v882_v52 = vsel %vm9106_vm10, %v804_v15, %v881_v10  ;;  %v755_v17 = vld [vmem:[#allocation2 + $0x20] sm:$0x11] }
  0x83   : > { %2385 = vmatprep.subr.bf16.mxu1 %v8276_v32  ;;  %v1820_v32 = vld [vmem:[#allocation3 + $0x8] sm:$0xf]  ;;  %1404 = vmatmul.mubr.bf16.gmra.mxu0 %v8264_v25  ;;  %796 = vst [vmem:[#allocation2 + $0x50] sm:$0x11] %v795_v61  ;;  %883 = vst [vmem:[#allocation2 + $0x80] sm:$0x11] %v882_v52 }
  0x84   : > { %v1852_v51 = vshll.u32 %v1820_v32, 16  ;;  %v1738_v25 = vshll.u32 %v9201_v40, 16  ;;  %v1714_v27 = vrot.slane %v1713_v47, 4  ;;  %v756_v15 = vsel %vm9306_vm0, 0, %v755_v17 }
  0x85   : > { %1677 = vmatmul.mubr.bf16.gmra.mxu1 %v7370_v11  ;;  %v1727_v11 = vor.u32 %v9353_v8, %v9351_v7  ;;  %2200 = vmatpush2.bf16.msra.mxu0 %v8271_v12  ;;  %v1841_v7 = vor.u32 %v1840_v57, %v1837_v50  ;;  %v752_v8 = vld [vmem:[#allocation2 + $0x18] sm:$0x11]  ;;  %v1735_v12 = vshrl.u32 %v9201_v40, 16  ;;  %757 = vst [vmem:[#allocation2 + $0x20] sm:$0x11] %v756_v15  ;;  %v9407_v61 = vrot.slane %v1752_v42, 5 }
  0x86   : > { %2386 = vmatpush1.bf16.msra.mxu1 %v8274_v48  ;;  %v1849_v48 = vshrl.u32 %v1820_v32, 16  ;;  %2405 = vmatprep.mubr.bf16.mxu1 %v11222_v0  ;;  %v1854_v5 = vrot.slane %v1852_v51, 5  ;;  %v753_v20 = vsel %vm9306_vm0, 0, %v752_v8  ;;  %v1024_v32 = vld [vmem:[#allocation3 + $0x4] sm:$0x1]  ;;  %v9397_v51 = vrot.slane %v1858_v16, 5 }
  0x87   : > { %2387 = vmatprep.subr.bf16.mxu1 %v8282_v4  ;;  %2201 = vmatprep.subr.bf16.mxu0 %v8279_v26  ;;  %v1074_v26 = vrot.slane %v9257_v35, 4  ;;  %754 = vst [vmem:[#allocation2 + $0x18] sm:$0x11] %v753_v20  ;;  %v1728_v40 = vrot.slane %v1727_v11, 4  ;;  %v1025_v50 = vsel %vm9054_vm2, %v9300_v19, %v1024_v32  ;;  %v9399_v47 = vrot.slane %v1841_v7, 4 }
  0x88   : > { %v1851_v4 = vrot.slane %v1849_v48, 4  ;;  %1026 = vst [vmem:[#allocation3 + $0x4] sm:$0x1] %v1025_v50  ;;  %v9401_v57 = vrot.slane %v1735_v12, 4  ;;  %v9403_v60 = vrot.slane %v1738_v25, 5 }
  0x89   : > { %2202 = vmatpush2.bf16.msra.mxu0 %v8277_v56  ;;  %v990_v56 = vld [vmem:[#allocation3 + $0x1c] sm:$0x1]  ;;  %v1822_v11 = vld [vmem:[#allocation3 + $0x10] sm:$0xf]  ;;  %v8328_v35 = vld [vmem:[%s11217_s7 + $0x100] ss:$8 sps:$4 sm:$0xff]  }
  0x8a   : > { %2388 = vmatpush1.bf16.msra.mxu1 %v8280_v1  ;;  %v8285_v1 = vld [vmem:[#allocation4 + $0x274] ss:$8 sps:$4 sm:$0xff]   ;;  %v1855_v48 = vor.u32 %v1854_v5, %v1851_v4  ;;  %v991_v16 = vsel %vm9070_vm4, 0, %v990_v56  ;;  %v9413_v4 = vld [vmem:[#allocation2 + $0x50] sm:$0x11]  ;;  %v1863_v7 = vshrl.u32 %v1822_v11, 16 }
  0x8b   : > { %3004 = vmatprep.subr.bf16.mxu1 %v8288_v14  ;;  %v1749_v14 = vshrl.u32 %v9205_v41, 16  ;;  %2802 = vmatprep.subr.bf16.mxu0 %v8285_v1  ;;  %v987_v41 = vld [vmem:[#allocation3 + $0x14] sm:$0x1]  ;;  %v1824_v1 = vld [vmem:[#allocation3 + $0x18] sm:$0xf]  ;;  %v1866_v8 = vshll.u32 %v1822_v11, 16 }
  0x8c   : > { %v988_v52 = vsel %vm9070_vm4, 0, %v987_v41  ;;  %v9415_v5 = vld [vmem:[#allocation2 + $0x80] sm:$0x11]  ;;  %992 = vst [vmem:[#allocation3 + $0x1c] sm:$0x1] %v991_v16  ;;  %v1716_v17 = vshll.u32 %v9413_v4, 16 }
  0x8d   : > { %v9405_v10 = vrot.slane %v1749_v14, 4  ;;  %989 = vst [vmem:[#allocation3 + $0x14] sm:$0x1] %v988_v52  ;;  %v1730_v12 = vshll.u32 %v9415_v5, 16  ;;  %v1856_v25 = vrot.slane %v1855_v48, 4  ;;  %v1877_v20 = vshrl.u32 %v1824_v1, 16 }
  0x8e   : > { %v887_v14 = vld [vmem:[#allocation2 + $0x18] sm:$0x11]  ;;  %v893_v32 = vld [vmem:[#allocation2 + $0x20] sm:$0x11]  ;;  %v1865_v42 = vrot.slane %v1863_v7, 4  ;;  %v1868_v50 = vrot.slane %v1866_v8, 5  ;;  %v1741_v7 = vor.u32 %v9403_v60, %v9401_v57 }
  0x8f   : > { %v1718_v41 = vrot.slane %v1716_v17, 5  ;;  %v1732_v56 = vrot.slane %v1730_v12, 5  ;;  %v888_v11 = vsel %vm9106_vm10, %v812_v55, %v887_v14  ;;  %v894_v48 = vsel %vm9106_vm10, %v820_v29, %v893_v32  ;;  %v8283_v52 = vld [vmem:[#allocation4 + $0x270] ss:$8 sps:$4 sm:$0xff]   ;;  %v9433_v16 = vld [vmem:[#allocation3 + $0x4] sm:$0x1] }
  0x90   : > { %889 = vst [vmem:[#allocation2 + $0x18] sm:$0x11] %v888_v11  ;;  %895 = vst [vmem:[#allocation2 + $0x20] sm:$0x11] %v894_v48  ;;  %v1755_v8 = vor.u32 %v9407_v61, %v9405_v10  ;;  %v1869_v63 = vor.u32 %v1868_v50, %v1865_v42  ;;  %v1880_v17 = vshll.u32 %v1824_v1, 16  ;;  %v1844_v29 = vshll.u32 %v9433_v16, 16 }
  0x91   : > { %v1719_v55 = vsel %vm9421_vm5, %v1714_v27, %v1718_v41  ;;  %v1733_v9 = vsel %vm9421_vm5, %v1728_v40, %v1732_v56  ;;  %v8291_v12 = vld [vmem:[#allocation4 + $0x264] ss:$8 sps:$4 sm:$0xff]   ;;  %v9444_v14 = vrot.slane %v1877_v20, 4  ;;  %v761_v60 = vld [vmem:[#allocation2 + $0x28] sm:$0x11]  ;;  %v1763_v10 = vshrl.u32 %v9255_v34, 16 }
  0x92   : > { %v758_v32 = vld [vmem:[#allocation2 + $0x98] sm:$0x11]  ;;  %v7404_v11 = vcombine.low %v1719_v55, %v1733_v9  ;;  %v7405_v48 = vcombine.high %v1719_v55, %v1733_v9  ;;  %v1882_v57 = vrot.slane %v1880_v17, 5  ;;  %v1846_v27 = vrot.slane %v1844_v29, 5  ;;  %v8294_v41 = vld [vmem:[%s11217_s7 + $0x164] ss:$8 sps:$4 sm:$0xff]  }
  0x93   : > { %v8286_v61 = vld [vmem:[%s11217_s7 + $0x170] ss:$8 sps:$4 sm:$0xff]   ;;  %v1861_v40 = vsel %vm9421_vm5, %v1856_v25, %v9397_v51  ;;  %v1123_v42 = vld [vmem:[#allocation3 + $0x1c] sm:$0x1]  ;;  %v759_v20 = vsel %vm9306_vm0, 0, %v758_v32  ;;  %v762_v25 = vsel %vm9306_vm0, 0, %v761_v60 }
  0x94   : > { %v1117_v1 = vld [vmem:[#allocation3 + $0x14] sm:$0x1]  ;;  %2203 = vmatprep.mubr.bf16.mxu0 %v7405_v48  ;;  %v8289_v50 = vld [vmem:[#allocation4 + $0x260] ss:$8 sps:$4 sm:$0xff]   ;;  %v1124_v51 = vsel %vm9054_vm2, %v1050_v24, %v1123_v42  ;;  %760 = vst [vmem:[#allocation2 + $0x98] sm:$0x11] %v759_v20  ;;  %v1847_v17 = vsel %vm9421_vm5, %v9399_v47, %v1846_v27  ;;  %v1883_v34 = vor.u32 %v1882_v57, %v9444_v14 }
  0x95   : > { %v1118_v56 = vsel %vm9054_vm2, %v1042_v22, %v1117_v1  ;;  %2204 = vmatmul.mubr.bf16.vlgmr.msra.gmra.mxu0 %v7404_v11  ;;  %v1742_v55 = vrot.slane %v1741_v7, 4  ;;  %v8297_v9 = vld [vmem:[#allocation4 + $0x254] ss:$8 sps:$4 sm:$0xff]   ;;  %1125 = vst [vmem:[#allocation3 + $0x1c] sm:$0x1] %v1124_v51  ;;  %v7460_v22 = vcombine.low %v1847_v17, %v1861_v40  ;;  %v1756_v24 = vrot.slane %v1755_v8, 4 }
  0x96   : > { %1119 = vst [vmem:[#allocation3 + $0x14] sm:$0x1] %v1118_v56  ;;  %763 = vst [vmem:[#allocation2 + $0x28] sm:$0x11] %v762_v25  ;;  %2803 = vmatpush1.bf16.msra.mxu0 %v8283_v52  ;;  %v9473_v29 = vrot.slane %v1869_v63, 4  ;;  %v1780_v32 = vshll.u32 %v9264_v49, 16 }
  0x97   : > { %v993_v11 = vld [vmem:[#allocation3 + $0x24] sm:$0x1]  ;;  %2804 = vmatprep.subr.bf16.mxu0 %v8291_v12  ;;  %v8292_v47 = vld [vmem:[%s11217_s7 + $0x160] ss:$8 sps:$4 sm:$0xff]   ;;  %v9479_v7 = vld [vmem:[#allocation2 + $0x18] sm:$0x11]  ;;  %2406 = vmatmul.mubr.bf16.vlgmr.msra.gmra.mxu1 %v7460_v22 }
  0x98   : > { %v9481_v48 = vld [vmem:[#allocation2 + $0x20] sm:$0x11]  ;;  %v9484_v60 = vrot.slane %v1763_v10, 4  ;;  %v9486_v52 = vrot.slane %v1766_v39, 5  ;;  %v1744_v8 = vshll.u32 %v9479_v7, 16  ;;  %v9493_v27 = vrot.slane %v1777_v45, 4  ;;  %3005 = vmatpush1.bf16.msra.mxu1 %v8286_v61  ;;  %2415 = vmatprep.mubr.bf16.mxu1 %v11222_v0 }
  0x99   : > { %v1758_v49 = vshll.u32 %v9481_v48, 16  ;;  %v8295_v63 = vld [vmem:[#allocation4 + $0x250] ss:$8 sps:$4 sm:$0xff]   ;;  %v8300_v12 = vld [vmem:[%s11217_s7 + $0x154] ss:$8 sps:$4 sm:$0xff]   ;;  %v994_v40 = vsel %vm9070_vm4, 0, %v993_v11  ;;  %3006 = vmatprep.subr.bf16.mxu1 %v8294_v41 }
  0x9a   : > { %v996_v14 = vld [vmem:[#allocation3 + $0x2c] sm:$0x1]  ;;  %v8303_v57 = vld [vmem:[#allocation4 + $0x244] ss:$8 sps:$4 sm:$0xff]   ;;  %995 = vst [vmem:[#allocation3 + $0x24] sm:$0x1] %v994_v40  ;;  %2805 = vmatpush1.bf16.msra.mxu0 %v8289_v50 }
  0x9b   : > { %v997_v10 = vsel %vm9070_vm4, 0, %v996_v14  ;;  %v1826_v1 = vld [vmem:[#allocation3 + $0x20] sm:$0xf]  ;;  %v1828_v42 = vld [vmem:[#allocation3 + $0x28] sm:$0xf]  ;;  %v1746_v20 = vrot.slane %v1744_v8, 5  ;;  %2806 = vmatprep.subr.bf16.mxu0 %v8297_v9  ;;  %v1769_v8 = vor.u32 %v9486_v52, %v9484_v60 }
  0x9c   : > { %v1760_v56 = vrot.slane %v1758_v49, 5  ;;  %v1782_v51 = vrot.slane %v1780_v32, 5  ;;  %998 = vst [vmem:[#allocation3 + $0x2c] sm:$0x1] %v997_v10  ;;  %v1891_v25 = vshrl.u32 %v1826_v1, 16  ;;  %v1884_v17 = vrot.slane %v1883_v34, 4  ;;  %3007 = vmatpush1.bf16.msra.mxu1 %v8292_v47 }
  0x9d   : > { %v8298_v61 = vld [vmem:[%s11217_s7 + $0x150] ss:$8 sps:$4 sm:$0xff]   ;;  %v1894_v45 = vshll.u32 %v1826_v1, 16  ;;  %v1905_v22 = vshrl.u32 %v1828_v42, 16  ;;  %v1908_v11 = vshll.u32 %v1828_v42, 16  ;;  %v1747_v40 = vsel %vm9421_vm5, %v1742_v55, %v1746_v20  ;;  %3008 = vmatprep.subr.bf16.mxu1 %v8300_v12 }
  0x9e   : > { %v899_v39 = vld [vmem:[#allocation2 + $0x98] sm:$0x11]  ;;  %v1761_v50 = vsel %vm9421_vm5, %v1756_v24, %v1760_v56  ;;  %v9507_v41 = vld [vmem:[#allocation3 + $0x14] sm:$0x1]  ;;  %v905_v34 = vld [vmem:[#allocation2 + $0x28] sm:$0x11]  ;;  %2807 = vmatpush1.bf16.msra.mxu0 %v8295_v63  ;;  %v1783_v47 = vor.u32 %v1782_v51, %v9493_v27 }
  0x9f   : > { %v9509_v32 = vld [vmem:[#allocation3 + $0x1c] sm:$0x1]  ;;  %v900_v9 = vsel %vm9106_vm10, %v828_v54, %v899_v39  ;;  %v7407_v49 = vcombine.high %v1747_v40, %v1761_v50  ;;  %v7406_v14 = vcombine.low %v1747_v40, %v1761_v50  ;;  %v1872_v55 = vshll.u32 %v9507_v41, 16  ;;  %v8301_v10 = vld [vmem:[#allocation4 + $0x240] ss:$8 sps:$4 sm:$0xff]   ;;  %2808 = vmatprep.subr.bf16.mxu0 %v8303_v57 }
  0xa0   : > { %v1886_v24 = vshll.u32 %v9509_v32, 16  ;;  %901 = vst [vmem:[#allocation2 + $0x98] sm:$0x11] %v900_v9  ;;  %v906_v54 = vsel %vm9106_vm10, %v836_v58, %v905_v34  ;;  %v1893_v60 = vrot.slane %v1891_v25, 4  ;;  %v1896_v52 = vrot.slane %v1894_v45, 5  ;;  %3009 = vmatpush1.bf16.msra.mxu1 %v8298_v61 }
  0xa1   : > { %2213 = vmatprep.mubr.bf16.mxu0 %v7407_v49  ;;  %v1874_v1 = vrot.slane %v1872_v55, 5  ;;  %v8304_v63 = vld [vmem:[%s11217_s7 + $0x140] ss:$8 sps:$4 sm:$0xff]   ;;  %907 = vst [vmem:[#allocation2 + $0x28] sm:$0x11] %v906_v54  ;;  %v1907_v20 = vrot.slane %v1905_v22, 4  ;;  %3010 = vmatprep.subr.bf16.mxu1 %v8306_v2 }
  0xa2   : > { %v1888_v42 = vrot.slane %v1886_v24, 5  ;;  %v8309_v12 = vld [vmem:[#allocation4 + $0x234] ss:$8 sps:$4 sm:$0xff]   ;;  %v1910_v56 = vrot.slane %v1908_v11, 5  ;;  %2214 = vmatmul.mubr.bf16.gmra.mxu0 %v7406_v14  ;;  %v1897_v39 = vor.u32 %v1896_v52, %v1893_v60  ;;  %v767_v40 = vld [vmem:[#allocation2 + $0x90] sm:$0x11] }
  0xa3   : > { %v1129_v6 = vld [vmem:[#allocation3 + $0x24] sm:$0x1]  ;;  %v844_v27 = vrot.slane %v9291_v13, 4  ;;  %v1875_v51 = vsel %vm9421_vm5, %v9473_v29, %v1874_v1  ;;  %v8307_v25 = vld [vmem:[#allocation4 + $0x230] ss:$8 sps:$4 sm:$0xff]   ;;  %2809 = vmatpush1.bf16.msra.mxu0 %v8301_v10  ;;  %v1784_v9 = vrot.slane %v1783_v47, 4 }
  0xa4   : > { %v764_v58 = vld [vmem:[#allocation2 + $0x40] sm:$0x11]  ;;  %v1889_v57 = vsel %vm9421_vm5, %v1884_v17, %v1888_v42  ;;  %v1130_v45 = vsel %vm9054_vm2, %v1058_v44, %v1129_v6  ;;  %v1135_v22 = vld [vmem:[#allocation3 + $0x2c] sm:$0x1]  ;;  %v8312_v50 = vld [vmem:[%s11217_s7 + $0x134] ss:$8 sps:$4 sm:$0xff]   ;;  %v1911_v61 = vor.u32 %v1910_v56, %v1907_v20  ;;  %2810 = vmatprep.subr.bf16.mxu0 %v8309_v12  ;;  %3011 = vmatpush1.bf16.msra.mxu1 %v8304_v63 }
  0xa5   : > { %v7461_v11 = vcombine.low %v1875_v51, %v1889_v57  ;;  %1131 = vst [vmem:[#allocation3 + $0x24] sm:$0x1] %v1130_v45  ;;  %v1136_v29 = vsel %vm9054_vm2, %v1066_v53, %v1135_v22  ;;  %v765_v30 = vsel %vm9306_vm0, 0, %v764_v58  ;;  %v852_v44 = vrot.slane %v9297_v18, 4  ;;  %v8310_v34 = vld [vmem:[%s11217_s7 + $0x130] ss:$8 sps:$4 sm:$0xff]   ;;  %3012 = vmatprep.subr.bf16.mxu1 %v8312_v50 }
  0xa6   : > { %v1770_v17 = vrot.slane %v1769_v8, 4  ;;  %1137 = vst [vmem:[#allocation3 + $0x2c] sm:$0x1] %v1136_v29  ;;  %v8315_v49 = vld [vmem:[#allocation4 + $0x224] ss:$8 sps:$4 sm:$0xff]   ;;  %v768_v36 = vsel %vm9306_vm0, 0, %v767_v40 }
  0xa7   : > { %766 = vst [vmem:[#allocation2 + $0x40] sm:$0x11] %v765_v30  ;;  %2416 = vmatmul.mubr.bf16.gmra.mxu1 %v7461_v11  ;;  %v9555_v53 = vld [vmem:[#allocation2 + $0x98] sm:$0x11]  ;;  %v9557_v14 = vrot.slane %v1897_v39, 4  ;;  %v1791_v24 = vshrl.u32 %v9336_v59, 16  ;;  %2811 = vmatpush1.bf16.msra.mxu0 %v8307_v25 }
  0xa8   : > { %v8313_v55 = vld [vmem:[#allocation4 + $0x220] ss:$8 sps:$4 sm:$0xff]   ;;  %v8318_v8 = vld [vmem:[%s11217_s7 + $0x124] ss:$8 sps:$4 sm:$0xff]   ;;  %769 = vst [vmem:[#allocation2 + $0x90] sm:$0x11] %v768_v36  ;;  %2425 = vmatprep.mubr.bf16.mxu1 %v11222_v0  ;;  %2812 = vmatprep.subr.bf16.mxu0 %v8315_v49 }
  0xa9   : > { %v1794_v10 = vshll.u32 %v9336_v59, 16  ;;  %v1805_v2 = vshrl.u32 %v9343_v62, 16  ;;  %v1772_v54 = vshll.u32 %v9555_v53, 16  ;;  %v8321_v47 = vld [vmem:[#allocation4 + $0x214] ss:$8 sps:$4 sm:$0xff]   ;;  %v1912_v1 = vrot.slane %v1911_v61, 4  ;;  %3013 = vmatpush1.bf16.msra.mxu1 %v8310_v34 }
  0xaa   : > { %v999_v60 = vld [vmem:[#allocation3 + $0x34] sm:$0x1]  ;;  %v9567_v52 = vld [vmem:[#allocation2 + $0x28] sm:$0x11]  ;;  %v1808_v42 = vshll.u32 %v9343_v62, 16  ;;  %v9576_v39 = vrot.slane %v1791_v24, 4  ;;  %3014 = vmatprep.subr.bf16.mxu1 %v8318_v8 }
  0xab   : > { %v1000_v12 = vsel %vm9070_vm4, 0, %v999_v60  ;;  %v1774_v59 = vrot.slane %v1772_v54, 5  ;;  %v1786_v20 = vshll.u32 %v9567_v52, 16  ;;  %v8316_v63 = vld [vmem:[%s11217_s7 + $0x120] ss:$8 sps:$4 sm:$0xff]   ;;  %v9578_v58 = vrot.slane %v1794_v10, 5  ;;  %2813 = vmatpush1.bf16.msra.mxu0 %v8313_v55 }
  0xac   : > { %1001 = vst [vmem:[#allocation3 + $0x34] sm:$0x1] %v1000_v12  ;;  %v1002_v56 = vld [vmem:[#allocation3 + $0x3c] sm:$0x1]  ;;  %v1830_v6 = vld [vmem:[#allocation3 + $0x30] sm:$0xf]  ;;  %2814 = vmatprep.subr.bf16.mxu0 %v8321_v47 }
  0xad   : > { %v9580_v40 = vrot.slane %v1805_v2, 4  ;;  %v8324_v62 = vld [vmem:[%s11217_s7 + $0x114] ss:$8 sps:$4 sm:$0xff]   ;;  %v1003_v51 = vsel %vm9070_vm4, 0, %v1002_v56  ;;  %v1775_v57 = vsel %vm9421_vm5, %v1770_v17, %v1774_v59  ;;  %v1788_v25 = vrot.slane %v1786_v20, 5  ;;  %3015 = vmatpush1.bf16.msra.mxu1 %v8316_v63 }
  0xae   : > { %v9589_v45 = vld [vmem:[#allocation3 + $0x24] sm:$0x1]  ;;  %1004 = vst [vmem:[#allocation3 + $0x3c] sm:$0x1] %v1003_v51  ;;  %v1832_v22 = vld [vmem:[#allocation3 + $0x38] sm:$0xf]  ;;  %3016 = vmatprep.subr.bf16.mxu1 %v8324_v62 }
  0xaf   : > { %v9591_v11 = vld [vmem:[#allocation3 + $0x2c] sm:$0x1]  ;;  %v1900_v50 = vshll.u32 %v9589_v45, 16  ;;  %v911_v29 = vld [vmem:[#allocation2 + $0x40] sm:$0x11]  ;;  %v1919_v61 = vshrl.u32 %v1830_v6, 16  ;;  %v1789_v30 = vsel %vm9421_vm5, %v1784_v9, %v1788_v25 }
  0xb0   : > { %v1914_v49 = vshll.u32 %v9591_v11, 16  ;;  %v912_v17 = vsel %vm9106_vm10, %v844_v27, %v911_v29  ;;  %v917_v34 = vld [vmem:[#allocation2 + $0x90] sm:$0x11]  ;;  %v1922_v36 = vshll.u32 %v1830_v6, 16  ;;  %v7409_v24 = vcombine.high %v1775_v57, %v1789_v30  ;;  %v8319_v9 = vld [vmem:[#allocation4 + $0x210] ss:$8 sps:$4 sm:$0xff]  }
  0xb1   : > { %v7408_v10 = vcombine.low %v1775_v57, %v1789_v30  ;;  %v1902_v2 = vrot.slane %v1900_v50, 5  ;;  %913 = vst [vmem:[#allocation2 + $0x40] sm:$0x11] %v912_v17  ;;  %v918_v55 = vsel %vm9106_vm10, %v852_v44, %v917_v34  ;;  %v8322_v13 = vld [vmem:[%s11217_s7 + $0x110] ss:$8 sps:$4 sm:$0xff]   ;;  %v1810_v27 = vrot.slane %v1808_v42, 5  ;;  %2815 = vmatpush1.bf16.msra.mxu0 %v8319_v9 }
  0xb2   : > { %v1916_v8 = vrot.slane %v1914_v49, 5  ;;  %919 = vst [vmem:[#allocation2 + $0x90] sm:$0x11] %v918_v55  ;;  %v1933_v54 = vshrl.u32 %v1832_v22, 16  ;;  %v1936_v47 = vshll.u32 %v1832_v22, 16  ;;  %2223 = vmatprep.mubr.bf16.mxu0 %v7409_v24  ;;  %v1797_v42 = vor.u32 %v9578_v58, %v9576_v39  ;;  %3017 = vmatpush1.bf16.msra.mxu1 %v8322_v13 }
  0xb3   : > { %v8327_v60 = vld [vmem:[#allocation4 + $0x204] ss:$8 sps:$4 sm:$0xff]   ;;  %v1903_v18 = vsel %vm9421_vm5, %v9557_v14, %v1902_v2  ;;  %v8330_v44 = vld [vmem:[%s11217_s7 + $0x104] ss:$8 sps:$4 sm:$0xff]   ;;  %2224 = vmatmul.mubr.bf16.gmra.mxu0 %v7408_v10  ;;  %v1921_v56 = vrot.slane %v1919_v61, 4  ;;  %v1924_v6 = vrot.slane %v1922_v36, 5  ;;  %v1811_v51 = vor.u32 %v1810_v27, %v9580_v40 }
  0xb4   : > { %v1141_v12 = vld [vmem:[#allocation3 + $0x34] sm:$0x1]  ;;  %v1917_v59 = vsel %vm9421_vm5, %v1912_v1, %v1916_v8  ;;  %v8325_v62 = vld [vmem:[#allocation4 + $0x200] ss:$8 sps:$4 sm:$0xff]   ;;  %v1935_v39 = vrot.slane %v1933_v54, 4  ;;  %v1938_v58 = vrot.slane %v1936_v47, 5  ;;  %2816 = vmatprep.subr.bf16.mxu0 %v8327_v60  ;;  %3018 = vmatprep.subr.bf16.mxu1 %v8330_v44 }
  0xb5   : > { %v1142_v20 = vsel %vm9054_vm2, %v1074_v26, %v1141_v12  ;;  %v7462_v63 = vcombine.low %v1903_v18, %v1917_v59  ;;  %v1147_v14 = vld [vmem:[#allocation3 + $0x3c] sm:$0x1]  ;;  %v8333_v26 = vld [vmem:[#allocation4 + $0x2f4] ss:$8 sps:$4 sm:$0xff]   ;;  %v1798_v40 = vrot.slane %v1797_v42, 4  ;;  %v1925_v22 = vor.u32 %v1924_v6, %v1921_v56  ;;  %2817 = vmatpush1.bf16.msra.mxu0 %v8325_v62 }
  0xb6   : > { %1143 = vst [vmem:[#allocation3 + $0x34] sm:$0x1] %v1142_v20  ;;  %v1148_v1 = vsel %vm9054_vm2, %v1082_v28, %v1147_v14  ;;  %v8336_v57 = vld [vmem:[#allocation4 + $0x374] ss:$8 sps:$4 sm:$0xff]   ;;  %v8331_v50 = vld [vmem:[#allocation4 + $0x2f0] ss:$8 sps:$4 sm:$0xff]   ;;  %v1939_v30 = vor.u32 %v1938_v58, %v1935_v39  ;;  %3019 = vmatpush1.bf16.msra.mxu1 %v8328_v35  ;;  %2818 = vmatprep.subr.bf16.mxu0 %v8333_v26 }
  0xb7   : > { %2426 = vmatmul.mubr.bf16.gmra.mxu1 %v7462_v63  ;;  %1149 = vst [vmem:[#allocation3 + $0x3c] sm:$0x1] %v1148_v1  ;;  %v1812_v29 = vrot.slane %v1811_v51, 4  ;;  %v8339_v49 = vld [vmem:[#allocation4 + $0x2e4] ss:$8 sps:$4 sm:$0xff]   ;;  %3342 = vmatprep.subr.bf16.mxu1 %v8336_v57  ;;  %v1926_v10 = vrot.slane %v1925_v22, 4 }
  0xb8   : > { %v9630_v25 = vld [vmem:[#allocation2 + $0x40] sm:$0x11]  ;;  %2435 = vmatprep.mubr.bf16.mxu1 %v11222_v0  ;;  %v8337_v55 = vld [vmem:[#allocation4 + $0x2e0] ss:$8 sps:$4 sm:$0xff]   ;;  %v1940_v8 = vrot.slane %v1939_v30, 4  ;;  %v2547_v63 = vrot.slane %v9433_v16, 5 }
  0xb9   : > { %v9633_v37 = vld [vmem:[#allocation2 + $0x90] sm:$0x11]  ;;  %v1800_v28 = vshll.u32 %v9630_v25, 16  ;;  %2819 = vmatpush2.bf16.msra.mxu0 %v8331_v50  ;;  %v8345_v27 = vld [vmem:[#allocation4 + $0x2d4] ss:$8 sps:$4 sm:$0xff]   ;;  %v2551_v51 = vrot.slane %v9366_v38, 5 }
  0xba   : > { %v1814_v61 = vshll.u32 %v9633_v37, 16  ;;  %2820 = vmatprep.subr.bf16.mxu0 %v8339_v49  ;;  %v2521_v12 = vld [vmem:[#allocation3] sm:$0xe]  ;;  %v2522_v44 = vld [vmem:[#allocation3 + $0x8] sm:$0xe]  ;;  %v11259_v39 = vmov 0 }
  0xbb   : > { %v1802_v17 = vrot.slane %v1800_v28, 5  ;;  %v8343_v20 = vld [vmem:[#allocation4 + $0x2d0] ss:$8 sps:$4 sm:$0xff]   ;;  %v8351_v14 = vld [vmem:[#allocation4 + $0x2c4] ss:$8 sps:$4 sm:$0xff]   ;;  %v7488_v6 = vrot.slane %v2521_v12, 9 }
  0xbc   : > { %v1816_v34 = vrot.slane %v1814_v61, 5  ;;  %v7489_v62 = vrot.slane %v2522_v44, 9  ;;  %v11260_v39 = vsel %vm9653_vm9, 4294967295, %v11259_v39  ;;  %v8349_v58 = vld [vmem:[#allocation4 + $0x2c0] ss:$8 sps:$4 sm:$0xff]   ;;  %v2491_v22 = vrot.slane %v9413_v4, 5 }
  0xbd   : > { %v9637_v36 = vld [vmem:[#allocation3 + $0x34] sm:$0x1]  ;;  %v1803_v24 = vsel %vm9421_vm5, %v1798_v40, %v1802_v17  ;;  %2821 = vmatpush2.bf16.msra.mxu0 %v8337_v55  ;;  %11261 = vst [vmem:[#allocation13_spill] sm:$0xff] %v11260_v39  ;;  %v8357_v35 = vld [vmem:[#allocation4 + $0x2b4] ss:$8 sps:$4 sm:$0xff]   ;;  %v2548_v16 = vsel %vm9653_vm9, %v7488_v6, %v2547_v63  ;;  %v2495_v50 = vrot.slane %v9415_v5, 5 }
  0xbe   : > { %v1928_v2 = vshll.u32 %v9637_v36, 16  ;;  %v1817_v9 = vsel %vm9421_vm5, %v1812_v29, %v1816_v34  ;;  %v9644_v13 = vld [vmem:[#allocation3 + $0x3c] sm:$0x1]  ;;  %2822 = vmatprep.subr.bf16.mxu0 %v8345_v27  ;;  %v2552_v26 = vsel %vm9653_vm9, %v7489_v62, %v2551_v51  ;;  %v8334_v57 = vld [vmem:[#allocation4 + $0x370] ss:$8 sps:$4 sm:$0xff]   ;;  %v2555_v27 = vrot.slane %v9507_v41, 5 }
  0xbf   : > { %v7411_v54 = vcombine.high %v1803_v24, %v1817_v9  ;;  %v7410_v47 = vcombine.low %v1803_v24, %v1817_v9  ;;  %v1942_v18 = vshll.u32 %v9644_v13, 16  ;;  %v8355_v38 = vld [vmem:[#allocation4 + $0x2b0] ss:$8 sps:$4 sm:$0xff]   ;;  %v7552_v40 = vcombine.low %v2548_v16, %v2552_v26  ;;  %v8363_v28 = vld [vmem:[#allocation4 + $0x2a4] ss:$8 sps:$4 sm:$0xff]  }
  0xc0   : > { %v1930_v60 = vrot.slane %v1928_v2, 5  ;;  %v2462_v29 = vld [vmem:[#allocation2] sm:$0xee]  ;;  %v2463_v61 = vld [vmem:[#allocation2 + $0x70] sm:$0xee]  ;;  %v2499_v9 = vrot.slane %v9479_v7, 5 }
  0xc1   : > { %2233 = vmatprep.mubr.bf16.mxu0 %v7411_v54  ;;  %v1944_v42 = vrot.slane %v1942_v18, 5  ;;  %2823 = vmatpush2.bf16.msra.mxu0 %v8343_v20  ;;  %v8342_v30 = vld [vmem:[#allocation4 + $0x364] ss:$8 sps:$4 sm:$0xff]   ;;  %v7480_v49 = vrot.slane %v2462_v29, 9  ;;  %v7481_v17 = vrot.slane %v2463_v61, 9  ;;  %v2507_v16 = vrot.slane %v9555_v53, 5 }
  0xc2   : > { %v1931_v59 = vsel %vm9421_vm5, %v1926_v10, %v1930_v60  ;;  %2234 = vmatmul.mubr.bf16.gmra.mxu0 %v7410_v47  ;;  %2824 = vmatprep.subr.bf16.mxu0 %v8351_v14  ;;  %v8340_v34 = vld [vmem:[#allocation4 + $0x360] ss:$8 sps:$4 sm:$0xff]   ;;  %v8369_v10 = vld [vmem:[#allocation4 + $0x294] ss:$8 sps:$4 sm:$0xff]   ;;  %v8367_v54 = vld [vmem:[#allocation4 + $0x290] ss:$8 sps:$4 sm:$0xff]  }
  0xc3   : > { %v1945_v56 = vsel %vm9421_vm5, %v1940_v8, %v1944_v42  ;;  %v8361_v24 = vld [vmem:[#allocation4 + $0x2a0] ss:$8 sps:$4 sm:$0xff]   ;;  %v9666_v2 = vsel %vm9653_vm9, %v7480_v49, %v2491_v22  ;;  %v9670_v4 = vsel %vm9653_vm9, %v7481_v17, %v2495_v50  ;;  %v8348_v5 = vld [vmem:[#allocation4 + $0x354] ss:$8 sps:$4 sm:$0xff]   ;;  %v2503_v8 = vrot.slane %v9481_v48, 5 }
  0xc4   : > { %v7463_v1 = vcombine.low %v1931_v59, %v1945_v56  ;;  %v7497_v55 = vcombine.high %v9666_v2, %v9670_v4  ;;  %v8375_v47 = vld [vmem:[#allocation4 + $0x284] ss:$8 sps:$4 sm:$0xff]   ;;  %v2559_v60 = vrot.slane %v9509_v32, 5  ;;  %v2464_v18 = vld [vmem:[#allocation2 + $0x8] sm:$0xee]  ;;  %v2511_v26 = vrot.slane %v9567_v52, 5 }
  0xc5   : > { %2825 = vmatpush2.bf16.msra.mxu0 %v8349_v58  ;;  %v2465_v12 = vld [vmem:[#allocation2 + $0x30] sm:$0xee]  ;;  %v7482_v59 = vrot.slane %v2464_v18, 9  ;;  %v2524_v7 = vld [vmem:[#allocation3 + $0x18] sm:$0xe] }
  0xc6   : > { %2436 = vmatmul.mubr.bf16.gmra.mxu1 %v7463_v1  ;;  %2826 = vmatprep.subr.bf16.mxu0 %v8357_v35  ;;  %v2523_v44 = vld [vmem:[#allocation3 + $0x10] sm:$0xe]  ;;  %v7483_v42 = vrot.slane %v2465_v12, 9  ;;  %v8346_v48 = vld [vmem:[#allocation4 + $0x350] ss:$8 sps:$4 sm:$0xff]   ;;  %v7491_v63 = vrot.slane %v2524_v7, 9 }
  0xc7   : > { %3036 = vmatprep.mubr.bf16.mxu1 %v11222_v0  ;;  %2834 = vmatprep.mubr.bf16.mxu0 %v7497_v55  ;;  %v7490_v20 = vrot.slane %v2523_v44, 9  ;;  %v8354_v41 = vld [vmem:[#allocation4 + $0x344] ss:$8 sps:$4 sm:$0xff]   ;;  %v8352_v56 = vld [vmem:[#allocation4 + $0x340] ss:$8 sps:$4 sm:$0xff]   ;;  %v9688_v1 = vsel %vm9653_vm9, %v7482_v59, %v2499_v9 }
  0xc8   : > { %v8373_v32 = vld [vmem:[#allocation4 + $0x280] ss:$8 sps:$4 sm:$0xff]   ;;  %v2560_v6 = vsel %vm9653_vm9, %v7491_v63, %v2559_v60  ;;  %v8360_v62 = vld [vmem:[#allocation4 + $0x334] ss:$8 sps:$4 sm:$0xff]   ;;  %v8384_v51 = vld [vmem:[%s11217_s7 + $0x1f4] ss:$8 sps:$4 sm:$0xff]   ;;  %v9692_v58 = vsel %vm9653_vm9, %v7483_v42, %v2503_v8 }
  0xc9   : > { %2827 = vmatpush2.bf16.msra.mxu0 %v8355_v38  ;;  %v2556_v14 = vsel %vm9653_vm9, %v7490_v20, %v2555_v27  ;;  %v2567_v38 = vrot.slane %v9591_v11, 5  ;;  %v2467_v22 = vld [vmem:[#allocation2 + $0x38] sm:$0xee]  ;;  %v2525_v50 = vld [vmem:[#allocation3 + $0x20] sm:$0xe]  ;;  %v7499_v53 = vcombine.high %v9688_v1, %v9692_v58  ;;  %v2571_v27 = vrot.slane %v9637_v36, 5 }
  0xca   : > { %2828 = vmatprep.subr.bf16.mxu0 %v8363_v28  ;;  %v7553_v35 = vcombine.low %v2556_v14, %v2560_v6  ;;  %v2466_v28 = vld [vmem:[#allocation2 + $0x60] sm:$0xee]  ;;  %v8382_v29 = vld [vmem:[%s11217_s7 + $0x1f0] ss:$8 sps:$4 sm:$0xff]   ;;  %v2526_v52 = vld [vmem:[#allocation3 + $0x28] sm:$0xe]  ;;  %v7498_v44 = vcombine.low %v9688_v1, %v9692_v58 }
  0xcb   : > { %v8390_v11 = vld [vmem:[%s11217_s7 + $0x1e4] ss:$8 sps:$4 sm:$0xff]   ;;  %v7484_v61 = vrot.slane %v2466_v28, 9  ;;  %v7493_v49 = vrot.slane %v2526_v52, 9  ;;  %v8358_v17 = vld [vmem:[#allocation4 + $0x330] ss:$8 sps:$4 sm:$0xff]  }
  0xcc   : > { %v8396_v55 = vld [vmem:[%s11217_s7 + $0x1d4] ss:$8 sps:$4 sm:$0xff]   ;;  %v2469_v60 = vld [vmem:[#allocation2 + $0x68] sm:$0xee]  ;;  %v2527_v18 = vld [vmem:[#allocation3 + $0x30] sm:$0xe] }
  0xcd   : > { %2829 = vmatpush2.bf16.msra.mxu0 %v8361_v24  ;;  %v8366_v24 = vld [vmem:[#allocation4 + $0x324] ss:$8 sps:$4 sm:$0xff]   ;;  %v2508_v9 = vsel %vm9653_vm9, %v7484_v61, %v2507_v16  ;;  %v8372_v12 = vld [vmem:[#allocation4 + $0x314] ss:$8 sps:$4 sm:$0xff]   ;;  %v2528_v59 = vld [vmem:[#allocation3 + $0x38] sm:$0xe] }
  0xce   : > { %3037 = vmatmul.mubr.bf16.vlgmr.msra.gmra.mxu1 %v7552_v40  ;;  %2830 = vmatprep.subr.bf16.mxu0 %v8369_v10  ;;  %v7496_v40 = vcombine.low %v9666_v2, %v9670_v4  ;;  %v2568_v10 = vsel %vm9653_vm9, %v7493_v49, %v2567_v38  ;;  %v8364_v2 = vld [vmem:[#allocation4 + $0x320] ss:$8 sps:$4 sm:$0xff]   ;;  %v8388_v4 = vld [vmem:[%s11217_s7 + $0x1e0] ss:$8 sps:$4 sm:$0xff]   ;;  %v7494_v42 = vrot.slane %v2527_v18, 9  ;;  %v2519_v20 = vrot.slane %v9633_v37, 5 }
  0xcf   : > { %3343 = vmatpush1.bf16.msra.mxu1 %v8334_v57  ;;  %3046 = vmatprep.mubr.bf16.mxu1 %v11222_v0  ;;  %v2563_v57 = vrot.slane %v9589_v45, 5  ;;  %v7492_v45 = vrot.slane %v2525_v50, 9  ;;  %v8394_v7 = vld [vmem:[%s11217_s7 + $0x1d0] ss:$8 sps:$4 sm:$0xff]   ;;  %v8402_v63 = vld [vmem:[%s11217_s7 + $0x1c4] ss:$8 sps:$4 sm:$0xff]  }
  0xd0   : > { %3344 = vmatprep.subr.bf16.mxu1 %v8342_v30  ;;  %v7485_v30 = vrot.slane %v2467_v22, 9  ;;  %v7487_v14 = vrot.slane %v2469_v60, 9  ;;  %v8378_v37 = vld [vmem:[#allocation4 + $0x304] ss:$8 sps:$4 sm:$0xff]   ;;  %v9752_v16 = vld [vmem:[#allocation2 + $0x8] sm:$0xff] }
  0xd1   : > { %2831 = vmatpush2.bf16.msra.mxu0 %v8367_v54  ;;  %v2575_v54 = vrot.slane %v9644_v13, 5  ;;  %v2515_v13 = vrot.slane %v9630_v25, 5  ;;  %v8381_v38 = vld [vmem:[#allocation4 + $0x3f4] ss:$8 sps:$4 sm:$0xff]   ;;  %v8406_v28 = vld [vmem:[%s11217_s7 + $0x1b0] ss:$8 sps:$4 sm:$0xff]  }
  0xd2   : > { %2832 = vmatprep.subr.bf16.mxu0 %v8375_v47  ;;  %v2512_v8 = vsel %vm9653_vm9, %v7485_v30, %v2511_v26  ;;  %v2468_v47 = vld [vmem:[#allocation2 + $0x58] sm:$0xee]  ;;  %v2520_v58 = vsel %vm9653_vm9, %v7487_v14, %v2519_v20  ;;  %v8414_v50 = vld [vmem:[%s11217_s7 + $0x1a4] ss:$8 sps:$4 sm:$0xff]   ;;  %v8412_v52 = vld [vmem:[%s11217_s7 + $0x1a0] ss:$8 sps:$4 sm:$0xff]  }
  0xd3   : > { %3345 = vmatpush1.bf16.msra.mxu1 %v8340_v34  ;;  %v2564_v34 = vsel %vm9653_vm9, %v7492_v45, %v2563_v57  ;;  %v7501_v36 = vcombine.high %v2508_v9, %v2512_v8  ;;  %v8376_v26 = vld [vmem:[#allocation4 + $0x300] ss:$8 sps:$4 sm:$0xff]   ;;  %v8420_v45 = vld [vmem:[%s11217_s7 + $0x194] ss:$8 sps:$4 sm:$0xff]   ;;  %v8393_v61 = vld [vmem:[#allocation4 + $0x3d4] ss:$8 sps:$4 sm:$0xff]  }
  0xd4   : > { %3346 = vmatprep.subr.bf16.mxu1 %v8348_v5  ;;  %v7554_v5 = vcombine.low %v2564_v34, %v2568_v10  ;;  %v8418_v49 = vld [vmem:[%s11217_s7 + $0x190] ss:$8 sps:$4 sm:$0xff]   ;;  %v8391_v34 = vld [vmem:[#allocation4 + $0x3d0] ss:$8 sps:$4 sm:$0xff]   ;;  %v950_v20 = vld [vmem:[%s9051_s2 + $0x1c] sm:$0xf] }
  0xd5   : > { %2833 = vmatpush2.bf16.msra.mxu0 %v8373_v32  ;;  %v8370_v32 = vld [vmem:[#allocation4 + $0x310] ss:$8 sps:$4 sm:$0xff]   ;;  %v8397_v10 = vld [vmem:[#allocation4 + $0x3c0] ss:$8 sps:$4 sm:$0xff]   ;;  %v1084_v14 = vshrl.u32 %v950_v20, 16 }
  0xd6   : > { %3047 = vmatmul.mubr.bf16.gmra.mxu1 %v7553_v35  ;;  %3552 = vmatprep.subr.bf16.mxu0 %v8384_v51  ;;  %v8408_v51 = vld [vmem:[%s11217_s7 + $0x1b4] ss:$8 sps:$4 sm:$0xff]   ;;  %v10513_v3 = vld [vmem:[#allocation3 + $0x2c] sm:$0x1] }
  0xd7   : > { %3347 = vmatpush1.bf16.msra.mxu1 %v8346_v48  ;;  %3056 = vmatprep.mubr.bf16.mxu1 %v11222_v0  ;;  %v7495_v48 = vrot.slane %v2528_v59, 9  ;;  %v9750_v35 = vld [vmem:[#allocation2 + $0x70] sm:$0xff] }
  0xd8   : > { %3348 = vmatprep.subr.bf16.mxu1 %v8354_v41  ;;  %2835 = vmatmul.mubr.bf16.vlgmr.msra.gmra.mxu0 %v7496_v40  ;;  %v7486_v41 = vrot.slane %v2468_v47, 9  ;;  %v7573_v57 = vcombine.high %v9750_v35, %v9752_v16  ;;  %v7500_v40 = vcombine.low %v2508_v9, %v2512_v8  ;;  %v8430_v9 = vld [vmem:[#allocation4 + $0x470] ss:$8 sps:$4 sm:$0xff]   ;;  %v703_v47 = vld [vmem:[%s9115_s22 + $0x38] sm:$0xff]  ;;  %v735_v60 = vld [vmem:[#allocation2 + $0x10] sm:$0x11] }
  0xd9   : > { %3553 = vmatpush1.bf16.msra.mxu0 %v8382_v29  ;;  %2844 = vmatprep.mubr.bf16.mxu0 %v7499_v53  ;;  %v2576_v25 = vsel %vm9653_vm9, %v7495_v48, %v2575_v54  ;;  %v8379_v29 = vld [vmem:[#allocation4 + $0x3f0] ss:$8 sps:$4 sm:$0xff]   ;;  %v8387_v53 = vld [vmem:[#allocation4 + $0x3e4] ss:$8 sps:$4 sm:$0xff]   ;;  %v736_v18 = vsel %vm9106_vm10, 0, %v735_v60 }
  0xda   : > { %3554 = vmatprep.subr.bf16.mxu0 %v8390_v11  ;;  %v2516_v1 = vsel %vm9653_vm9, %v7486_v41, %v2515_v13  ;;  %v8385_v11 = vld [vmem:[#allocation4 + $0x3e0] ss:$8 sps:$4 sm:$0xff]   ;;  %v8403_v8 = vld [vmem:[#allocation4 + $0x3b0] ss:$8 sps:$4 sm:$0xff]   ;;  %v8411_v54 = vld [vmem:[#allocation4 + $0x3a4] ss:$8 sps:$4 sm:$0xff]  }
  0xdb   : > { %3349 = vmatpush1.bf16.msra.mxu1 %v8352_v56  ;;  %v2572_v56 = vsel %vm9653_vm9, %v7494_v42, %v2571_v27  ;;  %v7503_v22 = vcombine.high %v2516_v1, %v2520_v58  ;;  %v7502_v30 = vcombine.low %v2516_v1, %v2520_v58  ;;  %v8438_v27 = vld [vmem:[#allocation4 + $0x464] ss:$8 sps:$4 sm:$0xff]   ;;  %v8436_v59 = vld [vmem:[#allocation4 + $0x460] ss:$8 sps:$4 sm:$0xff]   ;;  %737 = vst [vmem:[#allocation2 + $0x10] sm:$0x11] %v736_v18 }
  0xdc   : > { %3350 = vmatprep.subr.bf16.mxu1 %v8360_v62  ;;  %v7555_v6 = vcombine.low %v2572_v56, %v2576_v25  ;;  %v8400_v62 = vld [vmem:[%s11217_s7 + $0x1c0] ss:$8 sps:$4 sm:$0xff]   ;;  %v857_v42 = vshll.u32 %v703_v47, 16  ;;  %v1087_v25 = vshll.u32 %v950_v20, 16  ;;  %v8451_v58 = vld [vmem:[#allocation4 + $0x440] ss:$8 sps:$4 sm:$0xff]  }
  0xdd   : > { %3555 = vmatpush1.bf16.msra.mxu0 %v8388_v4  ;;  %v8432_v4 = vld [vmem:[#allocation4 + $0x474] ss:$8 sps:$4 sm:$0xff]   ;;  %v975_v48 = vld [vmem:[#allocation3 + $0x40] sm:$0x1]  ;;  %v9829_v60 = vld [vmem:[#allocation2 + $0x58] sm:$0xff] }
  0xde   : > { %3057 = vmatmul.mubr.bf16.gmra.mxu1 %v7554_v5  ;;  %3556 = vmatprep.subr.bf16.mxu0 %v8396_v55  ;;  %v8405_v5 = vld [vmem:[#allocation4 + $0x3b4] ss:$8 sps:$4 sm:$0xff]   ;;  %v8429_v55 = vld [vmem:[#allocation3 + $0x8] ss:$8 sps:$4 sm:$0xff]   ;;  %v976_v41 = vsel %vm9054_vm2, 0, %v975_v48 }
  0xdf   : > { %3351 = vmatpush1.bf16.msra.mxu1 %v8358_v17  ;;  %3066 = vmatprep.mubr.bf16.mxu1 %v11222_v0  ;;  %v8426_v17 = vld [vmem:[%s11217_s7 + $0x184] ss:$8 sps:$4 sm:$0xff]   ;;  %v8444_v56 = vld [vmem:[#allocation4 + $0x450] ss:$8 sps:$4 sm:$0xff]   ;;  %977 = vst [vmem:[#allocation3 + $0x40] sm:$0x1] %v976_v41 }
  0xe0   : > { %3352 = vmatprep.subr.bf16.mxu1 %v8366_v24  ;;  %2845 = vmatmul.mubr.bf16.gmra.mxu0 %v7498_v44  ;;  %v8399_v24 = vld [vmem:[#allocation4 + $0x3c4] ss:$8 sps:$4 sm:$0xff]   ;;  %v8409_v44 = vld [vmem:[#allocation4 + $0x3a0] ss:$8 sps:$4 sm:$0xff]   ;;  %v8470_v18 = vld [vmem:[#allocation4 + $0x410] ss:$8 sps:$4 sm:$0xff]  }
  0xe1   : > { %3557 = vmatpush1.bf16.msra.mxu0 %v8394_v7  ;;  %2854 = vmatprep.mubr.bf16.mxu0 %v7501_v36  ;;  %v8417_v7 = vld [vmem:[#allocation4 + $0x394] ss:$8 sps:$4 sm:$0xff]   ;;  %v3769_v48 = vld [vmem:[#allocation3 + $0x8] sm:$0xf]  ;;  %v3771_v41 = vld [vmem:[#allocation3 + $0x10] sm:$0xf] }
  0xe2   : > { %3558 = vmatprep.subr.bf16.mxu0 %v8402_v63  ;;  %v8446_v36 = vld [vmem:[#allocation4 + $0x454] ss:$8 sps:$4 sm:$0xff]   ;;  %v8450_v63 = vld [vmem:[#allocation3 + $0x18] ss:$8 sps:$4 sm:$0xff]   ;;  %v920_v1 = vld [vmem:[#allocation2 + $0x10] sm:$0xff] }
  0xe3   : > { %3353 = vmatpush1.bf16.msra.mxu1 %v8364_v2  ;;  %v8424_v2 = vld [vmem:[%s11217_s7 + $0x180] ss:$8 sps:$4 sm:$0xff]   ;;  %v8768_v15 = vld [vmem:[#allocation4 + $0x8e4] ss:$8 sps:$4 sm:$0xff]  }
  0xe4   : > { %3354 = vmatprep.subr.bf16.mxu1 %v8372_v12  ;;  %v854_v12 = vshrl.u32 %v703_v47, 16 }
  0xe5   : > { %3559 = vmatpush1.bf16.msra.mxu0 %v8400_v62  ;;  %v8415_v62 = vld [vmem:[#allocation4 + $0x390] ss:$8 sps:$4 sm:$0xff]  }
  0xe6   : > { %3067 = vmatmul.mubr.bf16.gmra.mxu1 %v7555_v6  ;;  %3560 = vmatprep.subr.bf16.mxu0 %v8408_v51  ;;  %v9782_v13 = vrot.slane %v854_v12, 7  ;;  %v9788_v6 = vrot.slane %v1084_v14, 7  ;;  %v8423_v51 = vld [vmem:[#allocation4 + $0x384] ss:$8 sps:$4 sm:$0xff]  }
  0xe7   : > { %3355 = vmatpush1.bf16.msra.mxu1 %v8370_v32  ;;  %3374 = vmatprep.mubr.bf16.mxu1 %v7573_v57 }
  0xe8   : > { %3356 = vmatprep.subr.bf16.mxu1 %v8378_v37  ;;  %2855 = vmatmul.mubr.bf16.gmra.mxu0 %v7500_v40  ;;  %v859_v32 = vor.u32 %v857_v42, %v9782_v13  ;;  %v8453_v37 = vld [vmem:[#allocation4 + $0x444] ss:$8 sps:$4 sm:$0xff]   ;;  %v1089_v57 = vor.u32 %v1087_v25, %v9788_v6  ;;  %v8477_v25 = vld [vmem:[#allocation4 + $0x400] ss:$8 sps:$4 sm:$0xff]  }
  0xe9   : > { %3561 = vmatpush1.bf16.msra.mxu0 %v8406_v28  ;;  %2864 = vmatprep.mubr.bf16.mxu0 %v7503_v22  ;;  %v8435_v40 = vld [vmem:[%s11217_s7 + $0x274] ss:$8 sps:$4 sm:$0xff]   ;;  %v8459_v28 = vld [vmem:[#allocation4 + $0x434] ss:$8 sps:$4 sm:$0xff]  }
  0xea   : > { %3562 = vmatprep.subr.bf16.mxu0 %v8414_v50  ;;  %v9800_v22 = vld [vmem:[#allocation2 + $0x30] sm:$0xff]  ;;  %v3658_v50 = vshrl.u32 %v9750_v35, 16 }
  0xeb   : > { %3357 = vmatpush1.bf16.msra.mxu1 %v8376_v26  ;;  %v9793_v26 = vsel %vm9132_vm14, %v859_v32, %v920_v1  ;;  %v8479_v42 = vld [vmem:[#allocation4 + $0x404] ss:$8 sps:$4 sm:$0xff]   ;;  %v3686_v14 = vshrl.u32 %v9800_v22, 16  ;;  %v8454_v32 = vld [vmem:[%s11217_s7 + $0x240] ss:$8 sps:$4 sm:$0xff]  }
  0xec   : > { %3358 = vmatprep.subr.bf16.mxu1 %v8381_v38  ;;  %v8421_v38 = vld [vmem:[#allocation4 + $0x380] ss:$8 sps:$4 sm:$0xff]   ;;  %922 = vst [vmem:[#allocation2 + $0x10] sm:$0xff] %v9793_v26  ;;  %v8485_v1 = vld [vmem:[#allocation4 + $0x4f4] ss:$8 sps:$4 sm:$0xff]  }
  0xed   : > { %3563 = vmatpush1.bf16.msra.mxu0 %v8412_v52  ;;  %v8463_v52 = vld [vmem:[#allocation3 + $0x28] ss:$8 sps:$4 sm:$0xff]  }
  0xee   : > { %3564 = vmatprep.subr.bf16.mxu0 %v8420_v45  ;;  %v1150_v45 = vld [vmem:[#allocation3 + $0x40] sm:$0xf] }
  0xef   : > { %3359 = vmatpush2.bf16.msra.mxu1 %v8379_v29  ;;  %v3661_v29 = vshll.u32 %v9750_v35, 16 }
  0xf0   : > { %3360 = vmatprep.subr.bf16.mxu1 %v8387_v53  ;;  %2865 = vmatmul.mubr.bf16.gmra.mxu0 %v7502_v30  ;;  %v9804_v53 = vld [vmem:[#allocation2 + $0x60] sm:$0xff]  ;;  %v7572_v30 = vcombine.low %v9750_v35, %v9752_v16 }
  0xf1   : > { %3565 = vmatpush1.bf16.msra.mxu0 %v8418_v49  ;;  %3584 = vmatprep.mubr.bf16.mxu0 %v11222_v0  ;;  %v8466_v49 = vld [vmem:[#allocation4 + $0x424] ss:$8 sps:$4 sm:$0xff]   ;;  %v8441_v35 = vld [vmem:[%s11217_s7 + $0x264] ss:$8 sps:$4 sm:$0xff]  }
  0xf2   : > { %3566 = vmatprep.subr.bf16.mxu0 %v8426_v17  ;;  %v3672_v17 = vshrl.u32 %v9752_v16, 16 }
  0xf3   : > { %3361 = vmatpush2.bf16.msra.mxu1 %v8385_v11  ;;  %v8457_v11 = vld [vmem:[#allocation4 + $0x430] ss:$8 sps:$4 sm:$0xff]  }
  0xf4   : > { %3362 = vmatprep.subr.bf16.mxu1 %v8393_v61  ;;  %v1151_v61 = vsel %vm9085_vm6, %v1089_v57, %v1150_v45  ;;  %v9853_v57 = vld [vmem:[#allocation2 + $0x68] sm:$0xff] }
  0xf5   : > { %3567 = vmatpush1.bf16.msra.mxu0 %v8424_v2  ;;  %1152 = vst [vmem:[#allocation3 + $0x40] sm:$0xf] %v1151_v61  ;;  %v3660_v2 = vrot.slane %v3658_v50, 4  ;;  %v8483_v50 = vld [vmem:[#allocation4 + $0x4f0] ss:$8 sps:$4 sm:$0xff]  }
  0xf6   : > { %4122 = vmatprep.subr.bf16.mxu0 %v8432_v4  ;;  %v3663_v4 = vrot.slane %v3661_v29, 5  ;;  %v3688_v29 = vrot.slane %v3686_v14, 4  ;;  %v9858_v45 = vld [vmem:[#allocation3 + $0xc] sm:$0x1] }
  0xf7   : > { %3363 = vmatpush2.bf16.msra.mxu1 %v8391_v34  ;;  %v3675_v34 = vshll.u32 %v9752_v16, 16  ;;  %v8439_v16 = vld [vmem:[%s11217_s7 + $0x260] ss:$8 sps:$4 sm:$0xff]  }
  0xf8   : > { %3364 = vmatprep.subr.bf16.mxu1 %v8399_v24  ;;  %3585 = vmatmul.mubr.bf16.vlgmr.msra.gmra.mxu0 %v8429_v55  ;;  %v8433_v24 = vld [vmem:[%s11217_s7 + $0x270] ss:$8 sps:$4 sm:$0xff]   ;;  %v8449_v55 = vld [vmem:[%s11217_s7 + $0x254] ss:$8 sps:$4 sm:$0xff]   ;;  %v3664_v47 = vor.u32 %v3663_v4, %v3660_v2 }
  0xf9   : > { %4123 = vmatpush1.bf16.msra.mxu0 %v8430_v9  ;;  %3594 = vmatprep.mubr.bf16.mxu0 %v11222_v0  ;;  %v8472_v9 = vld [vmem:[#allocation4 + $0x414] ss:$8 sps:$4 sm:$0xff]  }
  0xfa   : > { %4124 = vmatprep.subr.bf16.mxu0 %v8438_v27  ;;  %v3677_v27 = vrot.slane %v3675_v34, 5  ;;  %v9871_v34 = vld [vmem:[#allocation3 + $0x14] sm:$0x1] }
  0xfb   : > { %3365 = vmatpush2.bf16.msra.mxu1 %v8397_v10  ;;  %v7575_v10 = vcombine.high %v9800_v22, %v9804_v53 }
  0xfc   : > { %3366 = vmatprep.subr.bf16.mxu1 %v8405_v5  ;;  %v8464_v5 = vld [vmem:[#allocation4 + $0x420] ss:$8 sps:$4 sm:$0xff]  }
  0xfd   : > { %4125 = vmatpush1.bf16.msra.mxu0 %v8436_v59  ;;  %v8476_v12 = vld [vmem:[#allocation3 + $0x38] ss:$8 sps:$4 sm:$0xff]  }
  0xfe   : > { %4126 = vmatprep.subr.bf16.mxu0 %v8446_v36  ;;  %v8447_v59 = vld [vmem:[%s11217_s7 + $0x250] ss:$8 sps:$4 sm:$0xff]   ;;  %v8456_v36 = vld [vmem:[%s11217_s7 + $0x244] ss:$8 sps:$4 sm:$0xff]  }
  0xff   : > { %3367 = vmatpush2.bf16.msra.mxu1 %v8403_v8  ;;  %v3674_v8 = vrot.slane %v3672_v17, 4  ;;  %v7579_v17 = vcombine.high %v9853_v57, %v9793_v26 }
 0x100   : > { %3368 = vmatprep.subr.bf16.mxu1 %v8411_v54  ;;  %3595 = vmatmul.mubr.bf16.gmra.mxu0 %v8450_v63  ;;  %v9827_v54 = vld [vmem:[#allocation2 + $0x38] sm:$0xff]  ;;  %v9841_v63 = vrot.slane %v3664_v47, 4 }
 0x101   : > { %4127 = vmatpush1.bf16.msra.mxu0 %v8444_v56  ;;  %3604 = vmatprep.mubr.bf16.mxu0 %v11222_v0  ;;  %v7577_v20 = vcombine.high %v9827_v54, %v9829_v60  ;;  %v3689_v56 = vshll.u32 %v9800_v22, 16 }
 0x102   : > { %4128 = vmatprep.subr.bf16.mxu0 %v8453_v37  ;;  %v3700_v37 = vshrl.u32 %v9804_v53, 16 }
 0x103   : > { %3369 = vmatpush2.bf16.msra.mxu1 %v8409_v44  ;;  %v7574_v44 = vcombine.low %v9800_v22, %v9804_v53  ;;  %v3803_v22 = vshll.u32 %v3771_v41, 16 }
 0x104   : > { %3370 = vmatprep.subr.bf16.mxu1 %v8417_v7  ;;  %v3678_v7 = vor.u32 %v3677_v27, %v3674_v8  ;;  %v3717_v8 = vshll.u32 %v9827_v54, 16  ;;  %v8489_v27 = vld [vmem:[#allocation4 + $0x4e0] ss:$8 sps:$4 sm:$0xff]  }
 0x105   : > { %4129 = vmatpush1.bf16.msra.mxu0 %v8451_v58 }
 0x106   : > { %4130 = vmatprep.subr.bf16.mxu0 %v8459_v28  ;;  %v3679_v58 = vrot.slane %v3678_v7, 4  ;;  %v3800_v28 = vshrl.u32 %v3771_v41, 16 }
 0x107   : > { %3371 = vmatpush2.bf16.msra.mxu1 %v8415_v62  ;;  %v3703_v62 = vshll.u32 %v9804_v53, 16  ;;  %v3691_v53 = vrot.slane %v3689_v56, 5 }
 0x108   : > { %3372 = vmatprep.subr.bf16.mxu1 %v8423_v51  ;;  %3605 = vmatmul.mubr.bf16.gmra.mxu0 %v8463_v52  ;;  %v8462_v51 = vld [vmem:[%s11217_s7 + $0x234] ss:$8 sps:$4 sm:$0xff]   ;;  %v8460_v52 = vld [vmem:[%s11217_s7 + $0x230] ss:$8 sps:$4 sm:$0xff]  }
 0x109   : > { %4131 = vmatpush1.bf16.msra.mxu0 %v8457_v11  ;;  %3614 = vmatprep.mubr.bf16.mxu0 %v11222_v0  ;;  %v9860_v11 = vrot.slane %v3700_v37, 4  ;;  %v9862_v61 = vrot.slane %v3703_v62, 5  ;;  %v8473_v37 = vld [vmem:[%s11217_s7 + $0x210] ss:$8 sps:$4 sm:$0xff]   ;;  %v8495_v62 = vld [vmem:[#allocation4 + $0x4d0] ss:$8 sps:$4 sm:$0xff]  }
 0x10a   : > { %4132 = vmatprep.subr.bf16.mxu0 %v8466_v49  ;;  %v8469_v49 = vld [vmem:[%s11217_s7 + $0x224] ss:$8 sps:$4 sm:$0xff]  }
 0x10b   : > { %3373 = vmatpush2.bf16.msra.mxu1 %v8421_v38  ;;  %v3786_v38 = vshrl.u32 %v3769_v48, 16  ;;  %v3706_v56 = vor.u32 %v9862_v61, %v9860_v11  ;;  %v9915_v11 = vld [vmem:[#allocation3 + $0x1c] sm:$0x1]  ;;  %v3775_v61 = vld [vmem:[#allocation3 + $0x20] sm:$0xf] }
 0x10c   : > { %4324 = vmatprep.subr.bf16.mxu1 %v8435_v40  ;;  %v3789_v40 = vshll.u32 %v3769_v48, 16  ;;  %v8475_v48 = vld [vmem:[%s11217_s7 + $0x214] ss:$8 sps:$4 sm:$0xff]   ;;  %v9889_v41 = vpop.f32.mrf.mxu0 }
 0x10d   : > { %4133 = vmatpush1.bf16.msra.mxu0 %v8464_v5  ;;  %v3788_v2 = vrot.slane %v3786_v38, 4  ;;  %v9874_v5 = vld [vmem:[#allocation2 + $0x80] sm:$0x11]  ;;  %v3719_v38 = vrot.slane %v3717_v8, 5 }
 0x10e   : > { %3375 = vmatmul.mubr.bf16.vlgmr.msra.gmra.mxu1 %v7572_v30  ;;  %4134 = vmatprep.subr.bf16.mxu0 %v8472_v9  ;;  %v7576_v30 = vcombine.low %v9827_v54, %v9829_v60  ;;  %v3791_v4 = vrot.slane %v3789_v40, 5  ;;  %v3692_v9 = vor.u32 %v3691_v53, %v3688_v29  ;;  %v3667_v47 = vshll.u32 %v9874_v5, 16  ;;  %v8503_v29 = vld [vmem:[#allocation4 + $0x4c4] ss:$8 sps:$4 sm:$0xff]   ;;  %v3773_v53 = vld [vmem:[#allocation3 + $0x18] sm:$0xf] }
 0x10f   : > { %4325 = vmatpush1.bf16.msra.mxu1 %v8433_v24  ;;  %3384 = vmatprep.mubr.bf16.mxu1 %v7575_v10  ;;  %v8491_v24 = vld [vmem:[#allocation4 + $0x4e4] ss:$8 sps:$4 sm:$0xff]   ;;  %v3714_v10 = vshrl.u32 %v9827_v54, 16  ;;  %v7578_v40 = vcombine.low %v9853_v57, %v9793_v26  ;;  %v8509_v8 = vld [vmem:[#allocation4 + $0x4b4] ss:$8 sps:$4 sm:$0xff]  }
 0x110   : > { %4326 = vmatprep.subr.bf16.mxu1 %v8441_v35  ;;  %3615 = vmatmul.mubr.bf16.gmra.mxu0 %v8476_v12  ;;  %v3802_v35 = vrot.slane %v3800_v28, 4  ;;  %v3795_v12 = vshll.u32 %v9858_v45, 16  ;;  %v3792_v54 = vor.u32 %v3791_v4, %v3788_v2  ;;  %v9891_v14 = vrot.slane %v3692_v9, 4  ;;  %v8482_v28 = vld [vmem:[%s11217_s7 + $0x204] ss:$8 sps:$4 sm:$0xff]  }
 0x111   : > { %4135 = vmatpush1.bf16.msra.mxu0 %v8470_v18  ;;  %v3828_v2 = vshrl.u32 %v3775_v61, 16  ;;  %v8501_v4 = vld [vmem:[#allocation4 + $0x4c0] ss:$8 sps:$4 sm:$0xff]  }
 0x112   : > { %4136 = vmatprep.subr.bf16.mxu0 %v8479_v42  ;;  %v8467_v42 = vld [vmem:[%s11217_s7 + $0x220] ss:$8 sps:$4 sm:$0xff]  }
 0x113   : > { %4327 = vmatpush1.bf16.msra.mxu1 %v8439_v16  ;;  %v3805_v16 = vrot.slane %v3803_v22, 5  ;;  %v3797_v22 = vrot.slane %v3795_v12, 5  ;;  %v3830_v12 = vrot.slane %v3828_v2, 4  ;;  %v3731_v2 = vshll.u32 %v9829_v60, 16 }
 0x114   : > { %4328 = vmatprep.subr.bf16.mxu1 %v8449_v55  ;;  %v9876_v55 = vld [vmem:[#allocation2 + $0x18] sm:$0x11] }
 0x115   : > { %4137 = vmatpush1.bf16.msra.mxu0 %v8477_v25  ;;  %v3681_v18 = vshll.u32 %v9876_v55, 16  ;;  %v3806_v7 = vor.u32 %v3805_v16, %v3802_v35  ;;  %v3728_v25 = vshrl.u32 %v9829_v60, 16  ;;  %v3831_v35 = vshll.u32 %v3775_v61, 16 }
 0x116   : > { %3385 = vmatmul.mubr.bf16.gmra.mxu1 %v7574_v44  ;;  %4138 = vmatprep.subr.bf16.mxu0 %v8485_v1  ;;  %v3809_v44 = vshll.u32 %v9871_v34, 16  ;;  %v3742_v60 = vshrl.u32 %v9853_v57, 16  ;;  %v9967_v19 = vrot.slane %v3731_v2, 5 }
 0x117   : > { %4329 = vmatpush1.bf16.msra.mxu1 %v8447_v59  ;;  %3394 = vmatprep.mubr.bf16.mxu1 %v7577_v20  ;;  %v8497_v59 = vld [vmem:[#allocation4 + $0x4d4] ss:$8 sps:$4 sm:$0xff]   ;;  %v3683_v20 = vrot.slane %v3681_v18, 5  ;;  %v9921_v9 = vrot.slane %v3728_v25, 4  ;;  %v3823_v18 = vshll.u32 %v9915_v11, 16 }
 0x118   : > { %4330 = vmatprep.subr.bf16.mxu1 %v8456_v36  ;;  %v3669_v36 = vrot.slane %v3667_v47, 5  ;;  %v8486_v25 = vld [vmem:[#allocation4 + $0x570] ss:$8 sps:$4 sm:$0xff]  }
 0x119   : > { %4139 = vmatpush2.bf16.msra.mxu0 %v8483_v50  ;;  %v9906_v1 = vsel %vm9421_vm5, %v3679_v58, %v3683_v20  ;;  %v3811_v50 = vrot.slane %v3809_v44, 5  ;;  %v3807_v58 = vrot.slane %v3806_v7, 4  ;;  %v8480_v44 = vld [vmem:[%s11217_s7 + $0x200] ss:$8 sps:$4 sm:$0xff]   ;;  %v8488_v20 = vld [vmem:[#allocation4 + $0x574] ss:$8 sps:$4 sm:$0xff]  }
 0x11a   : > { %4140 = vmatprep.subr.bf16.mxu0 %v8491_v24  ;;  %v3814_v24 = vshrl.u32 %v3773_v53, 16 }
 0x11b   : > { %4331 = vmatpush1.bf16.msra.mxu1 %v8454_v32  ;;  %v3716_v32 = vrot.slane %v3714_v10, 4  ;;  %v3817_v10 = vshll.u32 %v3773_v53, 16 }
 0x11c   : > { %4332 = vmatprep.subr.bf16.mxu1 %v8462_v51  ;;  %v9902_v51 = vsel %vm9421_vm5, %v9841_v63, %v3669_v36  ;;  %v8498_v36 = vld [vmem:[#allocation4 + $0x550] ss:$8 sps:$4 sm:$0xff]  }
 0x11d   : > { %4141 = vmatpush2.bf16.msra.mxu0 %v8489_v27  ;;  %v7649_v63 = vcombine.high %v9902_v51, %v9906_v1  ;;  %v3720_v16 = vor.u32 %v3719_v38, %v3716_v32  ;;  %v3816_v27 = vrot.slane %v3814_v24, 4  ;;  %v3819_v47 = vrot.slane %v3817_v10, 5  ;;  %v9936_v38 = vld [vmem:[#allocation2 + $0x98] sm:$0x11] }
 0x11e   : > { %3395 = vmatmul.mubr.bf16.gmra.mxu1 %v7576_v30  ;;  %4142 = vmatprep.subr.bf16.mxu0 %v8497_v59  ;;  %v1377_v30 = vpop.f32.mrf.mxu0 }
 0x11f   : > { %4333 = vmatpush1.bf16.msra.mxu1 %v8460_v52  ;;  %3404 = vmatprep.mubr.bf16.mxu1 %v7579_v17  ;;  %v3793_v52 = vrot.slane %v3792_v54, 4  ;;  %v9919_v17 = vld [vmem:[#allocation3 + $0x24] sm:$0x1]  ;;  %v3833_v54 = vrot.slane %v3831_v35, 5  ;;  %v3820_v32 = vor.u32 %v3819_v47, %v3816_v27  ;;  %v3777_v27 = vld [vmem:[#allocation3 + $0x28] sm:$0xf] }
 0x120   : > { %4334 = vmatprep.subr.bf16.mxu1 %v8469_v49  ;;  %4154 = vmatprep.mubr.bf16.mxu0 %v7649_v63  ;;  %v9917_v49 = vrot.slane %v3706_v56, 4  ;;  %v3837_v7 = vshll.u32 %v9919_v17, 16  ;;  %v8507_v56 = vld [vmem:[#allocation4 + $0x4b0] ss:$8 sps:$4 sm:$0xff]   ;;  %v8515_v63 = vld [vmem:[#allocation4 + $0x4a4] ss:$8 sps:$4 sm:$0xff]  }
 0x121   : > { %4143 = vmatpush2.bf16.msra.mxu0 %v8495_v62  ;;  %v3798_v59 = vsel %vm9421_vm5, %v3793_v52, %v3797_v22  ;;  %v9934_v62 = vld [vmem:[#allocation2 + $0x20] sm:$0x11]  ;;  %v9938_v22 = vrot.slane %v3720_v16, 4  ;;  %v3821_v53 = vrot.slane %v3820_v32, 4  ;;  %v3825_v52 = vrot.slane %v3823_v18, 5 }
 0x122   : > { %4144 = vmatprep.subr.bf16.mxu0 %v8503_v29  ;;  %v8494_v29 = vld [vmem:[#allocation4 + $0x564] ss:$8 sps:$4 sm:$0xff]   ;;  %v3839_v10 = vrot.slane %v3837_v7, 5  ;;  %v8492_v47 = vld [vmem:[#allocation4 + $0x560] ss:$8 sps:$4 sm:$0xff]   ;;  %v3845_v32 = vshll.u32 %v3777_v27, 16 }
 0x123   : > { %4335 = vmatpush1.bf16.msra.mxu1 %v8467_v42  ;;  %v3812_v42 = vsel %vm9421_vm5, %v3807_v58, %v3811_v50  ;;  %v8513_v58 = vld [vmem:[#allocation4 + $0x4a0] ss:$8 sps:$4 sm:$0xff]   ;;  %v3826_v7 = vsel %vm9421_vm5, %v3821_v53, %v3825_v52 }
 0x124   : > { %4336 = vmatprep.subr.bf16.mxu1 %v8475_v48  ;;  %v1379_v48 = vpop.f32.mrf.mxu0  ;;  %v7704_v50 = vcombine.low %v3798_v59, %v3812_v42  ;;  %v3842_v59 = vshrl.u32 %v3777_v27, 16  ;;  %v8521_v42 = vld [vmem:[#allocation4 + $0x494] ss:$8 sps:$4 sm:$0xff]   ;;  %v3847_v27 = vrot.slane %v3845_v32, 5 }
 0x125   : > { %4145 = vmatpush2.bf16.msra.mxu0 %v8501_v4  ;;  %v9976_v32 = vld [vmem:[#allocation2 + $0x40] sm:$0x11] }
 0x126   : > { %3405 = vmatmul.mubr.bf16.gmra.mxu1 %v7578_v40  ;;  %v3834_v40 = vor.u32 %v3833_v54, %v3830_v12  ;;  %4146 = vmatprep.subr.bf16.mxu0 %v8509_v8  ;;  %v9945_v35 = vpop.f32.mrf.mxu0  ;;  %v3695_v8 = vshll.u32 %v9934_v62, 16  ;;  %v9951_v12 = vld [vmem:[#allocation3 + $0x2c] sm:$0x1] }
 0x127   : > { %4337 = vmatpush1.bf16.msra.mxu1 %v8473_v37  ;;  %4356 = vmatprep.mubr.bf16.mxu1 %v11222_v0  ;;  %11262 = vst [vmem:[#allocation14_spill] sm:$0xff] %v9945_v35 }
 0x128   : > { %4338 = vmatprep.subr.bf16.mxu1 %v8482_v28  ;;  %v3835_v24 = vrot.slane %v3834_v40, 4  ;;  %v1385_v54 = vpop.f32.mrf.mxu0  ;;  %v3697_v52 = vrot.slane %v3695_v8, 5  ;;  %v9972_v8 = vld [vmem:[#allocation2 + $0x28] sm:$0x11] }
 0x129   : > { %4147 = vmatpush2.bf16.msra.mxu0 %v8507_v56 }
 0x12a   : > { %4148 = vmatprep.subr.bf16.mxu0 %v8515_v63  ;;  %v3844_v63 = vrot.slane %v3842_v59, 4  ;;  %v1387_v53 = vpop.f32.mrf.mxu0 }
 0x12b   : > { %4339 = vmatpush1.bf16.msra.mxu1 %v8480_v44  ;;  %v3779_v44 = vld [vmem:[#allocation3 + $0x30] sm:$0xf] }
 0x12c   : > { %4750 = vmatprep.subr.bf16.mxu1 %v8488_v20  ;;  %v9958_v20 = vld [vmem:[#allocation3 + $0x34] sm:$0x1]  ;;  %v3859_v4 = vshll.u32 %v3779_v44, 16  ;;  %v1389_v59 = vpop.f32.mrf.mxu0 }
 0x12d   : > { %v1648_v37 = vpop.f32.mrf.mxu1  ;;  %4149 = vmatpush2.bf16.msra.mxu0 %v8513_v58 }
 0x12e   : > { %v9941_v28 = vadd.f32 %v1648_v37, %v9889_v41  ;;  %v3709_v41 = vshll.u32 %v9936_v38, 16  ;;  %4357 = vmatmul.mubr.bf16.vlgmr.msra.gmra.mxu1 %v7704_v50  ;;  %v8500_v37 = vld [vmem:[#allocation4 + $0x554] ss:$8 sps:$4 sm:$0xff]   ;;  %v3840_v50 = vsel %vm9421_vm5, %v3835_v24, %v3839_v10  ;;  %v8506_v24 = vld [vmem:[#allocation4 + $0x544] ss:$8 sps:$4 sm:$0xff]   ;;  %4150 = vmatprep.subr.bf16.mxu0 %v8521_v42  ;;  %v9981_v42 = vsel %vm9421_vm5, %v9891_v14, %v3697_v52 }
 0x12f   : > { %v1650_v61 = vpop.f32.mrf.mxu1  ;;  %4751 = vmatpush1.bf16.msra.mxu1 %v8486_v25  ;;  %4366 = vmatprep.mubr.bf16.mxu1 %v11222_v0  ;;  %v8519_v25 = vld [vmem:[#allocation4 + $0x490] ss:$8 sps:$4 sm:$0xff]   ;;  %v8527_v10 = vld [vmem:[#allocation4 + $0x484] ss:$8 sps:$4 sm:$0xff]   ;;  %v1005_v14 = vld [vmem:[#allocation3 + $0x44] sm:$0x1]  ;;  %v3734_v52 = vor.u32 %v9967_v19, %v9921_v9 }
 0x130   : > { %v9947_v16 = vadd.f32 %v1650_v61, %v1377_v30  ;;  %v3856_v61 = vshrl.u32 %v3779_v44, 16  ;;  %4752 = vmatprep.subr.bf16.mxu1 %v8494_v29  ;;  %v7705_v29 = vcombine.low %v3826_v7, %v3840_v50  ;;  %v9974_v44 = vrot.slane %v3742_v60, 4  ;;  %v770_v7 = vld [vmem:[#allocation2 + $0x48] sm:$0x11] }
 0x131   : > { %v1652_v18 = vpop.f32.mrf.mxu1  ;;  %4151 = vmatpush2.bf16.msra.mxu0 %v8519_v25  ;;  %v3759_v19 = vshll.u32 %v9793_v26, 16  ;;  %v8512_v9 = vld [vmem:[#allocation4 + $0x534] ss:$8 sps:$4 sm:$0xff]  }
 0x132   : > { %v9954_v30 = vadd.f32 %v1652_v18, %v1379_v48  ;;  %v3851_v48 = vshll.u32 %v9951_v12, 16  ;;  %v3711_v18 = vrot.slane %v3709_v41, 5  ;;  %v3858_v0 = vrot.slane %v3856_v61, 4  ;;  %4152 = vmatprep.subr.bf16.mxu0 %v8527_v10 }
 0x133   : > { %v9961_v40 = vpop.f32.mrf.mxu1  ;;  %v3848_v41 = vor.u32 %v3847_v27, %v3844_v63  ;;  %4753 = vmatpush1.bf16.msra.mxu1 %v8492_v47  ;;  %v3861_v61 = vrot.slane %v3859_v4, 5  ;;  %v3723_v4 = vshll.u32 %v9972_v8, 16  ;;  %v771_v63 = vsel %vm9306_vm0, 0, %v770_v7  ;;  %v8504_v27 = vld [vmem:[#allocation4 + $0x540] ss:$8 sps:$4 sm:$0xff]  }
 0x134   : > { %11263 = vst [vmem:[#allocation15_spill] sm:$0xff] %v9961_v40  ;;  %v3865_v40 = vshll.u32 %v9958_v20, 16  ;;  %v3853_v2 = vrot.slane %v3851_v48, 5  ;;  %4754 = vmatprep.subr.bf16.mxu1 %v8500_v37  ;;  %v9996_v48 = vpop.f32.mrf.mxu0  ;;  %772 = vst [vmem:[#allocation2 + $0x48] sm:$0x11] %v771_v63  ;;  %v11264_v10 = vmov 0  }
 0x135   : > { %v1658_v56 = vpop.f32.mrf.mxu1  ;;  %v3849_v47 = vrot.slane %v3848_v41, 4  ;;  %v3862_v37 = vor.u32 %v3861_v61, %v3858_v0  ;;  %v3737_v0 = vshll.u32 %v9976_v32, 16  ;;  %v3756_v41 = vshrl.u32 %v9793_v26, 16  ;;  %v8510_v7 = vld [vmem:[#allocation4 + $0x530] ss:$8 sps:$4 sm:$0xff]   ;;  %4153 = vmatpush2.bf16.msra.mxu0 %v8525_v43 }
 0x136   : > { %v9970_v35 = vadd.f32 %v1658_v56, %v1385_v54  ;;  %v9986_v54 = vsel %vm9421_vm5, %v9917_v49, %v3711_v18  ;;  %v3867_v50 = vrot.slane %v3865_v40, 5  ;;  %v8536_v49 = vld [vmem:[%s11217_s7 + $0x2f4] ss:$8 sps:$4 sm:$0xff]   ;;  %4367 = vmatmul.mubr.bf16.gmra.mxu1 %v7705_v29  ;;  %v1006_v40 = vsel %vm9070_vm4, 0, %v1005_v14  ;;  %v3781_v18 = vld [vmem:[#allocation3 + $0x38] sm:$0xf] }
 0x137   : > { %v1660_v58 = vpop.f32.mrf.mxu1  ;;  %4755 = vmatpush1.bf16.msra.mxu1 %v8498_v36  ;;  %4376 = vmatprep.mubr.bf16.mxu1 %v11264_v10  ;;  %v3863_v29 = vrot.slane %v3862_v37, 4  ;;  %1007 = vst [vmem:[#allocation3 + $0x44] sm:$0x1] %v1006_v40  ;;  %v8534_v36 = vld [vmem:[%s11217_s7 + $0x2f0] ss:$8 sps:$4 sm:$0xff]   ;;  %v7651_v61 = vcombine.high %v9981_v42, %v9986_v54  ;;  %v3725_v26 = vrot.slane %v3723_v4, 5  ;;  %v1395_v14 = vpop.f32.mrf.mxu0 }
 0x138   : > { %v9988_v60 = vadd.f32 %v1660_v58, %v1387_v53  ;;  %4756 = vmatprep.subr.bf16.mxu1 %v8506_v24  ;;  %v7648_v58 = vcombine.low %v9902_v51, %v9906_v1  ;;  %v3870_v37 = vshrl.u32 %v3781_v18, 16  ;;  %v3873_v51 = vshll.u32 %v3781_v18, 16  ;;  %v8518_v1 = vld [vmem:[#allocation4 + $0x524] ss:$8 sps:$4 sm:$0xff]   ;;  %4952 = vmatprep.subr.bf16.mxu0 %v8536_v49  ;;  %v8542_v63 = vld [vmem:[%s11217_s7 + $0x2e4] ss:$8 sps:$4 sm:$0xff]  }
 0x139   : > { %v1662_v56 = vpop.f32.mrf.mxu1  ;;  %v3868_v24 = vsel %vm9421_vm5, %v3863_v29, %v3867_v50  ;;  %v3735_v40 = vrot.slane %v3734_v52, 4  ;;  %v8540_v43 = vld [vmem:[%s11217_s7 + $0x2e0] ss:$8 sps:$4 sm:$0xff]   ;;  %v3758_v50 = vrot.slane %v3756_v41, 4  ;;  %v3761_v29 = vrot.slane %v3759_v19, 5  ;;  %v1397_v18 = vpop.f32.mrf.mxu0 }
 0x13a   : > { %v9998_v53 = vadd.f32 %v1662_v56, %v1389_v59  ;;  %v3854_v59 = vsel %vm9421_vm5, %v3849_v47, %v3853_v2  ;;  %v11265_v2 = vshll.u32 %v9853_v57, 16  ;;  %v3783_v56 = vld [vmem:[#allocation3 + $0x40] sm:$0xf]  ;;  %v3739_v57 = vrot.slane %v3737_v0, 5  ;;  %4155 = vmatmul.mubr.bf16.vlgmr.msra.gmra.mxu0 %v7648_v58  ;;  %v8548_v49 = vld [vmem:[%s11217_s7 + $0x2d4] ss:$8 sps:$4 sm:$0xff]  }
 0x13b   : > { %v10005_v25 = vpop.f32.mrf.mxu1  ;;  %4757 = vmatpush1.bf16.msra.mxu1 %v8504_v27  ;;  %v10036_v52 = vld [vmem:[#allocation2 + $0x90] sm:$0x11]  ;;  %v3884_v0 = vshrl.u32 %v3783_v56, 16  ;;  %v3887_v27 = vshll.u32 %v3783_v56, 16  ;;  %4953 = vmatpush1.bf16.msra.mxu0 %v8534_v36  ;;  %v923_v19 = vld [vmem:[#allocation2 + $0x48] sm:$0x11] }
 0x13c   : > { %v10021_v47 = vrot.slane %v11265_v2, 5  ;;  %v7706_v2 = vcombine.low %v3854_v59, %v3868_v24  ;;  %4758 = vmatprep.subr.bf16.mxu1 %v8512_v9  ;;  %4164 = vmatprep.mubr.bf16.mxu0 %v7651_v61  ;;  %v10041_v59 = vsel %vm9421_vm5, %v9938_v22, %v3725_v26  ;;  %v3872_v9 = vrot.slane %v3870_v37, 4  ;;  %v1399_v24 = vpop.f32.mrf.mxu0  ;;  %v10053_v26 = vld [vmem:[#allocation3 + $0x3c] sm:$0x1]  ;;  %v8516_v56 = vld [vmem:[#allocation4 + $0x520] ss:$8 sps:$4 sm:$0xff]  }
 0x13d   : > { %v1668_v4 = vpop.f32.mrf.mxu1  ;;  %v3875_v58 = vrot.slane %v3873_v51, 5  ;;  %4954 = vmatprep.subr.bf16.mxu0 %v8542_v63  ;;  %v11266_v36 = vrot.slane %v9782_v13, 4  ;;  %v3762_v63 = vor.u32 %v3761_v29, %v3758_v50  ;;  %v3879_v50 = vshll.u32 %v10053_v26, 16 }
 0x13e   : > { %v10034_v31 = vadd.f32 %v1668_v4, %v1395_v14  ;;  %v10045_v14 = vsel %vm9421_vm5, %v3735_v40, %v3739_v57  ;;  %4377 = vmatmul.mubr.bf16.gmra.mxu1 %v7706_v2  ;;  %v1153_v22 = vld [vmem:[#allocation3 + $0x44] sm:$0x1]  ;;  %v3748_v51 = vor.u32 %v10021_v47, %v9974_v44  ;;  %v11267_v40 = vrot.slane %v9788_v6, 4  ;;  %v8546_v44 = vld [vmem:[%s11217_s7 + $0x2d0] ss:$8 sps:$4 sm:$0xff]   ;;  %v10076_v29 = vpop.f32.mrf.mxu0 }
 0x13f   : > { %v1670_v41 = vpop.f32.mrf.mxu1  ;;  %v924_v61 = vsel %vm9106_vm10, %v11266_v36, %v923_v19  ;;  %4759 = vmatpush1.bf16.msra.mxu1 %v8510_v7  ;;  %4386 = vmatprep.mubr.bf16.mxu1 %v11264_v10  ;;  %v8524_v57 = vld [vmem:[#allocation4 + $0x514] ss:$8 sps:$4 sm:$0xff]   ;;  %v7650_v2 = vcombine.low %v9981_v42, %v9986_v54  ;;  %v8522_v19 = vld [vmem:[#allocation4 + $0x510] ss:$8 sps:$4 sm:$0xff]   ;;  %v7653_v6 = vcombine.high %v10041_v59, %v10045_v14  ;;  %v3751_v47 = vshll.u32 %v10036_v52, 16 }
 0x140   : > { %v10047_v4 = vadd.f32 %v1670_v41, %v1397_v18  ;;  %925 = vst [vmem:[#allocation2 + $0x48] sm:$0x11] %v924_v61  ;;  %v1154_v13 = vsel %vm9054_vm2, %v11267_v40, %v1153_v22  ;;  %4760 = vmatprep.subr.bf16.mxu1 %v8518_v1  ;;  %v3886_v18 = vrot.slane %v3884_v0, 4  ;;  %v3889_v41 = vrot.slane %v3887_v27, 5  ;;  %4955 = vmatpush1.bf16.msra.mxu0 %v8540_v43  ;;  %v8530_v42 = vld [vmem:[#allocation4 + $0x504] ss:$8 sps:$4 sm:$0xff]  }
 0x141   : > { %v1672_v37 = vpop.f32.mrf.mxu1  ;;  %1155 = vst [vmem:[#allocation3 + $0x44] sm:$0x1] %v1154_v13  ;;  %v3876_v1 = vor.u32 %v3875_v58, %v3872_v9  ;;  %4956 = vmatprep.subr.bf16.mxu0 %v8548_v49  ;;  %v8554_v54 = vld [vmem:[%s11217_s7 + $0x2c4] ss:$8 sps:$4 sm:$0xff]   ;;  %v3749_v0 = vrot.slane %v3748_v51, 4  ;;  %v3763_v58 = vrot.slane %v3762_v63, 4 }
 0x142   : > { %v10064_v7 = vadd.f32 %v1672_v37, %v1399_v24  ;;  %v4413_v27 = vld [vmem:[#allocation2 + $0x70] sm:$0xee]  ;;  %v4414_v24 = vld [vmem:[#allocation2 + $0x8] sm:$0xee]  ;;  %4165 = vmatmul.mubr.bf16.gmra.mxu0 %v7650_v2  ;;  %v3890_v49 = vor.u32 %v3889_v41, %v3886_v18  ;;  %v4439_v36 = vrot.slane %v9874_v5, 5  ;;  %v3753_v22 = vrot.slane %v3751_v47, 5 }
 0x143   : > { %v10078_v43 = vpop.f32.mrf.mxu1  ;;  %4761 = vmatpush1.bf16.msra.mxu1 %v8516_v56  ;;  %v8552_v9 = vld [vmem:[%s11217_s7 + $0x2c0] ss:$8 sps:$4 sm:$0xff]   ;;  %4174 = vmatprep.mubr.bf16.mxu0 %v7653_v6  ;;  %v8560_v61 = vld [vmem:[%s11217_s7 + $0x2b4] ss:$8 sps:$4 sm:$0xff]   ;;  %v3877_v56 = vrot.slane %v3876_v1, 4  ;;  %v3881_v37 = vrot.slane %v3879_v50, 5  ;;  %v1405_v40 = vpop.f32.mrf.mxu0 }
 0x144   : > { %4762 = vmatprep.subr.bf16.mxu1 %v8524_v57  ;;  %4957 = vmatpush1.bf16.msra.mxu0 %v8546_v44  ;;  %v4443_v51 = vrot.slane %v9876_v55, 5  ;;  %v7724_v63 = vrot.slane %v4413_v27, 9  ;;  %v7725_v2 = vrot.slane %v4414_v24, 9  ;;  %v8528_v5 = vld [vmem:[#allocation4 + $0x500] ss:$8 sps:$4 sm:$0xff]   ;;  %v7652_v55 = vcombine.low %v10041_v59, %v10045_v14 }
 0x145   : > { %4958 = vmatprep.subr.bf16.mxu0 %v8554_v54  ;;  %v1678_v57 = vpop.f32.mrf.mxu1  ;;  %v8533_v6 = vld [vmem:[#allocation4 + $0x5f4] ss:$8 sps:$4 sm:$0xff]   ;;  %v1407_v47 = vpop.f32.mrf.mxu0  ;;  %v3891_v1 = vrot.slane %v3890_v49, 4  ;;  %v3754_v27 = vsel %vm9421_vm5, %v3749_v0, %v3753_v22  ;;  %v1675_v21 = vadd.f32 %v10078_v43, %v10076_v29  ;;  %v5723_v43 = vld [vmem:[#allocation3 + $0x20] sm:$0xf] }
 0x146   : > { %v10091_v41 = vadd.f32 %v1678_v57, %v1405_v40  ;;  %v8566_v59 = vld [vmem:[%s11217_s7 + $0x2a4] ss:$8 sps:$4 sm:$0xff]   ;;  %v10112_v57 = vsel %vm9653_vm9, %v7724_v63, %v4439_v36  ;;  %v10116_v0 = vsel %vm9653_vm9, %v7725_v2, %v4443_v51  ;;  %v8564_v36 = vld [vmem:[%s11217_s7 + $0x2a0] ss:$8 sps:$4 sm:$0xff]  }
 0x147   : > { %v10088_v13 = vld [vmem:[#allocation2 + $0x48] sm:$0x11]  ;;  %4763 = vmatpush1.bf16.msra.mxu1 %v8522_v19  ;;  %v1680_v54 = vpop.f32.mrf.mxu1  ;;  %v8558_v19 = vld [vmem:[%s11217_s7 + $0x2b0] ss:$8 sps:$4 sm:$0xff]   ;;  %v1409_v14 = vpop.f32.mrf.mxu0  ;;  %v7741_v63 = vcombine.high %v10112_v57, %v10116_v0  ;;  %v4469_v2 = vld [vmem:[#allocation3 + $0x8] sm:$0xe] }
 0x148   : > { %v3765_v18 = vshll.u32 %v10088_v13, 16  ;;  %v10093_v44 = vld [vmem:[#allocation3 + $0x44] sm:$0x1]  ;;  %4764 = vmatprep.subr.bf16.mxu1 %v8530_v42  ;;  %4959 = vmatpush1.bf16.msra.mxu0 %v8552_v9  ;;  %v10103_v40 = vadd.f32 %v1680_v54, %v1407_v47  ;;  %v3882_v42 = vsel %vm9421_vm5, %v3877_v56, %v3881_v37  ;;  %v8539_v47 = vld [vmem:[#allocation4 + $0x5e4] ss:$8 sps:$4 sm:$0xff]   ;;  %v4499_v54 = vrot.slane %v9871_v34, 5 }
 0x149   : > { %v3893_v50 = vshll.u32 %v10093_v44, 16  ;;  %4960 = vmatprep.subr.bf16.mxu0 %v8560_v61  ;;  %v1682_v49 = vpop.f32.mrf.mxu1  ;;  %v8531_v61 = vld [vmem:[#allocation4 + $0x5f0] ss:$8 sps:$4 sm:$0xff]  }
 0x14a   : > { %v3767_v24 = vrot.slane %v3765_v18, 5  ;;  %v10120_v18 = vadd.f32 %v1682_v49, %v1409_v14  ;;  %4175 = vmatmul.mubr.bf16.gmra.mxu0 %v7652_v55  ;;  %v8545_v55 = vld [vmem:[#allocation4 + $0x5d4] ss:$8 sps:$4 sm:$0xff]  }
 0x14b   : > { %v3895_v9 = vrot.slane %v3893_v50, 5  ;;  %4765 = vmatpush1.bf16.msra.mxu1 %v8528_v5  ;;  %v4470_v5 = vld [vmem:[#allocation3 + $0x10] sm:$0xe]  ;;  %v4495_v50 = vrot.slane %v9858_v45, 5  ;;  %v8578_v14 = vld [vmem:[%s11217_s7 + $0x284] ss:$8 sps:$4 sm:$0xff]  }
 0x14c   : > { %v3768_v22 = vsel %vm9421_vm5, %v3763_v58, %v3767_v24  ;;  %4766 = vmatprep.subr.bf16.mxu1 %v8533_v6  ;;  %4961 = vmatpush1.bf16.msra.mxu0 %v8558_v19  ;;  %v8572_v58 = vld [vmem:[%s11217_s7 + $0x294] ss:$8 sps:$4 sm:$0xff]   ;;  %v8537_v6 = vld [vmem:[#allocation4 + $0x5e0] ss:$8 sps:$4 sm:$0xff]   ;;  %v7732_v24 = vrot.slane %v4469_v2, 9 }
 0x14d   : > { %v7655_v56 = vcombine.high %v3754_v27, %v3768_v22  ;;  %v3896_v37 = vsel %vm9421_vm5, %v3891_v1, %v3895_v9  ;;  %4962 = vmatprep.subr.bf16.mxu0 %v8566_v59  ;;  %v7654_v1 = vcombine.low %v3754_v27, %v3768_v22  ;;  %v8570_v19 = vld [vmem:[%s11217_s7 + $0x290] ss:$8 sps:$4 sm:$0xff]   ;;  %v7733_v59 = vrot.slane %v4470_v5, 9  ;;  %v8543_v27 = vld [vmem:[#allocation4 + $0x5d0] ss:$8 sps:$4 sm:$0xff]  }
 0x14e   : > { %v7707_v51 = vcombine.low %v3882_v42, %v3896_v37  ;;  %v8551_v42 = vld [vmem:[#allocation4 + $0x5c4] ss:$8 sps:$4 sm:$0xff]   ;;  %v8576_v45 = vld [vmem:[%s11217_s7 + $0x280] ss:$8 sps:$4 sm:$0xff]   ;;  %v4496_v34 = vsel %vm9653_vm9, %v7732_v24, %v4495_v50  ;;  %v8581_v49 = vld [vmem:[#allocation4 + $0x674] ss:$8 sps:$4 sm:$0xff]   ;;  %v10148_v37 = vpop.f32.mrf.mxu0 }
 0x14f   : > { %4184 = vmatprep.mubr.bf16.mxu0 %v7655_v56  ;;  %4767 = vmatpush2.bf16.msra.mxu1 %v8531_v61  ;;  %v4500_v9 = vsel %vm9653_vm9, %v7733_v59, %v4499_v54  ;;  %v4471_v61 = vld [vmem:[#allocation3 + $0x18] sm:$0xe]  ;;  %v4472_v22 = vld [vmem:[#allocation3 + $0x20] sm:$0xe]  ;;  %v8557_v56 = vld [vmem:[#allocation4 + $0x5b4] ss:$8 sps:$4 sm:$0xff]   ;;  %v10152_v54 = vpop.f32.mrf.mxu1 }
 0x150   : > { %4768 = vmatprep.subr.bf16.mxu1 %v8539_v47  ;;  %4387 = vmatmul.mubr.bf16.gmra.mxu1 %v7707_v51  ;;  %v8549_v47 = vld [vmem:[#allocation4 + $0x5c0] ss:$8 sps:$4 sm:$0xff]   ;;  %v4503_v51 = vrot.slane %v9915_v11, 5  ;;  %v7735_v2 = vrot.slane %v4472_v22, 9  ;;  %v4507_v5 = vrot.slane %v9919_v17, 5 }
 0x151   : > { %4963 = vmatpush1.bf16.msra.mxu0 %v8564_v36  ;;  %4782 = vmatprep.mubr.bf16.mxu1 %v7741_v63  ;;  %v7796_v36 = vcombine.low %v4496_v34, %v4500_v9  ;;  %v8579_v63 = vld [vmem:[#allocation4 + $0x670] ss:$8 sps:$4 sm:$0xff]   ;;  %v8563_v50 = vld [vmem:[#allocation4 + $0x5a4] ss:$8 sps:$4 sm:$0xff]   ;;  %v8585_v11 = vld [vmem:[#allocation4 + $0x660] ss:$8 sps:$4 sm:$0xff]  }
 0x152   : > { %4964 = vmatprep.subr.bf16.mxu0 %v8572_v58  ;;  %4185 = vmatmul.mubr.bf16.gmra.mxu0 %v7654_v1  ;;  %v7734_v58 = vrot.slane %v4471_v61, 9  ;;  %v8555_v1 = vld [vmem:[#allocation4 + $0x5b0] ss:$8 sps:$4 sm:$0xff]   ;;  %v8593_v59 = vld [vmem:[#allocation4 + $0x654] ss:$8 sps:$4 sm:$0xff]  }
 0x153   : > { %4769 = vmatpush2.bf16.msra.mxu1 %v8537_v6  ;;  %4984 = vmatprep.mubr.bf16.mxu0 %v11264_v10  ;;  %v4473_v34 = vld [vmem:[#allocation3 + $0x28] sm:$0xe]  ;;  %v8569_v61 = vld [vmem:[#allocation4 + $0x594] ss:$8 sps:$4 sm:$0xff]  }
 0x154   : > { %4770 = vmatprep.subr.bf16.mxu1 %v8545_v55  ;;  %v8587_v55 = vld [vmem:[#allocation4 + $0x664] ss:$8 sps:$4 sm:$0xff]  }
 0x155   : > { %4965 = vmatpush1.bf16.msra.mxu0 %v8570_v19  ;;  %v2205_v6 = vpop.f32.mrf.mxu0 }
 0x156   : > { %4966 = vmatprep.subr.bf16.mxu0 %v8578_v14  ;;  %v2244_v19 = vadd.f32 %v2205_v6, %v9941_v28  ;;  %v8561_v14 = vld [vmem:[#allocation4 + $0x5a0] ss:$8 sps:$4 sm:$0xff]   ;;  %v8591_v6 = vld [vmem:[#allocation4 + $0x650] ss:$8 sps:$4 sm:$0xff]  }
 0x157   : > { %4771 = vmatpush2.bf16.msra.mxu1 %v8543_v27  ;;  %v2207_v24 = vpop.f32.mrf.mxu0  ;;  %v2407_v17 = vpop.f32.mrf.mxu1 }
 0x158   : > { %4772 = vmatprep.subr.bf16.mxu1 %v8551_v42  ;;  %v2245_v27 = vadd.f32 %v2207_v24, %v9947_v16  ;;  %v4504_v42 = vsel %vm9653_vm9, %v7734_v58, %v4503_v51  ;;  %v10161_v28 = vadd.f32 %v2407_v17, %v2244_v19  ;;  %v8567_v58 = vld [vmem:[#allocation4 + $0x590] ss:$8 sps:$4 sm:$0xff]   ;;  %v4515_v19 = vrot.slane %v9958_v20, 5  ;;  %v8575_v24 = vld [vmem:[#allocation4 + $0x584] ss:$8 sps:$4 sm:$0xff]  }
 0x159   : > { %4967 = vmatpush1.bf16.msra.mxu0 %v8576_v45  ;;  %v4508_v45 = vsel %vm9653_vm9, %v7735_v2, %v4507_v5  ;;  %v2209_v9 = vpop.f32.mrf.mxu0  ;;  %v2409_v16 = vpop.f32.mrf.mxu1  ;;  %v8605_v20 = vld [vmem:[#allocation4 + $0x634] ss:$8 sps:$4 sm:$0xff]  }
 0x15a   : > { %5292 = vmatprep.subr.bf16.mxu0 %v8581_v49  ;;  %v4474_v49 = vld [vmem:[#allocation3 + $0x30] sm:$0xe]  ;;  %v2246_v22 = vadd.f32 %v2209_v9, %v9954_v30  ;;  %v7797_v51 = vcombine.low %v4504_v42, %v4508_v45 }
 0x15b   : > { %4773 = vmatpush2.bf16.msra.mxu1 %v8549_v47  ;;  %v10164_v47 = vadd.f32 %v2409_v16, %v2245_v27  ;;  %v10167_v2 = vpop.f32.mrf.mxu0  ;;  %v2411_v5 = vpop.f32.mrf.mxu1  ;;  %v4447_v27 = vrot.slane %v9934_v62, 5  ;;  %v8597_v42 = vld [vmem:[#allocation4 + $0x640] ss:$8 sps:$4 sm:$0xff]   ;;  %v4519_v16 = vrot.slane %v10053_v26, 5 }
 0x15c   : > { %4774 = vmatprep.subr.bf16.mxu1 %v8557_v56  ;;  %4985 = vmatmul.mubr.bf16.vlgmr.msra.gmra.mxu0 %v7796_v36  ;;  %v4415_v56 = vld [vmem:[#allocation2 + $0x30] sm:$0xee]  ;;  %v4416_v36 = vld [vmem:[#allocation2 + $0x60] sm:$0xee]  ;;  %v10170_v30 = vadd.f32 %v2411_v5, %v2246_v22 }
 0x15d   : > { %5293 = vmatpush1.bf16.msra.mxu0 %v8579_v63  ;;  %4994 = vmatprep.mubr.bf16.mxu0 %v11264_v10  ;;  %v4511_v63 = vrot.slane %v9951_v12, 5  ;;  %v7726_v12 = vrot.slane %v4415_v56, 9  ;;  %v7727_v17 = vrot.slane %v4416_v36, 9  ;;  %v8573_v45 = vld [vmem:[#allocation4 + $0x580] ss:$8 sps:$4 sm:$0xff]   ;;  %v10174_v9 = vpop.f32.mrf.mxu1 }
 0x15e   : > { %5294 = vmatprep.subr.bf16.mxu0 %v8587_v55  ;;  %v7736_v55 = vrot.slane %v4473_v34, 9 }
 0x15f   : > { %4775 = vmatpush2.bf16.msra.mxu1 %v8555_v1  ;;  %v7737_v1 = vrot.slane %v4474_v49, 9  ;;  %v10188_v56 = vsel %vm9653_vm9, %v7726_v12, %v4447_v27  ;;  %v8582_v12 = vld [vmem:[%s11217_s7 + $0x370] ss:$8 sps:$4 sm:$0xff]  }
 0x160   : > { %4776 = vmatprep.subr.bf16.mxu1 %v8563_v50  ;;  %v8599_v50 = vld [vmem:[#allocation4 + $0x644] ss:$8 sps:$4 sm:$0xff]  }
 0x161   : > { %5295 = vmatpush1.bf16.msra.mxu0 %v8585_v11  ;;  %v4451_v11 = vrot.slane %v9936_v38, 5  ;;  %v4516_v62 = vsel %vm9653_vm9, %v7737_v1, %v4515_v19  ;;  %v4476_v38 = vld [vmem:[#allocation3 + $0x40] sm:$0xe]  ;;  %v4523_v19 = vrot.slane %v10093_v44, 5  ;;  %v4455_v44 = vrot.slane %v9972_v8, 5 }
 0x162   : > { %5296 = vmatprep.subr.bf16.mxu0 %v8593_v59  ;;  %v2215_v34 = vpop.f32.mrf.mxu0  ;;  %v4512_v59 = vsel %vm9653_vm9, %v7736_v55, %v4511_v63  ;;  %v4418_v63 = vld [vmem:[#allocation2 + $0x58] sm:$0xee]  ;;  %v8603_v55 = vld [vmem:[#allocation4 + $0x630] ss:$8 sps:$4 sm:$0xff]   ;;  %v7739_v26 = vrot.slane %v4476_v38, 9 }
 0x163   : > { %4777 = vmatpush2.bf16.msra.mxu1 %v8561_v14  ;;  %v4475_v14 = vld [vmem:[#allocation3 + $0x38] sm:$0xe]  ;;  %v2248_v49 = vadd.f32 %v2215_v34, %v9970_v35  ;;  %v10192_v36 = vsel %vm9653_vm9, %v7727_v17, %v4451_v11  ;;  %v8588_v34 = vld [vmem:[%s11217_s7 + $0x360] ss:$8 sps:$4 sm:$0xff]  }
 0x164   : > { %4778 = vmatprep.subr.bf16.mxu1 %v8569_v61  ;;  %4995 = vmatmul.mubr.bf16.gmra.mxu0 %v7797_v51  ;;  %v8584_v61 = vld [vmem:[%s11217_s7 + $0x374] ss:$8 sps:$4 sm:$0xff]   ;;  %v2217_v22 = vpop.f32.mrf.mxu0  ;;  %v7738_v1 = vrot.slane %v4475_v14, 9  ;;  %v7743_v17 = vcombine.high %v10188_v56, %v10192_v36  ;;  %v4419_v38 = vld [vmem:[#allocation2 + $0x68] sm:$0xee] }
 0x165   : > { %5297 = vmatpush1.bf16.msra.mxu0 %v8591_v6  ;;  %5004 = vmatprep.mubr.bf16.mxu0 %v11264_v10  ;;  %v2249_v35 = vadd.f32 %v2217_v22, %v9988_v60  ;;  %v4417_v51 = vld [vmem:[#allocation2 + $0x38] sm:$0xee] }
 0x166   : > { %5298 = vmatprep.subr.bf16.mxu0 %v8599_v50  ;;  %v2219_v6 = vpop.f32.mrf.mxu0  ;;  %v7740_v50 = vcombine.low %v10112_v57, %v10116_v0  ;;  %v8611_v60 = vld [vmem:[#allocation4 + $0x624] ss:$8 sps:$4 sm:$0xff]   ;;  %v8590_v57 = vld [vmem:[%s11217_s7 + $0x364] ss:$8 sps:$4 sm:$0xff]   ;;  %v4520_v8 = vsel %vm9653_vm9, %v7738_v1, %v4519_v16 }
 0x167   : > { %4779 = vmatpush2.bf16.msra.mxu1 %v8567_v58  ;;  %v7798_v58 = vcombine.low %v4512_v59, %v4516_v62  ;;  %v2417_v5 = vpop.f32.mrf.mxu1  ;;  %v2250_v27 = vadd.f32 %v2219_v6, %v9998_v53  ;;  %v7728_v53 = vrot.slane %v4417_v51, 9  ;;  %v8609_v59 = vld [vmem:[#allocation4 + $0x620] ss:$8 sps:$4 sm:$0xff]   ;;  %v4524_v62 = vsel %vm9653_vm9, %v7739_v26, %v4523_v19  ;;  %v8615_v51 = vld [vmem:[#allocation4 + $0x610] ss:$8 sps:$4 sm:$0xff]  }
 0x168   : > { %4780 = vmatprep.subr.bf16.mxu1 %v8575_v24  ;;  %v10198_v24 = vadd.f32 %v2417_v5, %v2248_v49  ;;  %v8617_v49 = vld [vmem:[#allocation4 + $0x614] ss:$8 sps:$4 sm:$0xff]   ;;  %v10234_v5 = vld [vmem:[#allocation2 + $0x30] sm:$0xff]  ;;  %v7742_v6 = vcombine.low %v10188_v56, %v10192_v36  ;;  %v7730_v56 = vrot.slane %v4419_v38, 9  ;;  %v4463_v36 = vrot.slane %v10036_v52, 5 }
 0x169   : > { %5299 = vmatpush1.bf16.msra.mxu0 %v8597_v42  ;;  %v2419_v11 = vpop.f32.mrf.mxu1  ;;  %v7729_v42 = vrot.slane %v4418_v63, 9  ;;  %v4456_v22 = vsel %vm9653_vm9, %v7728_v53, %v4455_v44  ;;  %v7799_v63 = vcombine.low %v4520_v8, %v4524_v62  ;;  %v8594_v26 = vld [vmem:[%s11217_s7 + $0x350] ss:$8 sps:$4 sm:$0xff]   ;;  %v8602_v19 = vld [vmem:[%s11217_s7 + $0x344] ss:$8 sps:$4 sm:$0xff]  }
 0x16a   : > { %5300 = vmatprep.subr.bf16.mxu0 %v8605_v20  ;;  %v10210_v0 = vadd.f32 %v2419_v11, %v2249_v35  ;;  %v4420_v35 = vld [vmem:[#allocation2 + $0x10] sm:$0xee]  ;;  %v8629_v53 = vld [vmem:[#allocation4 + $0x6f4] ss:$8 sps:$4 sm:$0xff]  }
 0x16b   : > { %4781 = vmatpush2.bf16.msra.mxu1 %v8573_v45  ;;  %v4459_v45 = vrot.slane %v9976_v32, 5  ;;  %v2421_v20 = vpop.f32.mrf.mxu1  ;;  %v8596_v32 = vld [vmem:[%s11217_s7 + $0x354] ss:$8 sps:$4 sm:$0xff]   ;;  %v8621_v44 = vld [vmem:[#allocation4 + $0x600] ss:$8 sps:$4 sm:$0xff]  }
 0x16c   : > { %5502 = vmatprep.subr.bf16.mxu1 %v8584_v61  ;;  %5005 = vmatmul.mubr.bf16.gmra.mxu0 %v7798_v58  ;;  %v10224_v14 = vadd.f32 %v2421_v20, %v2250_v27  ;;  %v10226_v61 = vpop.f32.mrf.mxu0  ;;  %v10232_v58 = vld [vmem:[#allocation2 + $0x8] sm:$0xff]  ;;  %v4464_v20 = vsel %vm9653_vm9, %v7730_v56, %v4463_v36  ;;  %v8636_v38 = vld [vmem:[#allocation4 + $0x6e4] ss:$8 sps:$4 sm:$0xff]  }
 0x16d   : > { %5301 = vmatpush1.bf16.msra.mxu0 %v8603_v55  ;;  %5014 = vmatprep.mubr.bf16.mxu0 %v11264_v10  ;;  %v4460_v16 = vsel %vm9653_vm9, %v7729_v42, %v4459_v45  ;;  %v8623_v55 = vld [vmem:[#allocation4 + $0x604] ss:$8 sps:$4 sm:$0xff]   ;;  %v7817_v1 = vcombine.high %v10232_v58, %v10234_v5  ;;  %v10246_v27 = vpop.f32.mrf.mxu1  ;;  %v8600_v42 = vld [vmem:[%s11217_s7 + $0x340] ss:$8 sps:$4 sm:$0xff]   ;;  %v5608_v33 = vshrl.u32 %v10232_v58, 16 }
 0x16e   : > { %4783 = vmatmul.mubr.bf16.vlgmr.msra.gmra.mxu1 %v7740_v50  ;;  %5302 = vmatprep.subr.bf16.mxu0 %v8611_v60  ;;  %v7745_v50 = vcombine.high %v4456_v22, %v4460_v16  ;;  %v8648_v36 = vld [vmem:[#allocation4 + $0x6c4] ss:$8 sps:$4 sm:$0xff]  }
 0x16f   : > { %5503 = vmatpush1.bf16.msra.mxu1 %v8582_v12  ;;  %4792 = vmatprep.mubr.bf16.mxu1 %v7743_v17  ;;  %v7731_v12 = vrot.slane %v4420_v35, 9  ;;  %v4467_v17 = vrot.slane %v10088_v13, 5  ;;  %v8606_v35 = vld [vmem:[%s11217_s7 + $0x330] ss:$8 sps:$4 sm:$0xff]  }
 0x170   : > { %5504 = vmatprep.subr.bf16.mxu1 %v8590_v57 }
 0x171   : > { %5303 = vmatpush1.bf16.msra.mxu0 %v8609_v59  ;;  %v4468_v59 = vsel %vm9653_vm9, %v7731_v12, %v4467_v17  ;;  %v8618_v17 = vld [vmem:[%s11217_s7 + $0x310] ss:$8 sps:$4 sm:$0xff]  }
 0x172   : > { %5304 = vmatprep.subr.bf16.mxu0 %v8617_v49  ;;  %v7746_v56 = vcombine.low %v4464_v20, %v4468_v59 }
 0x173   : > { %5505 = vmatpush1.bf16.msra.mxu1 %v8588_v34  ;;  %v2225_v60 = vpop.f32.mrf.mxu0 }
 0x174   : > { %5506 = vmatprep.subr.bf16.mxu1 %v8596_v32  ;;  %5015 = vmatmul.mubr.bf16.gmra.mxu0 %v7799_v63  ;;  %v2252_v11 = vadd.f32 %v2225_v60, %v10034_v31  ;;  %v8608_v31 = vld [vmem:[%s11217_s7 + $0x334] ss:$8 sps:$4 sm:$0xff]   ;;  %v7744_v32 = vcombine.low %v4456_v22, %v4460_v16  ;;  %v7747_v63 = vcombine.high %v4464_v20, %v4468_v59  ;;  %v8634_v22 = vld [vmem:[#allocation4 + $0x6e0] ss:$8 sps:$4 sm:$0xff]  }
 0x175   : > { %5305 = vmatpush1.bf16.msra.mxu0 %v8615_v51  ;;  %5324 = vmatprep.mubr.bf16.mxu0 %v7817_v1  ;;  %v2227_v57 = vpop.f32.mrf.mxu0  ;;  %v8612_v1 = vld [vmem:[%s11217_s7 + $0x320] ss:$8 sps:$4 sm:$0xff]  }
 0x176   : > { %4793 = vmatmul.mubr.bf16.gmra.mxu1 %v7742_v6  ;;  %5306 = vmatprep.subr.bf16.mxu0 %v8623_v55  ;;  %v2253_v52 = vadd.f32 %v2227_v57, %v10047_v4  ;;  %v8627_v4 = vld [vmem:[#allocation4 + $0x6f0] ss:$8 sps:$4 sm:$0xff]   ;;  %v8642_v55 = vld [vmem:[#allocation4 + $0x6d4] ss:$8 sps:$4 sm:$0xff]   ;;  %v8646_v57 = vld [vmem:[#allocation4 + $0x6c0] ss:$8 sps:$4 sm:$0xff]  }
 0x177   : > { %5507 = vmatpush1.bf16.msra.mxu1 %v8594_v26  ;;  %4802 = vmatprep.mubr.bf16.mxu1 %v7745_v50  ;;  %v2427_v45 = vpop.f32.mrf.mxu1  ;;  %v2229_v34 = vpop.f32.mrf.mxu0  ;;  %v8620_v26 = vld [vmem:[%s11217_s7 + $0x314] ss:$8 sps:$4 sm:$0xff]  }
 0x178   : > { %5508 = vmatprep.subr.bf16.mxu1 %v8602_v19  ;;  %v10258_v13 = vadd.f32 %v2427_v45, %v2252_v11  ;;  %v2254_v8 = vadd.f32 %v2229_v34, %v10064_v7  ;;  %v8614_v7 = vld [vmem:[%s11217_s7 + $0x324] ss:$8 sps:$4 sm:$0xff]   ;;  %v8640_v19 = vld [vmem:[#allocation4 + $0x6d0] ss:$8 sps:$4 sm:$0xff]  }
 0x179   : > { %v2429_v62 = vpop.f32.mrf.mxu1  ;;  %5307 = vmatpush1.bf16.msra.mxu0 %v8621_v44  ;;  %v10275_v16 = vpop.f32.mrf.mxu0  ;;  %v8626_v44 = vld [vmem:[%s11217_s7 + $0x304] ss:$8 sps:$4 sm:$0xff]   ;;  %v978_v45 = vld [vmem:[#allocation3 + $0x48] sm:$0x1] }
 0x17a   : > { %v10265_v49 = vadd.f32 %v2429_v62, %v2253_v52  ;;  %5308 = vmatprep.subr.bf16.mxu0 %v8629_v53  ;;  %v738_v53 = vld [vmem:[#allocation2 + $0x78] sm:$0x11]  ;;  %v8654_v34 = vld [vmem:[#allocation4 + $0x6b4] ss:$8 sps:$4 sm:$0xff]   ;;  %v979_v20 = vsel %vm9054_vm2, 0, %v978_v45 }
 0x17b   : > { %5509 = vmatpush1.bf16.msra.mxu1 %v8600_v42  ;;  %v2431_v51 = vpop.f32.mrf.mxu1  ;;  %v739_v52 = vsel %vm9106_vm10, 0, %v738_v53  ;;  %980 = vst [vmem:[#allocation3 + $0x48] sm:$0x1] %v979_v20  ;;  %v5611_v53 = vshll.u32 %v10232_v58, 16  ;;  %v8643_v45 = vld [vmem:[#allocation4 + $0x750] ss:$8 sps:$4 sm:$0xff]  }
 0x17c   : > { %5510 = vmatprep.subr.bf16.mxu1 %v8608_v31  ;;  %v10273_v6 = vadd.f32 %v2431_v51, %v2254_v8  ;;  %740 = vst [vmem:[#allocation2 + $0x78] sm:$0x11] %v739_v52  ;;  %v5625_v52 = vshll.u32 %v10234_v5, 16  ;;  %v8651_v20 = vld [vmem:[#allocation4 + $0x744] ss:$8 sps:$4 sm:$0xff]  }
 0x17d   : > { %5309 = vmatpush2.bf16.msra.mxu0 %v8627_v4  ;;  %v10283_v60 = vpop.f32.mrf.mxu1  ;;  %v8632_v4 = vld [vmem:[#allocation4 + $0x774] ss:$8 sps:$4 sm:$0xff]  }
 0x17e   : > { %4803 = vmatmul.mubr.bf16.gmra.mxu1 %v7744_v32  ;;  %5310 = vmatprep.subr.bf16.mxu0 %v8636_v38  ;;  %v8633_v38 = vld [vmem:[#allocation3 + $0x10] ss:$8 sps:$4 sm:$0xff]  }
 0x17f   : > { %5511 = vmatpush1.bf16.msra.mxu1 %v8606_v35  ;;  %4812 = vmatprep.mubr.bf16.mxu1 %v7747_v63  ;;  %v8652_v35 = vld [vmem:[#allocation4 + $0x6b0] ss:$8 sps:$4 sm:$0xff]   ;;  %v8660_v63 = vld [vmem:[#allocation4 + $0x6a4] ss:$8 sps:$4 sm:$0xff]  }
 0x180   : > { %5512 = vmatprep.subr.bf16.mxu1 %v8614_v7  ;;  %v8630_v7 = vld [vmem:[#allocation4 + $0x770] ss:$8 sps:$4 sm:$0xff]  }
 0x181   : > { %5311 = vmatpush2.bf16.msra.mxu0 %v8634_v22 }
 0x182   : > { %v2235_v50 = vpop.f32.mrf.mxu0  ;;  %5312 = vmatprep.subr.bf16.mxu0 %v8642_v55  ;;  %v8639_v55 = vld [vmem:[#allocation4 + $0x764] ss:$8 sps:$4 sm:$0xff]  }
 0x183   : > { %5513 = vmatpush1.bf16.msra.mxu1 %v8612_v1  ;;  %v2256_v12 = vadd.f32 %v2235_v50, %v10091_v41  ;;  %v8658_v1 = vld [vmem:[#allocation4 + $0x6a0] ss:$8 sps:$4 sm:$0xff]  }
 0x184   : > { %5514 = vmatprep.subr.bf16.mxu1 %v8620_v26  ;;  %v2237_v11 = vpop.f32.mrf.mxu0  ;;  %v937_v26 = vld [vmem:[#allocation2 + $0x78] sm:$0xff] }
 0x185   : > { %v2257_v42 = vadd.f32 %v2237_v11, %v10103_v40  ;;  %5313 = vmatpush2.bf16.msra.mxu0 %v8640_v19  ;;  %v8624_v40 = vld [vmem:[%s11217_s7 + $0x300] ss:$8 sps:$4 sm:$0xff]   ;;  %v8666_v19 = vld [vmem:[#allocation4 + $0x694] ss:$8 sps:$4 sm:$0xff]  }
 0x186   : > { %4813 = vmatmul.mubr.bf16.gmra.mxu1 %v7746_v56  ;;  %v2437_v41 = vpop.f32.mrf.mxu1  ;;  %v2239_v31 = vpop.f32.mrf.mxu0  ;;  %5314 = vmatprep.subr.bf16.mxu0 %v8648_v36  ;;  %v10315_v56 = vsel %vm9132_vm14, %v9093_v46, %v937_v26  ;;  %v1167_v36 = vld [vmem:[#allocation3 + $0x48] sm:$0xf]  ;;  %v8649_v26 = vld [vmem:[#allocation4 + $0x740] ss:$8 sps:$4 sm:$0xff]  }
 0x187   : > { %5515 = vmatpush1.bf16.msra.mxu1 %v8618_v17  ;;  %v10297_v59 = vadd.f32 %v2437_v41, %v2256_v12  ;;  %v2258_v8 = vadd.f32 %v2239_v31, %v10120_v18  ;;  %5534 = vmatprep.mubr.bf16.mxu1 %v11264_v10  ;;  %v8637_v12 = vld [vmem:[#allocation4 + $0x760] ss:$8 sps:$4 sm:$0xff]   ;;  %v8645_v17 = vld [vmem:[#allocation4 + $0x754] ss:$8 sps:$4 sm:$0xff]   ;;  %939 = vst [vmem:[#allocation2 + $0x78] sm:$0xff] %v10315_v56 }
 0x188   : > { %v2439_v62 = vpop.f32.mrf.mxu1  ;;  %5516 = vmatprep.subr.bf16.mxu1 %v8626_v44  ;;  %v1168_v44 = vsel %vm9085_vm6, %v9093_v46, %v1167_v36  ;;  %v8664_v41 = vld [vmem:[#allocation4 + $0x690] ss:$8 sps:$4 sm:$0xff]   ;;  %v8672_v31 = vld [vmem:[#allocation4 + $0x684] ss:$8 sps:$4 sm:$0xff]   ;;  %v8657_v36 = vld [vmem:[#allocation4 + $0x734] ss:$8 sps:$4 sm:$0xff]  }
 0x189   : > { %v10304_v32 = vadd.f32 %v2439_v62, %v2257_v42  ;;  %5315 = vmatpush2.bf16.msra.mxu0 %v8646_v57  ;;  %1169 = vst [vmem:[#allocation3 + $0x48] sm:$0xf] %v1168_v44  ;;  %v5622_v42 = vshrl.u32 %v10234_v5, 16  ;;  %v8692_v46 = vld [vmem:[#allocation3 + $0x20] ss:$8 sps:$4 sm:$0xff]   ;;  %v5613_v62 = vrot.slane %v5611_v53, 5 }
 0x18a   : > { %v2441_v51 = vpop.f32.mrf.mxu1  ;;  %5316 = vmatprep.subr.bf16.mxu0 %v8654_v34  ;;  %v11272_v53 = vld [vmem:[#allocation14_spill] sm:$0xff] }
 0x18b   : > { %5517 = vmatpush1.bf16.msra.mxu1 %v8624_v40  ;;  %v10306_v18 = vadd.f32 %v2441_v51, %v2258_v8  ;;  %v8670_v8 = vld [vmem:[#allocation4 + $0x680] ss:$8 sps:$4 sm:$0xff]   ;;  %v5610_v40 = vrot.slane %v5608_v33, 4  ;;  %v10332_v51 = vld [vmem:[#allocation2 + $0x20] sm:$0x11] }
 0x18c   : > { %v10308_v22 = vpop.f32.mrf.mxu1  ;;  %6072 = vmatprep.subr.bf16.mxu1 %v8632_v4  ;;  %v5624_v4 = vrot.slane %v5622_v42, 4  ;;  %11271 = vst [vmem:[#allocation17_spill] sm:$0xff] %v10332_v51  ;;  %v5631_v33 = vshll.u32 %v10332_v51, 16  ;;  %v11273_v42 = vld [vmem:[#allocation15_spill] sm:$0xff] }
 0x18d   : > { %11268 = vst [vmem:[#allocation16_spill] sm:$0xff] %v10306_v18  ;;  %5317 = vmatpush2.bf16.msra.mxu0 %v8652_v35  ;;  %v10330_v35 = vld [vmem:[#allocation2 + $0x18] sm:$0x11] }
 0x18e   : > { %5535 = vmatmul.mubr.bf16.vlgmr.msra.gmra.mxu1 %v8633_v38  ;;  %5318 = vmatprep.subr.bf16.mxu0 %v8660_v63  ;;  %v10310_v50 = vpop.f32.mrf.mxu1  ;;  %v5627_v38 = vrot.slane %v5625_v52, 5  ;;  %11270 = vst [vmem:[#allocation11_spill] sm:$0xff] %v10330_v35  ;;  %v8683_v63 = vld [vmem:[%s11217_s7 + $0x3f4] ss:$8 sps:$4 sm:$0xff]   ;;  %v5617_v11 = vshll.u32 %v10330_v35, 16  ;;  %v1655_v52 = vadd.f32 %v11273_v42, %v11272_v53  ;;  %v5633_v39 = vrot.slane %v5631_v33, 5 }
 0x18f   : > { %6073 = vmatpush1.bf16.msra.mxu1 %v8630_v7  ;;  %5544 = vmatprep.mubr.bf16.mxu1 %v11264_v10  ;;  %v8661_v33 = vld [vmem:[#allocation4 + $0x720] ss:$8 sps:$4 sm:$0xff]  }
 0x190   : > { %6074 = vmatprep.subr.bf16.mxu1 %v8639_v55  ;;  %v10322_v57 = vpop.f32.mrf.mxu1  ;;  %v10339_v55 = vld [vmem:[#allocation2 + $0x60] sm:$0xff]  ;;  %v5628_v44 = vor.u32 %v5627_v38, %v5624_v4  ;;  %v5619_v53 = vrot.slane %v5617_v11, 5  ;;  %v5719_v11 = vld [vmem:[#allocation3 + $0x10] sm:$0xf] }
 0x191   : > { %5319 = vmatpush2.bf16.msra.mxu0 %v8658_v1  ;;  %v10341_v1 = vld [vmem:[#allocation2 + $0x38] sm:$0xff] }
 0x192   : > { %5320 = vmatprep.subr.bf16.mxu0 %v8666_v19  ;;  %v10328_v34 = vpop.f32.mrf.mxu1  ;;  %v7816_v19 = vcombine.low %v10232_v58, %v10234_v5  ;;  %v8681_v58 = vld [vmem:[%s11217_s7 + $0x3f0] ss:$8 sps:$4 sm:$0xff]   ;;  %v8689_v5 = vld [vmem:[%s11217_s7 + $0x3e4] ss:$8 sps:$4 sm:$0xff]   ;;  %v5629_v42 = vrot.slane %v5628_v44, 4 }
 0x193   : > { %6075 = vmatpush1.bf16.msra.mxu1 %v8637_v12 }
 0x194   : > { %6076 = vmatprep.subr.bf16.mxu1 %v8645_v17  ;;  %v10337_v7 = vpop.f32.mrf.mxu1  ;;  %v5614_v17 = vor.u32 %v5613_v62, %v5610_v40  ;;  %v8663_v40 = vld [vmem:[#allocation4 + $0x724] ss:$8 sps:$4 sm:$0xff]  }
 0x195   : > { %5321 = vmatpush2.bf16.msra.mxu0 %v8664_v41  ;;  %v10360_v41 = vpop.f32.mrf.mxu0 }
 0x196   : > { %5322 = vmatprep.subr.bf16.mxu0 %v8672_v31  ;;  %5545 = vmatmul.mubr.bf16.gmra.mxu1 %v8692_v46  ;;  %v10346_v12 = vpop.f32.mrf.mxu1  ;;  %v8707_v46 = vld [vmem:[#allocation3 + $0x30] ss:$8 sps:$4 sm:$0xff]   ;;  %v5615_v38 = vrot.slane %v5614_v17, 4  ;;  %v8698_v17 = vld [vmem:[%s11217_s7 + $0x3d4] ss:$8 sps:$4 sm:$0xff]  }
 0x197   : > { %6077 = vmatpush1.bf16.msra.mxu1 %v8643_v45  ;;  %5554 = vmatprep.mubr.bf16.mxu1 %v11264_v10  ;;  %v7819_v45 = vcombine.high %v10339_v55, %v10341_v1 }
 0x198   : > { %6078 = vmatprep.subr.bf16.mxu1 %v8651_v20  ;;  %v10362_v31 = vpop.f32.mrf.mxu1  ;;  %v2247_v20 = vadd.f32 %v10167_v2, %v1655_v52  ;;  %v2836_v62 = vpop.f32.mrf.mxu0  ;;  %v10371_v2 = vld [vmem:[#allocation2 + $0x58] sm:$0xff] }
 0x199   : > { %5323 = vmatpush2.bf16.msra.mxu0 %v8670_v8  ;;  %v8655_v8 = vld [vmem:[#allocation4 + $0x730] ss:$8 sps:$4 sm:$0xff]   ;;  %v2875_v51 = vadd.f32 %v2836_v62, %v10161_v28  ;;  %v5739_v62 = vshll.u32 %v5719_v11, 16 }
 0x19a   : > { %6274 = vmatprep.subr.bf16.mxu0 %v8683_v63  ;;  %v10365_v4 = vpop.f32.mrf.mxu1  ;;  %v8687_v63 = vld [vmem:[%s11217_s7 + $0x3e0] ss:$8 sps:$4 sm:$0xff]   ;;  %v2449_v44 = vadd.f32 %v10174_v9, %v2247_v20  ;;  %v8696_v9 = vld [vmem:[%s11217_s7 + $0x3d0] ss:$8 sps:$4 sm:$0xff]  }
 0x19b   : > { %6079 = vmatpush1.bf16.msra.mxu1 %v8649_v26  ;;  %v10373_v26 = vld [vmem:[#allocation2 + $0x68] sm:$0xff] }
 0x19c   : > { %6080 = vmatprep.subr.bf16.mxu1 %v8657_v36  ;;  %5325 = vmatmul.mubr.bf16.vlgmr.msra.gmra.mxu0 %v7816_v19  ;;  %v1665_v19 = vadd.f32 %v10005_v25, %v9996_v48  ;;  %v2838_v36 = vpop.f32.mrf.mxu0  ;;  %v10380_v28 = vpop.f32.mrf.mxu1  ;;  %v10386_v48 = vadd.f32 %v10310_v50, %v2875_v51  ;;  %v5721_v25 = vld [vmem:[#allocation3 + $0x18] sm:$0xf]  ;;  %v10399_v50 = vsel %vm9421_vm5, %v5615_v38, %v5619_v53  ;;  %v8667_v20 = vld [vmem:[#allocation4 + $0x710] ss:$8 sps:$4 sm:$0xff]   ;;  %v8704_v38 = vld [vmem:[%s11217_s7 + $0x3c4] ss:$8 sps:$4 sm:$0xff]  }
 0x19d   : > { %6275 = vmatpush1.bf16.msra.mxu0 %v8681_v58  ;;  %5334 = vmatprep.mubr.bf16.mxu0 %v7819_v45  ;;  %v2876_v52 = vadd.f32 %v2838_v36, %v10164_v47  ;;  %v8669_v58 = vld [vmem:[#allocation4 + $0x714] ss:$8 sps:$4 sm:$0xff]   ;;  %v7818_v45 = vcombine.low %v10339_v55, %v10341_v1  ;;  %v10403_v51 = vsel %vm9421_vm5, %v5629_v42, %v5633_v39  ;;  %v8720_v39 = vld [vmem:[#allocation3 + $0x40] ss:$8 sps:$4 sm:$0xff]   ;;  %v5750_v53 = vshrl.u32 %v5721_v25, 16 }
 0x19e   : > { %6276 = vmatprep.subr.bf16.mxu0 %v8689_v5  ;;  %5555 = vmatmul.mubr.bf16.gmra.mxu1 %v8707_v46  ;;  %11274 = vst [vmem:[#allocation14_spill] sm:$0xff] %v10386_v48  ;;  %v2840_v5 = vpop.f32.mrf.mxu0  ;;  %v7821_v46 = vcombine.high %v10371_v2, %v10373_v26  ;;  %v10395_v47 = vpop.f32.mrf.mxu1  ;;  %v773_v48 = vld [vmem:[#allocation2 + $0x88] sm:$0x11]  ;;  %v2251_v35 = vadd.f32 %v10226_v61, %v1665_v19  ;;  %v5753_v42 = vshll.u32 %v5721_v25, 16  ;;  %v5636_v19 = vshrl.u32 %v10339_v55, 16 }
 0x19f   : > { %6081 = vmatpush1.bf16.msra.mxu1 %v8655_v8  ;;  %5564 = vmatprep.mubr.bf16.mxu1 %v11264_v10  ;;  %v2877_v8 = vadd.f32 %v2840_v5, %v10170_v30  ;;  %v10407_v36 = vadd.f32 %v10322_v57, %v2876_v52  ;;  %v8675_v30 = vld [vmem:[#allocation4 + $0x704] ss:$8 sps:$4 sm:$0xff]   ;;  %v8702_v57 = vld [vmem:[%s11217_s7 + $0x3c0] ss:$8 sps:$4 sm:$0xff]   ;;  %v774_v52 = vsel %vm9306_vm0, 0, %v773_v48 }
 0x1a0   : > { %6082 = vmatprep.subr.bf16.mxu1 %v8663_v40  ;;  %v5736_v40 = vshrl.u32 %v5719_v11, 16  ;;  %v2842_v18 = vpop.f32.mrf.mxu0  ;;  %v7893_v11 = vcombine.high %v10399_v50, %v10403_v51  ;;  %v8673_v25 = vld [vmem:[#allocation4 + $0x700] ss:$8 sps:$4 sm:$0xff]   ;;  %775 = vst [vmem:[#allocation2 + $0x88] sm:$0x11] %v774_v52  ;;  %v2453_v48 = vadd.f32 %v10246_v27, %v2251_v35  ;;  %v7820_v35 = vcombine.low %v10371_v2, %v10373_v26 }
 0x1a1   : > { %6277 = vmatpush1.bf16.msra.mxu0 %v8687_v63  ;;  %11275 = vst [vmem:[#allocation15_spill] sm:$0xff] %v10407_v36  ;;  %v2878_v63 = vadd.f32 %v2842_v18, %v2449_v44  ;;  %v10419_v61 = vadd.f32 %v10328_v34, %v2877_v8  ;;  %v10425_v18 = vpop.f32.mrf.mxu1  ;;  %v10427_v44 = vld [vmem:[#allocation3 + $0x14] sm:$0x1]  ;;  %v8680_v36 = vld [vmem:[#allocation4 + $0x7f4] ss:$8 sps:$4 sm:$0xff]  }
 0x1a2   : > { %6278 = vmatprep.subr.bf16.mxu0 %v8698_v17  ;;  %v2846_v17 = vpop.f32.mrf.mxu0  ;;  %v10432_v5 = vld [vmem:[#allocation2 + $0x10] sm:$0xff] }
 0x1a3   : > { %6083 = vmatpush1.bf16.msra.mxu1 %v8661_v33  ;;  %11276 = vst [vmem:[#allocation18_spill] sm:$0xff] %v10419_v61  ;;  %v8713_v33 = vld [vmem:[%s11217_s7 + $0x3b4] ss:$8 sps:$4 sm:$0xff]   ;;  %v2879_v34 = vadd.f32 %v2846_v17, %v10198_v24  ;;  %v10439_v8 = vadd.f32 %v10337_v7, %v2878_v63  ;;  %v1008_v61 = vld [vmem:[#allocation3 + $0x4c] sm:$0x1]  ;;  %v10450_v63 = vrot.slane %v5636_v19, 4  ;;  %v7823_v17 = vcombine.high %v10432_v5, %v10315_v56 }
 0x1a4   : > { %6084 = vmatprep.subr.bf16.mxu1 %v8669_v58  ;;  %5335 = vmatmul.mubr.bf16.gmra.mxu0 %v7818_v45  ;;  %v10434_v58 = vrot.slane %v5736_v40, 4  ;;  %v10436_v45 = vrot.slane %v5739_v62, 5  ;;  %v2848_v24 = vpop.f32.mrf.mxu0  ;;  %v5755_v40 = vrot.slane %v5753_v42, 5  ;;  %v8678_v42 = vld [vmem:[#allocation4 + $0x7f0] ss:$8 sps:$4 sm:$0xff]  }
 0x1a5   : > { %6279 = vmatpush1.bf16.msra.mxu0 %v8696_v9  ;;  %5344 = vmatprep.mubr.bf16.mxu0 %v7821_v46  ;;  %v10444_v9 = vld [vmem:[#allocation3 + $0x1c] sm:$0x1]  ;;  %v5752_v46 = vrot.slane %v5750_v53, 4  ;;  %v10447_v62 = vadd.f32 %v10346_v12, %v2879_v34  ;;  %v2880_v7 = vadd.f32 %v2848_v24, %v10210_v0  ;;  %v1009_v0 = vsel %vm9070_vm4, 0, %v1008_v61  ;;  %v8711_v19 = vld [vmem:[%s11217_s7 + $0x3b0] ss:$8 sps:$4 sm:$0xff]  }
 0x1a6   : > { %6280 = vmatprep.subr.bf16.mxu0 %v8704_v38  ;;  %5565 = vmatmul.mubr.bf16.gmra.mxu1 %v8720_v39  ;;  %11277 = vst [vmem:[#allocation19_spill] sm:$0xff] %v10444_v9  ;;  %v2850_v27 = vpop.f32.mrf.mxu0  ;;  %v10455_v38 = vpop.f32.mrf.mxu1  ;;  %v5725_v39 = vld [vmem:[#allocation3 + $0x28] sm:$0xf]  ;;  %v5742_v52 = vor.u32 %v10436_v45, %v10434_v58  ;;  %1010 = vst [vmem:[#allocation3 + $0x4c] sm:$0x1] %v1009_v0  ;;  %v5764_v24 = vshrl.u32 %v5723_v43, 16  ;;  %v10484_v0 = vadd.f32 %v10152_v54, %v10148_v37 }
 0x1a7   : > { %6085 = vmatpush1.bf16.msra.mxu1 %v8667_v20  ;;  %6104 = vmatprep.mubr.bf16.mxu1 %v7893_v11  ;;  %v5745_v20 = vshll.u32 %v10427_v44, 16  ;;  %v10462_v11 = vadd.f32 %v10362_v31, %v2880_v7  ;;  %v8686_v34 = vld [vmem:[#allocation4 + $0x7e4] ss:$8 sps:$4 sm:$0xff]   ;;  %v8719_v31 = vld [vmem:[%s11217_s7 + $0x3a4] ss:$8 sps:$4 sm:$0xff]   ;;  %v5767_v7 = vshll.u32 %v5723_v43, 16 }
 0x1a8   : > { %6086 = vmatprep.subr.bf16.mxu1 %v8675_v30  ;;  %v2881_v30 = vadd.f32 %v2850_v27, %v10224_v14  ;;  %v2852_v61 = vpop.f32.mrf.mxu0  ;;  %v5756_v14 = vor.u32 %v5755_v40, %v5752_v46  ;;  %v8717_v58 = vld [vmem:[%s11217_s7 + $0x3a0] ss:$8 sps:$4 sm:$0xff]   ;;  %v5778_v45 = vshrl.u32 %v5725_v39, 16  ;;  %v2255_v46 = vadd.f32 %v10275_v16, %v1675_v21 }
 0x1a9   : > { %6281 = vmatpush1.bf16.msra.mxu0 %v8702_v57  ;;  %v5759_v57 = vshll.u32 %v10444_v9, 16  ;;  %v2882_v53 = vadd.f32 %v2852_v61, %v2453_v48  ;;  %v10492_v48 = vrot.slane %v5745_v20, 5  ;;  %v5653_v43 = vshll.u32 %v10341_v1, 16  ;;  %v11279_v21 = vld [vmem:[#allocation12_spill] sm:$0xff] }
 0x1aa   : > { %6282 = vmatprep.subr.bf16.mxu0 %v8713_v33  ;;  %v10477_v27 = vadd.f32 %v10365_v4, %v2881_v30  ;;  %v5781_v33 = vshll.u32 %v5725_v39, 16  ;;  %v2856_v40 = vpop.f32.mrf.mxu0  ;;  %v8726_v4 = vld [vmem:[%s11217_s7 + $0x394] ss:$8 sps:$4 sm:$0xff]   ;;  %v940_v39 = vld [vmem:[#allocation2 + $0x88] sm:$0x11]  ;;  %v10499_v16 = vrot.slane %v5742_v52, 4 }
 0x1ab   : > { %6087 = vmatpush1.bf16.msra.mxu1 %v8673_v25  ;;  %v10487_v25 = vpop.f32.mrf.mxu1  ;;  %v8684_v30 = vld [vmem:[#allocation4 + $0x7e0] ss:$8 sps:$4 sm:$0xff]   ;;  %v10496_v37 = vadd.f32 %v10380_v28, %v2882_v53  ;;  %v2883_v54 = vadd.f32 %v2856_v40, %v10258_v13  ;;  %v8695_v20 = vld [vmem:[#allocation4 + $0x7d4] ss:$8 sps:$4 sm:$0xff]   ;;  %v5757_v12 = vrot.slane %v5756_v14, 4  ;;  %v5761_v29 = vrot.slane %v5759_v57, 5 }
 0x1ac   : > { %6088 = vmatprep.subr.bf16.mxu1 %v8680_v36  ;;  %5345 = vmatmul.mubr.bf16.gmra.mxu0 %v7820_v35  ;;  %v10501_v36 = vld [vmem:[#allocation3 + $0x24] sm:$0x1]  ;;  %v941_v35 = vsel %vm9106_vm10, %v11279_v21, %v940_v39  ;;  %v2858_v61 = vpop.f32.mrf.mxu0  ;;  %v5766_v9 = vrot.slane %v5764_v24, 4  ;;  %v5769_v28 = vrot.slane %v5767_v7, 5  ;;  %v5780_v52 = vrot.slane %v5778_v45, 4 }
 0x1ad   : > { %6283 = vmatpush1.bf16.msra.mxu0 %v8711_v19  ;;  %5354 = vmatprep.mubr.bf16.mxu0 %v7823_v17  ;;  %942 = vst [vmem:[#allocation2 + $0x88] sm:$0x11] %v941_v35  ;;  %v10507_v13 = vadd.f32 %v10395_v47, %v2883_v54  ;;  %v2884_v19 = vadd.f32 %v2858_v61, %v10265_v49  ;;  %v8724_v17 = vld [vmem:[%s11217_s7 + $0x390] ss:$8 sps:$4 sm:$0xff]   ;;  %v5783_v53 = vrot.slane %v5781_v33, 5  ;;  %v3068_v57 = vpop.f32.mrf.mxu1  ;;  %v11280_v47 = vshll.u32 %v10339_v55, 16 }
 0x1ae   : > { %6284 = vmatprep.subr.bf16.mxu0 %v8719_v31  ;;  %v2457_v31 = vadd.f32 %v10283_v60, %v2255_v46  ;;  %v2860_v14 = vpop.f32.mrf.mxu0  ;;  %v11281_v49 = vshrl.u32 %v10341_v1, 16  ;;  %v1170_v40 = vld [vmem:[#allocation3 + $0x4c] sm:$0x1]  ;;  %v5727_v33 = vld [vmem:[#allocation3 + $0x30] sm:$0xf]  ;;  %v5787_v61 = vshll.u32 %v10513_v3, 16 }
 0x1af   : > { %6089 = vmatpush2.bf16.msra.mxu1 %v8678_v42  ;;  %v7822_v42 = vcombine.low %v10432_v5, %v10315_v56  ;;  %v10520_v24 = vrot.slane %v11280_v47, 5  ;;  %v10527_v45 = vadd.f32 %v10425_v18, %v2884_v19  ;;  %v2885_v60 = vadd.f32 %v2860_v14, %v10273_v6  ;;  %v5729_v46 = vld [vmem:[#allocation3 + $0x38] sm:$0xf]  ;;  %v8732_v1 = vld [vmem:[%s11217_s7 + $0x384] ss:$8 sps:$4 sm:$0xff]  }
 0x1b0   : > { %6090 = vmatprep.subr.bf16.mxu1 %v8686_v34  ;;  %v10524_v7 = vrot.slane %v11281_v49, 4  ;;  %v10530_v34 = vrot.slane %v5653_v43, 5  ;;  %v1171_v55 = vsel %vm9054_vm2, %v11279_v21, %v1170_v40  ;;  %v2862_v39 = vpop.f32.mrf.mxu0  ;;  %v5748_v6 = vsel %vm9421_vm5, %v10499_v16, %v10492_v48  ;;  %v8701_v54 = vld [vmem:[#allocation4 + $0x7c4] ss:$8 sps:$4 sm:$0xff]   ;;  %v3070_v48 = vpop.f32.mrf.mxu1  ;;  %v8733_v49 = vld [vmem:[#allocation4 + $0x870] ss:$8 sps:$4 sm:$0xff]  }
 0x1b1   : > { %6285 = vmatpush1.bf16.msra.mxu0 %v8717_v58  ;;  %v5762_v18 = vsel %vm9421_vm5, %v5757_v12, %v5761_v29  ;;  %v5770_v58 = vor.u32 %v5769_v28, %v5766_v9  ;;  %v5773_v43 = vshll.u32 %v10501_v36, 16  ;;  %1172 = vst [vmem:[#allocation3 + $0x4c] sm:$0x1] %v1171_v55  ;;  %v2886_v21 = vadd.f32 %v2862_v39, %v2457_v31  ;;  %v8699_v28 = vld [vmem:[#allocation4 + $0x7c0] ss:$8 sps:$4 sm:$0xff]  }
 0x1b2   : > { %6286 = vmatprep.subr.bf16.mxu0 %v8726_v4  ;;  %v10546_v4 = vadd.f32 %v10455_v38, %v2885_v60  ;;  %v5784_v35 = vor.u32 %v5783_v53, %v5780_v52  ;;  %v2866_v19 = vpop.f32.mrf.mxu0  ;;  %v5792_v16 = vshrl.u32 %v5727_v33, 16  ;;  %v5795_v29 = vshll.u32 %v5727_v33, 16  ;;  %v8710_v53 = vld [vmem:[#allocation4 + $0x7b4] ss:$8 sps:$4 sm:$0xff]   ;;  %v10568_v33 = vld [vmem:[#allocation3 + $0x34] sm:$0x1]  ;;  %v3072_v55 = vpop.f32.mrf.mxu1 }
 0x1b3   : > { %6091 = vmatpush2.bf16.msra.mxu1 %v8684_v30  ;;  %v5806_v9 = vshrl.u32 %v5729_v46, 16  ;;  %v5809_v12 = vshll.u32 %v5729_v46, 16  ;;  %v2259_v30 = vadd.f32 %v10360_v41, %v10484_v0  ;;  %v10552_v14 = vadd.f32 %v10487_v25, %v2886_v21  ;;  %v8735_v41 = vld [vmem:[#allocation4 + $0x874] ss:$8 sps:$4 sm:$0xff]   ;;  %11282 = vst [vmem:[#allocation10_spill] sm:$0xff] %v10568_v33 }
 0x1b4   : > { %6092 = vmatprep.subr.bf16.mxu1 %v8695_v20  ;;  %5355 = vmatmul.mubr.bf16.gmra.mxu0 %v7822_v42  ;;  %v2887_v38 = vadd.f32 %v2866_v19, %v10297_v59  ;;  %v8730_v20 = vld [vmem:[%s11217_s7 + $0x380] ss:$8 sps:$4 sm:$0xff]   ;;  %v5664_v52 = vshrl.u32 %v10371_v2, 16  ;;  %v2868_v31 = vpop.f32.mrf.mxu0  ;;  %v7948_v42 = vcombine.low %v5748_v6, %v5762_v18  ;;  %v10560_v0 = vrot.slane %v5770_v58, 4  ;;  %v8716_v19 = vld [vmem:[#allocation4 + $0x7a4] ss:$8 sps:$4 sm:$0xff]  }
 0x1b5   : > { %6287 = vmatpush1.bf16.msra.mxu0 %v8724_v17  ;;  %6306 = vmatprep.mubr.bf16.mxu0 %v11264_v10  ;;  %v10562_v25 = vrot.slane %v5773_v43, 5  ;;  %v5667_v59 = vshll.u32 %v10371_v2, 16  ;;  %v2888_v47 = vadd.f32 %v2868_v31, %v10304_v32  ;;  %v5785_v40 = vrot.slane %v5784_v35, 4  ;;  %v8708_v43 = vld [vmem:[#allocation4 + $0x7b0] ss:$8 sps:$4 sm:$0xff]  }
 0x1b6   : > { %6288 = vmatprep.subr.bf16.mxu0 %v8732_v1  ;;  %v10565_v17 = vadd.f32 %v3068_v57, %v2887_v38  ;;  %v5789_v60 = vrot.slane %v5787_v61, 5  ;;  %v2870_v46 = vpop.f32.mrf.mxu0  ;;  %v5794_v39 = vrot.slane %v5792_v16, 4  ;;  %v5797_v1 = vrot.slane %v5795_v29, 5  ;;  %v11283_v57 = vld [vmem:[#allocation16_spill] sm:$0xff]  ;;  %v8738_v32 = vld [vmem:[#allocation4 + $0x864] ss:$8 sps:$4 sm:$0xff]  }
 0x1b7   : > { %6093 = vmatpush2.bf16.msra.mxu1 %v8693_v23  ;;  %v5808_v6 = vrot.slane %v5806_v9, 4  ;;  %v5811_v18 = vrot.slane %v5809_v12, 5  ;;  %v2461_v58 = vadd.f32 %v10308_v22, %v2259_v30  ;;  %v10571_v23 = vadd.f32 %v3070_v48, %v2888_v47  ;;  %v10576_v61 = vld [vmem:[#allocation3 + $0x3c] sm:$0x1]  ;;  %v5733_v12 = vld [vmem:[#allocation3 + $0x48] sm:$0xf]  ;;  %v3074_v47 = vpop.f32.mrf.mxu1 }
 0x1b8   : > { %6094 = vmatprep.subr.bf16.mxu1 %v8701_v54  ;;  %v2889_v21 = vadd.f32 %v2870_v46, %v11283_v57  ;;  %11284 = vst [vmem:[#allocation12_spill] sm:$0xff] %v10576_v61  ;;  %v5731_v54 = vld [vmem:[#allocation3 + $0x40] sm:$0xf]  ;;  %v2872_v16 = vpop.f32.mrf.mxu0  ;;  %v5776_v22 = vsel %vm9421_vm5, %v10560_v0, %v10562_v25  ;;  %v5678_v48 = vshrl.u32 %v10373_v26, 16  ;;  %v5681_v9 = vshll.u32 %v10373_v26, 16 }
 0x1b9   : > { %6289 = vmatpush1.bf16.msra.mxu0 %v8730_v20  ;;  %v2890_v38 = vadd.f32 %v2872_v16, %v2461_v58  ;;  %v10588_v20 = vld [vmem:[#allocation2 + $0x98] sm:$0x11]  ;;  %v5790_v31 = vsel %vm9421_vm5, %v5785_v40, %v5789_v60  ;;  %v10595_v0 = vld [vmem:[#allocation2 + $0x28] sm:$0x11]  ;;  %v5798_v26 = vor.u32 %v5797_v1, %v5794_v39  ;;  %v5812_v25 = vor.u32 %v5811_v18, %v5808_v6 }
 0x1ba   : > { %6700 = vmatprep.subr.bf16.mxu0 %v8735_v41  ;;  %v10586_v30 = vadd.f32 %v3072_v55, %v2889_v21  ;;  %11285 = vst [vmem:[#allocation16_spill] sm:$0xff] %v10588_v20  ;;  %v5801_v41 = vshll.u32 %v10568_v33, 16  ;;  %v10593_v46 = vpop.f32.mrf.mxu0  ;;  %11286 = vst [vmem:[#allocation20_spill] sm:$0xff] %v10595_v0  ;;  %v5820_v55 = vshrl.u32 %v5731_v54, 16  ;;  %v8714_v58 = vld [vmem:[#allocation4 + $0x7a0] ss:$8 sps:$4 sm:$0xff]  }
 0x1bb   : > { %6095 = vmatpush2.bf16.msra.mxu1 %v8699_v28  ;;  %v5815_v28 = vshll.u32 %v10576_v61, 16  ;;  %v10598_v57 = vadd.f32 %v3074_v47, %v2890_v38  ;;  %v8736_v21 = vld [vmem:[#allocation4 + $0x860] ss:$8 sps:$4 sm:$0xff]   ;;  %v5823_v40 = vshll.u32 %v5731_v54, 16  ;;  %v5837_v60 = vshll.u32 %v5733_v12, 16 }
 0x1bc   : > { %6096 = vmatprep.subr.bf16.mxu1 %v8710_v53  ;;  %6307 = vmatmul.mubr.bf16.vlgmr.msra.gmra.mxu0 %v7948_v42  ;;  %v5834_v53 = vshrl.u32 %v5733_v12, 16  ;;  %v10601_v16 = vpop.f32.mrf.mxu0  ;;  %v8741_v42 = vld [vmem:[#allocation4 + $0x854] ss:$8 sps:$4 sm:$0xff]   ;;  %v5666_v39 = vrot.slane %v5664_v52, 4  ;;  %v5669_v1 = vrot.slane %v5667_v59, 5  ;;  %v10605_v6 = vrot.slane %v5678_v48, 4 }
 0x1bd   : > { %6701 = vmatpush1.bf16.msra.mxu0 %v8733_v49  ;;  %6316 = vmatprep.mubr.bf16.mxu0 %v11264_v10  ;;  %v10607_v18 = vrot.slane %v5681_v9, 5  ;;  %v8723_v49 = vld [vmem:[#allocation4 + $0x794] ss:$8 sps:$4 sm:$0xff]   ;;  %v5645_v38 = vshll.u32 %v10588_v20, 16  ;;  %v5659_v54 = vshll.u32 %v10595_v0, 16  ;;  %v7949_v47 = vcombine.low %v5776_v22, %v5790_v31 }
 0x1be   : > { %6702 = vmatprep.subr.bf16.mxu0 %v8738_v32  ;;  %v5692_v12 = vshrl.u32 %v10432_v5, 16  ;;  %v10612_v32 = vpop.f32.mrf.mxu0  ;;  %v8739_v29 = vld [vmem:[#allocation4 + $0x850] ss:$8 sps:$4 sm:$0xff]   ;;  %v5799_v2 = vrot.slane %v5798_v26, 4  ;;  %v5803_v52 = vrot.slane %v5801_v41, 5  ;;  %v5813_v59 = vrot.slane %v5812_v25, 4 }
 0x1bf   : > { %6097 = vmatpush2.bf16.msra.mxu1 %v8708_v43  ;;  %v5817_v48 = vrot.slane %v5815_v28, 5  ;;  %v10614_v9 = vld [vmem:[#allocation2 + $0x40] sm:$0x11]  ;;  %v5822_v43 = vrot.slane %v5820_v55, 4  ;;  %v5825_v35 = vrot.slane %v5823_v40, 5  ;;  %v5836_v61 = vrot.slane %v5834_v53, 4 }
 0x1c0   : > { %6098 = vmatprep.subr.bf16.mxu1 %v8716_v19  ;;  %v5839_v33 = vrot.slane %v5837_v60, 5  ;;  %v10616_v20 = vpop.f32.mrf.mxu0  ;;  %v8744_v22 = vld [vmem:[#allocation4 + $0x844] ss:$8 sps:$4 sm:$0xff]   ;;  %v5670_v31 = vor.u32 %v5669_v1, %v5666_v39  ;;  %v10618_v19 = vld [vmem:[#allocation3 + $0x44] sm:$0x1]  ;;  %v11289_v26 = vor.u32 %v10520_v24, %v10450_v63  ;;  %v5647_v28 = vrot.slane %v5645_v38, 5 }
 0x1c1   : > { %6703 = vmatpush1.bf16.msra.mxu0 %v8736_v21  ;;  %11287 = vst [vmem:[#allocation21_spill] sm:$0xff] %v10618_v19  ;;  %v10620_v0 = vld [vmem:[#allocation3 + $0x4c] sm:$0x1]  ;;  %v8721_v41 = vld [vmem:[#allocation4 + $0x790] ss:$8 sps:$4 sm:$0xff]   ;;  %v11290_v55 = vor.u32 %v10530_v34, %v10524_v7  ;;  %v5661_v40 = vrot.slane %v5659_v54, 5  ;;  %v5804_v39 = vsel %vm9421_vm5, %v5799_v2, %v5803_v52  ;;  %v5818_v63 = vsel %vm9421_vm5, %v5813_v59, %v5817_v48 }
 0x1c2   : > { %6704 = vmatprep.subr.bf16.mxu0 %v8741_v42  ;;  %11288 = vst [vmem:[#allocation22_spill] sm:$0xff] %v10620_v0  ;;  %v5643_v25 = vrot.slane %v11289_v26, 4  ;;  %v8729_v53 = vld [vmem:[#allocation4 + $0x784] ss:$8 sps:$4 sm:$0xff]   ;;  %v10628_v60 = vpop.f32.mrf.mxu0  ;;  %v8727_v24 = vld [vmem:[#allocation4 + $0x780] ss:$8 sps:$4 sm:$0xff]   ;;  %v5826_v34 = vor.u32 %v5825_v35, %v5822_v43  ;;  %v5684_v2 = vor.u32 %v10607_v18, %v10605_v6  ;;  %v7892_v35 = vcombine.low %v10399_v50, %v10403_v51 }
 0x1c3   : > { %6099 = vmatpush2.bf16.msra.mxu1 %v8714_v58  ;;  %v5657_v21 = vrot.slane %v11290_v55, 4  ;;  %v10630_v42 = vld [vmem:[#allocation2 + $0x90] sm:$0x11]  ;;  %v5673_v58 = vshll.u32 %v10614_v9, 16  ;;  %v5829_v1 = vshll.u32 %v10618_v19, 16  ;;  %v5843_v38 = vshll.u32 %v10620_v0, 16 }
 0x1c4   : > { %6100 = vmatprep.subr.bf16.mxu1 %v8723_v49  ;;  %6317 = vmatmul.mubr.bf16.gmra.mxu0 %v7949_v47  ;;  %v8742_v7 = vld [vmem:[#allocation4 + $0x840] ss:$8 sps:$4 sm:$0xff]   ;;  %v5840_v49 = vor.u32 %v5839_v33, %v5836_v61  ;;  %v10640_v54 = vpop.f32.mrf.mxu0  ;;  %v5671_v47 = vrot.slane %v5670_v31, 4  ;;  %v8747_v52 = vld [vmem:[#allocation4 + $0x834] ss:$8 sps:$4 sm:$0xff]   ;;  %v10644_v59 = vrot.slane %v5692_v12, 4  ;;  %v10651_v33 = vsel %vm9421_vm5, %v5643_v25, %v5647_v28 }
 0x1c5   : > { %6705 = vmatpush1.bf16.msra.mxu0 %v8739_v29  ;;  %6326 = vmatprep.mubr.bf16.mxu0 %v11264_v10  ;;  %v5695_v29 = vshll.u32 %v10432_v5, 16  ;;  %v10655_v61 = vsel %vm9421_vm5, %v5657_v21, %v5661_v40  ;;  %v5687_v48 = vshll.u32 %v10630_v42, 16  ;;  %v6363_v6 = vld [vmem:[#allocation2 + $0x8] sm:$0xee]  ;;  %v6364_v18 = vld [vmem:[#allocation2 + $0x30] sm:$0xee]  ;;  %v7950_v43 = vcombine.low %v5804_v39, %v5818_v63 }
 0x1c6   : > { %6706 = vmatprep.subr.bf16.mxu0 %v8744_v22  ;;  %v10658_v12 = vpop.f32.mrf.mxu0  ;;  %v5675_v5 = vrot.slane %v5673_v58, 5  ;;  %v5706_v22 = vshrl.u32 %v10315_v56, 16  ;;  %v5709_v50 = vshll.u32 %v10315_v56, 16  ;;  %v8759_v51 = vld [vmem:[%s11217_s7 + $0x474] ss:$8 sps:$4 sm:$0xff]   ;;  %v5831_v26 = vrot.slane %v5829_v1, 5 }
 0x1c7   : > { %6101 = vmatpush2.bf16.msra.mxu1 %v8721_v41  ;;  %v8745_v31 = vld [vmem:[#allocation4 + $0x830] ss:$8 sps:$4 sm:$0xff]   ;;  %v5827_v41 = vrot.slane %v5826_v34, 4  ;;  %v5841_v25 = vrot.slane %v5840_v49, 4  ;;  %v5845_v28 = vrot.slane %v5843_v38, 5  ;;  %v7968_v21 = vrot.slane %v6363_v6, 9 }
 0x1c8   : > { %6102 = vmatprep.subr.bf16.mxu1 %v8729_v53  ;;  %v8750_v55 = vld [vmem:[#allocation4 + $0x824] ss:$8 sps:$4 sm:$0xff]   ;;  %v7969_v58 = vrot.slane %v6364_v18, 9  ;;  %v11292_v39 = vld [vmem:[#allocation17_spill] sm:$0xff]  ;;  %v7895_v56 = vcombine.high %v10651_v33, %v10655_v61  ;;  %v5685_v0 = vrot.slane %v5684_v2, 4  ;;  %v5689_v19 = vrot.slane %v5687_v48, 5  ;;  %v10672_v1 = vpop.f32.mrf.mxu0 }
 0x1c9   : > { %6707 = vmatpush1.bf16.msra.mxu0 %v8742_v7  ;;  %v11291_v40 = vld [vmem:[#allocation11_spill] sm:$0xff]  ;;  %v6393_v63 = vrot.slane %v11292_v39, 5  ;;  %v5697_v7 = vrot.slane %v5695_v29, 5  ;;  %v5708_v49 = vrot.slane %v5706_v22, 4  ;;  %v5711_v38 = vrot.slane %v5709_v50, 5 }
 0x1ca   : > { %6708 = vmatprep.subr.bf16.mxu0 %v8747_v52  ;;  %v6389_v53 = vrot.slane %v11291_v40, 5  ;;  %v8757_v34 = vld [vmem:[%s11217_s7 + $0x470] ss:$8 sps:$4 sm:$0xff]   ;;  %v10677_v6 = vld [vmem:[#allocation2 + $0x48] sm:$0x11]  ;;  %v5832_v29 = vsel %vm9421_vm5, %v5827_v41, %v5831_v26  ;;  %v5846_v48 = vsel %vm9421_vm5, %v5841_v25, %v5845_v28  ;;  %v10707_v28 = vpop.f32.mrf.mxu0 }
 0x1cb   : > { %6103 = vmatpush2.bf16.msra.mxu1 %v8727_v24  ;;  %v8765_v24 = vld [vmem:[%s11217_s7 + $0x464] ss:$8 sps:$4 sm:$0xff]   ;;  %v8748_v52 = vld [vmem:[#allocation4 + $0x820] ss:$8 sps:$4 sm:$0xff]   ;;  %v8751_v39 = vld [vmem:[#allocation4 + $0x810] ss:$8 sps:$4 sm:$0xff]  }
 0x1cc   : > { %6327 = vmatmul.mubr.bf16.gmra.mxu0 %v7950_v43  ;;  %6902 = vmatprep.subr.bf16.mxu1 %v8759_v51  ;;  %v10679_v2 = vld [vmem:[#allocation2 + $0x88] sm:$0x11]  ;;  %v10688_v43 = vsel %vm9421_vm5, %v5671_v47, %v5675_v5  ;;  %v10692_v51 = vsel %vm9653_vm9, %v7968_v21, %v6389_v53  ;;  %v11294_v41 = vld [vmem:[#allocation14_spill] sm:$0xff]  ;;  %v5698_v47 = vor.u32 %v5697_v7, %v10644_v59  ;;  %v11295_v59 = vld [vmem:[#allocation15_spill] sm:$0xff] }
 0x1cd   : > { %6709 = vmatpush1.bf16.msra.mxu0 %v8745_v31  ;;  %6336 = vmatprep.mubr.bf16.mxu0 %v11264_v10  ;;  %v8753_v22 = vld [vmem:[#allocation4 + $0x814] ss:$8 sps:$4 sm:$0xff]   ;;  %v10696_v31 = vsel %vm9653_vm9, %v7969_v58, %v6393_v63  ;;  %v8763_v5 = vld [vmem:[%s11217_s7 + $0x460] ss:$8 sps:$4 sm:$0xff]   ;;  %v5712_v21 = vor.u32 %v5711_v38, %v5708_v49  ;;  %v5715_v40 = vshll.u32 %v10679_v2, 16  ;;  %v7951_v53 = vcombine.low %v5832_v29, %v5846_v48  ;;  %v11296_v38 = vld [vmem:[#allocation18_spill] sm:$0xff]  ;;  %v10731_v48 = vpop.f32.mrf.mxu0 }
 0x1ce   : > { %v3376_v18 = vpop.f32.mrf.mxu1  ;;  %6105 = vmatmul.mubr.bf16.vlgmr.msra.gmra.mxu1 %v7892_v35  ;;  %6710 = vmatprep.subr.bf16.mxu0 %v8750_v55  ;;  %v10701_v35 = vsel %vm9421_vm5, %v5685_v0, %v5689_v19  ;;  %v5701_v55 = vshll.u32 %v10677_v6, 16  ;;  %v8771_v0 = vld [vmem:[%s11217_s7 + $0x454] ss:$8 sps:$4 sm:$0xff]   ;;  %v7985_v63 = vcombine.high %v10692_v51, %v10696_v31  ;;  %v7894_v7 = vcombine.low %v10651_v33, %v10655_v61 }
 0x1cf   : > { %v3415_v26 = vadd.f32 %v3376_v18, %v11294_v41  ;;  %6114 = vmatprep.mubr.bf16.mxu1 %v7895_v56  ;;  %6903 = vmatpush1.bf16.msra.mxu1 %v8757_v34  ;;  %v8756_v34 = vld [vmem:[#allocation4 + $0x804] ss:$8 sps:$4 sm:$0xff]   ;;  %v5699_v18 = vrot.slane %v5698_v47, 4  ;;  %v5713_v61 = vrot.slane %v5712_v21, 4  ;;  %v8762_v47 = vld [vmem:[#allocation4 + $0x8f4] ss:$8 sps:$4 sm:$0xff]  }
 0x1d0   : > { %v3378_v25 = vpop.f32.mrf.mxu1  ;;  %6904 = vmatprep.subr.bf16.mxu1 %v8765_v24  ;;  %v5703_v33 = vrot.slane %v5701_v55, 5 }
 0x1d1   : > { %v10715_v19 = vadd.f32 %v10593_v46, %v3415_v26  ;;  %v3416_v58 = vadd.f32 %v3378_v25, %v11295_v59  ;;  %6711 = vmatpush1.bf16.msra.mxu0 %v8748_v52  ;;  %v7897_v46 = vcombine.high %v10688_v43, %v10701_v35  ;;  %v8769_v52 = vld [vmem:[%s11217_s7 + $0x450] ss:$8 sps:$4 sm:$0xff]  }
 0x1d2   : > { %v3380_v56 = vpop.f32.mrf.mxu1  ;;  %6712 = vmatprep.subr.bf16.mxu0 %v8753_v22  ;;  %v5717_v22 = vrot.slane %v5715_v40, 5 }
 0x1d3   : > { %v10723_v49 = vadd.f32 %v10601_v16, %v3416_v58  ;;  %v3417_v24 = vadd.f32 %v3380_v56, %v11296_v38  ;;  %6905 = vmatpush1.bf16.msra.mxu1 %v8763_v5  ;;  %v8777_v16 = vld [vmem:[%s11217_s7 + $0x444] ss:$8 sps:$4 sm:$0xff]   ;;  %v8754_v5 = vld [vmem:[#allocation4 + $0x800] ss:$8 sps:$4 sm:$0xff]   ;;  %v8760_v58 = vld [vmem:[#allocation4 + $0x8f0] ss:$8 sps:$4 sm:$0xff]  }
 0x1d4   : > { %v3382_v29 = vpop.f32.mrf.mxu1  ;;  %6337 = vmatmul.mubr.bf16.gmra.mxu0 %v7951_v53  ;;  %6906 = vmatprep.subr.bf16.mxu1 %v8771_v0  ;;  %v10749_v53 = vsel %vm9421_vm5, %v5699_v18, %v5703_v33  ;;  %v10753_v0 = vsel %vm9421_vm5, %v5713_v61, %v5717_v22  ;;  %v6419_v18 = vld [vmem:[#allocation3 + $0x10] sm:$0xe]  ;;  %v8795_v61 = vld [vmem:[%s11217_s7 + $0x414] ss:$8 sps:$4 sm:$0xff]   ;;  %v6420_v22 = vld [vmem:[#allocation3 + $0x18] sm:$0xe] }
 0x1d5   : > { %v10737_v41 = vadd.f32 %v10612_v32, %v3417_v24  ;;  %v3418_v26 = vadd.f32 %v3382_v29, %v10439_v8  ;;  %6713 = vmatpush1.bf16.msra.mxu0 %v8751_v39  ;;  %6732 = vmatprep.mubr.bf16.mxu0 %v7985_v63  ;;  %v8775_v32 = vld [vmem:[%s11217_s7 + $0x440] ss:$8 sps:$4 sm:$0xff]   ;;  %v3610_v8 = vpop.f32.mrf.mxu0  ;;  %v7896_v63 = vcombine.low %v10688_v43, %v10701_v35  ;;  %v8789_v43 = vld [vmem:[%s11217_s7 + $0x424] ss:$8 sps:$4 sm:$0xff]   ;;  %v8766_v35 = vld [vmem:[#allocation4 + $0x8e0] ss:$8 sps:$4 sm:$0xff]  }
 0x1d6   : > { %v3386_v25 = vpop.f32.mrf.mxu1  ;;  %6115 = vmatmul.mubr.bf16.gmra.mxu1 %v7894_v7  ;;  %6714 = vmatprep.subr.bf16.mxu0 %v8756_v34  ;;  %v7899_v34 = vcombine.high %v10749_v53, %v10753_v0 }
 0x1d7   : > { %v10741_v55 = vadd.f32 %v10616_v20, %v3418_v26  ;;  %v3419_v21 = vadd.f32 %v3386_v25, %v10447_v62  ;;  %6124 = vmatprep.mubr.bf16.mxu1 %v7897_v46  ;;  %6907 = vmatpush1.bf16.msra.mxu1 %v8769_v52  ;;  %v8783_v62 = vld [vmem:[%s11217_s7 + $0x434] ss:$8 sps:$4 sm:$0xff]   ;;  %v3612_v38 = vpop.f32.mrf.mxu0  ;;  %v8774_v46 = vld [vmem:[#allocation4 + $0x8d4] ss:$8 sps:$4 sm:$0xff]  }
 0x1d8   : > { %v3388_v40 = vpop.f32.mrf.mxu1  ;;  %6908 = vmatprep.subr.bf16.mxu1 %v8777_v16  ;;  %v8772_v16 = vld [vmem:[#allocation4 + $0x8d0] ss:$8 sps:$4 sm:$0xff]   ;;  %v8780_v25 = vld [vmem:[#allocation4 + $0x8c4] ss:$8 sps:$4 sm:$0xff]  }
 0x1d9   : > { %v3420_v20 = vadd.f32 %v3388_v40, %v10462_v11  ;;  %v10760_v59 = vadd.f32 %v10628_v60, %v3419_v21  ;;  %6715 = vmatpush1.bf16.msra.mxu0 %v8754_v5  ;;  %v8781_v11 = vld [vmem:[%s11217_s7 + $0x430] ss:$8 sps:$4 sm:$0xff]   ;;  %v3616_v33 = vpop.f32.mrf.mxu0  ;;  %v7898_v5 = vcombine.low %v10749_v53, %v10753_v0  ;;  %v6445_v21 = vrot.slane %v10427_v44, 5  ;;  %v8801_v44 = vld [vmem:[%s11217_s7 + $0x404] ss:$8 sps:$4 sm:$0xff]  }
 0x1da   : > { %v3390_v39 = vpop.f32.mrf.mxu1  ;;  %6716 = vmatprep.subr.bf16.mxu0 %v8762_v47  ;;  %v7976_v47 = vrot.slane %v6419_v18, 9  ;;  %v6457_v18 = vrot.slane %v10513_v3, 5 }
 0x1db   : > { %v3421_v56 = vadd.f32 %v3390_v39, %v10477_v27  ;;  %v10766_v7 = vadd.f32 %v10640_v54, %v3420_v20  ;;  %6909 = vmatpush1.bf16.msra.mxu1 %v8775_v32  ;;  %v3618_v53 = vpop.f32.mrf.mxu0 }
 0x1dc   : > { %v3392_v60 = vpop.f32.mrf.mxu1  ;;  %6910 = vmatprep.subr.bf16.mxu1 %v8783_v62  ;;  %v11297_v62 = vld [vmem:[#allocation19_spill] sm:$0xff] }
 0x1dd   : > { %v3422_v27 = vadd.f32 %v3392_v60, %v10496_v37  ;;  %v10778_v54 = vadd.f32 %v10658_v12, %v3421_v56  ;;  %6717 = vmatpush2.bf16.msra.mxu0 %v8760_v58  ;;  %v8787_v37 = vld [vmem:[%s11217_s7 + $0x420] ss:$8 sps:$4 sm:$0xff]   ;;  %v6449_v20 = vrot.slane %v11297_v62, 5  ;;  %v3620_v60 = vpop.f32.mrf.mxu0 }
 0x1de   : > { %v3396_v24 = vpop.f32.mrf.mxu1  ;;  %6125 = vmatmul.mubr.bf16.gmra.mxu1 %v7896_v63  ;;  %6718 = vmatprep.subr.bf16.mxu0 %v8768_v15  ;;  %v8786_v63 = vld [vmem:[#allocation4 + $0x8b4] ss:$8 sps:$4 sm:$0xff]   ;;  %v6446_v15 = vsel %vm9653_vm9, %v7976_v47, %v6445_v21  ;;  %v6366_v21 = vld [vmem:[#allocation2 + $0x38] sm:$0xee]  ;;  %v8796_v62 = vld [vmem:[#allocation4 + $0x890] ss:$8 sps:$4 sm:$0xff]  }
 0x1df   : > { %v3423_v52 = vadd.f32 %v3396_v24, %v10507_v13  ;;  %v10782_v29 = vadd.f32 %v10672_v1, %v3422_v27  ;;  %6134 = vmatprep.mubr.bf16.mxu1 %v7899_v34  ;;  %6911 = vmatpush1.bf16.msra.mxu1 %v8781_v11  ;;  %v6422_v27 = vld [vmem:[#allocation3 + $0x28] sm:$0xe] }
 0x1e0   : > { %v3398_v12 = vpop.f32.mrf.mxu1  ;;  %6912 = vmatprep.subr.bf16.mxu1 %v8789_v43  ;;  %v6421_v43 = vld [vmem:[#allocation3 + $0x20] sm:$0xe] }
 0x1e1   : > { %v3424_v13 = vadd.f32 %v3398_v12, %v10527_v45  ;;  %v10792_v1 = vadd.f32 %v10707_v28, %v3423_v52  ;;  %6719 = vmatpush2.bf16.msra.mxu0 %v8766_v35  ;;  %v8793_v45 = vld [vmem:[%s11217_s7 + $0x410] ss:$8 sps:$4 sm:$0xff]   ;;  %v7977_v28 = vrot.slane %v6420_v22, 9  ;;  %v7978_v22 = vrot.slane %v6421_v43, 9 }
 0x1e2   : > { %v3400_v26 = vpop.f32.mrf.mxu1  ;;  %6720 = vmatprep.subr.bf16.mxu0 %v8774_v46  ;;  %v8792_v46 = vld [vmem:[#allocation4 + $0x8a4] ss:$8 sps:$4 sm:$0xff]  }
 0x1e3   : > { %v3425_v32 = vadd.f32 %v3400_v26, %v10546_v4  ;;  %v10799_v40 = vadd.f32 %v10731_v48, %v3424_v13  ;;  %6913 = vmatpush1.bf16.msra.mxu1 %v8787_v37  ;;  %v8778_v48 = vld [vmem:[#allocation4 + $0x8c0] ss:$8 sps:$4 sm:$0xff]   ;;  %v6453_v37 = vrot.slane %v10501_v36, 5  ;;  %v7979_v13 = vrot.slane %v6422_v27, 9 }
 0x1e4   : > { %v3402_v58 = vpop.f32.mrf.mxu1  ;;  %6914 = vmatprep.subr.bf16.mxu1 %v8795_v61 }
 0x1e5   : > { %v3426_v4 = vadd.f32 %v3402_v58, %v10552_v14  ;;  %v10809_v0 = vadd.f32 %v3610_v8, %v3425_v32  ;;  %6721 = vmatpush2.bf16.msra.mxu0 %v8772_v16  ;;  %v8799_v14 = vld [vmem:[%s11217_s7 + $0x400] ss:$8 sps:$4 sm:$0xff]   ;;  %v6450_v8 = vsel %vm9653_vm9, %v7977_v28, %v6449_v20  ;;  %v6458_v47 = vsel %vm9653_vm9, %v7979_v13, %v6457_v18  ;;  %v6424_v28 = vld [vmem:[#allocation3 + $0x38] sm:$0xe] }
 0x1e6   : > { %v3406_v39 = vpop.f32.mrf.mxu1  ;;  %6135 = vmatmul.mubr.bf16.gmra.mxu1 %v7898_v5  ;;  %6722 = vmatprep.subr.bf16.mxu0 %v8780_v25  ;;  %v8040_v52 = vcombine.low %v6446_v15, %v6450_v8  ;;  %v8790_v5 = vld [vmem:[#allocation4 + $0x8a0] ss:$8 sps:$4 sm:$0xff]   ;;  %v8798_v25 = vld [vmem:[#allocation4 + $0x894] ss:$8 sps:$4 sm:$0xff]  }
 0x1e7   : > { %v3427_v56 = vadd.f32 %v3406_v39, %v10565_v17  ;;  %v10814_v34 = vadd.f32 %v3612_v38, %v3426_v4  ;;  %6915 = vmatpush1.bf16.msra.mxu1 %v8793_v45  ;;  %6934 = vmatprep.mubr.bf16.mxu1 %v11264_v10  ;;  %v8784_v38 = vld [vmem:[#allocation4 + $0x8b0] ss:$8 sps:$4 sm:$0xff]   ;;  %v6423_v45 = vld [vmem:[#allocation3 + $0x30] sm:$0xe]  ;;  %v7971_v39 = vrot.slane %v6366_v21, 9  ;;  %v6409_v21 = vrot.slane %v10630_v42, 5 }
 0x1e8   : > { %v3408_v11 = vpop.f32.mrf.mxu1  ;;  %6916 = vmatprep.subr.bf16.mxu1 %v8801_v44  ;;  %v11298_v20 = vld [vmem:[#allocation16_spill] sm:$0xff]  ;;  %v6367_v18 = vld [vmem:[#allocation2 + $0x58] sm:$0xee] }
 0x1e9   : > { %v3428_v35 = vadd.f32 %v3408_v11, %v10571_v23  ;;  %v10823_v17 = vadd.f32 %v3616_v33, %v3427_v56  ;;  %6723 = vmatpush2.bf16.msra.mxu0 %v8778_v48  ;;  %v3622_v33 = vpop.f32.mrf.mxu0  ;;  %v6397_v58 = vrot.slane %v11298_v20, 5  ;;  %v7980_v56 = vrot.slane %v6423_v45, 9 }
 0x1ea   : > { %v3410_v24 = vpop.f32.mrf.mxu1  ;;  %6724 = vmatprep.subr.bf16.mxu0 %v8786_v63  ;;  %v11299_v63 = vld [vmem:[#allocation20_spill] sm:$0xff]  ;;  %v7981_v11 = vrot.slane %v6424_v28, 9  ;;  %v11302_v28 = vld [vmem:[#allocation21_spill] sm:$0xff] }
 0x1eb   : > { %v3429_v12 = vadd.f32 %v3410_v24, %v10586_v30  ;;  %v10828_v61 = vadd.f32 %v3618_v53, %v3428_v35  ;;  %6917 = vmatpush1.bf16.msra.mxu1 %v8799_v14  ;;  %v6454_v30 = vsel %vm9653_vm9, %v7978_v22, %v6453_v37  ;;  %v8804_v53 = vld [vmem:[#allocation4 + $0x884] ss:$8 sps:$4 sm:$0xff]   ;;  %v6401_v15 = vrot.slane %v11299_v63, 5  ;;  %v8802_v35 = vld [vmem:[#allocation4 + $0x880] ss:$8 sps:$4 sm:$0xff]  }
 0x1ec   : > { %v3412_v23 = vpop.f32.mrf.mxu1  ;;  %v8041_v4 = vcombine.low %v6454_v30, %v6458_v47  ;;  %v11300_v14 = vld [vmem:[#allocation10_spill] sm:$0xff]  ;;  %v7984_v22 = vcombine.low %v10692_v51, %v10696_v31  ;;  %v7972_v47 = vrot.slane %v6367_v18, 9  ;;  %v6413_v18 = vrot.slane %v10677_v6, 5 }
 0x1ed   : > { %v3430_v16 = vadd.f32 %v3412_v23, %v10598_v57  ;;  %v10831_v26 = vadd.f32 %v3620_v60, %v3429_v12  ;;  %6725 = vmatpush2.bf16.msra.mxu0 %v8784_v38  ;;  %v6365_v57 = vld [vmem:[#allocation2 + $0x60] sm:$0xee]  ;;  %v6461_v8 = vrot.slane %v11300_v14, 5  ;;  %v6402_v24 = vsel %vm9653_vm9, %v7971_v39, %v6401_v15  ;;  %v6368_v12 = vld [vmem:[#allocation2 + $0x68] sm:$0xee] }
 0x1ee   : > { %6726 = vmatprep.subr.bf16.mxu0 %v8792_v46  ;;  %v10833_v36 = vpop.f32.mrf.mxu1  ;;  %6935 = vmatmul.mubr.bf16.vlgmr.msra.gmra.mxu1 %v8040_v52  ;;  %v7970_v48 = vrot.slane %v6365_v57, 9  ;;  %v11301_v60 = vld [vmem:[#allocation12_spill] sm:$0xff]  ;;  %v7973_v57 = vrot.slane %v6368_v12, 9  ;;  %v6369_v39 = vld [vmem:[#allocation2 + $0x10] sm:$0xee] }
 0x1ef   : > { %v10835_v3 = vadd.f32 %v3622_v33, %v3430_v16  ;;  %6944 = vmatprep.mubr.bf16.mxu1 %v11264_v10  ;;  %v6465_v43 = vrot.slane %v11301_v60, 5  ;;  %v6462_v52 = vsel %vm9653_vm9, %v7980_v56, %v6461_v8  ;;  %v6425_v23 = vld [vmem:[#allocation3 + $0x40] sm:$0xe]  ;;  %v6426_v33 = vld [vmem:[#allocation3 + $0x48] sm:$0xe] }
 0x1f0   : > { %v10842_v32 = vpop.f32.mrf.mxu1  ;;  %v6398_v38 = vsel %vm9653_vm9, %v7970_v48, %v6397_v58  ;;  %v7982_v45 = vrot.slane %v6425_v23, 9  ;;  %v7983_v20 = vrot.slane %v6426_v33, 9  ;;  %v11303_v58 = vld [vmem:[#allocation22_spill] sm:$0xff]  ;;  %v6410_v42 = vsel %vm9653_vm9, %v7973_v57, %v6409_v21 }
 0x1f1   : > { %6727 = vmatpush2.bf16.msra.mxu0 %v8790_v5  ;;  %v6466_v37 = vsel %vm9653_vm9, %v7981_v11, %v6465_v43  ;;  %v7987_v16 = vcombine.high %v6398_v38, %v6402_v24  ;;  %v6405_v5 = vrot.slane %v10614_v9, 5  ;;  %v6370_v56 = vld [vmem:[#allocation2 + $0x78] sm:$0xee]  ;;  %v7986_v11 = vcombine.low %v6398_v38, %v6402_v24 }
 0x1f2   : > { %6728 = vmatprep.subr.bf16.mxu0 %v8798_v25  ;;  %v10845_v44 = vpop.f32.mrf.mxu1  ;;  %v8042_v30 = vcombine.low %v6462_v52, %v6466_v37  ;;  %v7974_v52 = vrot.slane %v6369_v39, 9  ;;  %v7975_v12 = vrot.slane %v6370_v56, 9 }
 0x1f3   : > { %v6406_v9 = vsel %vm9653_vm9, %v7972_v47, %v6405_v5 }
 0x1f4   : > { %v10850_v27 = vpop.f32.mrf.mxu1  ;;  %v6414_v6 = vsel %vm9653_vm9, %v7974_v52, %v6413_v18  ;;  %v7988_v5 = vcombine.low %v6406_v9, %v6410_v42 }
 0x1f5   : > { %6729 = vmatpush2.bf16.msra.mxu0 %v8796_v62  ;;  %v6469_v62 = vrot.slane %v11302_v28, 5 }
 0x1f6   : > { %6730 = vmatprep.subr.bf16.mxu0 %v8804_v53  ;;  %6945 = vmatmul.mubr.bf16.gmra.mxu1 %v8041_v4  ;;  %v10856_v46 = vpop.f32.mrf.mxu1  ;;  %v6473_v53 = vrot.slane %v11303_v58, 5 }
 0x1f7   : > { %6954 = vmatprep.mubr.bf16.mxu1 %v11264_v10  ;;  %v6470_v15 = vsel %vm9653_vm9, %v7982_v45, %v6469_v62 }
 0x1f8   : > { %v4370_v13 = vpop.f32.mrf.mxu1 }
 0x1f9   : > { %6731 = vmatpush2.bf16.msra.mxu0 %v8802_v35  ;;  %v7989_v35 = vcombine.high %v6406_v9, %v6410_v42 }
 0x1fa   : > { %v4372_v25 = vpop.f32.mrf.mxu1  ;;  %v4156_v51 = vpop.f32.mrf.mxu0 }
 0x1fb   : > { %v4195_v4 = vadd.f32 %v4156_v51, %v10715_v19  ;;  %v6474_v19 = vsel %vm9653_vm9, %v7983_v20, %v6473_v53 }
 0x1fc   : > { %6733 = vmatmul.mubr.bf16.vlgmr.msra.gmra.mxu0 %v7984_v22  ;;  %v4374_v31 = vpop.f32.mrf.mxu1  ;;  %v4158_v48 = vpop.f32.mrf.mxu0  ;;  %v8043_v37 = vcombine.low %v6470_v15, %v6474_v19  ;;  %v6417_v22 = vrot.slane %v10679_v2, 5 }
 0x1fd   : > { %6742 = vmatprep.mubr.bf16.mxu0 %v7987_v16  ;;  %v4196_v63 = vadd.f32 %v4158_v48, %v10723_v49  ;;  %v10881_v14 = vadd.f32 %v10833_v36, %v4195_v4 }
 0x1fe   : > { %6955 = vmatmul.mubr.bf16.gmra.mxu1 %v8042_v30  ;;  %v4160_v8 = vpop.f32.mrf.mxu0  ;;  %v4378_v60 = vpop.f32.mrf.mxu1  ;;  %v6418_v2 = vsel %vm9653_vm9, %v7975_v12, %v6417_v22 }
 0x1ff   : > { %6964 = vmatprep.mubr.bf16.mxu1 %v11264_v10  ;;  %v4197_v43 = vadd.f32 %v4160_v8, %v10737_v41  ;;  %v10885_v49 = vadd.f32 %v10842_v32, %v4196_v63  ;;  %v7991_v47 = vcombine.high %v6414_v6, %v6418_v2  ;;  %v7990_v58 = vcombine.low %v6414_v6, %v6418_v2 }
 0x200   : > { %v4162_v10 = vpop.f32.mrf.mxu0  ;;  %v4380_v41 = vpop.f32.mrf.mxu1 }
 0x201   : > { %v4198_v36 = vadd.f32 %v4162_v10, %v10741_v55  ;;  %v10891_v23 = vadd.f32 %v10845_v44, %v4197_v43 }
 0x202   : > { %v4166_v38 = vpop.f32.mrf.mxu0 }
 0x203   : > { %v4199_v24 = vadd.f32 %v4166_v38, %v10760_v59  ;;  %v10895_v32 = vadd.f32 %v10850_v27, %v4198_v36  ;;  %v4382_v59 = vpop.f32.mrf.mxu1 }
 0x204   : > { %6743 = vmatmul.mubr.bf16.gmra.mxu0 %v7986_v11  ;;  %v4168_v33 = vpop.f32.mrf.mxu0 }
 0x205   : > { %6752 = vmatprep.mubr.bf16.mxu0 %v7989_v35  ;;  %v10902_v55 = vadd.f32 %v10856_v46, %v4199_v24  ;;  %v4200_v44 = vadd.f32 %v4168_v33, %v10766_v7  ;;  %v4384_v28 = vpop.f32.mrf.mxu1 }
 0x206   : > { %6965 = vmatmul.mubr.bf16.gmra.mxu1 %v8043_v37  ;;  %v4170_v16 = vpop.f32.mrf.mxu0 }
 0x207   : > { %v10905_v30 = vadd.f32 %v4370_v13, %v4200_v44  ;;  %v4201_v27 = vadd.f32 %v4170_v16, %v10778_v54 }
 0x208   : > { %v4172_v57 = vpop.f32.mrf.mxu0 }
 0x209   : > { %v10908_v21 = vadd.f32 %v4372_v25, %v4201_v27  ;;  %v4202_v45 = vadd.f32 %v4172_v57, %v10782_v29 }
 0x20a   : > { %v4176_v50 = vpop.f32.mrf.mxu0 }
 0x20b   : > { %v10911_v46 = vadd.f32 %v4374_v31, %v4202_v45  ;;  %v4203_v7 = vadd.f32 %v4176_v50, %v10792_v1 }
 0x20c   : > { %6753 = vmatmul.mubr.bf16.gmra.mxu0 %v7988_v5  ;;  %v4178_v62 = vpop.f32.mrf.mxu0 }
 0x20d   : > { %6762 = vmatprep.mubr.bf16.mxu0 %v7991_v47  ;;  %v10914_v20 = vadd.f32 %v4378_v60, %v4203_v7  ;;  %v4204_v13 = vadd.f32 %v4178_v62, %v10799_v40 }
 0x20e   : > { %v4180_v54 = vpop.f32.mrf.mxu0 }
 0x20f   : > { %v4406_v25 = vadd.f32 %v4380_v41, %v4204_v13  ;;  %v4205_v51 = vadd.f32 %v4180_v54, %v10809_v0 }
 0x210   : > { %v4388_v53 = vpop.f32.mrf.mxu1  ;;  %v4182_v29 = vpop.f32.mrf.mxu0 }
 0x211   : > { %v4407_v4 = vadd.f32 %v4382_v59, %v4205_v51  ;;  %v4206_v48 = vadd.f32 %v4182_v29, %v10814_v34 }
 0x212   : > { %v4186_v31 = vpop.f32.mrf.mxu0  ;;  %v4390_v9 = vpop.f32.mrf.mxu1 }
 0x213   : > { %v4408_v1 = vadd.f32 %v4384_v28, %v4206_v48  ;;  %v4207_v42 = vadd.f32 %v4186_v31, %v10823_v17 }
 0x214   : > { %6763 = vmatmul.mubr.bf16.gmra.mxu0 %v7990_v58  ;;  %v4188_v39 = vpop.f32.mrf.mxu0  ;;  %v4392_v19 = vpop.f32.mrf.mxu1 }
 0x215   : > { %v4409_v63 = vadd.f32 %v4388_v53, %v4207_v42  ;;  %v4208_v40 = vadd.f32 %v4188_v39, %v10828_v61 }
 0x216   : > { %v4190_v15 = vpop.f32.mrf.mxu0  ;;  %v4394_v34 = vpop.f32.mrf.mxu1 }
 0x217   : > { %v4410_v56 = vadd.f32 %v4390_v9, %v4208_v40  ;;  %v4209_v8 = vadd.f32 %v4190_v15, %v10831_v26 }
 0x218   : > { %v4192_v0 = vpop.f32.mrf.mxu0 }
 0x219   : > { %v4411_v11 = vadd.f32 %v4392_v19, %v4209_v8  ;;  %v4210_v60 = vadd.f32 %v4192_v0, %v10835_v3 }
 0x21b   : > { %v4412_v35 = vadd.f32 %v4394_v34, %v4210_v60 }
 0x21c   : > { %v4986_v43 = vpop.f32.mrf.mxu0 }
 0x21e   : > { %v4988_v52 = vpop.f32.mrf.mxu0 }
 0x220   : > { %v4990_v10 = vpop.f32.mrf.mxu0 }
 0x222   : > { %v4992_v37 = vpop.f32.mrf.mxu0 }
 0x224   : > { %v4996_v17 = vpop.f32.mrf.mxu0 }
 0x226   : > { %v4998_v18 = vpop.f32.mrf.mxu0 }
 0x228   : > { %v5000_v12 = vpop.f32.mrf.mxu0 }
 0x22a   : > { %v5002_v22 = vpop.f32.mrf.mxu0 }
 0x22c   : > { %v5006_v41 = vpop.f32.mrf.mxu0 }
 0x22e   : > { %v4784_v61 = vpop.f32.mrf.mxu1  ;;  %v5008_v44 = vpop.f32.mrf.mxu0 }
 0x22f   : > { %v4823_v36 = vadd.f32 %v4784_v61, %v10881_v14 }
 0x230   : > { %v4786_v38 = vpop.f32.mrf.mxu1  ;;  %v5010_v57 = vpop.f32.mrf.mxu0 }
 0x231   : > { %v10924_v26 = vadd.f32 %v4986_v43, %v4823_v36  ;;  %v4824_v24 = vadd.f32 %v4786_v38, %v10885_v49 }
 0x232   : > { %v4788_v3 = vpop.f32.mrf.mxu1  ;;  %v5012_v62 = vpop.f32.mrf.mxu0 }
 0x233   : > { %v10927_v33 = vadd.f32 %v4988_v52, %v4824_v24  ;;  %v4825_v6 = vadd.f32 %v4788_v3, %v10891_v23 }
 0x234   : > { %v4790_v2 = vpop.f32.mrf.mxu1 }
 0x235   : > { %v10930_v16 = vadd.f32 %v4990_v10, %v4825_v6  ;;  %v4826_v5 = vadd.f32 %v4790_v2, %v10895_v32 }
 0x236   : > { %v4794_v59 = vpop.f32.mrf.mxu1 }
 0x237   : > { %v10933_v27 = vadd.f32 %v4992_v37, %v4826_v5  ;;  %v4827_v14 = vadd.f32 %v4794_v59, %v10902_v55 }
 0x238   : > { %v4796_v47 = vpop.f32.mrf.mxu1 }
 0x239   : > { %v4828_v49 = vadd.f32 %v4796_v47, %v10905_v30  ;;  %v10937_v45 = vadd.f32 %v4996_v17, %v4827_v14  ;;  %v5016_v30 = vpop.f32.mrf.mxu0 }
 0x23a   : > { %v4798_v50 = vpop.f32.mrf.mxu1 }
 0x23b   : > { %v4829_v23 = vadd.f32 %v4798_v50, %v10908_v21  ;;  %v10940_v28 = vadd.f32 %v4998_v18, %v4828_v49  ;;  %v5018_v42 = vpop.f32.mrf.mxu0 }
 0x23c   : > { %v4800_v7 = vpop.f32.mrf.mxu1 }
 0x23d   : > { %v4830_v32 = vadd.f32 %v4800_v7, %v10911_v46  ;;  %v10943_v13 = vadd.f32 %v5000_v12, %v4829_v23  ;;  %v5020_v8 = vpop.f32.mrf.mxu0 }
 0x23e   : > { %v4804_v54 = vpop.f32.mrf.mxu1 }
 0x23f   : > { %v4831_v55 = vadd.f32 %v4804_v54, %v10914_v20  ;;  %v10946_v58 = vadd.f32 %v5002_v22, %v4830_v32  ;;  %v5022_v52 = vpop.f32.mrf.mxu0 }
 0x240   : > { %v4806_v53 = vpop.f32.mrf.mxu1 }
 0x241   : > { %v4832_v51 = vadd.f32 %v4806_v53, %v4406_v25  ;;  %v10948_v29 = vadd.f32 %v5006_v41, %v4831_v55 }
 0x242   : > { %v4808_v48 = vpop.f32.mrf.mxu1 }
 0x243   : > { %v4833_v21 = vadd.f32 %v4808_v48, %v4407_v4  ;;  %v10950_v31 = vadd.f32 %v5008_v44, %v4832_v51 }
 0x244   : > { %v4810_v9 = vpop.f32.mrf.mxu1 }
 0x245   : > { %v4834_v39 = vadd.f32 %v4810_v9, %v4408_v1  ;;  %v10952_v46 = vadd.f32 %v5010_v57, %v4833_v21 }
 0x246   : > { %v4814_v40 = vpop.f32.mrf.mxu1 }
 0x247   : > { %v4835_v15 = vadd.f32 %v4814_v40, %v4409_v63  ;;  %v10954_v19 = vadd.f32 %v5012_v62, %v4834_v39 }
 0x248   : > { %v4816_v20 = vpop.f32.mrf.mxu1 }
 0x249   : > { %v4836_v0 = vadd.f32 %v4816_v20, %v4410_v56  ;;  %v10956_v60 = vadd.f32 %v5016_v30, %v4835_v15 }
 0x24a   : > { %v4818_v25 = vpop.f32.mrf.mxu1 }
 0x24b   : > { %v4837_v34 = vadd.f32 %v4818_v25, %v4411_v11  ;;  %v10958_v43 = vadd.f32 %v5018_v42, %v4836_v0 }
 0x24c   : > { %v4820_v4 = vpop.f32.mrf.mxu1 }
 0x24d   : > { %11304 = vst [vmem:[#allocation11_spill] sm:$0xff] %v10958_v43  ;;  %v4838_v10 = vadd.f32 %v4820_v4, %v4412_v35  ;;  %v10960_v37 = vadd.f32 %v5020_v8, %v4837_v34 }
 0x24e   : > { %v10964_v17 = vpop.f32.mrf.mxu1 }
 0x24f   : > { %11305 = vst [vmem:[#allocation17_spill] sm:$0xff] %v10960_v37  ;;  %v10962_v1 = vadd.f32 %v5022_v52, %v4838_v10 }
 0x250   : > { %v10966_v63 = vpop.f32.mrf.mxu1 }
 0x251   : > { %11306 = vst [vmem:[#allocation13_spill] sm:$0xff] %v10962_v1 }
 0x252   : > { %v10968_v18 = vpop.f32.mrf.mxu1 }
 0x254   : > { %v10970_v12 = vpop.f32.mrf.mxu1 }
 0x256   : > { %v10972_v11 = vpop.f32.mrf.mxu1 }
 0x258   : > { %v10976_v35 = vpop.f32.mrf.mxu1 }
 0x25a   : > { %v10982_v24 = vpop.f32.mrf.mxu1 }
 0x25c   : > { %v5326_v56 = vpop.f32.mrf.mxu0  ;;  %v10988_v2 = vpop.f32.mrf.mxu1 }
 0x25e   : > { %v5328_v22 = vpop.f32.mrf.mxu0  ;;  %v10992_v5 = vpop.f32.mrf.mxu1 }
 0x260   : > { %v5330_v61 = vpop.f32.mrf.mxu0  ;;  %v10998_v47 = vpop.f32.mrf.mxu1 }
 0x262   : > { %v10974_v36 = vpop.f32.mrf.mxu0  ;;  %v11004_v50 = vpop.f32.mrf.mxu1 }
 0x264   : > { %v10978_v38 = vpop.f32.mrf.mxu0  ;;  %v11010_v62 = vpop.f32.mrf.mxu1 }
 0x265   : > { %11309 = vst [vmem:[#allocation18_spill] sm:$0xff] %v11010_v62 }
 0x266   : > { %v10980_v41 = vpop.f32.mrf.mxu0  ;;  %v11014_v54 = vpop.f32.mrf.mxu1 }
 0x267   : > { %11311 = vst [vmem:[#allocation16_spill] sm:$0xff] %v11014_v54 }
 0x268   : > { %v10984_v3 = vpop.f32.mrf.mxu0  ;;  %v11016_v53 = vpop.f32.mrf.mxu1 }
 0x269   : > { %11312 = vst [vmem:[#allocation20_spill] sm:$0xff] %v11016_v53 }
 0x26a   : > { %v10986_v6 = vpop.f32.mrf.mxu0  ;;  %v11020_v51 = vpop.f32.mrf.mxu1 }
 0x26b   : > { %11313 = vst [vmem:[#allocation10_spill] sm:$0xff] %v11020_v51 }
 0x26c   : > { %v10990_v44 = vpop.f32.mrf.mxu0  ;;  %v11024_v21 = vpop.f32.mrf.mxu1 }
 0x26d   : > { %11314 = vst [vmem:[#allocation12_spill] sm:$0xff] %v11024_v21 }
 0x26e   : > { %v10994_v59 = vpop.f32.mrf.mxu0 }
 0x270   : > { %v10996_v14 = vpop.f32.mrf.mxu0 }
 0x272   : > { %v11000_v57 = vpop.f32.mrf.mxu0 }
 0x274   : > { %v11002_v49 = vpop.f32.mrf.mxu0 }
 0x276   : > { %v11006_v23 = vpop.f32.mrf.mxu0 }
 0x277   : > { %11307 = vst [vmem:[#allocation14_spill] sm:$0xff] %v11006_v23 }
 0x278   : > { %v11008_v7 = vpop.f32.mrf.mxu0 }
 0x279   : > { %11308 = vst [vmem:[#allocation15_spill] sm:$0xff] %v11008_v7 }
 0x27a   : > { %v11012_v32 = vpop.f32.mrf.mxu0 }
 0x27b   : > { %11310 = vst [vmem:[#allocation19_spill] sm:$0xff] %v11012_v32 }
 0x27c   : > { %v6308_v55 = vpop.f32.mrf.mxu0 }
 0x27e   : > { %v11018_v30 = vpop.f32.mrf.mxu0 }
 0x280   : > { %v11022_v48 = vpop.f32.mrf.mxu0 }
 0x282   : > { %v11026_v9 = vpop.f32.mrf.mxu0 }
 0x284   : > { %v11028_v39 = vpop.f32.mrf.mxu0 }
 0x286   : > { %v11030_v20 = vpop.f32.mrf.mxu0 }
 0x287   : > { %11315 = vst [vmem:[#allocation21_spill] sm:$0xff] %v11030_v20 }
 0x288   : > { %v11032_v25 = vpop.f32.mrf.mxu0 }
 0x289   : > { %11316 = vst [vmem:[#allocation22_spill] sm:$0xff] %v11032_v25  ;;  %v6993_v25 = vlaneseq }
 0x28a   : > { %v11038_v52 = vpop.f32.mrf.mxu0 }
 0x28b   : > { %11317 = vst [vmem:[#allocation23_spill] sm:$0xff] %v11038_v52 }
 0x28c   : > { %v11044_v51 = vpop.f32.mrf.mxu0 }
 0x28d   : > { %11319 = vst [vmem:[#allocation25_spill] sm:$0xff] %v11044_v51 }
 0x28e   : > { %v6106_v42 = vpop.f32.mrf.mxu1  ;;  %v11050_v7 = vpop.f32.mrf.mxu0 }
 0x28f   : > { %11322 = vst [vmem:[#allocation28_spill] sm:$0xff] %v11050_v7  ;;  %v5365_v7 = vadd.f32 %v5326_v56, %v10924_v26  ;;  %v5368_v26 = vadd.f32 %v10974_v36, %v10933_v27 }
 0x290   : > { %v6108_v40 = vpop.f32.mrf.mxu1  ;;  %v11054_v53 = vpop.f32.mrf.mxu0 }
 0x291   : > { %11324 = vst [vmem:[#allocation30_spill] sm:$0xff] %v11054_v53  ;;  %v5578_v27 = vadd.f32 %v10970_v12, %v5368_v26 }
 0x292   : > { %v6110_v15 = vpop.f32.mrf.mxu1  ;;  %v11060_v52 = vpop.f32.mrf.mxu0 }
 0x293   : > { %11327 = vst [vmem:[#allocation33_spill] sm:$0xff] %v11060_v52  ;;  %v5367_v52 = vadd.f32 %v5330_v61, %v10930_v16 }
 0x294   : > { %v6112_v8 = vpop.f32.mrf.mxu1  ;;  %v11066_v51 = vpop.f32.mrf.mxu0 }
 0x295   : > { %11330 = vst [vmem:[#allocation36_spill] sm:$0xff] %v11066_v51  ;;  %v5577_v16 = vadd.f32 %v10968_v18, %v5367_v52  ;;  %v5372_v18 = vadd.f32 %v10986_v6, %v10946_v58 }
 0x296   : > { %v6116_v0 = vpop.f32.mrf.mxu1 }
 0x298   : > { %v11034_v34 = vpop.f32.mrf.mxu1 }
 0x29a   : > { %v11036_v4 = vpop.f32.mrf.mxu1 }
 0x29c   : > { %v11040_v10 = vpop.f32.mrf.mxu1 }
 0x29e   : > { %v11042_v21 = vpop.f32.mrf.mxu1 }
 0x29f   : > { %11318 = vst [vmem:[#allocation24_spill] sm:$0xff] %v11042_v21 }
 0x2a0   : > { %v11046_v32 = vpop.f32.mrf.mxu1 }
 0x2a1   : > { %11320 = vst [vmem:[#allocation26_spill] sm:$0xff] %v11046_v32 }
 0x2a2   : > { %v11048_v1 = vpop.f32.mrf.mxu1 }
 0x2a3   : > { %11321 = vst [vmem:[#allocation27_spill] sm:$0xff] %v11048_v1 }
 0x2a4   : > { %v11052_v37 = vpop.f32.mrf.mxu1 }
 0x2a5   : > { %11323 = vst [vmem:[#allocation29_spill] sm:$0xff] %v11052_v37  ;;  %v11069_v37 = vpop.f32.mrf.mxu0 }
 0x2a6   : > { %v11056_v54 = vpop.f32.mrf.mxu1  ;;  %11331 = vst [vmem:[#allocation37_spill] sm:$0xff] %v11069_v37 }
 0x2a7   : > { %11325 = vst [vmem:[#allocation31_spill] sm:$0xff] %v11056_v54  ;;  %v5366_v54 = vadd.f32 %v5328_v22, %v10927_v33  ;;  %v5369_v33 = vadd.f32 %v10978_v38, %v10937_v45  ;;  %v5370_v45 = vadd.f32 %v10980_v41, %v10940_v28 }
 0x2a8   : > { %v11058_v23 = vpop.f32.mrf.mxu1 }
 0x2a9   : > { %11326 = vst [vmem:[#allocation32_spill] sm:$0xff] %v11058_v23  ;;  %v6994_v23 = vshrl.u32 %v6993_v25, 7  ;;  %v5576_v37 = vadd.f32 %v10966_v63, %v5366_v54  ;;  %v5579_v63 = vadd.f32 %v10972_v11, %v5369_v33  ;;  %v5373_v11 = vadd.f32 %v10990_v44, %v10948_v29  ;;  %v11334_v33 = vld [vmem:[#allocation21_spill] sm:$0xff] }
 0x2aa   : > { %v11062_v43 = vpop.f32.mrf.mxu1  ;;  %v5580_v58 = vadd.f32 %v10976_v35, %v5370_v45  ;;  %v5375_v35 = vadd.f32 %v10996_v14, %v10952_v46  ;;  %v11340_v45 = vld [vmem:[#allocation14_spill] sm:$0xff] }
 0x2ab   : > { %11328 = vst [vmem:[#allocation34_spill] sm:$0xff] %v11062_v43  ;;  %v5575_v43 = vadd.f32 %v10964_v17, %v5365_v7  ;;  %v6146_v20 = vadd.f32 %v6108_v40, %v5576_v37  ;;  %v6995_v17 = vsub.s32 0, %v6994_v23  ;;  %v6991_v7 = vld [vmem:[#allocation6] sm:$0x3]  ;;  %v5371_v37 = vadd.f32 %v10984_v3, %v10943_v13 }
 0x2ac   : > { %v11064_v62 = vpop.f32.mrf.mxu1 }
 0x2ad   : > { %11329 = vst [vmem:[#allocation35_spill] sm:$0xff] %v11064_v62  ;;  %v11076_v62 = vpop.f32.mrf.mxu0  ;;  %v6145_v56 = vadd.f32 %v6106_v42, %v5575_v43  ;;  %v6999_v43 = vsub.s32 1, %v6994_v23  ;;  %v6348_v54 = vadd.f32 %v11018_v30, %v6146_v20  ;;  %v11103_v12 = vrot.slane %v6991_v7, %v6995_v17  ;;  %v11336_v17 = vld [vmem:[#allocation22_spill] sm:$0xff] }
 0x2ae   : > { %v6936_v32 = vpop.f32.mrf.mxu1  ;;  %11332 = vst [vmem:[#allocation38_spill] sm:$0xff] %v11076_v62  ;;  %v6149_v23 = vadd.f32 %v6116_v0, %v5579_v63  ;;  %v5581_v6 = vadd.f32 %v10982_v24, %v5371_v37  ;;  %v5582_v30 = vadd.f32 %v10988_v2, %v5372_v18  ;;  %v6150_v24 = vadd.f32 %v11034_v34, %v5580_v58  ;;  %v11339_v63 = vld [vmem:[#allocation11_spill] sm:$0xff] }
 0x2af   : > { %v11088_v61 = vpop.f32.mrf.mxu0  ;;  %v6347_v62 = vadd.f32 %v6308_v55, %v6145_v56  ;;  %v6148_v55 = vadd.f32 %v6112_v8, %v5578_v27  ;;  %v11108_v40 = vrot.slane %v6991_v7, %v6999_v43  ;;  %v5378_v37 = vadd.f32 %v11340_v45, %v11339_v63  ;;  %v11341_v18 = vld [vmem:[#allocation23_spill] sm:$0xff] }
 0x2b0   : > { %v6938_v1 = vpop.f32.mrf.mxu1  ;;  %v6351_v2 = vadd.f32 %v11028_v39, %v6149_v23  ;;  %v6152_v52 = vadd.f32 %v11040_v10, %v5582_v30 }
 0x2b1   : > { %v6350_v29 = vadd.f32 %v11026_v9, %v6148_v55 }
 0x2b2   : > { %v6940_v53 = vpop.f32.mrf.mxu1 }
 0x2b4   : > { %v11072_v21 = vpop.f32.mrf.mxu1 }
 0x2b6   : > { %v11078_v51 = vpop.f32.mrf.mxu1 }
 0x2b7   : > { %11333 = vst [vmem:[#allocation39_spill] sm:$0xff] %v11078_v51  ;;  %v6147_v51 = vadd.f32 %v6110_v15, %v5577_v16  ;;  %v6352_v16 = vadd.f32 %v11334_v33, %v6150_v24  ;;  %v11346_v24 = vld [vmem:[#allocation20_spill] sm:$0xff] }
 0x2b8   : > { %v11085_v22 = vpop.f32.mrf.mxu1 }
 0x2b9   : > { %v6349_v41 = vadd.f32 %v11022_v48, %v6147_v51  ;;  %v5583_v48 = vadd.f32 %v10992_v5, %v5373_v11  ;;  %v5376_v5 = vadd.f32 %v11000_v57, %v10954_v19  ;;  %v11335_v19 = vld [vmem:[#allocation24_spill] sm:$0xff]  ;;  %v11342_v11 = vld [vmem:[#allocation26_spill] sm:$0xff] }
 0x2ba   : > { %v11090_v25 = vpop.f32.mrf.mxu1 }
 0x2bb   : > { %v6153_v57 = vadd.f32 %v11335_v19, %v5583_v48 }
 0x2bc   : > { %v6734_v36 = vpop.f32.mrf.mxu0  ;;  %v11100_v38 = vpop.f32.mrf.mxu1 }
 0x2bd   : > { %v6773_v42 = vadd.f32 %v6734_v36, %v6347_v62  ;;  %v5374_v62 = vadd.f32 %v10994_v59, %v10950_v31  ;;  %v6151_v31 = vadd.f32 %v11036_v4, %v5581_v6  ;;  %v6354_v36 = vadd.f32 %v11341_v18, %v6152_v52  ;;  %v11344_v6 = vld [vmem:[#allocation25_spill] sm:$0xff] }
 0x2be   : > { %v6736_v28 = vpop.f32.mrf.mxu0  ;;  %v11115_v20 = vpop.f32.mrf.mxu1  ;;  %v11337_v27 = vld [vmem:[#allocation39_spill] sm:$0xff]  ;;  %v6355_v30 = vadd.f32 %v11344_v6, %v6153_v57  ;;  %v11354_v57 = vld [vmem:[#allocation30_spill] sm:$0xff] }
 0x2bf   : > { %v6975_v13 = vadd.f32 %v6936_v32, %v6773_v42  ;;  %v6774_v3 = vadd.f32 %v6736_v28, %v6348_v54 }
 0x2c0   : > { %v6738_v15 = vpop.f32.mrf.mxu0  ;;  %v11130_v34 = vpop.f32.mrf.mxu1 }
 0x2c1   : > { %v7003_v44 = vadd.f32 %v11103_v12, %v6975_v13  ;;  %v6976_v32 = vadd.f32 %v6938_v1, %v6774_v3  ;;  %v6775_v51 = vadd.f32 %v6738_v15, %v6349_v41  ;;  %v5584_v1 = vadd.f32 %v10998_v47, %v5374_v62  ;;  %v11343_v3 = vld [vmem:[#allocation16_spill] sm:$0xff] }
 0x2c2   : > { %v6740_v8 = vpop.f32.mrf.mxu0  ;;  %v5377_v47 = vadd.f32 %v11002_v49, %v10956_v60  ;;  %v11338_v60 = vld [vmem:[#allocation18_spill] sm:$0xff]  ;;  %v6960_v42 = vpop.f32.mrf.mxu1 }
 0x2c3   : > { %v7004_v59 = vadd.f32 %v11108_v40, %v6976_v32  ;;  %v6977_v0 = vadd.f32 %v6940_v53, %v6775_v51  ;;  %v6776_v9 = vadd.f32 %v6740_v8, %v6350_v29  ;;  %v7019_v46 = vmax.f32 %v7003_v44, 0.0  ;;  %v11345_v44 = vld [vmem:[#allocation27_spill] sm:$0xff]  ;;  %v11347_v8 = vld [vmem:[#allocation17_spill] sm:$0xff] }
 0x2c4   : > { %v6744_v14 = vpop.f32.mrf.mxu0  ;;  %v5585_v53 = vadd.f32 %v11004_v50, %v5375_v35  ;;  %v5586_v49 = vadd.f32 %v11338_v60, %v5376_v5  ;;  %v6154_v23 = vadd.f32 %v11342_v11, %v5584_v1  ;;  %v5587_v58 = vadd.f32 %v11343_v3, %v5377_v47  ;;  %v11360_v3 = vld [vmem:[#allocation34_spill] sm:$0xff] }
 0x2c5   : > { %v7020_v39 = vmax.f32 %v7004_v59, 0.0  ;;  %v7005_v26 = vadd.f32 %v11103_v12, %v6977_v0  ;;  %v6978_v4 = vadd.f32 %v11072_v21, %v6776_v9  ;;  %v6777_v56 = vadd.f32 %v6744_v14, %v6351_v2  ;;  %v11349_v0 = vld [vmem:[#allocation13_spill] sm:$0xff]  ;;  %v11350_v9 = vld [vmem:[#allocation19_spill] sm:$0xff] }
 0x2c6   : > { %v6746_v10 = vpop.f32.mrf.mxu0  ;;  %v6353_v21 = vadd.f32 %v11336_v17, %v6151_v31  ;;  %v6155_v32 = vadd.f32 %v11345_v44, %v5585_v53  ;;  %v5588_v2 = vadd.f32 %v11346_v24, %v5378_v37  ;;  %v11348_v31 = vld [vmem:[#allocation15_spill] sm:$0xff]  ;;  %v5380_v1 = vadd.f32 %v11350_v9, %v11349_v0  ;;  %v11363_v0 = vld [vmem:[#allocation38_spill] sm:$0xff] }
 0x2c7   : > { %v8079_v7 = vpack.c.bf16 %v7020_v39, %v7019_v46  ;;  %v7006_v50 = vadd.f32 %v11108_v40, %v6978_v4  ;;  %v6979_v43 = vadd.f32 %v11337_v27, %v6777_v56  ;;  %v6778_v54 = vadd.f32 %v6746_v10, %v6352_v16  ;;  %v6962_v46 = vpop.f32.mrf.mxu1  ;;  %v11352_v4 = vld [vmem:[#allocation29_spill] sm:$0xff]  ;;  %v11353_v53 = vld [vmem:[#allocation31_spill] sm:$0xff] }
 0x2c8   : > { %v6748_v55 = vpop.f32.mrf.mxu0  ;;  %v7021_v28 = vmax.f32 %v7005_v26, 0.0  ;;  %v5379_v59 = vadd.f32 %v11348_v31, %v11347_v8  ;;  %v6156_v56 = vadd.f32 %v11352_v4, %v5586_v49  ;;  %v6157_v47 = vadd.f32 %v11353_v53, %v5587_v58 }
 0x2c9   : > { %7099 = vst [vmem:[%s11144_s5] sm:$0xff] %v8079_v7  ;;  %v7022_v41 = vmax.f32 %v7006_v50, 0.0  ;;  %v6779_v13 = vadd.f32 %v6748_v55, %v6353_v21  ;;  %v7007_v62 = vadd.f32 %v11103_v12, %v6979_v43  ;;  %v6980_v15 = vadd.f32 %v11085_v22, %v6778_v54  ;;  %v11351_v22 = vld [vmem:[#allocation28_spill] sm:$0xff]  ;;  %v11355_v50 = vld [vmem:[#allocation10_spill] sm:$0xff]  ;;  %v6966_v45 = vpop.f32.mrf.mxu1 }
 0x2ca   : > { %v6750_v29 = vpop.f32.mrf.mxu0  ;;  %v6356_v14 = vadd.f32 %v11351_v22, %v6154_v23  ;;  %v6357_v10 = vadd.f32 %v11354_v57, %v6155_v32  ;;  %v5589_v27 = vadd.f32 %v11355_v50, %v5379_v59  ;;  %v11356_v43 = vld [vmem:[#allocation32_spill] sm:$0xff]  ;;  %v11358_v23 = vld [vmem:[#allocation33_spill] sm:$0xff] }
 0x2cb   : > { %v8080_v51 = vpack.c.bf16 %v7022_v41, %v7021_v28  ;;  %v6981_v48 = vadd.f32 %v11090_v25, %v6779_v13  ;;  %v6780_v35 = vadd.f32 %v6750_v29, %v6354_v36  ;;  %v7008_v5 = vadd.f32 %v11108_v40, %v6980_v15  ;;  %v11357_v55 = vld [vmem:[#allocation12_spill] sm:$0xff]  ;;  %v11361_v15 = vld [vmem:[#allocation37_spill] sm:$0xff] }
 0x2cc   : > { %v6754_v52 = vpop.f32.mrf.mxu0  ;;  %v7023_v33 = vmax.f32 %v7007_v62, 0.0  ;;  %v5590_v11 = vadd.f32 %v11357_v55, %v5380_v1  ;;  %v11359_v28 = vld [vmem:[#allocation36_spill] sm:$0xff]  ;;  %v6159_v58 = vadd.f32 %v11360_v3, %v5589_v27 }
 0x2cd   : > { %7100 = vst [vmem:[%s11144_s5 + $0x8] sm:$0xff] %v8080_v51  ;;  %v7009_v39 = vadd.f32 %v11103_v12, %v6981_v48  ;;  %v6982_v25 = vadd.f32 %v11100_v38, %v6780_v35  ;;  %v6781_v26 = vadd.f32 %v6754_v52, %v6355_v30  ;;  %v7024_v16 = vmax.f32 %v7008_v5, 0.0  ;;  %v11362_v51 = vld [vmem:[#allocation35_spill] sm:$0xff] }
 0x2ce   : > { %v6756_v19 = vpop.f32.mrf.mxu0  ;;  %v6158_v38 = vadd.f32 %v11356_v43, %v5588_v2  ;;  %v6359_v41 = vadd.f32 %v11359_v28, %v6157_v47  ;;  %v6160_v48 = vadd.f32 %v11362_v51, %v5590_v11  ;;  %v6361_v9 = vadd.f32 %v11363_v0, %v6159_v58 }
 0x2cf   : > { %v7010_v17 = vadd.f32 %v11108_v40, %v6982_v25  ;;  %v6983_v21 = vadd.f32 %v11115_v20, %v6781_v26  ;;  %v6782_v7 = vadd.f32 %v6756_v19, %v6356_v14  ;;  %v8081_v60 = vpack.c.bf16 %v7024_v16, %v7023_v33 }
 0x2d0   : > { %v7025_v63 = vmax.f32 %v7009_v39, 0.0  ;;  %v6758_v49 = vpop.f32.mrf.mxu0  ;;  %v6358_v20 = vadd.f32 %v11358_v23, %v6156_v56  ;;  %v6360_v29 = vadd.f32 %v11361_v15, %v6158_v38  ;;  %v6362_v39 = vadd.f32 %v11088_v61, %v6160_v48 }
 0x2d1   : > { %v7026_v37 = vmax.f32 %v7010_v17, 0.0  ;;  %v7011_v18 = vadd.f32 %v11103_v12, %v6983_v21  ;;  %v6984_v36 = vadd.f32 %v11130_v34, %v6782_v7  ;;  %v6783_v54 = vadd.f32 %v6758_v49, %v6357_v10  ;;  %7101 = vst [vmem:[%s11144_s5 + $0x10] sm:$0xff] %v8081_v60  ;;  %v6968_v34 = vpop.f32.mrf.mxu1 }
 0x2d2   : > { %v6760_v13 = vpop.f32.mrf.mxu0 }
 0x2d3   : > { %v8082_v6 = vpack.c.bf16 %v7026_v37, %v7025_v63  ;;  %v7012_v30 = vadd.f32 %v11108_v40, %v6984_v36  ;;  %v6985_v62 = vadd.f32 %v6960_v42, %v6783_v54  ;;  %v6784_v44 = vadd.f32 %v6760_v13, %v6358_v20  ;;  %v6970_v22 = vpop.f32.mrf.mxu1 }
 0x2d4   : > { %v6764_v32 = vpop.f32.mrf.mxu0  ;;  %v7027_v35 = vmax.f32 %v7011_v18, 0.0 }
 0x2d5   : > { %7102 = vst [vmem:[%s11144_s5 + $0x18] sm:$0xff] %v8082_v6  ;;  %v7028_v24 = vmax.f32 %v7012_v30, 0.0  ;;  %v6785_v2 = vadd.f32 %v6764_v32, %v6359_v41  ;;  %v7013_v8 = vadd.f32 %v11103_v12, %v6985_v62  ;;  %v6986_v31 = vadd.f32 %v6962_v46, %v6784_v44  ;;  %v6972_v57 = vpop.f32.mrf.mxu1 }
 0x2d6   : > { %v6766_v59 = vpop.f32.mrf.mxu0 }
 0x2d7   : > { %v8083_v1 = vpack.c.bf16 %v7028_v24, %v7027_v35  ;;  %v6987_v42 = vadd.f32 %v6966_v45, %v6785_v2  ;;  %v6786_v5 = vadd.f32 %v6766_v59, %v6360_v29  ;;  %v7014_v52 = vadd.f32 %v11108_v40, %v6986_v31 }
 0x2d8   : > { %v6768_v14 = vpop.f32.mrf.mxu0  ;;  %v7029_v46 = vmax.f32 %v7013_v8, 0.0 }
 0x2d9   : > { %7103 = vst [vmem:[%s11144_s5 + $0x20] sm:$0xff] %v8083_v1  ;;  %v7015_v25 = vadd.f32 %v11103_v12, %v6987_v42  ;;  %v6988_v26 = vadd.f32 %v6968_v34, %v6786_v5  ;;  %v6787_v4 = vadd.f32 %v6768_v14, %v6361_v9  ;;  %v7030_v56 = vmax.f32 %v7014_v52, 0.0 }
 0x2da   : > { %v6770_v53 = vpop.f32.mrf.mxu0 }
 0x2db   : > { %v7016_v47 = vadd.f32 %v11108_v40, %v6988_v26  ;;  %v6989_v33 = vadd.f32 %v6970_v22, %v6787_v4  ;;  %v6788_v16 = vadd.f32 %v6770_v53, %v6362_v39  ;;  %v8084_v19 = vpack.c.bf16 %v7030_v56, %v7029_v46 }
 0x2dc   : > { %v7031_v10 = vmax.f32 %v7015_v25, 0.0 }
 0x2dd   : > { %v7032_v17 = vmax.f32 %v7016_v47, 0.0  ;;  %v7017_v61 = vadd.f32 %v11103_v12, %v6989_v33  ;;  %v6990_v21 = vadd.f32 %v6972_v57, %v6788_v16  ;;  %7104 = vst [vmem:[%s11144_s5 + $0x28] sm:$0xff] %v8084_v19 }
 0x2df   : > { %v8085_v7 = vpack.c.bf16 %v7032_v17, %v7031_v10  ;;  %v7018_v50 = vadd.f32 %v11108_v40, %v6990_v21  ;;  %v7033_v27 = vmax.f32 %v7017_v61, 0.0 }
 0x2e1   : > { %7105 = vst [vmem:[%s11144_s5 + $0x30] sm:$0xff] %v8085_v7  ;;  %v7034_v43 = vmax.f32 %v7018_v50, 0.0 }
 0x2e3   : > { %v8086_v38 = vpack.c.bf16 %v7034_v43, %v7033_v27 }
 0x2e5   : > { %7106 = vst [vmem:[%s11144_s5 + $0x38] sm:$0xff] %v8086_v38 }
 0x2e6 PF: > { %s21_s29 = sadd.s32 1, %s8887_s29   ;;  %s11364_s3 = smov %s8883_s28 }
 0x2e7   : > { %p18_p4 = scmp.ge.s32.totalorder %s21_s29, 4   ;;  %s11365_s28 = smov %s11367_s30 }
 0x2e9   :  { %20 = sbr.rel (!%p18_p4) target bundleno = 3 (0x3), region = 132 }
 0x2ee   :  { %7139 = vsyncpa [#allocation5], 1 }
 0x2ef   :  { %7141 = vsyncpa [#allocation5 + $0x1], 1 }
 0x2f0   :  { %7142 = vsyncpa [#allocation7], 1 }

</bundles_post_ra>
